<compile_context>
chip_gen: v7x
topology: tpu7x:2x2x1
jax: 0.10.0
libtpu: 0.0.40
codegen_flags: <defaults>
</compile_context>

<pallas_src>
from functools import partial

import jax
import jax.numpy as jnp
from jax.experimental import pallas as pl
from jax.experimental.pallas import tpu as pltpu

K = 7                 # ConvTranspose2d kernel size
C_IN = 3
C_OUT = 64
KC = K * C_IN         # 21  contraction rows per kw tap, ordered (kh, ci)
KC_PAD = 24           # padded to a sublane multiple of 8 (f32)
TH = 16               # output rows per grid step -> tile lane width = TH * WF (>= 2048)


def _kernel(x_ref, w_ref, b_ref, o_ref, p_ref, *, wf, m, m_ext, w_out):
    # x_ref: (C_IN, H_img*WF) f32 -- whole padded image, flat per channel (resident per image)
    # w_ref: (K, C_OUT, KC_PAD) f32 -- per-kw flipped/packed weights
    # b_ref: (C_OUT, 1)         f32
    # o_ref: (C_OUT, TH, W_out) f32 -- NCHW output tile (C_out on sublanes, W_out on lanes)
    # p_ref: (KC_PAD, M_EXT)    f32 -- row-shifted slab scratch ("fused im2col")
    r = pl.program_id(1)
    row0 = r * TH

    # Zero the scratch once (covers the 3 contraction-padding rows 21..23); the slab copies
    # below overwrite rows [0, 21).
    p_ref[...] = jnp.zeros_like(p_ref)

    # Slab build: p[kh*C_IN + ci, th*WF + w'] = x_pad[ci, row0 + kh + th, w'].
    # One contiguous, 128-lane-aligned copy per kh covering all 3 channels and TH(+1) rows.
    for kh in range(K):
        src = pl.multiple_of((row0 + kh) * wf, 128)
        p_ref[kh * C_IN:(kh + 1) * C_IN, :] = x_ref[:, pl.ds(src, m_ext)]

    # out[co, th*WF + wo] = sum_kw  W_kw[co, :] . p[:, th*WF + wo + kw]
    # (the kw shift is a static slice of the flattened slabs -- no gathers, no rolls)
    pv = p_ref[...]
    acc = jnp.dot(w_ref[0], pv[:, 0:m], preferred_element_type=jnp.float32)
    for kw in range(1, K):
        acc = acc + jnp.dot(w_ref[kw], pv[:, kw:kw + m],
                            preferred_element_type=jnp.float32)

    # f32 epilogue (bias + ReLU) -- keep f32 for v5e's VPU.
    acc = jnp.maximum(acc + b_ref[...], 0.0)

    # Store TH lane-aligned row slices straight into the NCHW output block
    # (columns >= W_out of each flattened row are padding and never stored).
    for th in range(TH):
        o_ref[:, th, :] = acc[:, th * wf: th * wf + w_out]


def pack_params(w, b):
    """One-time repack of ConvTranspose2d params (hoisted out of the forward path).

    w: (C_IN, C_OUT, K, K) PyTorch layout; b: (C_OUT,).
    Returns w_packed (K, C_OUT, KC_PAD) with w_packed[kw, co, kh*C_IN+ci] = w[ci,co,K-1-kh,K-1-kw],
    and bias (C_OUT, 1), both f32.
    """
    w_flip = w[:, :, ::-1, ::-1]                        # flip both spatial taps
    wt = jnp.transpose(w_flip, (3, 1, 2, 0))            # -> (kw, co, kh, ci)
    wt = wt.reshape(K, C_OUT, K * C_IN)                 # contraction index = kh*C_IN + ci
    w_packed = jnp.zeros((K, C_OUT, KC_PAD), jnp.float32)
    w_packed = w_packed.at[:, :, :KC].set(wt.astype(jnp.float32))
    b_packed = b.reshape(C_OUT, 1).astype(jnp.float32)
    return w_packed, b_packed


@jax.jit
def convtranspose2d_relu(x, w_packed, b_packed):
    """x: (N, C_IN, H, W) f32 NCHW; params from pack_params(). Returns f32 NCHW output."""
    N, _, H, W = x.shape
    P = K - 1
    H_out, W_out = H + P, W + P
    WF = pl.cdiv(W + 2 * P, 128) * 128      # padded image row width (lane dim, 128-aligned)
    H_out_pad = pl.cdiv(H_out, TH) * TH
    H_img = H_out_pad + K                   # halo rows + 1 spare row for the M_EXT overread
    L = H_img * WF
    M = TH * WF                             # output-tile lane width
    M_EXT = M + 128                         # one extra lane tile so the kw-shifted slice fits

    # Only wrapper-side prep on the activation path: zero-pad the tiny 3-channel input and
    # flatten each channel row-major (free minor-dims-merge reshape).  ~1x the input bytes.
    x_pad = jnp.pad(x.astype(jnp.float32),
                    ((0, 0), (0, 0), (P, H_img - P - H), (P, WF - P - W)))
    x_flat = x_pad.reshape(N, C_IN, L)

    kernel = partial(_kernel, wf=WF, m=M, m_ext=M_EXT, w_out=W_out)
    out = pl.pallas_call(
        kernel,
        out_shape=jax.ShapeDtypeStruct((N, C_OUT, H_out_pad, W_out), jnp.float32),
        grid=(N, H_out_pad // TH),
        in_specs=[
            # Whole padded image resident in VMEM (re-DMA'd only when n changes).
            # TODO(synk): for very tall/wide images (e.g. 525x800 at f32) shrink TH or raise
            # vmem_limit_bytes; at the test sizes this is a few hundred KB.
            pl.BlockSpec((None, C_IN, L), lambda n, r: (n, 0, 0)),
            pl.BlockSpec((K, C_OUT, KC_PAD), lambda n, r: (0, 0, 0)),
            pl.BlockSpec((C_OUT, 1), lambda n, r: (0, 0)),
        ],
        out_specs=pl.BlockSpec((None, C_OUT, TH, W_out), lambda n, r: (n, 0, r, 0)),
        scratch_shapes=[pltpu.VMEM((KC_PAD, M_EXT), jnp.float32)],
        compiler_params=pltpu.CompilerParams(
            dimension_semantics=("parallel", "parallel")),
    )(x_flat, w_packed, b_packed)

    if H_out_pad != H_out:
        out = out[:, :, :H_out, :]
    return out


def reference_convtranspose2d_relu(x, w, b):
    """Direct scatter-form transcription of ConvTranspose2d + ReLU, pure JAX f32."""
    N, _, H, W = x.shape
    H_out, W_out = H + K - 1, W + K - 1
    y = jnp.zeros((N, C_OUT, H_out, W_out), jnp.float32)
    for kh in range(K):
        for kw in range(K):
            contrib = jnp.einsum('nchw,co->nohw', x, w[:, :, kh, kw],
                                 precision='highest')
            y = y.at[:, :, kh:kh + H, kw:kw + W].add(contrib)
    return jnp.maximum(y + b[None, :, None, None], 0.0)


if __name__ == "__main__":
    key = jax.random.PRNGKey(0)
    kx, kwt, kb = jax.random.split(key, 3)

    # Small shapes consistent with the module: C_in=3 -> C_out=64, K=7 (output 32 x 32).
    N, H, W = 2, 26, 26
    x1 = jax.random.normal(kx, (N, C_IN, H, W), dtype=jnp.float32)
    weight = 0.1 * jax.random.normal(kwt, (C_IN, C_OUT, K, K), dtype=jnp.float32)
    bias = 0.1 * jax.random.normal(kb, (C_OUT,), dtype=jnp.float32)

    w_packed, b_packed = pack_params(weight, bias)     # one-time param repack (hoisted)
    out = jax.block_until_ready(convtranspose2d_relu(x1, w_packed, b_packed))

    ref = reference_convtranspose2d_relu(x1, weight, bias)
    assert out.shape == (N, C_OUT, H + K - 1, W + K - 1), out.shape
    max_err = float(jnp.max(jnp.abs(out - ref)))
    assert jnp.allclose(out, ref, rtol=5e-2, atol=5e-2), max_err

    print("KERNEL_OK")
</pallas_src>

<mosaic_0001>
module attributes {stable_mosaic.version = 11 : i64} {
  func.func @_kernel(%arg0: i32, %arg1: i32, %arg2: memref<1x3x4992xf32, #tpu.memory_space<vmem>>, %arg3: memref<7x64x24xf32, #tpu.memory_space<vmem>>, %arg4: memref<64x1xf32, #tpu.memory_space<vmem>>, %arg5: memref<1x64x16x32xf32, #tpu.memory_space<vmem>>, %arg6: memref<24x2176xf32, #tpu.memory_space<vmem>>) attributes {dimension_semantics = [#tpu.dimension_semantics<parallel>, #tpu.dimension_semantics<parallel>], iteration_bounds = array<i64: 2, 2>, scalar_prefetch = 0 : i64, scratch_operands = 1 : i64, tpu.core_type = #tpu.core_type<tc>, window_params = [{transform_indices = @transform_0, window_bounds = array<i64: 1, 3, 4992>}, {pipeline_mode = #tpu.pipeline_mode<synchronous>, transform_indices = @transform_1, window_bounds = array<i64: 7, 64, 24>}, {pipeline_mode = #tpu.pipeline_mode<synchronous>, transform_indices = @transform_2, window_bounds = array<i64: 64, 1>}, {transform_indices = @transform_3, window_bounds = array<i64: 1, 64, 16, 32>}]} {
    %c16_i32 = arith.constant 16 : i32
    %0 = arith.muli %arg1, %c16_i32 : i32
    %cst = arith.constant 0.000000e+00 : f32
    %1 = vector.broadcast %cst : f32 to vector<24x2176xf32>
    %c0 = arith.constant 0 : index
    %c0_0 = arith.constant 0 : index
    %2 = vector.load %arg6[%c0, %c0_0] : memref<24x2176xf32, #tpu.memory_space<vmem>>, vector<24x2176xf32>
    tpu.vector_store %arg6[%c0, %c0_0], %1 {strides = array<i32>} : memref<24x2176xf32, #tpu.memory_space<vmem>>, vector<24x2176xf32>,
    %c0_i32 = arith.constant 0 : i32
    %3 = arith.addi %0, %c0_i32 : i32
    %c128_i32 = arith.constant 128 : i32
    %4 = arith.muli %3, %c128_i32 : i32
    %5 = tpu.assume_multiple %4, 128 : i32
    %c0_1 = arith.constant 0 : index
    %c0_2 = arith.constant 0 : index
    %6 = arith.index_cast %5 : i32 to index
    %7 = vector.load %arg2[%c0_1, %c0_2, %6] : memref<1x3x4992xf32, #tpu.memory_space<vmem>>, vector<1x3x2176xf32>
    %8 = vector.shape_cast %7 : vector<1x3x2176xf32> to vector<3x2176xf32>
    %c0_3 = arith.constant 0 : index
    %c0_4 = arith.constant 0 : index
    %9 = vector.load %arg6[%c0_3, %c0_4] : memref<24x2176xf32, #tpu.memory_space<vmem>>, vector<3x2176xf32>
    tpu.vector_store %arg6[%c0_3, %c0_4], %8 {strides = array<i32>} : memref<24x2176xf32, #tpu.memory_space<vmem>>, vector<3x2176xf32>,
    %c1_i32 = arith.constant 1 : i32
    %10 = arith.addi %0, %c1_i32 : i32
    %c128_i32_5 = arith.constant 128 : i32
    %11 = arith.muli %10, %c128_i32_5 : i32
    %12 = tpu.assume_multiple %11, 128 : i32
    %c0_6 = arith.constant 0 : index
    %c0_7 = arith.constant 0 : index
    %13 = arith.index_cast %12 : i32 to index
    %14 = vector.load %arg2[%c0_6, %c0_7, %13] : memref<1x3x4992xf32, #tpu.memory_space<vmem>>, vector<1x3x2176xf32>
    %15 = vector.shape_cast %14 : vector<1x3x2176xf32> to vector<3x2176xf32>
    %c3 = arith.constant 3 : index
    %c0_8 = arith.constant 0 : index
    %16 = vector.load %arg6[%c3, %c0_8] : memref<24x2176xf32, #tpu.memory_space<vmem>>, vector<3x2176xf32>
    tpu.vector_store %arg6[%c3, %c0_8], %15 {strides = array<i32>} : memref<24x2176xf32, #tpu.memory_space<vmem>>, vector<3x2176xf32>,
    %c2_i32 = arith.constant 2 : i32
    %17 = arith.addi %0, %c2_i32 : i32
    %c128_i32_9 = arith.constant 128 : i32
    %18 = arith.muli %17, %c128_i32_9 : i32
    %19 = tpu.assume_multiple %18, 128 : i32
    %c0_10 = arith.constant 0 : index
    %c0_11 = arith.constant 0 : index
    %20 = arith.index_cast %19 : i32 to index
    %21 = vector.load %arg2[%c0_10, %c0_11, %20] : memref<1x3x4992xf32, #tpu.memory_space<vmem>>, vector<1x3x2176xf32>
    %22 = vector.shape_cast %21 : vector<1x3x2176xf32> to vector<3x2176xf32>
    %c6 = arith.constant 6 : index
    %c0_12 = arith.constant 0 : index
    %23 = vector.load %arg6[%c6, %c0_12] : memref<24x2176xf32, #tpu.memory_space<vmem>>, vector<3x2176xf32>
    tpu.vector_store %arg6[%c6, %c0_12], %22 {strides = array<i32>} : memref<24x2176xf32, #tpu.memory_space<vmem>>, vector<3x2176xf32>,
    %c3_i32 = arith.constant 3 : i32
    %24 = arith.addi %0, %c3_i32 : i32
    %c128_i32_13 = arith.constant 128 : i32
    %25 = arith.muli %24, %c128_i32_13 : i32
    %26 = tpu.assume_multiple %25, 128 : i32
    %c0_14 = arith.constant 0 : index
    %c0_15 = arith.constant 0 : index
    %27 = arith.index_cast %26 : i32 to index
    %28 = vector.load %arg2[%c0_14, %c0_15, %27] : memref<1x3x4992xf32, #tpu.memory_space<vmem>>, vector<1x3x2176xf32>
    %29 = vector.shape_cast %28 : vector<1x3x2176xf32> to vector<3x2176xf32>
    %c9 = arith.constant 9 : index
    %c0_16 = arith.constant 0 : index
    %30 = vector.load %arg6[%c9, %c0_16] : memref<24x2176xf32, #tpu.memory_space<vmem>>, vector<3x2176xf32>
    tpu.vector_store %arg6[%c9, %c0_16], %29 {strides = array<i32>} : memref<24x2176xf32, #tpu.memory_space<vmem>>, vector<3x2176xf32>,
    %c4_i32 = arith.constant 4 : i32
    %31 = arith.addi %0, %c4_i32 : i32
    %c128_i32_17 = arith.constant 128 : i32
    %32 = arith.muli %31, %c128_i32_17 : i32
    %33 = tpu.assume_multiple %32, 128 : i32
    %c0_18 = arith.constant 0 : index
    %c0_19 = arith.constant 0 : index
    %34 = arith.index_cast %33 : i32 to index
    %35 = vector.load %arg2[%c0_18, %c0_19, %34] : memref<1x3x4992xf32, #tpu.memory_space<vmem>>, vector<1x3x2176xf32>
    %36 = vector.shape_cast %35 : vector<1x3x2176xf32> to vector<3x2176xf32>
    %c12 = arith.constant 12 : index
    %c0_20 = arith.constant 0 : index
    %37 = vector.load %arg6[%c12, %c0_20] : memref<24x2176xf32, #tpu.memory_space<vmem>>, vector<3x2176xf32>
    tpu.vector_store %arg6[%c12, %c0_20], %36 {strides = array<i32>} : memref<24x2176xf32, #tpu.memory_space<vmem>>, vector<3x2176xf32>,
    %c5_i32 = arith.constant 5 : i32
    %38 = arith.addi %0, %c5_i32 : i32
    %c128_i32_21 = arith.constant 128 : i32
    %39 = arith.muli %38, %c128_i32_21 : i32
    %40 = tpu.assume_multiple %39, 128 : i32
    %c0_22 = arith.constant 0 : index
    %c0_23 = arith.constant 0 : index
    %41 = arith.index_cast %40 : i32 to index
    %42 = vector.load %arg2[%c0_22, %c0_23, %41] : memref<1x3x4992xf32, #tpu.memory_space<vmem>>, vector<1x3x2176xf32>
    %43 = vector.shape_cast %42 : vector<1x3x2176xf32> to vector<3x2176xf32>
    %c15 = arith.constant 15 : index
    %c0_24 = arith.constant 0 : index
    %44 = vector.load %arg6[%c15, %c0_24] : memref<24x2176xf32, #tpu.memory_space<vmem>>, vector<3x2176xf32>
    tpu.vector_store %arg6[%c15, %c0_24], %43 {strides = array<i32>} : memref<24x2176xf32, #tpu.memory_space<vmem>>, vector<3x2176xf32>,
    %c6_i32 = arith.constant 6 : i32
    %45 = arith.addi %0, %c6_i32 : i32
    %c128_i32_25 = arith.constant 128 : i32
    %46 = arith.muli %45, %c128_i32_25 : i32
    %47 = tpu.assume_multiple %46, 128 : i32
    %c0_26 = arith.constant 0 : index
    %c0_27 = arith.constant 0 : index
    %48 = arith.index_cast %47 : i32 to index
    %49 = vector.load %arg2[%c0_26, %c0_27, %48] : memref<1x3x4992xf32, #tpu.memory_space<vmem>>, vector<1x3x2176xf32>
    %50 = vector.shape_cast %49 : vector<1x3x2176xf32> to vector<3x2176xf32>
    %c18 = arith.constant 18 : index
    %c0_28 = arith.constant 0 : index
    %51 = vector.load %arg6[%c18, %c0_28] : memref<24x2176xf32, #tpu.memory_space<vmem>>, vector<3x2176xf32>
    tpu.vector_store %arg6[%c18, %c0_28], %50 {strides = array<i32>} : memref<24x2176xf32, #tpu.memory_space<vmem>>, vector<3x2176xf32>,
    %c0_29 = arith.constant 0 : index
    %c0_30 = arith.constant 0 : index
    %52 = vector.load %arg6[%c0_29, %c0_30] : memref<24x2176xf32, #tpu.memory_space<vmem>>, vector<24x2176xf32>
    %c0_31 = arith.constant 0 : index
    %c0_32 = arith.constant 0 : index
    %c0_33 = arith.constant 0 : index
    %53 = vector.load %arg3[%c0_31, %c0_32, %c0_33] : memref<7x64x24xf32, #tpu.memory_space<vmem>>, vector<1x64x24xf32>
    %54 = vector.shape_cast %53 : vector<1x64x24xf32> to vector<64x24xf32>
    %55 = vector.extract_strided_slice %52 {offsets = [0, 0], sizes = [24, 2048], strides = [1, 1]} : vector<24x2176xf32> to vector<24x2048xf32>
    %cst_34 = arith.constant dense<0.000000e+00> : vector<64x2048xf32>
    %56 = tpu.matmul %54, %55, %cst_34 {dimension_numbers = #tpu.dot_dimension_numbers<[1], [0], [0], [1], [0, 0, 1, 1], [], []>} : vector<64x24xf32>, vector<24x2048xf32>, vector<64x2048xf32> -> vector<64x2048xf32>
    %c1 = arith.constant 1 : index
    %c0_35 = arith.constant 0 : index
    %c0_36 = arith.constant 0 : index
    %57 = vector.load %arg3[%c1, %c0_35, %c0_36] : memref<7x64x24xf32, #tpu.memory_space<vmem>>, vector<1x64x24xf32>
    %58 = vector.shape_cast %57 : vector<1x64x24xf32> to vector<64x24xf32>
    %59 = vector.extract_strided_slice %52 {offsets = [0, 1], sizes = [24, 2048], strides = [1, 1]} : vector<24x2176xf32> to vector<24x2048xf32>
    %cst_37 = arith.constant dense<0.000000e+00> : vector<64x2048xf32>
    %60 = tpu.matmul %58, %59, %cst_37 {dimension_numbers = #tpu.dot_dimension_numbers<[1], [0], [0], [1], [0, 0, 1, 1], [], []>} : vector<64x24xf32>, vector<24x2048xf32>, vector<64x2048xf32> -> vector<64x2048xf32>
    %61 = arith.addf %56, %60 : vector<64x2048xf32>
    %c2 = arith.constant 2 : index
    %c0_38 = arith.constant 0 : index
    %c0_39 = arith.constant 0 : index
    %62 = vector.load %arg3[%c2, %c0_38, %c0_39] : memref<7x64x24xf32, #tpu.memory_space<vmem>>, vector<1x64x24xf32>
    %63 = vector.shape_cast %62 : vector<1x64x24xf32> to vector<64x24xf32>
    %64 = vector.extract_strided_slice %52 {offsets = [0, 2], sizes = [24, 2048], strides = [1, 1]} : vector<24x2176xf32> to vector<24x2048xf32>
    %cst_40 = arith.constant dense<0.000000e+00> : vector<64x2048xf32>
    %65 = tpu.matmul %63, %64, %cst_40 {dimension_numbers = #tpu.dot_dimension_numbers<[1], [0], [0], [1], [0, 0, 1, 1], [], []>} : vector<64x24xf32>, vector<24x2048xf32>, vector<64x2048xf32> -> vector<64x2048xf32>
    %66 = arith.addf %61, %65 : vector<64x2048xf32>
    %c3_41 = arith.constant 3 : index
    %c0_42 = arith.constant 0 : index
    %c0_43 = arith.constant 0 : index
    %67 = vector.load %arg3[%c3_41, %c0_42, %c0_43] : memref<7x64x24xf32, #tpu.memory_space<vmem>>, vector<1x64x24xf32>
    %68 = vector.shape_cast %67 : vector<1x64x24xf32> to vector<64x24xf32>
    %69 = vector.extract_strided_slice %52 {offsets = [0, 3], sizes = [24, 2048], strides = [1, 1]} : vector<24x2176xf32> to vector<24x2048xf32>
    %cst_44 = arith.constant dense<0.000000e+00> : vector<64x2048xf32>
    %70 = tpu.matmul %68, %69, %cst_44 {dimension_numbers = #tpu.dot_dimension_numbers<[1], [0], [0], [1], [0, 0, 1, 1], [], []>} : vector<64x24xf32>, vector<24x2048xf32>, vector<64x2048xf32> -> vector<64x2048xf32>
    %71 = arith.addf %66, %70 : vector<64x2048xf32>
    %c4 = arith.constant 4 : index
    %c0_45 = arith.constant 0 : index
    %c0_46 = arith.constant 0 : index
    %72 = vector.load %arg3[%c4, %c0_45, %c0_46] : memref<7x64x24xf32, #tpu.memory_space<vmem>>, vector<1x64x24xf32>
    %73 = vector.shape_cast %72 : vector<1x64x24xf32> to vector<64x24xf32>
    %74 = vector.extract_strided_slice %52 {offsets = [0, 4], sizes = [24, 2048], strides = [1, 1]} : vector<24x2176xf32> to vector<24x2048xf32>
    %cst_47 = arith.constant dense<0.000000e+00> : vector<64x2048xf32>
    %75 = tpu.matmul %73, %74, %cst_47 {dimension_numbers = #tpu.dot_dimension_numbers<[1], [0], [0], [1], [0, 0, 1, 1], [], []>} : vector<64x24xf32>, vector<24x2048xf32>, vector<64x2048xf32> -> vector<64x2048xf32>
    %76 = arith.addf %71, %75 : vector<64x2048xf32>
    %c5 = arith.constant 5 : index
    %c0_48 = arith.constant 0 : index
    %c0_49 = arith.constant 0 : index
    %77 = vector.load %arg3[%c5, %c0_48, %c0_49] : memref<7x64x24xf32, #tpu.memory_space<vmem>>, vector<1x64x24xf32>
    %78 = vector.shape_cast %77 : vector<1x64x24xf32> to vector<64x24xf32>
    %79 = vector.extract_strided_slice %52 {offsets = [0, 5], sizes = [24, 2048], strides = [1, 1]} : vector<24x2176xf32> to vector<24x2048xf32>
    %cst_50 = arith.constant dense<0.000000e+00> : vector<64x2048xf32>
    %80 = tpu.matmul %78, %79, %cst_50 {dimension_numbers = #tpu.dot_dimension_numbers<[1], [0], [0], [1], [0, 0, 1, 1], [], []>} : vector<64x24xf32>, vector<24x2048xf32>, vector<64x2048xf32> -> vector<64x2048xf32>
    %81 = arith.addf %76, %80 : vector<64x2048xf32>
    %c6_51 = arith.constant 6 : index
    %c0_52 = arith.constant 0 : index
    %c0_53 = arith.constant 0 : index
    %82 = vector.load %arg3[%c6_51, %c0_52, %c0_53] : memref<7x64x24xf32, #tpu.memory_space<vmem>>, vector<1x64x24xf32>
    %83 = vector.shape_cast %82 : vector<1x64x24xf32> to vector<64x24xf32>
    %84 = vector.extract_strided_slice %52 {offsets = [0, 6], sizes = [24, 2048], strides = [1, 1]} : vector<24x2176xf32> to vector<24x2048xf32>
    %cst_54 = arith.constant dense<0.000000e+00> : vector<64x2048xf32>
    %85 = tpu.matmul %83, %84, %cst_54 {dimension_numbers = #tpu.dot_dimension_numbers<[1], [0], [0], [1], [0, 0, 1, 1], [], []>} : vector<64x24xf32>, vector<24x2048xf32>, vector<64x2048xf32> -> vector<64x2048xf32>
    %86 = arith.addf %81, %85 : vector<64x2048xf32>
    %c0_55 = arith.constant 0 : index
    %c0_56 = arith.constant 0 : index
    %87 = vector.load %arg4[%c0_55, %c0_56] : memref<64x1xf32, #tpu.memory_space<vmem>>, vector<64x1xf32>
    %88 = vector.broadcast %87 : vector<64x1xf32> to vector<64x2048xf32>
    %89 = arith.addf %86, %88 : vector<64x2048xf32>
    %cst_57 = arith.constant 0.000000e+00 : f32
    %90 = vector.broadcast %cst_57 : f32 to vector<64x2048xf32>
    %91 = arith.maximumf %89, %90 : vector<64x2048xf32>
    %92 = vector.extract_strided_slice %91 {offsets = [0, 0], sizes = [64, 32], strides = [1, 1]} : vector<64x2048xf32> to vector<64x32xf32>
    %c0_58 = arith.constant 0 : index
    %c0_59 = arith.constant 0 : index
    %c0_60 = arith.constant 0 : index
    %c0_61 = arith.constant 0 : index
    %93 = vector.load %arg5[%c0_58, %c0_59, %c0_60, %c0_61] : memref<1x64x16x32xf32, #tpu.memory_space<vmem>>, vector<1x64x1x32xf32>
    %94 = vector.shape_cast %93 : vector<1x64x1x32xf32> to vector<64x32xf32>
    %95 = vector.shape_cast %92 : vector<64x32xf32> to vector<1x64x1x32xf32>
    tpu.vector_store %arg5[%c0_58, %c0_59, %c0_60, %c0_61], %95 {strides = array<i32>} : memref<1x64x16x32xf32, #tpu.memory_space<vmem>>, vector<1x64x1x32xf32>,
    %96 = vector.extract_strided_slice %91 {offsets = [0, 128], sizes = [64, 32], strides = [1, 1]} : vector<64x2048xf32> to vector<64x32xf32>
    %c0_62 = arith.constant 0 : index
    %c0_63 = arith.constant 0 : index
    %c1_64 = arith.constant 1 : index
    %c0_65 = arith.constant 0 : index
    %97 = vector.load %arg5[%c0_62, %c0_63, %c1_64, %c0_65] : memref<1x64x16x32xf32, #tpu.memory_space<vmem>>, vector<1x64x1x32xf32>
    %98 = vector.shape_cast %97 : vector<1x64x1x32xf32> to vector<64x32xf32>
    %99 = vector.shape_cast %96 : vector<64x32xf32> to vector<1x64x1x32xf32>
    tpu.vector_store %arg5[%c0_62, %c0_63, %c1_64, %c0_65], %99 {strides = array<i32>} : memref<1x64x16x32xf32, #tpu.memory_space<vmem>>, vector<1x64x1x32xf32>,
    %100 = vector.extract_strided_slice %91 {offsets = [0, 256], sizes = [64, 32], strides = [1, 1]} : vector<64x2048xf32> to vector<64x32xf32>
    %c0_66 = arith.constant 0 : index
    %c0_67 = arith.constant 0 : index
    %c2_68 = arith.constant 2 : index
    %c0_69 = arith.constant 0 : index
    %101 = vector.load %arg5[%c0_66, %c0_67, %c2_68, %c0_69] : memref<1x64x16x32xf32, #tpu.memory_space<vmem>>, vector<1x64x1x32xf32>
    %102 = vector.shape_cast %101 : vector<1x64x1x32xf32> to vector<64x32xf32>
    %103 = vector.shape_cast %100 : vector<64x32xf32> to vector<1x64x1x32xf32>
    tpu.vector_store %arg5[%c0_66, %c0_67, %c2_68, %c0_69], %103 {strides = array<i32>} : memref<1x64x16x32xf32, #tpu.memory_space<vmem>>, vector<1x64x1x32xf32>,
    %104 = vector.extract_strided_slice %91 {offsets = [0, 384], sizes = [64, 32], strides = [1, 1]} : vector<64x2048xf32> to vector<64x32xf32>
    %c0_70 = arith.constant 0 : index
    %c0_71 = arith.constant 0 : index
    %c3_72 = arith.constant 3 : index
    %c0_73 = arith.constant 0 : index
    %105 = vector.load %arg5[%c0_70, %c0_71, %c3_72, %c0_73] : memref<1x64x16x32xf32, #tpu.memory_space<vmem>>, vector<1x64x1x32xf32>
    %106 = vector.shape_cast %105 : vector<1x64x1x32xf32> to vector<64x32xf32>
    %107 = vector.shape_cast %104 : vector<64x32xf32> to vector<1x64x1x32xf32>
    tpu.vector_store %arg5[%c0_70, %c0_71, %c3_72, %c0_73], %107 {strides = array<i32>} : memref<1x64x16x32xf32, #tpu.memory_space<vmem>>, vector<1x64x1x32xf32>,
    %108 = vector.extract_strided_slice %91 {offsets = [0, 512], sizes = [64, 32], strides = [1, 1]} : vector<64x2048xf32> to vector<64x32xf32>
    %c0_74 = arith.constant 0 : index
    %c0_75 = arith.constant 0 : index
    %c4_76 = arith.constant 4 : index
    %c0_77 = arith.constant 0 : index
    %109 = vector.load %arg5[%c0_74, %c0_75, %c4_76, %c0_77] : memref<1x64x16x32xf32, #tpu.memory_space<vmem>>, vector<1x64x1x32xf32>
    %110 = vector.shape_cast %109 : vector<1x64x1x32xf32> to vector<64x32xf32>
    %111 = vector.shape_cast %108 : vector<64x32xf32> to vector<1x64x1x32xf32>
    tpu.vector_store %arg5[%c0_74, %c0_75, %c4_76, %c0_77], %111 {strides = array<i32>} : memref<1x64x16x32xf32, #tpu.memory_space<vmem>>, vector<1x64x1x32xf32>,
    %112 = vector.extract_strided_slice %91 {offsets = [0, 640], sizes = [64, 32], strides = [1, 1]} : vector<64x2048xf32> to vector<64x32xf32>
    %c0_78 = arith.constant 0 : index
    %c0_79 = arith.constant 0 : index
    %c5_80 = arith.constant 5 : index
    %c0_81 = arith.constant 0 : index
    %113 = vector.load %arg5[%c0_78, %c0_79, %c5_80, %c0_81] : memref<1x64x16x32xf32, #tpu.memory_space<vmem>>, vector<1x64x1x32xf32>
    %114 = vector.shape_cast %113 : vector<1x64x1x32xf32> to vector<64x32xf32>
    %115 = vector.shape_cast %112 : vector<64x32xf32> to vector<1x64x1x32xf32>
    tpu.vector_store %arg5[%c0_78, %c0_79, %c5_80, %c0_81], %115 {strides = array<i32>} : memref<1x64x16x32xf32, #tpu.memory_space<vmem>>, vector<1x64x1x32xf32>,
    %116 = vector.extract_strided_slice %91 {offsets = [0, 768], sizes = [64, 32], strides = [1, 1]} : vector<64x2048xf32> to vector<64x32xf32>
    %c0_82 = arith.constant 0 : index
    %c0_83 = arith.constant 0 : index
    %c6_84 = arith.constant 6 : index
    %c0_85 = arith.constant 0 : index
    %117 = vector.load %arg5[%c0_82, %c0_83, %c6_84, %c0_85] : memref<1x64x16x32xf32, #tpu.memory_space<vmem>>, vector<1x64x1x32xf32>
    %118 = vector.shape_cast %117 : vector<1x64x1x32xf32> to vector<64x32xf32>
    %119 = vector.shape_cast %116 : vector<64x32xf32> to vector<1x64x1x32xf32>
    tpu.vector_store %arg5[%c0_82, %c0_83, %c6_84, %c0_85], %119 {strides = array<i32>} : memref<1x64x16x32xf32, #tpu.memory_space<vmem>>, vector<1x64x1x32xf32>,
    %120 = vector.extract_strided_slice %91 {offsets = [0, 896], sizes = [64, 32], strides = [1, 1]} : vector<64x2048xf32> to vector<64x32xf32>
    %c0_86 = arith.constant 0 : index
    %c0_87 = arith.constant 0 : index
    %c7 = arith.constant 7 : index
    %c0_88 = arith.constant 0 : index
    %121 = vector.load %arg5[%c0_86, %c0_87, %c7, %c0_88] : memref<1x64x16x32xf32, #tpu.memory_space<vmem>>, vector<1x64x1x32xf32>
    %122 = vector.shape_cast %121 : vector<1x64x1x32xf32> to vector<64x32xf32>
    %123 = vector.shape_cast %120 : vector<64x32xf32> to vector<1x64x1x32xf32>
    tpu.vector_store %arg5[%c0_86, %c0_87, %c7, %c0_88], %123 {strides = array<i32>} : memref<1x64x16x32xf32, #tpu.memory_space<vmem>>, vector<1x64x1x32xf32>,
    %124 = vector.extract_strided_slice %91 {offsets = [0, 1024], sizes = [64, 32], strides = [1, 1]} : vector<64x2048xf32> to vector<64x32xf32>
    %c0_89 = arith.constant 0 : index
    %c0_90 = arith.constant 0 : index
    %c8 = arith.constant 8 : index
    %c0_91 = arith.constant 0 : index
    %125 = vector.load %arg5[%c0_89, %c0_90, %c8, %c0_91] : memref<1x64x16x32xf32, #tpu.memory_space<vmem>>, vector<1x64x1x32xf32>
    %126 = vector.shape_cast %125 : vector<1x64x1x32xf32> to vector<64x32xf32>
    %127 = vector.shape_cast %124 : vector<64x32xf32> to vector<1x64x1x32xf32>
    tpu.vector_store %arg5[%c0_89, %c0_90, %c8, %c0_91], %127 {strides = array<i32>} : memref<1x64x16x32xf32, #tpu.memory_space<vmem>>, vector<1x64x1x32xf32>,
    %128 = vector.extract_strided_slice %91 {offsets = [0, 1152], sizes = [64, 32], strides = [1, 1]} : vector<64x2048xf32> to vector<64x32xf32>
    %c0_92 = arith.constant 0 : index
    %c0_93 = arith.constant 0 : index
    %c9_94 = arith.constant 9 : index
    %c0_95 = arith.constant 0 : index
    %129 = vector.load %arg5[%c0_92, %c0_93, %c9_94, %c0_95] : memref<1x64x16x32xf32, #tpu.memory_space<vmem>>, vector<1x64x1x32xf32>
    %130 = vector.shape_cast %129 : vector<1x64x1x32xf32> to vector<64x32xf32>
    %131 = vector.shape_cast %128 : vector<64x32xf32> to vector<1x64x1x32xf32>
    tpu.vector_store %arg5[%c0_92, %c0_93, %c9_94, %c0_95], %131 {strides = array<i32>} : memref<1x64x16x32xf32, #tpu.memory_space<vmem>>, vector<1x64x1x32xf32>,
    %132 = vector.extract_strided_slice %91 {offsets = [0, 1280], sizes = [64, 32], strides = [1, 1]} : vector<64x2048xf32> to vector<64x32xf32>
    %c0_96 = arith.constant 0 : index
    %c0_97 = arith.constant 0 : index
    %c10 = arith.constant 10 : index
    %c0_98 = arith.constant 0 : index
    %133 = vector.load %arg5[%c0_96, %c0_97, %c10, %c0_98] : memref<1x64x16x32xf32, #tpu.memory_space<vmem>>, vector<1x64x1x32xf32>
    %134 = vector.shape_cast %133 : vector<1x64x1x32xf32> to vector<64x32xf32>
    %135 = vector.shape_cast %132 : vector<64x32xf32> to vector<1x64x1x32xf32>
    tpu.vector_store %arg5[%c0_96, %c0_97, %c10, %c0_98], %135 {strides = array<i32>} : memref<1x64x16x32xf32, #tpu.memory_space<vmem>>, vector<1x64x1x32xf32>,
    %136 = vector.extract_strided_slice %91 {offsets = [0, 1408], sizes = [64, 32], strides = [1, 1]} : vector<64x2048xf32> to vector<64x32xf32>
    %c0_99 = arith.constant 0 : index
    %c0_100 = arith.constant 0 : index
    %c11 = arith.constant 11 : index
    %c0_101 = arith.constant 0 : index
    %137 = vector.load %arg5[%c0_99, %c0_100, %c11, %c0_101] : memref<1x64x16x32xf32, #tpu.memory_space<vmem>>, vector<1x64x1x32xf32>
    %138 = vector.shape_cast %137 : vector<1x64x1x32xf32> to vector<64x32xf32>
    %139 = vector.shape_cast %136 : vector<64x32xf32> to vector<1x64x1x32xf32>
    tpu.vector_store %arg5[%c0_99, %c0_100, %c11, %c0_101], %139 {strides = array<i32>} : memref<1x64x16x32xf32, #tpu.memory_space<vmem>>, vector<1x64x1x32xf32>,
    %140 = vector.extract_strided_slice %91 {offsets = [0, 1536], sizes = [64, 32], strides = [1, 1]} : vector<64x2048xf32> to vector<64x32xf32>
    %c0_102 = arith.constant 0 : index
    %c0_103 = arith.constant 0 : index
    %c12_104 = arith.constant 12 : index
    %c0_105 = arith.constant 0 : index
    %141 = vector.load %arg5[%c0_102, %c0_103, %c12_104, %c0_105] : memref<1x64x16x32xf32, #tpu.memory_space<vmem>>, vector<1x64x1x32xf32>
    %142 = vector.shape_cast %141 : vector<1x64x1x32xf32> to vector<64x32xf32>
    %143 = vector.shape_cast %140 : vector<64x32xf32> to vector<1x64x1x32xf32>
    tpu.vector_store %arg5[%c0_102, %c0_103, %c12_104, %c0_105], %143 {strides = array<i32>} : memref<1x64x16x32xf32, #tpu.memory_space<vmem>>, vector<1x64x1x32xf32>,
    %144 = vector.extract_strided_slice %91 {offsets = [0, 1664], sizes = [64, 32], strides = [1, 1]} : vector<64x2048xf32> to vector<64x32xf32>
    %c0_106 = arith.constant 0 : index
    %c0_107 = arith.constant 0 : index
    %c13 = arith.constant 13 : index
    %c0_108 = arith.constant 0 : index
    %145 = vector.load %arg5[%c0_106, %c0_107, %c13, %c0_108] : memref<1x64x16x32xf32, #tpu.memory_space<vmem>>, vector<1x64x1x32xf32>
    %146 = vector.shape_cast %145 : vector<1x64x1x32xf32> to vector<64x32xf32>
    %147 = vector.shape_cast %144 : vector<64x32xf32> to vector<1x64x1x32xf32>
    tpu.vector_store %arg5[%c0_106, %c0_107, %c13, %c0_108], %147 {strides = array<i32>} : memref<1x64x16x32xf32, #tpu.memory_space<vmem>>, vector<1x64x1x32xf32>,
    %148 = vector.extract_strided_slice %91 {offsets = [0, 1792], sizes = [64, 32], strides = [1, 1]} : vector<64x2048xf32> to vector<64x32xf32>
    %c0_109 = arith.constant 0 : index
    %c0_110 = arith.constant 0 : index
    %c14 = arith.constant 14 : index
    %c0_111 = arith.constant 0 : index
    %149 = vector.load %arg5[%c0_109, %c0_110, %c14, %c0_111] : memref<1x64x16x32xf32, #tpu.memory_space<vmem>>, vector<1x64x1x32xf32>
    %150 = vector.shape_cast %149 : vector<1x64x1x32xf32> to vector<64x32xf32>
    %151 = vector.shape_cast %148 : vector<64x32xf32> to vector<1x64x1x32xf32>
    tpu.vector_store %arg5[%c0_109, %c0_110, %c14, %c0_111], %151 {strides = array<i32>} : memref<1x64x16x32xf32, #tpu.memory_space<vmem>>, vector<1x64x1x32xf32>,
    %152 = vector.extract_strided_slice %91 {offsets = [0, 1920], sizes = [64, 32], strides = [1, 1]} : vector<64x2048xf32> to vector<64x32xf32>
    %c0_112 = arith.constant 0 : index
    %c0_113 = arith.constant 0 : index
    %c15_114 = arith.constant 15 : index
    %c0_115 = arith.constant 0 : index
    %153 = vector.load %arg5[%c0_112, %c0_113, %c15_114, %c0_115] : memref<1x64x16x32xf32, #tpu.memory_space<vmem>>, vector<1x64x1x32xf32>
    %154 = vector.shape_cast %153 : vector<1x64x1x32xf32> to vector<64x32xf32>
    %155 = vector.shape_cast %152 : vector<64x32xf32> to vector<1x64x1x32xf32>
    tpu.vector_store %arg5[%c0_112, %c0_113, %c15_114, %c0_115], %155 {strides = array<i32>} : memref<1x64x16x32xf32, #tpu.memory_space<vmem>>, vector<1x64x1x32xf32>,
    return
  }
  func.func @transform_0(%arg0: i32, %arg1: i32) -> (i32, i32, i32) {
    %c0_i32 = arith.constant 0 : i32
    %c0_i32_0 = arith.constant 0 : i32
    %c0_i32_1 = arith.constant 0 : i32
    return %arg0, %c0_i32, %c0_i32_0 : i32, i32, i32
  }
  func.func @transform_1(%arg0: i32, %arg1: i32) -> (i32, i32, i32) {
    %c0_i32 = arith.constant 0 : i32
    %c0_i32_0 = arith.constant 0 : i32
    %c0_i32_1 = arith.constant 0 : i32
    %c0_i32_2 = arith.constant 0 : i32
    return %c0_i32, %c0_i32_0, %c0_i32_1 : i32, i32, i32
  }
  func.func @transform_2(%arg0: i32, %arg1: i32) -> (i32, i32) {
    %c0_i32 = arith.constant 0 : i32
    %c0_i32_0 = arith.constant 0 : i32
    %c0_i32_1 = arith.constant 0 : i32
    return %c0_i32, %c0_i32_0 : i32, i32
  }
  func.func @transform_3(%arg0: i32, %arg1: i32) -> (i32, i32, i32, i32) {
    %c0_i32 = arith.constant 0 : i32
    %c0_i32_0 = arith.constant 0 : i32
    %c0_i32_1 = arith.constant 0 : i32
    return %arg0, %c0_i32, %arg1, %c0_i32_0 : i32, i32, i32, i32
  }
}

</mosaic_0001>

<bundles_post_ra>
// kernel: convtranspose2d_relu.1
= control target key start
LH: loop header
LB: loop body
LE: loop exit
PB: predicated region body
PF: predicated region fallthrough
CT: control target
= control target key end

     0   :  { %s21030_s12 = smov 0   ;;  %s21032_s13 = smov 0   ;;  %s28819_s0 = inlined_call_operand.vmem [shape: f32[2,3,4992], index: 0, kind: input, shape index: {}]   ;;  %s28820_s1 = inlined_call_operand.vmem [shape: f32[7,64,24], index: 1, kind: input, shape index: {}]   ;;  %s28821_s2 = inlined_call_operand.vmem [shape: f32[64,1], index: 2, kind: input, shape index: {}]   ;;  %s28822_s3 = inlined_call_operand.vmem [shape: f32[2,64,32,32], index: 3, kind: output, shape index: {}]  }
   0x1   :  { %s21034_s14 = smov 0   ;;  %s21036_s15 = smov 0  }
   0x2   :  { %s21038_s16 = smov 0   ;;  %s21040_s17 = smov 0  }
   0x3   :  { %s21042_s18 = smov 0  }
   0x4 LB: > { %s22_s19 = sadd.s32 1, %s20991_s16  ;;  %s25_s20 = sadd.s32 1, %s20995_s17  ;;  %s20999_s18 = sphi %s21042_s18, %s13_s18   ;;  %s20995_s17 = sphi %s21040_s17, %s28839_s17   ;;  %s20991_s16 = sphi %s21038_s16, %s28838_s16   ;;  %s20987_s15 = sphi %s21036_s15, %s28837_s15   ;;  %s20983_s14 = sphi %s21034_s14, %s28836_s14   ;;  %s20979_s13 = sphi %s21032_s13, %s28835_s13   ;;  %s20975_s12 = sphi %s21030_s12, %s28834_s12  }
   0x5   : > { %p23_p0 = scmp.ge.s32.totalorder %s22_s19, 2  ;;  %s18674_s21 = sadd.s32 4294967295, %s20999_s18  }
   0x6   : > { %p112_p1 = scmp.ne.s32.totalorder %s20979_s13, %s20975_s12  ;;  %p113_p2 = scmp.eq.s32.totalorder %s18674_s21, 3 }
   0x7   : > { %s28841_s19 = smov (%p23_p0, %s22_s19), 0  ;;  %s28843_s20 = smov (!%p23_p0, %s25_s20), %s20995_s17 }
   0x8   : > { %s98_s22 = ssub.s32 %s20991_s16, %s28841_s19  ;;  %p27_p3 = scmp.ge.s32.totalorder %s28843_s20, 2 }
   0x9   : > { %p18678_p4 = scmp.ge.s32.totalorder %s20999_s18, 1  ;;  %p21076_p5 = por %p113_p2, %p112_p1 }
   0xa   : > { %p151_p6 = scmp.lt.s32.totalorder %s20999_s18, 5  ;;  %s28845_s20 = smov (%p27_p3, %s28843_s20), 0 }
   0xb   : > { %s97_s24 = ssub.s32 %s20995_s17, %s28845_s20  ;;  %s102_s26 = sadd.s32 1, %s20979_s13 }
   0xc   : > { %p152_p7 = pnand %p18678_p4, %p151_p6  ;;  %s99_s25 = sor.u32 %s98_s22, %s97_s24 }
   0xd   : > { %p100_p8 = scmp.eq.s32.totalorder %s99_s25, 0  ;;  %p174_p9 = scmp.lt.s32.totalorder (!%p152_p7), %s20987_s15, 1  ;;  %v21001_v0 = vmov (!%p152_p7), 0.0   ;;  %vm1016_vm0 = vcmask (!%p152_p7), 1039360   ;;  %vm1113_vm1 = vcmask (!%p152_p7), 195584   ;;  %vm3081_vm2 = vcmask (!%p152_p7), 1031168  }
   0xe   : > { %155 = sbr.rel (%p152_p7) target bundleno = 1830 (0x726), region = 32  ;;  %s21091_s28 = sshll.u32 (!%p152_p7), %s20983_s14, 11  ;;  %181 = vst [vmem:[#allocation2] sm:$0xff] (!%p152_p7), %v21001_v0  ;;  %198 = vst [vmem:[#allocation2 + $0x88] sm:$0xff] (!%p152_p7), %v21001_v0  ;;  %1315 = vmatprep.mubr.f32.mxu1 (!%p152_p7), %v21001_v0  ;;  %1202 = vmatprep.mubr.f32.mxu0 (!%p152_p7), %v21001_v0  ;;  %vm4345_vm3 = vcmask (!%p152_p7), 1022976   ;;  %vm5609_vm4 = vcmask (!%p152_p7), 1014784  }
   0xf   : > { %s21087_s27 = scalar_select %p100_p8, %s20979_s13, %s102_s26  }
  0x10   : > { %s233_s29 = sshra.s32 (!%p152_p7), %s21091_s28, 7  ;;  %s19199_s30 = sadd.s32 (!%p152_p7), 128, %s21091_s28  ;;  %182 = vst [vmem:[#allocation2 + $0x8] sm:$0xff] (!%p152_p7), %v21001_v0  ;;  %183 = vst [vmem:[#allocation2 + $0x10] sm:$0xff] (!%p152_p7), %v21001_v0  ;;  %vm6873_vm5 = vcmask (!%p152_p7), 1006592   ;;  %vm8137_vm6 = vcmask (!%p152_p7), 998400  }
  0x11   : > { %184 = vst [vmem:[#allocation2 + $0x18] sm:$0xff] (!%p152_p7), %v21001_v0  ;;  %185 = vst [vmem:[#allocation2 + $0x20] sm:$0xff] (!%p152_p7), %v21001_v0  ;;  %s18683_s5 = sshll.u32 (!%p152_p7), %s233_s29, 2  ;;  %s289_s6 = sshra.s32 (!%p152_p7), %s19199_s30, 7  ;;  %vm10058_vm7 = vcmask (!%p152_p7), 253952  }
  0x12   : > { %186 = vst [vmem:[#allocation2 + $0x28] sm:$0xff] (!%p152_p7), %v21001_v0  ;;  %187 = vst [vmem:[#allocation2 + $0x30] sm:$0xff] (!%p152_p7), %v21001_v0  ;;  %s18685_s8 = sshll.u32 (!%p152_p7), %s289_s6, 2  ;;  %s19201_s9 = sadd.s32 (!%p152_p7), 256, %s21091_s28 }
  0x13   : > { %188 = vst [vmem:[#allocation2 + $0x38] sm:$0xff] (!%p152_p7), %v21001_v0  ;;  %189 = vst [vmem:[#allocation2 + $0x40] sm:$0xff] (!%p152_p7), %v21001_v0  ;;  %s19203_s10 = sadd.s32 (!%p152_p7), 384, %s21091_s28  ;;  %s372_s24 = sshra.s32 (!%p152_p7), %s19201_s9, 7 }
  0x14   : > { %190 = vst [vmem:[#allocation2 + $0x48] sm:$0xff] (!%p152_p7), %v21001_v0  ;;  %191 = vst [vmem:[#allocation2 + $0x50] sm:$0xff] (!%p152_p7), %v21001_v0  ;;  %s18687_s29 = sshll.u32 (!%p152_p7), %s372_s24, 2  ;;  %s472_s30 = sshra.s32 (!%p152_p7), %s19203_s10, 7 }
  0x15   : > { %192 = vst [vmem:[#allocation2 + $0x58] sm:$0xff] %v21001_v0  ;;  %193 = vst [vmem:[#allocation2 + $0x60] sm:$0xff] %v21001_v0  ;;  %s175_s4 = scalar_select %p174_p9, %s20987_s15, 1 }
  0x16   : > { %194 = vst [vmem:[#allocation2 + $0x68] sm:$0xff] %v21001_v0  ;;  %195 = vst [vmem:[#allocation2 + $0x70] sm:$0xff] %v21001_v0  ;;  %s19207_s9 = sadd.s32 640, %s21091_s28 }
  0x17   : > { %196 = vst [vmem:[#allocation2 + $0x78] sm:$0xff] %v21001_v0  ;;  %197 = vst [vmem:[#allocation2 + $0x80] sm:$0xff] %v21001_v0  ;;  %s20208_s7 = smul.u32 156, %s175_s4  ;;  %s614_s11 = sshra.s32 %s19207_s9, 7 }
  0x18   : > { %199 = vst [vmem:[#allocation2 + $0x90] sm:$0xff] %v21001_v0  ;;  %200 = vst [vmem:[#allocation2 + $0x98] sm:$0xff] %v21001_v0  ;;  %s18693_s24 = sshll.u32 %s614_s11, 2  ;;  %s21007_s9 = smov 122  }
  0x19   : > { %201 = vst [vmem:[#allocation2 + $0xa0] sm:$0xff] %v21001_v0  ;;  %202 = vst [vmem:[#allocation2 + $0xa8] sm:$0xff] %v21001_v0  ;;  %s21160_s22 = scalar_lea.vmem %s28819_s0, %s20208_s7  ;;  %s19205_s7 = sadd.s32 512, %s21091_s28 }
  0x1a   : > { %203 = vst [vmem:[#allocation2 + $0xb0] sm:$0xff] %v21001_v0  ;;  %204 = vst [vmem:[#allocation2 + $0xb8] sm:$0xff] %v21001_v0  ;;  %s21163_s25 = scalar_lea.vmem %s21160_s22, %s18683_s5  ;;  %s21166_s26 = scalar_lea.vmem %s21160_s22, %s18685_s8 }
  0x1b   : > { %205 = vst [vmem:[#allocation2 + $0xc0] sm:$0xff] %v21001_v0  ;;  %206 = vst [vmem:[#allocation2 + $0xc8] sm:$0xff] %v21001_v0  ;;  %v237_v1 = vld [vmem:[%s21163_s25] sm:$0x77]  ;;  %s21171_s4 = scalar_lea.vmem %s21160_s22, %s18687_s29  ;;  %s18689_s5 = sshll.u32 %s472_s30, 2 }
  0x1c   : > { %207 = vst [vmem:[#allocation2 + $0xd0] sm:$0xff] %v21001_v0  ;;  %208 = vst [vmem:[#allocation2 + $0xd8] sm:$0xff] %v21001_v0  ;;  %v293_v2 = vld [vmem:[%s21166_s26] sm:$0x77]  ;;  %v254_v5 = vcombine.high %v237_v1, %v237_v1  ;;  %v238_v6 = vld [vmem:[%s21163_s25 + $0x8] sm:$0x77]  ;;  %s21179_s6 = scalar_lea.vmem %s21160_s22, %s18689_s5  ;;  %s21197_s29 = scalar_lea.vmem %s21160_s22, %s18693_s24 }
  0x1d   : > { %209 = vst [vmem:[#allocation2 + $0xe0] sm:$0xff] %v21001_v0  ;;  %210 = vst [vmem:[#allocation2 + $0xe8] sm:$0xff] %v21001_v0  ;;  %v311_v3 = vcombine.high %v293_v2, %v293_v2  ;;  %v319_v4 = vrot.slane %v293_v2, 5  ;;  %v21175_v7 = vld [vmem:[%s21166_s26 + $0x8] sm:$0x77]  ;;  %v255_v11 = vcombine.high %v238_v6, %v238_v6  ;;  %s555_s8 = sshra.s32 %s19205_s7, 7 }
  0x1e   : > { %211 = vst [vmem:[#allocation2 + $0xf0] sm:$0xff] %v21001_v0  ;;  %212 = vst [vmem:[#allocation2 + $0xf8] sm:$0xff] %v21001_v0  ;;  %v376_v8 = vld [vmem:[%s21171_s4] sm:$0x77]  ;;  %v377_v9 = vld [vmem:[%s21171_s4 + $0x8] sm:$0x77]  ;;  %v312_v21 = vcombine.high %v21175_v7, %v21175_v7 }
  0x1f   : > { %213 = vst [vmem:[#allocation2 + $0x100] sm:$0xff] %v21001_v0  ;;  %214 = vst [vmem:[#allocation2 + $0x108] sm:$0xff] %v21001_v0  ;;  %v321_v10 = vrot.slane %v21175_v7, 5  ;;  %v402_v12 = vrot.slane %v376_v8, 2  ;;  %v476_v13 = vld [vmem:[%s21179_s6] sm:$0x77]  ;;  %v394_v14 = vcombine.high %v376_v8, %v376_v8  ;;  %v395_v15 = vcombine.high %v377_v9, %v377_v9 }
  0x20   : > { %215 = vst [vmem:[#allocation2 + $0x110] sm:$0xff] %v21001_v0  ;;  %216 = vst [vmem:[#allocation2 + $0x118] sm:$0xff] %v21001_v0  ;;  %v404_v16 = vrot.slane %v377_v9, 2  ;;  %v502_v17 = vrot.slane %v476_v13, 7  ;;  %s18691_s10 = sshll.u32 %s555_s8, 2  ;;  %v494_v19 = vcombine.high %v476_v13, %v476_v13  ;;  %v320_v20 = vrot.slane %v311_v3, 5 }
  0x21   : > { %217 = vst [vmem:[#allocation2 + $0x120] sm:$0xff] %v21001_v0  ;;  %218 = vst [vmem:[#allocation2 + $0x128] sm:$0xff] %v21001_v0  ;;  %v477_v18 = vld [vmem:[%s21179_s6 + $0x8] sm:$0x77]  ;;  %s21190_s21 = scalar_lea.vmem %s21160_s22, %s18691_s10  ;;  %v403_v22 = vrot.slane %v394_v14, 2  ;;  %v405_v26 = vrot.slane %v395_v15, 2 }
  0x22   : > { %219 = vst [vmem:[#allocation2 + $0x130] sm:$0xff] %v21001_v0  ;;  %220 = vst [vmem:[#allocation2 + $0x138] sm:$0xff] %v21001_v0  ;;  %v495_v23 = vcombine.high %v477_v18, %v477_v18  ;;  %v504_v24 = vrot.slane %v477_v18, 7  ;;  %v21193_v25 = vld [vmem:[%s21171_s4 + $0x10] sm:$0x77]  ;;  %v503_v28 = vrot.slane %v494_v19, 7 }
  0x23   : > { %221 = vst [vmem:[#allocation2 + $0x140] sm:$0xff] %v21001_v0  ;;  %222 = vst [vmem:[#allocation2 + $0x148] sm:$0xff] %v21001_v0  ;;  %v559_v27 = vld [vmem:[%s21190_s21] sm:$0x77]  ;;  %v560_v29 = vld [vmem:[%s21190_s21 + $0x8] sm:$0x77]  ;;  %v396_v47 = vcombine.high %v21193_v25, %v21193_v25 }
  0x24   : > { %223 = vst [vmem:[#allocation2 + $0x150] sm:$0xff] %v21001_v0  ;;  %224 = vst [vmem:[#allocation2 + $0x158] sm:$0xff] %v21001_v0  ;;  %v577_v30 = vcombine.low %v559_v27, %v559_v27  ;;  %v618_v31 = vld [vmem:[%s21197_s29] sm:$0x77]  ;;  %v578_v32 = vcombine.low %v560_v29, %v560_v29  ;;  %v619_v33 = vld [vmem:[%s21197_s29 + $0x8] sm:$0x77] }
  0x25   : > { %225 = vst [vmem:[#allocation2 + $0x160] sm:$0xff] %v21001_v0  ;;  %226 = vst [vmem:[#allocation2 + $0x168] sm:$0xff] %v21001_v0  ;;  %v406_v34 = vrot.slane %v21193_v25, 2  ;;  %v505_v35 = vrot.slane %v495_v23, 7  ;;  %v644_v36 = vrot.slane %v618_v31, 1  ;;  %v636_v37 = vcombine.high %v618_v31, %v618_v31  ;;  %s19209_s30 = sadd.s32 768, %s21091_s28 }
  0x26   : > { %227 = vst [vmem:[#allocation2 + $0x170] sm:$0xff] %v21001_v0  ;;  %228 = vst [vmem:[#allocation2 + $0x178] sm:$0xff] %v21001_v0  ;;  %v637_v38 = vcombine.high %v619_v33, %v619_v33  ;;  %v646_v39 = vrot.slane %v619_v33, 1  ;;  %v21204_v40 = vld [vmem:[%s21179_s6 + $0x10] sm:$0x77]  ;;  %v322_v46 = vrot.slane %v312_v21, 5 }
  0x27   : > { %229 = vst [vmem:[#allocation2 + $0x180] sm:$0xff] %v21001_v0  ;;  %230 = vst [vmem:[#allocation2 + $0x188] sm:$0xff] %v21001_v0  ;;  %v561_v41 = vld [vmem:[%s21190_s21 + $0x10] sm:$0x77]  ;;  %v506_v42 = vrot.slane %v21204_v40, 7  ;;  %v645_v48 = vrot.slane %v636_v37, 1  ;;  %v496_v61 = vcombine.high %v21204_v40, %v21204_v40 }
  0x28   : > { %231 = vst [vmem:[#allocation2 + $0x190] sm:$0xff] %v21001_v0  ;;  %270 = vst [vmem:[#allocation2] sm:$0x7] %v237_v1  ;;  %v579_v43 = vcombine.low %v561_v41, %v561_v41  ;;  %v21209_v44 = vld [vmem:[%s21197_s29 + $0x10] sm:$0x77]  ;;  %v647_v49 = vrot.slane %v637_v38, 1 }
  0x29   : > { %272 = vst [vmem:[#allocation2 + $0x10] sm:$0x7] %v238_v6  ;;  %353 = vst [vmem:[#allocation2] sm:$0x38] %v319_v4  ;;  %v239_v45 = vld [vmem:[%s21163_s25 + $0x10] sm:$0x77]  ;;  %v638_v8 = vcombine.high %v21209_v44, %v21209_v44 }
  0x2a   : > { %271 = vst [vmem:[#allocation2 + $0x8] sm:$0x7] %v254_v5  ;;  %355 = vst [vmem:[#allocation2 + $0x10] sm:$0x38] %v321_v10  ;;  %v648_v50 = vrot.slane %v21209_v44, 1  ;;  %v256_v52 = vcombine.high %v239_v45, %v239_v45  ;;  %s714_s5 = sshra.s32 %s19209_s30, 7 }
  0x2b   : > { %273 = vst [vmem:[#allocation2 + $0x18] sm:$0x7] %v255_v11  ;;  %436 = vst [vmem:[#allocation2 + $0x88] ss:$-132 sps:$4 sm:$0xc1] %v402_v12   ;;  %s18695_s7 = sshll.u32 %s714_s5, 2 }
  0x2c   : > { %455 = vst [vmem:[#allocation2 + $0x98] ss:$-132 sps:$4 sm:$0xc1] %v404_v16   ;;  %536 = vst [vmem:[#allocation2 + $0x88] sm:$0xe] %v502_v17  ;;  %s21223_s28 = scalar_lea.vmem %s21160_s22, %s18695_s7  ;;  %v407_v63 = vrot.slane %v396_v47, 2 }
  0x2d   : > { %354 = vst [vmem:[#allocation2 + $0x8] sm:$0x38] %v320_v20  ;;  %454 = vst [vmem:[#allocation2 + $0x90] ss:$-132 sps:$4 sm:$0xc1] %v403_v22   ;;  %s21002_s22 = smov 127  }
  0x2e   : > { %538 = vst [vmem:[#allocation2 + $0x98] sm:$0xe] %v504_v24  ;;  %596 = vst [vmem:[#allocation2 + $0x90] sm:$0x70] %v559_v27  ;;  %v295_v51 = vld [vmem:[%s21166_s26 + $0x10] sm:$0x77] }
  0x2f   : > { %598 = vst [vmem:[#allocation2 + $0xa0] sm:$0x70] %v560_v29  ;;  %456 = vst [vmem:[#allocation2 + $0xa0] ss:$-132 sps:$4 sm:$0xc1] %v405_v26   ;;  %v323_v53 = vrot.slane %v295_v51, 5  ;;  %v313_v56 = vcombine.high %v295_v51, %v295_v51 }
  0x30   : > { %537 = vst [vmem:[#allocation2 + $0x90] sm:$0xe] %v503_v28  ;;  %595 = vst [vmem:[#allocation2 + $0x88] sm:$0x70] %v577_v30  ;;  %v240_v54 = vld [vmem:[%s21163_s25 + $0x18] sm:$0x77] }
  0x31   : > { %597 = vst [vmem:[#allocation2 + $0x98] sm:$0x70] %v578_v32  ;;  %457 = vst [vmem:[#allocation2 + $0xa8] ss:$-132 sps:$4 sm:$0xc1] %v406_v34   ;;  %v257_v59 = vcombine.high %v240_v54, %v240_v54  ;;  %v324_v62 = vrot.slane %v313_v56, 5 }
  0x32   : > { %539 = vst [vmem:[#allocation2 + $0xa0] sm:$0xe] %v505_v35  ;;  %600 = vst [vmem:[#allocation2 + $0xb0] sm:$0x70] %v561_v41  ;;  %v296_v55 = vld [vmem:[%s21166_s26 + $0x18] sm:$0x77] }
  0x33   : > { %678 = vst [vmem:[#allocation2 + $0x88] sm:$0x80] %v644_v36  ;;  %680 = vst [vmem:[#allocation2 + $0x120] ss:$-132 sps:$4 sm:$0x83] %v646_v39   ;;  %v325_v57 = vrot.slane %v296_v55, 5  ;;  %v314_v60 = vcombine.high %v296_v55, %v296_v55 }
  0x34   : > { %695 = vst [vmem:[#allocation2 + $0x110] sm:$0x3] %v644_v36  ;;  %274 = vst [vmem:[#allocation2 + $0x20] sm:$0x7] %v239_v45  ;;  %v379_v58 = vld [vmem:[%s21171_s4 + $0x18] sm:$0x77] }
  0x35   : > { %540 = vst [vmem:[#allocation2 + $0xa8] sm:$0xe] %v506_v42  ;;  %599 = vst [vmem:[#allocation2 + $0xa8] sm:$0x70] %v579_v43  ;;  %v408_v1 = vrot.slane %v379_v58, 2  ;;  %v397_v3 = vcombine.high %v379_v58, %v379_v58  ;;  %v795_v4 = vld [vmem:[#allocation2] sm:$0xff] }
  0x36   : > { %356 = vst [vmem:[#allocation2 + $0x18] sm:$0x38] %v322_v46  ;;  %679 = vst [vmem:[#allocation2 + $0x118] ss:$-132 sps:$4 sm:$0x83] %v645_v48   ;;  %v326_v7 = vrot.slane %v314_v60, 5 }
  0x37   : > { %681 = vst [vmem:[#allocation2 + $0x128] ss:$-132 sps:$4 sm:$0x83] %v647_v49   ;;  %682 = vst [vmem:[#allocation2 + $0x130] ss:$-132 sps:$4 sm:$0x83] %v648_v50  }
  0x38   : > { %275 = vst [vmem:[#allocation2 + $0x28] sm:$0x7] %v256_v52  ;;  %276 = vst [vmem:[#allocation2 + $0x30] sm:$0x7] %v240_v54  ;;  %v241_v2 = vld [vmem:[%s21163_s25 + $0x20] sm:$0x77] }
  0x39   : > { %357 = vst [vmem:[#allocation2 + $0x20] sm:$0x38] %v323_v53  ;;  %v718_v5 = vld [vmem:[%s21223_s28] sm:$0x77]  ;;  %v719_v6 = vld [vmem:[%s21223_s28 + $0x8] sm:$0x77]  ;;  %v258_v9 = vcombine.high %v241_v2, %v241_v2 }
  0x3a   : > { %359 = vst [vmem:[#allocation2 + $0x30] sm:$0x38] %v325_v57  ;;  %277 = vst [vmem:[#allocation2 + $0x38] sm:$0x7] %v257_v59  ;;  %v796_v10 = vld [vmem:[#allocation2 + $0x8] sm:$0xff]  ;;  %v797_v11 = vld [vmem:[#allocation2 + $0x10] sm:$0xff]  ;;  %v736_v12 = vcombine.high %v718_v5, %v718_v5  ;;  %v737_v14 = vcombine.high %v719_v6, %v719_v6 }
  0x3b   : > { %278 = vst [vmem:[#allocation2 + $0x40] sm:$0x7] %v241_v2  ;;  %v746_v13 = vrot.slane %v719_v6, 6  ;;  %v720_v15 = vld [vmem:[%s21223_s28 + $0x10] sm:$0x77]  ;;  %v744_v18 = vrot.slane %v718_v5, 6  ;;  %v21241_v43 = vpack.i.bf16 %v797_v11, %v796_v10 }
  0x3c   : > { %358 = vst [vmem:[#allocation2 + $0x28] sm:$0x38] %v324_v62  ;;  %441 = vst [vmem:[#allocation2 + $0xb0] ss:$-132 sps:$4 sm:$0xc1] %v407_v63   ;;  %v748_v17 = vrot.slane %v720_v15, 6  ;;  %v738_v33 = vcombine.high %v720_v15, %v720_v15 }
  0x3d   : > { %442 = vst [vmem:[#allocation2 + $0xb8] ss:$-132 sps:$4 sm:$0xc1] %v408_v1   ;;  %v297_v16 = vld [vmem:[%s21166_s26 + $0x20] sm:$0x77]  ;;  %v409_v21 = vrot.slane %v397_v3, 2 }
  0x3e   : > { %v327_v19 = vrot.slane %v297_v16, 5  ;;  %360 = vst [vmem:[#allocation2 + $0x38] sm:$0x38] %v326_v7  ;;  %v380_v20 = vld [vmem:[%s21171_s4 + $0x20] sm:$0x77]  ;;  %v812_v22 = vld [vmem:[#allocation2 + $0x88] sm:$0xff]  ;;  %v315_v34 = vcombine.high %v297_v16, %v297_v16 }
  0x3f   : > { %279 = vst [vmem:[#allocation2 + $0x48] sm:$0x7] %v258_v9  ;;  %v814_v23 = vld [vmem:[#allocation2 + $0x98] sm:$0xff]  ;;  %v745_v24 = vrot.slane %v736_v12, 6  ;;  %780 = vst [vmem:[#allocation2 + $0x120] sm:$0x1c] %v746_v13  ;;  %v21233_v28 = vpack.i.bf16 %v812_v22, %v795_v4  ;;  %v398_v41 = vcombine.high %v380_v20, %v380_v20 }
  0x40   : > { %v747_v25 = vrot.slane %v737_v14, 6  ;;  %v410_v26 = vrot.slane %v380_v20, 2  ;;  %v507_v27 = vrot.slane %v496_v61, 7  ;;  %v798_v29 = vld [vmem:[#allocation2 + $0x18] sm:$0xff]  ;;  %782 = vst [vmem:[#allocation2 + $0x130] sm:$0x1c] %v748_v17 }
  0x41   : > { %778 = vst [vmem:[#allocation2 + $0x110] sm:$0x1c] %v744_v18  ;;  %361 = vst [vmem:[#allocation2 + $0x40] sm:$0x38] %v327_v19  ;;  %v479_v30 = vld [vmem:[%s21179_s6 + $0x18] sm:$0x77]  ;;  %20275 = vrot.lane.b32.xlu0 %v21233_v28, %s21002_s22 }
  0x42   : > { %443 = vst [vmem:[#allocation2 + $0xc0] ss:$-132 sps:$4 sm:$0xc1] %v409_v21   ;;  %v562_v31 = vld [vmem:[%s21190_s21 + $0x18] sm:$0x77]  ;;  %v649_v32 = vrot.slane %v638_v8, 1  ;;  %v497_v40 = vcombine.high %v479_v30, %v479_v30 }
  0x43   : > { %v813_v35 = vld [vmem:[#allocation2 + $0x90] sm:$0xff]  ;;  %v815_v36 = vld [vmem:[#allocation2 + $0xa0] sm:$0xff]  ;;  %v816_v37 = vld [vmem:[#allocation2 + $0xa8] sm:$0xff]  ;;  %779 = vst [vmem:[#allocation2 + $0x118] sm:$0x1c] %v745_v24  ;;  %v508_v38 = vrot.slane %v479_v30, 7  ;;  %v580_v39 = vcombine.low %v562_v31, %v562_v31 }
  0x44   : > { %781 = vst [vmem:[#allocation2 + $0x128] sm:$0x1c] %v747_v25  ;;  %444 = vst [vmem:[#allocation2 + $0xc8] ss:$-132 sps:$4 sm:$0xc1] %v410_v26   ;;  %v21239_v42 = vpack.i.bf16 %v814_v23, %v813_v35  ;;  %v799_v44 = vld [vmem:[#allocation2 + $0x20] sm:$0xff]  ;;  %v21245_v48 = vpack.i.bf16 %v816_v37, %v815_v36 }
  0x45   : > { %541 = vst [vmem:[#allocation2 + $0xb0] sm:$0xe] %v507_v27  ;;  %602 = vst [vmem:[#allocation2 + $0xc0] sm:$0x70] %v562_v31  ;;  %v621_v45 = vld [vmem:[%s21197_s29 + $0x18] sm:$0x77]  ;;  %v21251_v58 = vpack.i.bf16 %v799_v44, %v798_v29  ;;  %20280 = vrot.lane.b32.xlu0 %v21241_v43, %s21002_s22 }
  0x46   : > { %683 = vst [vmem:[#allocation2 + $0x138] ss:$-132 sps:$4 sm:$0x83] %v649_v32   ;;  %v480_v46 = vld [vmem:[%s21179_s6 + $0x20] sm:$0x77]  ;;  %v749_v47 = vrot.slane %v738_v33, 6  ;;  %20290 = vrot.lane.b32.xlu1 %v21239_v42, %s21002_s22  ;;  %v639_v55 = vcombine.high %v621_v45, %v621_v45 }
  0x47   : > { %542 = vst [vmem:[#allocation2 + $0xb8] sm:$0xe] %v508_v38  ;;  %601 = vst [vmem:[#allocation2 + $0xb8] sm:$0x70] %v580_v39  ;;  %v650_v49 = vrot.slane %v621_v45, 1  ;;  %v509_v50 = vrot.slane %v497_v40, 7  ;;  %v498_v62 = vcombine.high %v480_v46, %v480_v46 }
  0x48   : > { %v510_v51 = vrot.slane %v480_v46, 7  ;;  %v563_v52 = vld [vmem:[%s21190_s21 + $0x20] sm:$0x77]  ;;  %783 = vst [vmem:[#allocation2 + $0x138] sm:$0x1c] %v749_v47  ;;  %v328_v56 = vrot.slane %v315_v34, 5 }
  0x49   : > { %v581_v53 = vcombine.low %v563_v52, %v563_v52  ;;  %v622_v54 = vld [vmem:[%s21197_s29 + $0x20] sm:$0x77]  ;;  %604 = vst [vmem:[#allocation2 + $0xd0] sm:$0x70] %v563_v52  ;;  %v411_v57 = vrot.slane %v398_v41, 2  ;;  %v651_v1 = vrot.slane %v639_v55, 1  ;;  %20285 = vrot.lane.b32.xlu0 %v21251_v58, %s21002_s22 }
  0x4a   : > { %684 = vst [vmem:[#allocation2 + $0x140] ss:$-132 sps:$4 sm:$0x83] %v650_v49   ;;  %543 = vst [vmem:[#allocation2 + $0xc0] sm:$0xe] %v509_v50  ;;  %v652_v59 = vrot.slane %v622_v54, 1  ;;  %v640_v63 = vcombine.high %v622_v54, %v622_v54  ;;  %20295 = vrot.lane.b32.xlu1 %v21245_v48, %s21002_s22 }
  0x4b   : > { %544 = vst [vmem:[#allocation2 + $0xc8] sm:$0xe] %v510_v51  ;;  %v721_v60 = vld [vmem:[%s21223_s28 + $0x18] sm:$0x77]  ;;  %v242_v61 = vld [vmem:[%s21163_s25 + $0x28] sm:$0x77] }
  0x4c   : > { %603 = vst [vmem:[#allocation2 + $0xc8] sm:$0x70] %v581_v53  ;;  %v750_v2 = vrot.slane %v721_v60, 6  ;;  %v739_v3 = vcombine.high %v721_v60, %v721_v60  ;;  %280 = vst [vmem:[#allocation2 + $0x50] sm:$0x7] %v242_v61  ;;  %v259_v5 = vcombine.high %v242_v61, %v242_v61  ;;  %v511_v7 = vrot.slane %v498_v62, 7 }
  0x4d   : > { %v298_v4 = vld [vmem:[%s21166_s26 + $0x28] sm:$0x77]  ;;  %362 = vst [vmem:[#allocation2 + $0x48] sm:$0x38] %v328_v56  ;;  %v653_v8 = vrot.slane %v640_v63, 1  ;;  %v21260_v11 = vld [vmem:[#allocation2 + $0x118] sm:$0xff] }
  0x4e   : > { %445 = vst [vmem:[#allocation2 + $0xd0] ss:$-132 sps:$4 sm:$0xc1] %v411_v57   ;;  %686 = vst [vmem:[#allocation2 + $0x150] ss:$-132 sps:$4 sm:$0x83] %v652_v59   ;;  %v316_v9 = vcombine.high %v298_v4, %v298_v4  ;;  %984 = vrot.lane.b32.xlu1 %v21260_v11, %s21002_s22 }
  0x4f   : > { %v329_v6 = vrot.slane %v298_v4, 5  ;;  %685 = vst [vmem:[#allocation2 + $0x148] ss:$-132 sps:$4 sm:$0x83] %v651_v1   ;;  %784 = vst [vmem:[#allocation2 + $0x140] sm:$0x1c] %v750_v2 }
  0x50   : > { %v751_v10 = vrot.slane %v739_v3, 6  ;;  %281 = vst [vmem:[#allocation2 + $0x58] sm:$0x7] %v259_v5  ;;  %v381_v12 = vld [vmem:[%s21171_s4 + $0x28] sm:$0x77]  ;;  %v330_v14 = vrot.slane %v316_v9, 5 }
  0x51   : > { %363 = vst [vmem:[#allocation2 + $0x50] sm:$0x38] %v329_v6  ;;  %v481_v13 = vld [vmem:[%s21179_s6 + $0x28] sm:$0x77]  ;;  %545 = vst [vmem:[#allocation2 + $0xd0] sm:$0xe] %v511_v7  ;;  %v399_v19 = vcombine.high %v381_v12, %v381_v12 }
  0x52   : > { %687 = vst [vmem:[#allocation2 + $0x158] ss:$-132 sps:$4 sm:$0x83] %v653_v8   ;;  %785 = vst [vmem:[#allocation2 + $0x148] sm:$0x1c] %v751_v10  ;;  %v412_v15 = vrot.slane %v381_v12, 2  ;;  %v499_v20 = vcombine.high %v481_v13, %v481_v13 }
  0x53   : > { %v512_v16 = vrot.slane %v481_v13, 7  ;;  %v564_v17 = vld [vmem:[%s21190_s21 + $0x28] sm:$0x77]  ;;  %v21268_v21 = vld [vmem:[#allocation2 + $0x120] sm:$0xff]  ;;  %v243_v26 = vld [vmem:[%s21163_s25 + $0x30] sm:$0x77] }
  0x54   : > { %v623_v18 = vld [vmem:[%s21197_s29 + $0x28] sm:$0x77]  ;;  %v582_v23 = vcombine.low %v564_v17, %v564_v17  ;;  %606 = vst [vmem:[#allocation2 + $0xe0] sm:$0x70] %v564_v17  ;;  %v722_v25 = vld [vmem:[%s21223_s28 + $0x20] sm:$0x77]  ;;  %v260_v34 = vcombine.high %v243_v26, %v243_v26  ;;  %986 = vrot.lane.b32.xlu0 %v21268_v21, %s21002_s22 }
  0x55   : > { %v800_v22 = vld [vmem:[#allocation2 + $0x28] sm:$0xff]  ;;  %v654_v24 = vrot.slane %v623_v18, 1  ;;  %364 = vst [vmem:[#allocation2 + $0x58] sm:$0x38] %v330_v14  ;;  %v641_v27 = vcombine.high %v623_v18, %v623_v18  ;;  %v801_v29 = vld [vmem:[#allocation2 + $0x30] sm:$0xff]  ;;  %v752_v30 = vrot.slane %v722_v25, 6  ;;  %v740_v31 = vcombine.high %v722_v25, %v722_v25 }
  0x56   : > { %446 = vst [vmem:[#allocation2 + $0xd8] ss:$-132 sps:$4 sm:$0xc1] %v412_v15   ;;  %546 = vst [vmem:[#allocation2 + $0xd8] sm:$0xe] %v512_v16  ;;  %v21276_v35 = vld [vmem:[#allocation2 + $0x128] sm:$0xff]  ;;  %v21289_v56 = vpack.i.bf16 %v801_v29, %v800_v22 }
  0x57   : > { %282 = vst [vmem:[#allocation2 + $0x60] sm:$0x7] %v243_v26  ;;  %v299_v32 = vld [vmem:[%s21166_s26 + $0x30] sm:$0x77]  ;;  %605 = vst [vmem:[#allocation2 + $0xd8] sm:$0x70] %v582_v23  ;;  %988 = vrot.lane.b32.xlu1 %v21276_v35, %s21002_s22 }
  0x58   : > { %v382_v33 = vld [vmem:[%s21171_s4 + $0x30] sm:$0x77]  ;;  %688 = vst [vmem:[#allocation2 + $0x160] ss:$-132 sps:$4 sm:$0x83] %v654_v24   ;;  %v331_v36 = vrot.slane %v299_v32, 5  ;;  %v317_v53 = vcombine.high %v299_v32, %v299_v32 }
  0x59   : > { %v413_v37 = vrot.slane %v399_v19, 2  ;;  %v414_v38 = vrot.slane %v382_v33, 2  ;;  %v723_v39 = vld [vmem:[%s21223_s28 + $0x28] sm:$0x77]  ;;  %v21281_v40 = vld [vmem:[#allocation2 + $0x130] sm:$0xff]  ;;  %v753_v41 = vrot.slane %v740_v31, 6  ;;  %v400_v54 = vcombine.high %v382_v33, %v382_v33 }
  0x5a   : > { %786 = vst [vmem:[#allocation2 + $0x150] sm:$0x1c] %v752_v30  ;;  %v655_v44 = vrot.slane %v641_v27, 1  ;;  %v741_v45 = vcombine.high %v723_v39, %v723_v39  ;;  %v482_v46 = vld [vmem:[%s21179_s6 + $0x30] sm:$0x77]  ;;  %v513_v47 = vrot.slane %v499_v20, 7  ;;  %990 = vrot.lane.b32.xlu0 %v21281_v40, %s21002_s22 }
  0x5b   : > { %283 = vst [vmem:[#allocation2 + $0x68] sm:$0x7] %v260_v34  ;;  %v21284_v49 = vld [vmem:[#allocation2 + $0x110] sm:$0xff]  ;;  %v802_v50 = vld [vmem:[#allocation2 + $0x38] sm:$0xff]  ;;  %365 = vst [vmem:[#allocation2 + $0x60] sm:$0x38] %v331_v36  ;;  %v500_v63 = vcombine.high %v482_v46, %v482_v46 }
  0x5c   : > { %447 = vst [vmem:[#allocation2 + $0xe0] ss:$-132 sps:$4 sm:$0xc1] %v413_v37   ;;  %448 = vst [vmem:[#allocation2 + $0xe8] ss:$-132 sps:$4 sm:$0xc1] %v414_v38   ;;  %982 = vrot.lane.b32.xlu1 %v21284_v49, %s21002_s22 }
  0x5d   : > { %v514_v51 = vrot.slane %v482_v46, 7  ;;  %v565_v52 = vld [vmem:[%s21190_s21 + $0x30] sm:$0x77]  ;;  %v754_v55 = vrot.slane %v723_v39, 6  ;;  %v803_v57 = vld [vmem:[#allocation2 + $0x40] sm:$0xff]  ;;  %v755_v59 = vrot.slane %v741_v45, 6 }
  0x5e   : > { %787 = vst [vmem:[#allocation2 + $0x158] sm:$0x1c] %v753_v41  ;;  %689 = vst [vmem:[#allocation2 + $0x168] ss:$-132 sps:$4 sm:$0x83] %v655_v44   ;;  %v583_v60 = vcombine.low %v565_v52, %v565_v52  ;;  %v21293_v1 = vld [vmem:[#allocation2 + $0xb0] sm:$0xff]  ;;  %v21305_v20 = vpack.i.bf16 %v803_v57, %v802_v50  ;;  %20300 = vrot.lane.b32.xlu0 %v21289_v56, %s21002_s22 }
  0x5f   : > { %547 = vst [vmem:[#allocation2 + $0xe0] sm:$0xe] %v513_v47  ;;  %v624_v61 = vld [vmem:[%s21197_s29 + $0x30] sm:$0x77]  ;;  %608 = vst [vmem:[#allocation2 + $0xf0] sm:$0x70] %v565_v52 }
  0x60   : > { %v244_v62 = vld [vmem:[%s21163_s25 + $0x38] sm:$0x77]  ;;  %548 = vst [vmem:[#allocation2 + $0xe8] sm:$0xe] %v514_v51  ;;  %v656_v2 = vrot.slane %v624_v61, 1  ;;  %v332_v4 = vrot.slane %v317_v53, 5  ;;  %v642_v6 = vcombine.high %v624_v61, %v624_v61  ;;  %20305 = vrot.lane.b32.xlu1 %v21305_v20, %s21002_s22 }
  0x61   : > { %284 = vst [vmem:[#allocation2 + $0x70] sm:$0x7] %v244_v62  ;;  %v300_v3 = vld [vmem:[%s21166_s26 + $0x38] sm:$0x77]  ;;  %v415_v5 = vrot.slane %v400_v54, 2  ;;  %v515_v10 = vrot.slane %v500_v63, 7  ;;  %v261_v12 = vcombine.high %v244_v62, %v244_v62 }
  0x62   : > { %788 = vst [vmem:[#allocation2 + $0x160] sm:$0x1c] %v754_v55  ;;  %789 = vst [vmem:[#allocation2 + $0x168] sm:$0x1c] %v755_v59  ;;  %v333_v7 = vrot.slane %v300_v3, 5  ;;  %v318_v13 = vcombine.high %v300_v3, %v300_v3  ;;  %v21300_v14 = vld [vmem:[#allocation2 + $0xb8] sm:$0xff] }
  0x63   : > { %607 = vst [vmem:[#allocation2 + $0xe8] sm:$0x70] %v583_v60  ;;  %v383_v8 = vld [vmem:[%s21171_s4 + $0x38] sm:$0x77]  ;;  %366 = vst [vmem:[#allocation2 + $0x68] sm:$0x38] %v332_v4  ;;  %v21316_v34 = vpack.i.bf16 %v21300_v14, %v21293_v1 }
  0x64   : > { %v483_v9 = vld [vmem:[%s21179_s6 + $0x38] sm:$0x77]  ;;  %690 = vst [vmem:[#allocation2 + $0x170] ss:$-132 sps:$4 sm:$0x83] %v656_v2   ;;  %v416_v15 = vrot.slane %v383_v8, 2  ;;  %v401_v19 = vcombine.high %v383_v8, %v383_v8 }
  0x65   : > { %449 = vst [vmem:[#allocation2 + $0xf0] ss:$-132 sps:$4 sm:$0xc1] %v415_v5   ;;  %v516_v16 = vrot.slane %v483_v9, 7  ;;  %v566_v17 = vld [vmem:[%s21190_s21 + $0x38] sm:$0x77]  ;;  %v501_v27 = vcombine.high %v483_v9, %v483_v9  ;;  %20310 = vrot.lane.b32.xlu0 %v21316_v34, %s21002_s22 }
  0x66   : > { %v657_v18 = vrot.slane %v642_v6, 1  ;;  %v820_v22 = vld [vmem:[#allocation2 + $0xc8] sm:$0xff]  ;;  %367 = vst [vmem:[#allocation2 + $0x70] sm:$0x38] %v333_v7  ;;  %549 = vst [vmem:[#allocation2 + $0xf0] sm:$0xe] %v515_v10  ;;  %v584_v23 = vcombine.low %v566_v17, %v566_v17 }
  0x67   : > { %v625_v24 = vld [vmem:[%s21197_s29 + $0x38] sm:$0x77]  ;;  %610 = vst [vmem:[#allocation2 + $0x100] sm:$0x70] %v566_v17  ;;  %v724_v25 = vld [vmem:[%s21223_s28 + $0x30] sm:$0x77] }
  0x68   : > { %285 = vst [vmem:[#allocation2 + $0x78] sm:$0x7] %v261_v12  ;;  %v334_v26 = vrot.slane %v318_v13, 5  ;;  %v21309_v29 = vld [vmem:[#allocation2 + $0xc0] sm:$0xff]  ;;  %550 = vst [vmem:[#allocation2 + $0xf8] sm:$0xe] %v516_v16  ;;  %v742_v37 = vcombine.high %v724_v25, %v724_v25  ;;  %v643_v39 = vcombine.high %v625_v24, %v625_v24 }
  0x69   : > { %450 = vst [vmem:[#allocation2 + $0xf8] ss:$-132 sps:$4 sm:$0xc1] %v416_v15   ;;  %v658_v30 = vrot.slane %v625_v24, 1  ;;  %v756_v31 = vrot.slane %v724_v25, 6  ;;  %v417_v33 = vrot.slane %v401_v19, 2  ;;  %v21323_v45 = vpack.i.bf16 %v820_v22, %v21309_v29 }
  0x6a   : > { %691 = vst [vmem:[#allocation2 + $0x178] ss:$-132 sps:$4 sm:$0x83] %v657_v18   ;;  %v245_v32 = vld [vmem:[%s21163_s25 + $0x40] sm:$0x7]  ;;  %v517_v38 = vrot.slane %v501_v27, 7 }
  0x6b   : > { %609 = vst [vmem:[#allocation2 + $0xf8] sm:$0x70] %v584_v23  ;;  %286 = vst [vmem:[#allocation2 + $0x80] sm:$0x7] %v245_v32  ;;  %v301_v36 = vld [vmem:[%s21166_s26 + $0x40] sm:$0x7]  ;;  %20315 = vrot.lane.b32.xlu1 %v21323_v45, %s21002_s22 }
  0x6c   : > { %368 = vst [vmem:[#allocation2 + $0x78] sm:$0x38] %v334_v26  ;;  %692 = vst [vmem:[#allocation2 + $0x180] ss:$-132 sps:$4 sm:$0x83] %v658_v30   ;;  %v335_v41 = vrot.slane %v301_v36, 5 }
  0x6d   : > { %790 = vst [vmem:[#allocation2 + $0x170] sm:$0x1c] %v756_v31  ;;  %v384_v44 = vld [vmem:[%s21171_s4 + $0x40] sm:$0x7]  ;;  %v757_v47 = vrot.slane %v742_v37, 6  ;;  %v659_v51 = vrot.slane %v643_v39, 1 }
  0x6e   : > { %451 = vst [vmem:[#allocation2 + $0x100] ss:$-132 sps:$4 sm:$0xc1] %v417_v33   ;;  %v418_v46 = vrot.slane %v384_v44, 2  ;;  %v484_v50 = vld [vmem:[%s21179_s6 + $0x40] sm:$0x7] }
  0x6f   : > { %551 = vst [vmem:[#allocation2 + $0x100] sm:$0xe] %v517_v38  ;;  %369 = vst [vmem:[#allocation2 + $0x80] sm:$0x38] %v335_v41  ;;  %v518_v52 = vrot.slane %v484_v50, 7  ;;  %v21330_v57 = vld [vmem:[#allocation2 + $0x138] sm:$0xff] }
  0x70   : > { %v626_v53 = vld [vmem:[%s21197_s29 + $0x40] sm:$0x7]  ;;  %452 = vst [vmem:[#allocation2 + $0x108] ss:$-132 sps:$4 sm:$0xc1] %v418_v46   ;;  %992 = vrot.lane.b32.xlu0 %v21330_v57, %s21002_s22  ;;  %v21340_v4 = vld [vmem:[#allocation2 + $0x148] sm:$0xff] }
  0x71   : > { %791 = vst [vmem:[#allocation2 + $0x178] sm:$0x1c] %v757_v47  ;;  %v20840_v54 = vld [vmem:[%s21190_s21 + $0x40] ss:$0 sps:$4 sm:$0x77]   ;;  %v660_v55 = vrot.slane %v626_v53, 1 }
  0x72   : > { %693 = vst [vmem:[#allocation2 + $0x188] ss:$-132 sps:$4 sm:$0x83] %v659_v51   ;;  %552 = vst [vmem:[#allocation2 + $0x108] sm:$0xe] %v518_v52  ;;  %v21336_v2 = vld [vmem:[#allocation2 + $0x140] sm:$0xff] }
  0x73   : > { %v725_v59 = vld [vmem:[%s21223_s28 + $0x38] sm:$0x77]  ;;  %v726_v60 = vld [vmem:[%s21223_s28 + $0x40] sm:$0x7]  ;;  %611 = vst [vmem:[#allocation2 + $0x108] sm:$0x70] %v20840_v54  ;;  %994 = vrot.lane.b32.xlu1 %v21336_v2, %s21002_s22 }
  0x74   : > { %694 = vst [vmem:[#allocation2 + $0x190] ss:$-132 sps:$4 sm:$0x83] %v660_v55   ;;  %v758_v61 = vrot.slane %v725_v59, 6  ;;  %v760_v62 = vrot.slane %v726_v60, 6  ;;  %v743_v63 = vcombine.high %v725_v59, %v725_v59  ;;  %v21342_v5 = vld [vmem:[#allocation2 + $0x48] sm:$0xff]  ;;  %996 = vrot.lane.b32.xlu0 %v21340_v4, %s21002_s22 }
  0x75   : > { %v21344_v6 = vld [vmem:[#allocation2 + $0x50] sm:$0xff]  ;;  %v21350_v8 = vld [vmem:[#allocation2 + $0x58] sm:$0xff]  ;;  %v807_v9 = vld [vmem:[#allocation2 + $0x60] sm:$0xff]  ;;  %s21003_s25 = smov 126   ;;  %s21004_s4 = smov 125  }
  0x76   : > { %792 = vst [vmem:[#allocation2 + $0x180] sm:$0x1c] %v758_v61  ;;  %794 = vst [vmem:[#allocation2 + $0x190] sm:$0x1c] %v760_v62  ;;  %v759_v3 = vrot.slane %v743_v63, 6  ;;  %v21348_v7 = vld [vmem:[#allocation2 + $0x150] sm:$0xff]  ;;  %v21356_v10 = vpack.i.bf16 %v21344_v6, %v21342_v5  ;;  %v21365_v15 = vpack.i.bf16 %v807_v9, %v21350_v8 }
  0x77   : > { %v21358_v12 = vld [vmem:[#allocation2 + $0xd0] sm:$0xff]  ;;  %v21360_v13 = vld [vmem:[#allocation2 + $0xd8] sm:$0xff]  ;;  %998 = vrot.lane.b32.xlu1 %v21348_v7, %s21002_s22  ;;  %v21367_v16 = vld [vmem:[#allocation2 + $0xe0] sm:$0xff]  ;;  %s21005_s6 = smov 124   ;;  %s21006_s8 = smov 123  }
  0x78   : > { %793 = vst [vmem:[#allocation2 + $0x188] sm:$0x1c] %v759_v3  ;;  %v824_v17 = vld [vmem:[#allocation2 + $0xe8] sm:$0xff]  ;;  %20320 = vrot.lane.b32.xlu0 %v21356_v10, %s21002_s22  ;;  %v21373_v18 = vpack.i.bf16 %v21360_v13, %v21358_v12  ;;  %v21382_v22 = vld [vmem:[#allocation2 + $0x158] sm:$0xff]  ;;  %v21386_v23 = vld [vmem:[#allocation2 + $0x160] sm:$0xff]  ;;  %s19193_s11 = sshll.u32 (%p21076_p5), %s20983_s14, 1 }
  0x79   : > { %v21378_v19 = vpack.i.bf16 %v824_v17, %v21367_v16  ;;  %v21390_v24 = vld [vmem:[#allocation2 + $0x168] sm:$0xff]  ;;  %v809_v26 = vld [vmem:[#allocation2 + $0x70] sm:$0xff]  ;;  %v21398_v30 = vld [vmem:[#allocation2 + $0x78] sm:$0xff]  ;;  %s19194_s21 = sshll.u32 (%p21076_p5), %s20987_s15, 8 }
  0x7a   : > { %v21392_v25 = vld [vmem:[#allocation2 + $0x68] sm:$0xff]  ;;  %v21396_v27 = vld [vmem:[#allocation2 + $0x170] sm:$0xff]  ;;  %v811_v31 = vld [vmem:[#allocation2 + $0x80] sm:$0xff]  ;;  %s18052_s23 = sadd.s32 (%p21076_p5), %s19194_s21, %s19193_s11 }
  0x7b   : > { %20325 = vrot.lane.b32.xlu1 %v21365_v15, %s21002_s22  ;;  %v21403_v32 = vpack.i.bf16 %v809_v26, %v21392_v25  ;;  %v21405_v33 = vld [vmem:[#allocation2 + $0xf0] sm:$0xff]  ;;  %v826_v36 = vld [vmem:[#allocation2 + $0xf8] sm:$0xff]  ;;  %v21410_v37 = vpack.i.bf16 %v811_v31, %v21398_v30  ;;  %v21412_v38 = vld [vmem:[#allocation2 + $0x100] sm:$0xff]  ;;  %s19195_s24 = sshll.u32 (%p21076_p5), %s18052_s23, 3 }
  0x7c   : > { %20330 = vrot.lane.b32.xlu0 %v21373_v18, %s21002_s22  ;;  %v828_v39 = vld [vmem:[#allocation2 + $0x108] sm:$0xff]  ;;  %v21417_v41 = vpack.i.bf16 %v826_v36, %v21405_v33  ;;  %v21426_v46 = vld [vmem:[#allocation2 + $0x178] sm:$0xff]  ;;  %s28549_s5 = scalar_lea.vmem (%p21076_p5), %s28822_s3, %s19195_s24 }
  0x7d   : > { %v21422_v44 = vpack.i.bf16 %v828_v39, %v21412_v38  ;;  %v21430_v47 = vld [vmem:[#allocation2 + $0x180] sm:$0xff]  ;;  %v21438_v51 = vld [vmem:[#allocation2 + $0x190] sm:$0xff] }
  0x7f   : > { %20335 = vrot.lane.b32.xlu1 %v21378_v19, %s21002_s22  ;;  %v21434_v50 = vld [vmem:[#allocation2 + $0x188] sm:$0xff] }
  0x80   : > { %1000 = vrot.lane.b32.xlu0 %v21382_v22, %s21002_s22 }
  0x83   : > { %1002 = vrot.lane.b32.xlu1 %v21386_v23, %s21002_s22 }
  0x84   : > { %1004 = vrot.lane.b32.xlu0 %v21390_v24, %s21002_s22 }
  0x87   : > { %1006 = vrot.lane.b32.xlu1 %v21396_v27, %s21002_s22 }
  0x88   : > { %20340 = vrot.lane.b32.xlu0 %v21403_v32, %s21002_s22 }
  0x8b   : > { %20345 = vrot.lane.b32.xlu1 %v21410_v37, %s21002_s22 }
  0x8c   : > { %20350 = vrot.lane.b32.xlu0 %v21417_v41, %s21002_s22 }
  0x8f   : > { %20355 = vrot.lane.b32.xlu1 %v21422_v44, %s21002_s22 }
  0x90   : > { %1008 = vrot.lane.b32.xlu0 %v21426_v46, %s21002_s22 }
  0x93   : > { %1010 = vrot.lane.b32.xlu1 %v21430_v47, %s21002_s22 }
  0x94   : > { %1012 = vrot.lane.b32.xlu0 %v21434_v50, %s21002_s22 }
  0x97   : > { %1014 = vrot.lane.b32.xlu1 %v21438_v51, %s21002_s22 }
  0x98   : > { %20360 = vrot.lane.b32.xlu0 %v21241_v43, %s21003_s25 }
  0x9b   : > { %20365 = vrot.lane.b32.xlu1 %v21251_v58, %s21003_s25 }
  0x9c   : > { %20370 = vrot.lane.b32.xlu0 %v21239_v42, %s21003_s25 }
  0x9f   : > { %20375 = vrot.lane.b32.xlu1 %v21245_v48, %s21003_s25 }
  0xa0   : > { %20380 = vrot.lane.b32.xlu0 %v21233_v28, %s21003_s25 }
  0xa3   : > { %3049 = vrot.lane.b32.xlu1 %v21260_v11, %s21003_s25 }
  0xa4   : > { %3051 = vrot.lane.b32.xlu0 %v21268_v21, %s21003_s25 }
  0xa7   : > { %3053 = vrot.lane.b32.xlu1 %v21276_v35, %s21003_s25 }
  0xa8   : > { %3055 = vrot.lane.b32.xlu0 %v21281_v40, %s21003_s25 }
  0xab   : > { %3047 = vrot.lane.b32.xlu1 %v21284_v49, %s21003_s25  ;;  %v21494_v49 = vld [vmem:[%s28820_s1 + $0x40] sm:$0xff] }
  0xac   : > { %20385 = vrot.lane.b32.xlu0 %v21289_v56, %s21003_s25 }
  0xaf   : > { %20390 = vrot.lane.b32.xlu1 %v21305_v20, %s21003_s25 }
  0xb0   : > { %20395 = vrot.lane.b32.xlu0 %v21316_v34, %s21003_s25 }
  0xb3   : > { %v20276_v43 = vpop.permute.xlu0 %20275  ;;  %20400 = vrot.lane.b32.xlu1 %v21323_v45, %s21003_s25 }
  0xb4   : > { %v20278_v42 = vunpack.i.h.bf16 %v20276_v43  ;;  %v20277_v58 = vunpack.i.l.bf16 %v20276_v43  ;;  %3057 = vrot.lane.b32.xlu0 %v21330_v57, %s21003_s25 }
  0xb7   : > { %v20281_v21 = vpop.permute.xlu0 %20280  ;;  %3059 = vrot.lane.b32.xlu1 %v21336_v2, %s21003_s25 }
  0xb8   : > { %v20291_v52 = vpop.permute.xlu1 %20290  ;;  %v20283_v40 = vunpack.i.h.bf16 %v20281_v21  ;;  %v20282_v54 = vunpack.i.l.bf16 %v20281_v21  ;;  %3061 = vrot.lane.b32.xlu0 %v21340_v4, %s21003_s25 }
  0xb9   : > { %v20293_v53 = vunpack.i.h.bf16 %v20291_v52  ;;  %v20292_v28 = vunpack.i.l.bf16 %v20291_v52 }
  0xba   : > { %v1018_v61 = vsel %vm1016_vm0, %v20282_v54, %v20283_v40  ;;  %v1017_v11 = vsel %vm1016_vm0, %v20277_v58, %v20282_v54 }
  0xbb   : > { %v1034_v56 = vsel %vm1016_vm0, %v20292_v28, %v20293_v53  ;;  %v1033_v55 = vsel %vm1016_vm0, %v20278_v42, %v20292_v28  ;;  %v20286_v34 = vpop.permute.xlu0 %20285  ;;  %3063 = vrot.lane.b32.xlu1 %v21348_v7, %s21003_s25 }
  0xbc   : > { %v21464_v48 = vpop.permute.xlu1 %20295  ;;  %v19216_v62 = vpack.c.bf16 %v1034_v56, %v1018_v61  ;;  %v19218_v63 = vpack.c.bf16 %v1033_v55, %v1017_v11  ;;  %v20288_v3 = vunpack.i.h.bf16 %v20286_v34  ;;  %v20287_v9 = vunpack.i.l.bf16 %v20286_v34  ;;  %20405 = vrot.lane.b32.xlu0 %v21356_v10, %s21003_s25 }
  0xbd   : > { %v20298_v59 = vunpack.i.h.bf16 %v21464_v48  ;;  %v20297_v60 = vunpack.i.l.bf16 %v21464_v48  ;;  %v21549_v48 = vld [vmem:[%s28820_s1 + $0x58] sm:$0xff] }
  0xbe   : > { %19217 = vmatprep.subr.bf16.mxu0 %v19216_v62  ;;  %v1020_v31 = vsel %vm1016_vm0, %v20287_v9, %v20288_v3  ;;  %v1019_v36 = vsel %vm1016_vm0, %v20283_v40, %v20287_v9 }
  0xbf   : > { %v1036_v26 = vsel %vm1016_vm0, %v20297_v60, %v20298_v59  ;;  %19219 = vmatpush1.bf16.msra.mxu0 %v19218_v63  ;;  %v1035_v35 = vsel %vm1016_vm0, %v20293_v53, %v20297_v60  ;;  %v21506_v60 = vld [vmem:[%s28820_s1 + $0x48] sm:$0xff]  ;;  %20410 = vrot.lane.b32.xlu1 %v21365_v15, %s21003_s25 }
  0xc0   : > { %v985_v17 = vpop.permute.xlu1 %984  ;;  %v19220_v43 = vpack.c.bf16 %v1036_v26, %v1020_v31  ;;  %v19222_v42 = vpack.c.bf16 %v1035_v35, %v1019_v36  ;;  %v21521_v26 = vld [vmem:[%s28820_s1 + $0x50] sm:$0xff]  ;;  %20415 = vrot.lane.b32.xlu0 %v21373_v18, %s21003_s25 }
  0xc2   : > { %19221 = vmatprep.subr.bf16.mxu1 %v19220_v43 }
  0xc3   : > { %19223 = vmatpush1.bf16.msra.mxu1 %v19222_v42  ;;  %20420 = vrot.lane.b32.xlu1 %v21378_v19, %s21003_s25 }
  0xc4   : > { %3065 = vrot.lane.b32.xlu0 %v21382_v22, %s21003_s25 }
  0xc6   : > { %v987_v39 = vpop.permute.xlu0 %986 }
  0xc7   : > { %v1050_v52 = vsel %vm1016_vm0, %v985_v17, %v987_v39  ;;  %3067 = vrot.lane.b32.xlu1 %v21386_v23, %s21003_s25 }
  0xc8   : > { %1142 = vmatprep.subr.mxu0 %v1050_v52  ;;  %3069 = vrot.lane.b32.xlu0 %v21390_v24, %s21003_s25 }
  0xc9   : > { %v989_v28 = vpop.permute.xlu1 %988 }
  0xca   : > { %v1051_v40 = vsel %vm1016_vm0, %v987_v39, %v989_v28 }
  0xcb   : > { %3071 = vrot.lane.b32.xlu1 %v21396_v27, %s21003_s25 }
  0xcc   : > { %v21487_v21 = vpop.permute.xlu0 %990  ;;  %20425 = vrot.lane.b32.xlu0 %v21403_v32, %s21003_s25 }
  0xcd   : > { %v1052_v53 = vsel %vm1016_vm0, %v989_v28, %v21487_v21 }
  0xce   : > { %v983_v58 = vpop.permute.xlu1 %982  ;;  %1255 = vmatprep.subr.mxu1 %v1052_v53 }
  0xcf   : > { %1256 = vmatpush1.msra.mxu1 %v1051_v40  ;;  %v1049_v54 = vsel %vm1016_vm0, %v983_v58, %v985_v17  ;;  %20430 = vrot.lane.b32.xlu1 %v21410_v37, %s21003_s25  ;;  %v20847_v37 = vld [vmem:[#allocation2 + $0x10] sm:$0xff] }
  0xd0   : > { %v20301_v56 = vpop.permute.xlu0 %20300  ;;  %1143 = vmatpush1.msra.mxu0 %v1049_v54  ;;  %18712 = vmatmul.mubr.msk.f32.vlgmr.msra.gmra.mrb[0].mxu1 %vm1113_vm1, %v21494_v49 }
  0xd1   : > { %v20303_v55 = vunpack.i.h.bf16 %v20301_v56  ;;  %18704 = vmatmul.mubr.msk.f32.vlgmr.msra.gmra.mrb[0].mxu0 %vm1113_vm1, %v21494_v49  ;;  %1321 = vmatprep.mubr.f32.mxu1 %v21001_v0  ;;  %v20302_v61 = vunpack.i.l.bf16 %v20301_v56 }
  0xd2   : > { %v21508_v11 = vpop.permute.xlu1 %20305  ;;  %1208 = vmatprep.mubr.f32.mxu0 %v21001_v0  ;;  %20435 = vrot.lane.b32.xlu0 %v21417_v41, %s21003_s25 }
  0xd3   : > { %v28824_v34 = vunpack.i.h.bf16 %v21508_v11  ;;  %v20307_v62 = vunpack.i.l.bf16 %v21508_v11  ;;  %v1022_v31 = vsel %vm1016_vm0, %v20302_v61, %v20303_v55  ;;  %v1021_v36 = vsel %vm1016_vm0, %v20288_v3, %v20302_v61  ;;  %20440 = vrot.lane.b32.xlu1 %v21422_v44, %s21003_s25 }
  0xd4   : > { %18713 = vmatmul.mubr.msk.f32.gmra.mrb[2].mxu1 %vm1113_vm1, %v21506_v60 }
  0xd5   : > { %18705 = vmatmul.mubr.msk.f32.gmra.mrb[2].mxu0 %vm1113_vm1, %v21506_v60  ;;  %1327 = vmatprep.mubr.f32.mxu1 %v21001_v0  ;;  %v1023_v35 = vsel %vm1016_vm0, %v20303_v55, %v20307_v62  ;;  %v1024_v43 = vsel %vm1016_vm0, %v20307_v62, %v28824_v34 }
  0xd6   : > { %1214 = vmatprep.mubr.f32.mxu0 %v21001_v0  ;;  %3073 = vrot.lane.b32.xlu0 %v21426_v46, %s21003_s25 }
  0xd7   : > { %v20311_v63 = vpop.permute.xlu0 %20310  ;;  %3075 = vrot.lane.b32.xlu1 %v21430_v47, %s21003_s25  ;;  %v20848_v47 = vld [vmem:[#allocation2 + $0x98] sm:$0xff] }
  0xd8   : > { %v20313_v9 = vunpack.i.h.bf16 %v20311_v63  ;;  %v20312_v17 = vunpack.i.l.bf16 %v20311_v63  ;;  %18714 = vmatmul.mubr.msk.f32.gmra.mrb[4].mxu1 %vm1113_vm1, %v21521_v26  ;;  %v21563_v63 = vld [vmem:[%s28820_s1 + $0x60] sm:$0xff] }
  0xd9   : > { %18706 = vmatmul.mubr.msk.f32.gmra.mrb[4].mxu0 %vm1113_vm1, %v21521_v26  ;;  %1333 = vmatprep.mubr.f32.mxu1 %v21001_v0 }
  0xda   : > { %v1037_v42 = vsel %vm1016_vm0, %v20298_v59, %v20312_v17  ;;  %v1038_v3 = vsel %vm1016_vm0, %v20312_v17, %v20313_v9  ;;  %1220 = vmatprep.mubr.f32.mxu0 %v21001_v0  ;;  %3077 = vrot.lane.b32.xlu0 %v21434_v50, %s21003_s25 }
  0xdb   : > { %v19224_v58 = vpack.c.bf16 %v1038_v3, %v1022_v31  ;;  %v19226_v40 = vpack.c.bf16 %v1037_v42, %v1021_v36  ;;  %3079 = vrot.lane.b32.xlu1 %v21438_v51, %s21003_s25  ;;  %v20849_v51 = vld [vmem:[#allocation2] sm:$0xff] }
  0xdc   : > { %18715 = vmatmul.mubr.msk.f32.gmra.mrb[6].mxu1 %vm1113_vm1, %v21549_v48 }
  0xdd   : > { %v21526_v39 = vpop.permute.xlu1 %20315  ;;  %19225 = vmatprep.subr.bf16.mxu0 %v19224_v58  ;;  %18707 = vmatmul.mubr.msk.f32.gmra.mrb[6].mxu0 %vm1113_vm1, %v21549_v48 }
  0xde   : > { %v20318_v52 = vunpack.i.h.bf16 %v21526_v39  ;;  %v20317_v28 = vunpack.i.l.bf16 %v21526_v39  ;;  %19227 = vmatpush1.bf16.msra.mxu0 %v19226_v40  ;;  %1339 = vmatprep.mubr.f32.mxu1 %v21001_v0 }
  0xdf   : > { %1226 = vmatprep.mubr.f32.mxu0 %v21001_v0 }
  0xe0   : > { %v1039_v54 = vsel %vm1016_vm0, %v20313_v9, %v20317_v28  ;;  %v1040_v59 = vsel %vm1016_vm0, %v20317_v28, %v20318_v52  ;;  %18716 = vmatmul.mubr.msk.f32.gmra.mrb[8].mxu1 %vm1113_vm1, %v21563_v63 }
  0xe1   : > { %v19228_v20 = vpack.c.bf16 %v1040_v59, %v1024_v43  ;;  %v19230_v55 = vpack.c.bf16 %v1039_v54, %v1023_v35  ;;  %18708 = vmatmul.mubr.msk.f32.gmra.mrb[8].mxu0 %vm1113_vm1, %v21563_v63  ;;  %1345 = vmatprep.mubr.f32.mxu1 %v21001_v0  ;;  %v21601_v59 = vld [vmem:[%s28820_s1 + $0x70] sm:$0xff] }
  0xe2   : > { %v993_v53 = vpop.permute.xlu0 %992  ;;  %1232 = vmatprep.mubr.f32.mxu0 %v21001_v0 }
  0xe3   : > { %19229 = vmatprep.subr.bf16.mxu1 %v19228_v20  ;;  %v1053_v9 = vsel %vm1016_vm0, %v21487_v21, %v993_v53  ;;  %v21582_v21 = vld [vmem:[%s28820_s1 + $0x68] sm:$0xff] }
  0xe4   : > { %19231 = vmatpush1.bf16.msra.mxu1 %v19230_v55 }
  0xe5   : > { %v995_v56 = vpop.permute.xlu1 %994  ;;  %18717 = vmatmul.mubr.msk.f32.gmra.mrb[10].mxu1 %vm1113_vm1, %v21582_v21  ;;  %18709 = vmatmul.mubr.msk.f32.gmra.mrb[10].mxu0 %vm1113_vm1, %v21582_v21 }
  0xe6   : > { %v1054_v61 = vsel %vm1016_vm0, %v993_v53, %v995_v56  ;;  %v997_v62 = vpop.permute.xlu0 %996  ;;  %1351 = vmatprep.mubr.f32.mxu1 %v21001_v0  ;;  %1238 = vmatprep.mubr.f32.mxu0 %v21001_v0 }
  0xe7   : > { %1368 = vmatprep.subr.mxu0 %v1054_v61  ;;  %v1055_v36 = vsel %vm1016_vm0, %v995_v56, %v997_v62 }
  0xe8   : > { %1369 = vmatpush1.msra.mxu0 %v1053_v9 }
  0xe9   : > { %v21568_v17 = vpop.permute.xlu1 %998  ;;  %18718 = vmatmul.mubr.msk.f32.gmra.mrb[12].mxu1 %vm1113_vm1, %v21601_v59  ;;  %18710 = vmatmul.mubr.msk.f32.gmra.mrb[12].mxu0 %vm1113_vm1, %v21601_v59 }
  0xea   : > { %v1056_v31 = vsel %vm1016_vm0, %v997_v62, %v21568_v17  ;;  %v20321_v35 = vpop.permute.xlu0 %20320  ;;  %1357 = vmatprep.mubr.f32.mxu1 %v21001_v0  ;;  %1244 = vmatprep.mubr.f32.mxu0 %v21001_v0 }
  0xeb   : > { %1481 = vmatprep.subr.mxu1 %v1056_v31  ;;  %v20323_v43 = vunpack.i.h.bf16 %v20321_v35  ;;  %v20322_v28 = vunpack.i.l.bf16 %v20321_v35 }
  0xec   : > { %1482 = vmatpush1.msra.mxu1 %v1055_v36  ;;  %v21625_v36 = vld [vmem:[%s28820_s1 + $0x78] sm:$0xff] }
  0xed   : > { %v21585_v42 = vpop.permute.xlu1 %20325  ;;  %v1026_v45 = vsel %vm1016_vm0, %v20322_v28, %v20323_v43  ;;  %18719 = vmatmul.mubr.msk.f32.gmra.mrb[14].mxu1 %vm1113_vm1, %v21625_v36  ;;  %18711 = vmatmul.mubr.msk.f32.gmra.mrb[14].mxu0 %vm1113_vm1, %v21625_v36 }
  0xee   : > { %v28823_v3 = vunpack.i.h.bf16 %v21585_v42  ;;  %v20327_v53 = vunpack.i.l.bf16 %v21585_v42  ;;  %v20331_v58 = vpop.permute.xlu0 %20330  ;;  %1541 = vmatprep.mubr.f32.mxu1 %v21001_v0  ;;  %1428 = vmatprep.mubr.f32.mxu0 %v21001_v0 }
  0xef   : > { %v20333_v40 = vunpack.i.h.bf16 %v20331_v58  ;;  %v20332_v54 = vunpack.i.l.bf16 %v20331_v58 }
  0xf0   : > { %v1028_v62 = vsel %vm1016_vm0, %v20327_v53, %v28823_v3 }
  0xf1   : > { %v21605_v56 = vpop.permute.xlu1 %20335  ;;  %v1042_v61 = vsel %vm1016_vm0, %v20332_v54, %v20333_v40  ;;  %18728 = vmatmul.mubr.msk.f32.vlgmr.msra.gmra.mrb[16].mxu1 %vm1113_vm1, %v21494_v49  ;;  %18720 = vmatmul.mubr.msk.f32.vlgmr.msra.gmra.mrb[16].mxu0 %vm1113_vm1, %v21494_v49 }
  0xf2   : > { %v20338_v20 = vunpack.i.h.bf16 %v21605_v56  ;;  %v20337_v55 = vunpack.i.l.bf16 %v21605_v56  ;;  %v1001_v9 = vpop.permute.xlu0 %1000  ;;  %v19232_v31 = vpack.c.bf16 %v1042_v61, %v1026_v45  ;;  %v1027_v45 = vsel %vm1016_vm0, %v20323_v43, %v20327_v53  ;;  %1547 = vmatprep.mubr.f32.mxu1 %v21001_v0  ;;  %1434 = vmatprep.mubr.f32.mxu0 %v21001_v0 }
  0xf3   : > { %v28829_v43 = vunpack.i.h.bf16 %v21508_v11 }
  0xf4   : > { %v1044_v35 = vsel %vm1016_vm0, %v20337_v55, %v20338_v20  ;;  %19233 = vmatprep.subr.bf16.mxu0 %v19232_v31  ;;  %v1043_v34 = vsel %vm1016_vm0, %v20333_v40, %v20337_v55  ;;  %v1041_v31 = vsel %vm1016_vm0, %v20318_v52, %v20332_v54 }
  0xf5   : > { %v1003_v58 = vpop.permute.xlu1 %1002  ;;  %v19236_v3 = vpack.c.bf16 %v1044_v35, %v1028_v62  ;;  %v1025_v53 = vsel %vm1016_vm0, %v28829_v43, %v20322_v28  ;;  %v19238_v35 = vpack.c.bf16 %v1043_v34, %v1027_v45  ;;  %18729 = vmatmul.mubr.msk.f32.gmra.mrb[18].mxu1 %vm1113_vm1, %v21506_v60  ;;  %18721 = vmatmul.mubr.msk.f32.gmra.mrb[18].mxu0 %vm1113_vm1, %v21506_v60 }
  0xf6   : > { %v1005_v61 = vpop.permute.xlu0 %1004  ;;  %v19234_v52 = vpack.c.bf16 %v1041_v31, %v1025_v53  ;;  %1553 = vmatprep.mubr.f32.mxu1 %v21001_v0  ;;  %1440 = vmatprep.mubr.f32.mxu0 %v21001_v0 }
  0xf7   : > { %19237 = vmatprep.subr.bf16.mxu1 %v19236_v3  ;;  %v1058_v3 = vsel %vm1016_vm0, %v1001_v9, %v1003_v58  ;;  %v1059_v31 = vsel %vm1016_vm0, %v1003_v58, %v1005_v61 }
  0xf8   : > { %19235 = vmatpush1.bf16.msra.mxu0 %v19234_v52  ;;  %19239 = vmatpush1.bf16.msra.mxu1 %v19238_v35  ;;  %v1057_v52 = vsel %vm1016_vm0, %v21568_v17, %v1001_v9 }
  0xf9   : > { %v21646_v62 = vpop.permute.xlu1 %1006  ;;  %1594 = vmatprep.subr.mxu0 %v1058_v3  ;;  %18730 = vmatmul.mubr.msk.f32.gmra.mrb[20].mxu1 %vm1113_vm1, %v21521_v26 }
  0xfa   : > { %v21653_v39 = vpop.permute.xlu0 %20340  ;;  %v1060_v11 = vsel %vm1016_vm0, %v1005_v61, %v21646_v62  ;;  %18722 = vmatmul.mubr.msk.f32.gmra.mrb[20].mxu0 %vm1113_vm1, %v21521_v26  ;;  %1559 = vmatprep.mubr.f32.mxu1 %v21001_v0 }
  0xfb   : > { %v20343_v40 = vunpack.i.h.bf16 %v21653_v39  ;;  %v20342_v28 = vunpack.i.l.bf16 %v21653_v39  ;;  %1707 = vmatprep.subr.mxu1 %v1060_v11  ;;  %1446 = vmatprep.mubr.f32.mxu0 %v21001_v0 }
  0xfc   : > { %1595 = vmatpush1.msra.mxu0 %v1057_v52  ;;  %1708 = vmatpush1.msra.mxu1 %v1059_v31  ;;  %v28830_v31 = vunpack.i.h.bf16 %v21585_v42 }
  0xfd   : > { %v20346_v34 = vpop.permute.xlu1 %20345  ;;  %v1030_v35 = vsel %vm1016_vm0, %v20342_v28, %v20343_v40  ;;  %18731 = vmatmul.mubr.msk.f32.gmra.mrb[22].mxu1 %vm1113_vm1, %v21549_v48 }
  0xfe   : > { %v20348_v54 = vunpack.i.h.bf16 %v20346_v34  ;;  %v20347_v55 = vunpack.i.l.bf16 %v20346_v34  ;;  %v20351_v45 = vpop.permute.xlu0 %20350  ;;  %18723 = vmatmul.mubr.msk.f32.gmra.mrb[22].mxu0 %vm1113_vm1, %v21549_v48  ;;  %1565 = vmatprep.mubr.f32.mxu1 %v21001_v0  ;;  %v1029_v52 = vsel %vm1016_vm0, %v28830_v31, %v20342_v28  ;;  %v21834_v31 = vld [vmem:[#allocation2 + $0x128] sm:$0xff] }
  0xff   : > { %v20353_v43 = vunpack.i.h.bf16 %v20351_v45  ;;  %v20352_v53 = vunpack.i.l.bf16 %v20351_v45  ;;  %1452 = vmatprep.mubr.f32.mxu0 %v21001_v0 }
 0x100   : > { %v1032_v34 = vsel %vm1016_vm0, %v20347_v55, %v20348_v54  ;;  %v1031_v27 = vsel %vm1016_vm0, %v20343_v40, %v20347_v55 }
 0x101   : > { %v20356_v3 = vpop.permute.xlu1 %20355  ;;  %v1046_v11 = vsel %vm1016_vm0, %v20352_v53, %v20353_v43  ;;  %18732 = vmatmul.mubr.msk.f32.gmra.mrb[24].mxu1 %vm1113_vm1, %v21563_v63 }
 0x102   : > { %v20358_v58 = vunpack.i.h.bf16 %v20356_v3  ;;  %v20357_v61 = vunpack.i.l.bf16 %v20356_v3  ;;  %v19240_v17 = vpack.c.bf16 %v1046_v11, %v1030_v35  ;;  %18724 = vmatmul.mubr.msk.f32.gmra.mrb[24].mxu0 %vm1113_vm1, %v21563_v63  ;;  %1571 = vmatprep.mubr.f32.mxu1 %v21001_v0  ;;  %v1009_v15 = vpop.permute.xlu0 %1008  ;;  %v1045_v35 = vsel %vm1016_vm0, %v20338_v20, %v20352_v53  ;;  %v20843_v20 = vld [vmem:[#allocation2 + $0x8] sm:$0xff] }
 0x103   : > { %1458 = vmatprep.mubr.f32.mxu0 %v21001_v0  ;;  %v19242_v42 = vpack.c.bf16 %v1045_v35, %v1029_v52  ;;  %v21795_v44 = vpack.i.bf16 %v20847_v37, %v20843_v20  ;;  %v21848_v35 = vld [vmem:[#allocation2 + $0x120] sm:$0xff] }
 0x104   : > { %v1048_v9 = vsel %vm1016_vm0, %v20357_v61, %v20358_v58  ;;  %19241 = vmatprep.subr.bf16.mxu0 %v19240_v17  ;;  %v1047_v54 = vsel %vm1016_vm0, %v20353_v43, %v20357_v61  ;;  %v20844_v43 = vld [vmem:[#allocation2 + $0x90] sm:$0xff]  ;;  %v21754_v58 = vld [vmem:[#allocation2 + $0x18] sm:$0xff]  ;;  %v21756_v61 = vld [vmem:[#allocation2 + $0xa0] sm:$0xff] }
 0x105   : > { %v19244_v45 = vpack.c.bf16 %v1048_v9, %v1032_v34  ;;  %18733 = vmatmul.mubr.msk.f32.gmra.mrb[26].mxu1 %vm1113_vm1, %v21582_v21  ;;  %v1011_v19 = vpop.permute.xlu1 %1010  ;;  %v19246_v55 = vpack.c.bf16 %v1047_v54, %v1031_v27  ;;  %v19248_v53 = vpack.c.bf16 %v20844_v43, %v20843_v20  ;;  %v19252_v11 = vpack.c.bf16 %v21756_v61, %v21754_v58  ;;  %v20850_v17 = vld [vmem:[#allocation2 + $0x88] sm:$0xff] }
 0x106   : > { %18725 = vmatmul.mubr.msk.f32.gmra.mrb[26].mxu0 %vm1113_vm1, %v21582_v21  ;;  %1577 = vmatprep.mubr.f32.mxu1 %v21001_v0  ;;  %v1013_v40 = vpop.permute.xlu0 %1012  ;;  %v1062_v28 = vsel %vm1016_vm0, %v1009_v15, %v1011_v19  ;;  %v1061_v34 = vsel %vm1016_vm0, %v21646_v62, %v1009_v15  ;;  %v21807_v62 = vpack.i.bf16 %v20848_v47, %v20844_v43  ;;  %v20852_v27 = vld [vmem:[#allocation2 + $0x28] sm:$0xff] }
 0x107   : > { %19245 = vmatprep.subr.bf16.mxu1 %v19244_v45  ;;  %1464 = vmatprep.mubr.f32.mxu0 %v21001_v0  ;;  %v1063_v3 = vsel %vm1016_vm0, %v1011_v19, %v1013_v40  ;;  %v21817_v9 = vpack.i.bf16 %v20850_v17, %v20849_v51  ;;  %v19250_v45 = vpack.c.bf16 %v20850_v17, %v20849_v51  ;;  %v21828_v19 = vld [vmem:[#allocation2 + $0x118] sm:$0xff] }
 0x108   : > { %20445 = vrot.lane.b32.xlu0 %v21795_v44, %s21004_s4  ;;  %v19254_v15 = vpack.c.bf16 %v20848_v47, %v20847_v37  ;;  %v19256_v54 = vpack.c.bf16 %v21293_v1, %v20852_v27  ;;  %v21845_v1 = vld [vmem:[#allocation2 + $0x110] sm:$0xff]  ;;  %v19268_v20 = vpack.c.bf16 %v21367_v16, %v21350_v8  ;;  %v21971_v8 = vld [vmem:[%s28820_s1 + $0x18] sm:$0xff]  ;;  %v20865_v16 = vld [vmem:[#allocation2 + $0xc0] sm:$0xff] }
 0x109   : > { %18734 = vmatmul.mubr.msk.f32.gmra.mrb[28].mxu1 %vm1113_vm1, %v21601_v59  ;;  %v1015_v39 = vpop.permute.xlu1 %1014 }
 0x10a   : > { %18726 = vmatmul.mubr.msk.f32.gmra.mrb[28].mxu0 %vm1113_vm1, %v21601_v59  ;;  %1583 = vmatprep.mubr.f32.mxu1 %v21001_v0  ;;  %v1064_v56 = vsel %vm1016_vm0, %v1013_v40, %v1015_v39  ;;  %v20857_v39 = vld [vmem:[#allocation2 + $0x20] sm:$0xff] }
 0x10b   : > { %1470 = vmatprep.mubr.f32.mxu0 %v21001_v0  ;;  %v21852_v40 = vpack.i.bf16 %v20857_v39, %v21754_v58  ;;  %v19272_v58 = vpack.c.bf16 %v21405_v33, %v21392_v25  ;;  %v22066_v25 = vld [vmem:[#allocation2 + $0x60] sm:$0xff] }
 0x10c   : > { %20455 = vrot.lane.b32.xlu0 %v21807_v62, %s21004_s4 }
 0x10d   : > { %18735 = vmatmul.mubr.msk.f32.gmra.mrb[30].mxu1 %vm1113_vm1, %v21625_v36  ;;  %20450 = vrot.lane.b32.xlu1 %v21852_v40, %s21004_s4 }
 0x10e   : > { %18727 = vmatmul.mubr.msk.f32.gmra.mrb[30].mxu0 %vm1113_vm1, %v21625_v36  ;;  %1767 = vmatprep.mubr.f32.mxu1 %v21001_v0 }
 0x10f   : > { %1654 = vmatprep.mubr.f32.mxu0 %v21001_v0 }
 0x110   : > { %20465 = vrot.lane.b32.xlu0 %v21817_v9, %s21004_s4 }
 0x111   : > { %18744 = vmatmul.mubr.msk.f32.vlgmr.msra.gmra.mrb[32].mxu1 %vm1113_vm1, %v21494_v49 }
 0x112   : > { %18736 = vmatmul.mubr.msk.f32.vlgmr.msra.gmra.mrb[32].mxu0 %vm1113_vm1, %v21494_v49  ;;  %1773 = vmatprep.mubr.f32.mxu1 %v21001_v0 }
 0x113   : > { %19243 = vmatpush1.bf16.msra.mxu0 %v19242_v42  ;;  %1660 = vmatprep.mubr.f32.mxu0 %v21001_v0 }
 0x114   : > { %1820 = vmatprep.subr.mxu0 %v1062_v28  ;;  %19247 = vmatpush1.bf16.msra.mxu1 %v19246_v55  ;;  %v20860_v55 = vld [vmem:[#allocation2 + $0x30] sm:$0xff] }
 0x115   : > { %18745 = vmatmul.mubr.msk.f32.gmra.mrb[34].mxu1 %vm1113_vm1, %v21506_v60  ;;  %1933 = vmatprep.subr.mxu1 %v1064_v56  ;;  %v21877_v42 = vpack.i.bf16 %v20860_v55, %v20852_v27  ;;  %v19264_v56 = vpack.c.bf16 %v21358_v12, %v21342_v5  ;;  %v20864_v12 = vld [vmem:[#allocation2 + $0xc8] sm:$0xff] }
 0x116   : > { %18737 = vmatmul.mubr.msk.f32.gmra.mrb[34].mxu0 %vm1113_vm1, %v21506_v60  ;;  %1779 = vmatprep.mubr.f32.mxu1 %v21001_v0  ;;  %v21976_v43 = vpack.i.bf16 %v20864_v12, %v20865_v16  ;;  %v20877_v16 = vld [vmem:[#allocation2 + $0x78] sm:$0xff] }
 0x117   : > { %1821 = vmatpush1.msra.mxu0 %v1061_v34  ;;  %1666 = vmatprep.mubr.f32.mxu0 %v21001_v0 }
 0x118   : > { %1934 = vmatpush1.msra.mxu1 %v1063_v3  ;;  %19249 = vmatprep.subr.bf16.mxu0 %v19248_v53  ;;  %v21988_v53 = vld [vmem:[%s28820_s1 + $0x20] sm:$0xff]  ;;  %v19270_v3 = vpack.c.bf16 %v21360_v13, %v21344_v6  ;;  %v19276_v6 = vpack.c.bf16 %v21412_v38, %v21398_v30  ;;  %v22062_v13 = vld [vmem:[#allocation2 + $0x150] sm:$0xff]  ;;  %v20870_v30 = vld [vmem:[#allocation2 + $0xe8] sm:$0xff]  ;;  %v22110_v38 = vpop.permute.xlu0 %20360 }
 0x119   : > { %18746 = vmatmul.mubr.msk.f32.gmra.mrb[36].mxu1 %vm1113_vm1, %v21521_v26  ;;  %19253 = vmatprep.subr.bf16.mxu1 %v19252_v11  ;;  %v20362_v34 = vunpack.i.l.bf16 %v22110_v38  ;;  %v19274_v27 = vpack.c.bf16 %v20870_v30, %v22066_v25 }
 0x11a   : > { %18738 = vmatmul.mubr.msk.f32.gmra.mrb[36].mxu0 %vm1113_vm1, %v21521_v26  ;;  %1785 = vmatprep.mubr.f32.mxu1 %v21001_v0 }
 0x11b   : > { %1672 = vmatprep.mubr.f32.mxu0 %v21001_v0  ;;  %4315 = vrot.lane.b32.xlu0 %v21848_v35, %s21004_s4 }
 0x11c   : > { %v22128_v11 = vpop.permute.xlu0 %20370 }
 0x11d   : > { %18747 = vmatmul.mubr.msk.f32.gmra.mrb[38].mxu1 %vm1113_vm1, %v21549_v48  ;;  %v20372_v37 = vunpack.i.l.bf16 %v22128_v11 }
 0x11e   : > { %18739 = vmatmul.mubr.msk.f32.gmra.mrb[38].mxu0 %vm1113_vm1, %v21549_v48  ;;  %1791 = vmatprep.mubr.f32.mxu1 %v21001_v0 }
 0x11f   : > { %1678 = vmatprep.mubr.f32.mxu0 %v21001_v0 }
 0x121   : > { %18748 = vmatmul.mubr.msk.f32.gmra.mrb[40].mxu1 %vm1113_vm1, %v21563_v63 }
 0x122   : > { %18740 = vmatmul.mubr.msk.f32.gmra.mrb[40].mxu0 %vm1113_vm1, %v21563_v63  ;;  %1797 = vmatprep.mubr.f32.mxu1 %v21001_v0 }
 0x123   : > { %1684 = vmatprep.mubr.f32.mxu0 %v21001_v0 }
 0x125   : > { %18749 = vmatmul.mubr.msk.f32.gmra.mrb[42].mxu1 %vm1113_vm1, %v21582_v21 }
 0x126   : > { %18741 = vmatmul.mubr.msk.f32.gmra.mrb[42].mxu0 %vm1113_vm1, %v21582_v21  ;;  %1803 = vmatprep.mubr.f32.mxu1 %v21001_v0 }
 0x127   : > { %1690 = vmatprep.mubr.f32.mxu0 %v21001_v0 }
 0x129   : > { %18750 = vmatmul.mubr.msk.f32.gmra.mrb[44].mxu1 %vm1113_vm1, %v21601_v59 }
 0x12a   : > { %18742 = vmatmul.mubr.msk.f32.gmra.mrb[44].mxu0 %vm1113_vm1, %v21601_v59  ;;  %1809 = vmatprep.mubr.f32.mxu1 %v21001_v0 }
 0x12b   : > { %1696 = vmatprep.mubr.f32.mxu0 %v21001_v0 }
 0x12d   : > { %18751 = vmatmul.mubr.msk.f32.gmra.mrb[46].mxu1 %vm1113_vm1, %v21625_v36 }
 0x12e   : > { %18743 = vmatmul.mubr.msk.f32.gmra.mrb[46].mxu0 %vm1113_vm1, %v21625_v36  ;;  %1993 = vmatprep.mubr.f32.mxu1 %v21001_v0 }
 0x12f   : > { %1880 = vmatprep.mubr.f32.mxu0 %v21001_v0 }
 0x131   : > { %18760 = vmatmul.mubr.msk.f32.vlgmr.msra.gmra.mrb[48].mxu1 %vm1113_vm1, %v21494_v49 }
 0x132   : > { %18752 = vmatmul.mubr.msk.f32.vlgmr.msra.gmra.mrb[48].mxu0 %vm1113_vm1, %v21494_v49  ;;  %1999 = vmatprep.mubr.f32.mxu1 %v21001_v0  ;;  %v21837_v49 = vld [vmem:[#allocation2 + $0x38] sm:$0xff] }
 0x133   : > { %1886 = vmatprep.mubr.f32.mxu0 %v21001_v0  ;;  %19251 = vmatpush1.bf16.msra.mxu0 %v19250_v45  ;;  %v19260_v52 = vpack.c.bf16 %v21309_v29, %v21837_v49  ;;  %v20858_v29 = vld [vmem:[#allocation2 + $0xa8] sm:$0xff] }
 0x134   : > { %19255 = vmatpush1.bf16.msra.mxu1 %v19254_v15  ;;  %2070 = vmatprep.subr.mxu0 %v21828_v19 }
 0x135   : > { %18761 = vmatmul.mubr.msk.f32.gmra.mrb[50].mxu1 %vm1113_vm1, %v21506_v60  ;;  %2183 = vmatprep.subr.mxu1 %v21834_v31 }
 0x136   : > { %18753 = vmatmul.mubr.msk.f32.gmra.mrb[50].mxu0 %vm1113_vm1, %v21506_v60  ;;  %2005 = vmatprep.mubr.f32.mxu1 %v21001_v0  ;;  %v21865_v60 = vpack.i.bf16 %v20858_v29, %v21756_v61  ;;  %v22115_v61 = vld [vmem:[#allocation2 + $0x170] sm:$0xff] }
 0x137   : > { %1892 = vmatprep.mubr.f32.mxu0 %v21001_v0  ;;  %2071 = vmatpush1.msra.mxu0 %v21845_v1 }
 0x138   : > { %2184 = vmatpush1.msra.mxu1 %v21848_v35  ;;  %19257 = vmatprep.subr.bf16.mxu0 %v19256_v54  ;;  %v22146_v54 = vld [vmem:[#allocation2 + $0x70] sm:$0xff] }
 0x139   : > { %18762 = vmatmul.mubr.msk.f32.gmra.mrb[52].mxu1 %vm1113_vm1, %v21521_v26  ;;  %19261 = vmatprep.subr.bf16.mxu1 %v19260_v52 }
 0x13a   : > { %18754 = vmatmul.mubr.msk.f32.gmra.mrb[52].mxu0 %vm1113_vm1, %v21521_v26  ;;  %2011 = vmatprep.mubr.f32.mxu1 %v21001_v0  ;;  %v21873_v26 = vld [vmem:[#allocation2 + $0x130] sm:$0xff] }
 0x13b   : > { %1898 = vmatprep.mubr.f32.mxu0 %v21001_v0  ;;  %4319 = vrot.lane.b32.xlu0 %v21873_v26, %s21004_s4 }
 0x13c   : > { %20460 = vrot.lane.b32.xlu1 %v21865_v60, %s21004_s4 }
 0x13d   : > { %18763 = vmatmul.mubr.msk.f32.gmra.mrb[54].mxu1 %vm1113_vm1, %v21549_v48 }
 0x13e   : > { %18755 = vmatmul.mubr.msk.f32.gmra.mrb[54].mxu0 %vm1113_vm1, %v21549_v48  ;;  %2017 = vmatprep.mubr.f32.mxu1 %v21001_v0  ;;  %v21889_v48 = vld [vmem:[#allocation2 + $0xb0] sm:$0xff] }
 0x13f   : > { %1904 = vmatprep.mubr.f32.mxu0 %v21001_v0  ;;  %20470 = vrot.lane.b32.xlu0 %v21877_v42, %s21004_s4  ;;  %v20479_v28 = vpack.i.bf16 %v21300_v14, %v21889_v48  ;;  %v21922_v14 = vld [vmem:[%s28820_s1] sm:$0xff] }
 0x140   : > { %4313 = vrot.lane.b32.xlu1 %v21828_v19, %s21004_s4 }
 0x141   : > { %18764 = vmatmul.mubr.msk.f32.gmra.mrb[56].mxu1 %vm1113_vm1, %v21563_v63 }
 0x142   : > { %18756 = vmatmul.mubr.msk.f32.gmra.mrb[56].mxu0 %vm1113_vm1, %v21563_v63  ;;  %2023 = vmatprep.mubr.f32.mxu1 %v21001_v0  ;;  %v19258_v63 = vpack.c.bf16 %v20858_v29, %v20857_v39 }
 0x143   : > { %1910 = vmatprep.mubr.f32.mxu0 %v21001_v0  ;;  %20480 = vrot.lane.b32.xlu0 %v20479_v28, %s21004_s4 }
 0x144   : > { %4317 = vrot.lane.b32.xlu1 %v21834_v31, %s21004_s4 }
 0x145   : > { %18765 = vmatmul.mubr.msk.f32.gmra.mrb[58].mxu1 %vm1113_vm1, %v21582_v21 }
 0x146   : > { %18757 = vmatmul.mubr.msk.f32.gmra.mrb[58].mxu0 %vm1113_vm1, %v21582_v21  ;;  %2029 = vmatprep.mubr.f32.mxu1 %v21001_v0  ;;  %v21927_v21 = vld [vmem:[#allocation2 + $0xb8] sm:$0xff] }
 0x147   : > { %1916 = vmatprep.mubr.f32.mxu0 %v21001_v0  ;;  %4321 = vrot.lane.b32.xlu0 %v21330_v57, %s21004_s4 }
 0x148   : > { %4311 = vrot.lane.b32.xlu1 %v21845_v1, %s21004_s4 }
 0x149   : > { %18766 = vmatmul.mubr.msk.f32.gmra.mrb[60].mxu1 %vm1113_vm1, %v21601_v59 }
 0x14a   : > { %18758 = vmatmul.mubr.msk.f32.gmra.mrb[60].mxu0 %vm1113_vm1, %v21601_v59  ;;  %2035 = vmatprep.mubr.f32.mxu1 %v21001_v0  ;;  %v19262_v59 = vpack.c.bf16 %v21927_v21, %v20860_v55 }
 0x14b   : > { %1922 = vmatprep.mubr.f32.mxu0 %v21001_v0  ;;  %4325 = vrot.lane.b32.xlu0 %v21340_v4, %s21004_s4 }
 0x14d   : > { %18767 = vmatmul.mubr.msk.f32.gmra.mrb[62].mxu1 %vm1113_vm1, %v21625_v36 }
 0x14e   : > { %18759 = vmatmul.mubr.msk.f32.gmra.mrb[62].mxu0 %vm1113_vm1, %v21625_v36  ;;  %2243 = vmatprep.mubr.f32.mxu1 %v21001_v0  ;;  %v21938_v36 = vld [vmem:[%s28820_s1 + $0x8] sm:$0xff] }
 0x14f   : > { %2130 = vmatprep.mubr.f32.mxu0 %v21001_v0  ;;  %20490 = vrot.lane.b32.xlu0 %v21356_v10, %s21004_s4  ;;  %v22003_v10 = vld [vmem:[%s28820_s1 + $0x28] sm:$0xff] }
 0x151   : > { %18776 = vmatmul.mubr.msk.f32.vlgmr.msra.gmra.mrb[0].mxu1 %vm1113_vm1, %v21922_v14 }
 0x152   : > { %18768 = vmatmul.mubr.msk.f32.vlgmr.msra.gmra.mrb[0].mxu0 %vm1113_vm1, %v21922_v14  ;;  %2249 = vmatprep.mubr.f32.mxu1 %v21001_v0 }
 0x153   : > { %2136 = vmatprep.mubr.f32.mxu0 %v21001_v0  ;;  %19259 = vmatpush1.bf16.msra.mxu0 %v19258_v63  ;;  %v20381_v63 = vpop.permute.xlu0 %20380 }
 0x154   : > { %19263 = vmatpush1.bf16.msra.mxu1 %v19262_v59  ;;  %2296 = vmatprep.subr.mxu0 %v21330_v57  ;;  %v21955_v57 = vld [vmem:[%s28820_s1 + $0x10] sm:$0xff]  ;;  %v22178_v59 = vld [vmem:[#allocation2 + $0x178] sm:$0xff] }
 0x155   : > { %18777 = vmatmul.mubr.msk.f32.gmra.mrb[2].mxu1 %vm1113_vm1, %v21938_v36  ;;  %2409 = vmatprep.subr.mxu1 %v21340_v4  ;;  %v20863_v4 = vld [vmem:[#allocation2 + $0x40] sm:$0xff] }
 0x156   : > { %18769 = vmatmul.mubr.msk.f32.gmra.mrb[2].mxu0 %vm1113_vm1, %v21938_v36  ;;  %2255 = vmatprep.mubr.f32.mxu1 %v21001_v0  ;;  %v21961_v5 = vpack.i.bf16 %v20863_v4, %v21837_v49  ;;  %v22148_v49 = vld [vmem:[#allocation2 + $0xf8] sm:$0xff] }
 0x157   : > { %2142 = vmatprep.mubr.f32.mxu0 %v21001_v0  ;;  %2297 = vmatpush1.msra.mxu0 %v21873_v26  ;;  %v19278_v52 = vpack.c.bf16 %v22148_v49, %v22146_v54 }
 0x158   : > { %2410 = vmatpush1.msra.mxu1 %v21336_v2  ;;  %19265 = vmatprep.subr.bf16.mxu0 %v19264_v56 }
 0x159   : > { %18778 = vmatmul.mubr.msk.f32.gmra.mrb[4].mxu1 %vm1113_vm1, %v21955_v57  ;;  %19269 = vmatprep.subr.bf16.mxu1 %v19268_v20  ;;  %v22183_v20 = vld [vmem:[#allocation2 + $0x188] sm:$0xff] }
 0x15a   : > { %18770 = vmatmul.mubr.msk.f32.gmra.mrb[4].mxu0 %vm1113_vm1, %v21955_v57  ;;  %2261 = vmatprep.mubr.f32.mxu1 %v21001_v0 }
 0x15b   : > { %2148 = vmatprep.mubr.f32.mxu0 %v21001_v0  ;;  %20475 = vrot.lane.b32.xlu1 %v21961_v5, %s21004_s4 }
 0x15c   : > { %20500 = vrot.lane.b32.xlu0 %v21373_v18, %s21004_s4  ;;  %v22018_v18 = vld [vmem:[%s28820_s1 + $0x30] sm:$0xff] }
 0x15d   : > { %18779 = vmatmul.mubr.msk.f32.gmra.mrb[6].mxu1 %vm1113_vm1, %v21971_v8 }
 0x15e   : > { %18771 = vmatmul.mubr.msk.f32.gmra.mrb[6].mxu0 %vm1113_vm1, %v21971_v8  ;;  %2267 = vmatprep.mubr.f32.mxu1 %v21001_v0 }
 0x15f   : > { %2154 = vmatprep.mubr.f32.mxu0 %v21001_v0  ;;  %20485 = vrot.lane.b32.xlu1 %v21976_v43, %s21004_s4 }
 0x160   : > { %4329 = vrot.lane.b32.xlu0 %v21382_v22, %s21004_s4 }
 0x161   : > { %18780 = vmatmul.mubr.msk.f32.gmra.mrb[8].mxu1 %vm1113_vm1, %v21988_v53 }
 0x162   : > { %18772 = vmatmul.mubr.msk.f32.gmra.mrb[8].mxu0 %vm1113_vm1, %v21988_v53  ;;  %2273 = vmatprep.mubr.f32.mxu1 %v21001_v0 }
 0x163   : > { %2160 = vmatprep.mubr.f32.mxu0 %v21001_v0  ;;  %4323 = vrot.lane.b32.xlu1 %v21336_v2, %s21004_s4  ;;  %v22033_v2 = vld [vmem:[%s28820_s1 + $0x38] sm:$0xff] }
 0x164   : > { %4333 = vrot.lane.b32.xlu0 %v21390_v24, %s21004_s4 }
 0x165   : > { %18781 = vmatmul.mubr.msk.f32.gmra.mrb[10].mxu1 %vm1113_vm1, %v22003_v10 }
 0x166   : > { %18773 = vmatmul.mubr.msk.f32.gmra.mrb[10].mxu0 %vm1113_vm1, %v22003_v10  ;;  %2279 = vmatprep.mubr.f32.mxu1 %v21001_v0 }
 0x167   : > { %2166 = vmatprep.mubr.f32.mxu0 %v21001_v0  ;;  %4327 = vrot.lane.b32.xlu1 %v21348_v7, %s21004_s4  ;;  %v19266_v7 = vpack.c.bf16 %v20864_v12, %v20863_v4 }
 0x168   : > { %20510 = vrot.lane.b32.xlu0 %v21403_v32, %s21004_s4  ;;  %v22099_v32 = vld [vmem:[#allocation2 + $0x160] sm:$0xff] }
 0x169   : > { %18782 = vmatmul.mubr.msk.f32.gmra.mrb[12].mxu1 %vm1113_vm1, %v22018_v18 }
 0x16a   : > { %18774 = vmatmul.mubr.msk.f32.gmra.mrb[12].mxu0 %vm1113_vm1, %v22018_v18  ;;  %2285 = vmatprep.mubr.f32.mxu1 %v21001_v0 }
 0x16b   : > { %2172 = vmatprep.mubr.f32.mxu0 %v21001_v0 }
 0x16c   : > { %20520 = vrot.lane.b32.xlu0 %v21417_v41, %s21004_s4  ;;  %v22113_v41 = vpop.permute.xlu1 %20365 }
 0x16d   : > { %18783 = vmatmul.mubr.msk.f32.gmra.mrb[14].mxu1 %vm1113_vm1, %v22033_v2  ;;  %v20368_v51 = vunpack.i.h.bf16 %v22113_v41  ;;  %v20367_v17 = vunpack.i.l.bf16 %v22113_v41  ;;  %v22432_v41 = vld [vmem:[%s28820_s1 + $0x80] sm:$0xff] }
 0x16e   : > { %18775 = vmatmul.mubr.msk.f32.gmra.mrb[14].mxu0 %vm1113_vm1, %v22033_v2  ;;  %2469 = vmatprep.mubr.f32.mxu1 %v21001_v0 }
 0x16f   : > { %2356 = vmatprep.mubr.f32.mxu0 %v21001_v0  ;;  %v3085_v55 = vsel %vm3081_vm2, %v20367_v17, %v20368_v51 }
 0x170   : > { %4337 = vrot.lane.b32.xlu0 %v21426_v46, %s21004_s4  ;;  %v20363_v46 = vunpack.i.h.bf16 %v22110_v38  ;;  %v22135_v47 = vpop.permute.xlu1 %20375 }
 0x171   : > { %18792 = vmatmul.mubr.msk.f32.vlgmr.msra.gmra.mrb[16].mxu1 %vm1113_vm1, %v21922_v14  ;;  %v20378_v45 = vunpack.i.h.bf16 %v22135_v47  ;;  %v20377_v15 = vunpack.i.l.bf16 %v22135_v47 }
 0x172   : > { %18784 = vmatmul.mubr.msk.f32.vlgmr.msra.gmra.mrb[16].mxu0 %vm1113_vm1, %v21922_v14  ;;  %2475 = vmatprep.mubr.f32.mxu1 %v21001_v0  ;;  %v3083_v39 = vsel %vm3081_vm2, %v20362_v34, %v20363_v46 }
 0x173   : > { %2362 = vmatprep.mubr.f32.mxu0 %v21001_v0  ;;  %19267 = vmatpush1.bf16.msra.mxu0 %v19266_v7  ;;  %v3101_v28 = vsel %vm3081_vm2, %v20377_v15, %v20378_v45  ;;  %v20878_v7 = vld [vmem:[#allocation2 + $0x80] sm:$0xff] }
 0x174   : > { %19271 = vmatpush1.bf16.msra.mxu1 %v19270_v3  ;;  %2522 = vmatprep.subr.mxu0 %v21382_v22  ;;  %v20867_v22 = vld [vmem:[#allocation2 + $0x58] sm:$0xff]  ;;  %v19284_v4 = vpack.c.bf16 %v3101_v28, %v3085_v55  ;;  %v22186_v12 = vpop.permute.xlu1 %3049  ;;  %v22193_v3 = vpack.i.bf16 %v20878_v7, %v20877_v16  ;;  %v22240_v55 = vld [vmem:[#allocation2 + $0x190] sm:$0xff]  ;;  %v20383_v28 = vunpack.i.h.bf16 %v20381_v63 }
 0x175   : > { %18793 = vmatmul.mubr.msk.f32.gmra.mrb[18].mxu1 %vm1113_vm1, %v21938_v36  ;;  %2635 = vmatprep.subr.mxu1 %v21390_v24  ;;  %v22069_v24 = vpack.i.bf16 %v22066_v25, %v20867_v22  ;;  %v20880_v25 = vld [vmem:[#allocation2 + $0x100] sm:$0xff] }
 0x176   : > { %18785 = vmatmul.mubr.msk.f32.gmra.mrb[18].mxu0 %vm1113_vm1, %v21938_v36  ;;  %2481 = vmatprep.mubr.f32.mxu1 %v21001_v0 }
 0x177   : > { %2368 = vmatprep.mubr.f32.mxu0 %v21001_v0  ;;  %2523 = vmatpush1.msra.mxu0 %v22062_v13 }
 0x178   : > { %2636 = vmatpush1.msra.mxu1 %v21386_v23  ;;  %19273 = vmatprep.subr.bf16.mxu0 %v19272_v58  ;;  %v20869_v23 = vld [vmem:[#allocation2 + $0xe0] sm:$0xff]  ;;  %v22206_v22 = vpop.permute.xlu1 %3053 }
 0x179   : > { %18794 = vmatmul.mubr.msk.f32.gmra.mrb[20].mxu1 %vm1113_vm1, %v21955_v57  ;;  %19277 = vmatprep.subr.bf16.mxu1 %v19276_v6  ;;  %v22079_v33 = vpack.i.bf16 %v20870_v30, %v20869_v23  ;;  %v22195_v58 = vld [vmem:[#allocation2 + $0x180] sm:$0xff]  ;;  %v22203_v6 = vpop.permute.xlu0 %3051  ;;  %v20881_v23 = vld [vmem:[#allocation2 + $0x108] sm:$0xff] }
 0x17a   : > { %18786 = vmatmul.mubr.msk.f32.gmra.mrb[20].mxu0 %vm1113_vm1, %v21955_v57  ;;  %2487 = vmatprep.mubr.f32.mxu1 %v21001_v0  ;;  %v22210_v30 = vpack.i.bf16 %v20881_v23, %v20880_v25 }
 0x17b   : > { %2374 = vmatprep.mubr.f32.mxu0 %v21001_v0  ;;  %20495 = vrot.lane.b32.xlu1 %v22069_v24, %s21004_s4 }
 0x17c   : > { %4341 = vrot.lane.b32.xlu0 %v21434_v50, %s21004_s4  ;;  %v20373_v50 = vunpack.i.h.bf16 %v22128_v11 }
 0x17d   : > { %18795 = vmatmul.mubr.msk.f32.gmra.mrb[22].mxu1 %vm1113_vm1, %v21971_v8 }
 0x17e   : > { %18787 = vmatmul.mubr.msk.f32.gmra.mrb[22].mxu0 %vm1113_vm1, %v21971_v8  ;;  %2493 = vmatprep.mubr.f32.mxu1 %v21001_v0  ;;  %v3099_v29 = vsel %vm3081_vm2, %v20372_v37, %v20373_v50 }
 0x17f   : > { %2380 = vmatprep.mubr.f32.mxu0 %v21001_v0  ;;  %20505 = vrot.lane.b32.xlu1 %v22079_v33, %s21004_s4  ;;  %v19280_v56 = vpack.c.bf16 %v3099_v29, %v3083_v39 }
 0x180   : > { %20530 = vrot.lane.b32.xlu0 %v21795_v44, %s21005_s6  ;;  %v3084_v44 = vsel %vm3081_vm2, %v20363_v46, %v20367_v17 }
 0x181   : > { %18796 = vmatmul.mubr.msk.f32.gmra.mrb[24].mxu1 %vm1113_vm1, %v21988_v53 }
 0x182   : > { %18788 = vmatmul.mubr.msk.f32.gmra.mrb[24].mxu0 %vm1113_vm1, %v21988_v53  ;;  %2499 = vmatprep.mubr.f32.mxu1 %v21001_v0 }
 0x183   : > { %2386 = vmatprep.mubr.f32.mxu0 %v21001_v0  ;;  %4331 = vrot.lane.b32.xlu1 %v22099_v32, %s21004_s4 }
 0x184   : > { %20540 = vrot.lane.b32.xlu0 %v21807_v62, %s21005_s6  ;;  %v3115_v62 = vsel %vm3081_vm2, %v22186_v12, %v22203_v6 }
 0x185   : > { %18797 = vmatmul.mubr.msk.f32.gmra.mrb[26].mxu1 %vm1113_vm1, %v22003_v10 }
 0x186   : > { %18789 = vmatmul.mubr.msk.f32.gmra.mrb[26].mxu0 %vm1113_vm1, %v22003_v10  ;;  %2505 = vmatprep.mubr.f32.mxu1 %v21001_v0 }
 0x187   : > { %2392 = vmatprep.mubr.f32.mxu0 %v21001_v0  ;;  %4335 = vrot.lane.b32.xlu1 %v22115_v61, %s21004_s4 }
 0x188   : > { %20550 = vrot.lane.b32.xlu0 %v21817_v9, %s21005_s6 }
 0x189   : > { %18798 = vmatmul.mubr.msk.f32.gmra.mrb[28].mxu1 %vm1113_vm1, %v22018_v18 }
 0x18a   : > { %18790 = vmatmul.mubr.msk.f32.gmra.mrb[28].mxu0 %vm1113_vm1, %v22018_v18  ;;  %2511 = vmatprep.mubr.f32.mxu1 %v21001_v0 }
 0x18b   : > { %2398 = vmatprep.mubr.f32.mxu0 %v21001_v0  ;;  %20515 = vrot.lane.b32.xlu1 %v22193_v3, %s21004_s4 }
 0x18c   : > { %5579 = vrot.lane.b32.xlu0 %v21848_v35, %s21005_s6 }
 0x18d   : > { %18799 = vmatmul.mubr.msk.f32.gmra.mrb[30].mxu1 %vm1113_vm1, %v22033_v2 }
 0x18e   : > { %18791 = vmatmul.mubr.msk.f32.gmra.mrb[30].mxu0 %vm1113_vm1, %v22033_v2  ;;  %2695 = vmatprep.mubr.f32.mxu1 %v21001_v0 }
 0x18f   : > { %2582 = vmatprep.mubr.f32.mxu0 %v21001_v0  ;;  %20525 = vrot.lane.b32.xlu1 %v22210_v30, %s21004_s4 }
 0x190   : > { %5583 = vrot.lane.b32.xlu0 %v21873_v26, %s21005_s6  ;;  %v20564_v26 = vpack.i.bf16 %v21927_v21, %v21889_v48 }
 0x191   : > { %18808 = vmatmul.mubr.msk.f32.vlgmr.msra.gmra.mrb[32].mxu1 %vm1113_vm1, %v21922_v14 }
 0x192   : > { %18800 = vmatmul.mubr.msk.f32.vlgmr.msra.gmra.mrb[32].mxu0 %vm1113_vm1, %v21922_v14  ;;  %2701 = vmatprep.mubr.f32.mxu1 %v21001_v0 }
 0x193   : > { %2588 = vmatprep.mubr.f32.mxu0 %v21001_v0  ;;  %19275 = vmatpush1.bf16.msra.mxu0 %v19274_v27  ;;  %v22220_v27 = vpop.permute.xlu0 %3055 }
 0x194   : > { %19279 = vmatpush1.bf16.msra.mxu1 %v19278_v52  ;;  %2748 = vmatprep.subr.mxu0 %v22178_v59  ;;  %v3048_v52 = vpop.permute.xlu1 %3047 }
 0x195   : > { %18809 = vmatmul.mubr.msk.f32.gmra.mrb[34].mxu1 %vm1113_vm1, %v21938_v36  ;;  %2861 = vmatprep.subr.mxu1 %v22183_v20 }
 0x196   : > { %18801 = vmatmul.mubr.msk.f32.gmra.mrb[34].mxu0 %vm1113_vm1, %v21938_v36  ;;  %2707 = vmatprep.mubr.f32.mxu1 %v21001_v0 }
 0x197   : > { %2594 = vmatprep.mubr.f32.mxu0 %v21001_v0  ;;  %2749 = vmatpush1.msra.mxu0 %v22115_v61  ;;  %v22235_v39 = vpop.permute.xlu0 %20385 }
 0x198   : > { %2862 = vmatpush1.msra.mxu1 %v22195_v58  ;;  %19281 = vmatprep.subr.bf16.mxu0 %v19280_v56  ;;  %v22238_v29 = vpop.permute.xlu1 %20390  ;;  %v20382_v56 = vunpack.i.l.bf16 %v20381_v63  ;;  %v3098_v63 = vsel %vm3081_vm2, %v20383_v28, %v20372_v37  ;;  %v20388_v7 = vunpack.i.h.bf16 %v22235_v39  ;;  %v20387_v17 = vunpack.i.l.bf16 %v22235_v39 }
 0x199   : > { %18810 = vmatmul.mubr.msk.f32.gmra.mrb[36].mxu1 %vm1113_vm1, %v21955_v57  ;;  %19285 = vmatprep.subr.bf16.mxu1 %v19284_v4  ;;  %v28825_v25 = vunpack.i.h.bf16 %v22238_v29  ;;  %v20392_v46 = vunpack.i.l.bf16 %v22238_v29 }
 0x19a   : > { %18802 = vmatmul.mubr.msk.f32.gmra.mrb[36].mxu0 %vm1113_vm1, %v21955_v57  ;;  %2713 = vmatprep.mubr.f32.mxu1 %v21001_v0  ;;  %v3082_v4 = vsel %vm3081_vm2, %v20382_v56, %v20362_v34  ;;  %v3100_v34 = vsel %vm3081_vm2, %v20373_v50, %v20377_v15  ;;  %v3087_v56 = vsel %vm3081_vm2, %v20387_v17, %v20388_v7 }
 0x19b   : > { %2600 = vmatprep.mubr.f32.mxu0 %v21001_v0  ;;  %4339 = vrot.lane.b32.xlu1 %v22195_v58, %s21004_s4  ;;  %v22263_v16 = vpop.permute.xlu0 %20395  ;;  %v19282_v23 = vpack.c.bf16 %v3098_v63, %v3082_v4  ;;  %v19286_v28 = vpack.c.bf16 %v3100_v34, %v3084_v44  ;;  %v3117_v63 = vsel %vm3081_vm2, %v22206_v22, %v22220_v27 }
 0x19c   : > { %v28826_v37 = vunpack.i.h.bf16 %v22263_v16  ;;  %v22275_v38 = vpop.permute.xlu1 %20400  ;;  %v20397_v15 = vunpack.i.l.bf16 %v22263_v16  ;;  %v3089_v44 = vsel %vm3081_vm2, %v20392_v46, %v28825_v25  ;;  %v3116_v25 = vsel %vm3081_vm2, %v22203_v6, %v22206_v22  ;;  %20555 = vrot.lane.b32.xlu0 %v21877_v42, %s21005_s6 }
 0x19d   : > { %18811 = vmatmul.mubr.msk.f32.gmra.mrb[38].mxu1 %vm1113_vm1, %v21971_v8  ;;  %v20403_v11 = vunpack.i.h.bf16 %v22275_v38  ;;  %v20402_v50 = vunpack.i.l.bf16 %v22275_v38  ;;  %v3088_v21 = vsel %vm3081_vm2, %v20388_v7, %v20392_v46  ;;  %v22466_v46 = vld [vmem:[%s28820_s1 + $0x88] sm:$0xff] }
 0x19e   : > { %18803 = vmatmul.mubr.msk.f32.gmra.mrb[38].mxu0 %vm1113_vm1, %v21971_v8  ;;  %2719 = vmatprep.mubr.f32.mxu1 %v21001_v0  ;;  %v3103_v4 = vsel %vm3081_vm2, %v20397_v15, %v28826_v37  ;;  %v3102_v42 = vsel %vm3081_vm2, %v20378_v45, %v20397_v15 }
 0x19f   : > { %2606 = vmatprep.mubr.f32.mxu0 %v21001_v0  ;;  %4343 = vrot.lane.b32.xlu1 %v22240_v55, %s21004_s4  ;;  %v3105_v9 = vsel %vm3081_vm2, %v20402_v50, %v20403_v11  ;;  %v19288_v34 = vpack.c.bf16 %v3103_v4, %v3087_v56  ;;  %v22496_v4 = vld [vmem:[%s28820_s1 + $0x90] sm:$0xff] }
 0x1a0   : > { %v19292_v37 = vpack.c.bf16 %v3105_v9, %v3089_v44  ;;  %20565 = vrot.lane.b32.xlu0 %v20564_v26, %s21005_s6  ;;  %v20886_v44 = vld [vmem:[#allocation2 + $0x50] sm:$0xff] }
 0x1a1   : > { %18812 = vmatmul.mubr.msk.f32.gmra.mrb[40].mxu1 %vm1113_vm1, %v21988_v53 }
 0x1a2   : > { %18804 = vmatmul.mubr.msk.f32.gmra.mrb[40].mxu0 %vm1113_vm1, %v21988_v53  ;;  %2725 = vmatprep.mubr.f32.mxu1 %v21001_v0 }
 0x1a3   : > { %2612 = vmatprep.mubr.f32.mxu0 %v21001_v0  ;;  %20535 = vrot.lane.b32.xlu1 %v21852_v40, %s21005_s6 }
 0x1a5   : > { %18813 = vmatmul.mubr.msk.f32.gmra.mrb[42].mxu1 %vm1113_vm1, %v22003_v10 }
 0x1a6   : > { %18805 = vmatmul.mubr.msk.f32.gmra.mrb[42].mxu0 %vm1113_vm1, %v22003_v10  ;;  %2731 = vmatprep.mubr.f32.mxu1 %v21001_v0 }
 0x1a7   : > { %2618 = vmatprep.mubr.f32.mxu0 %v21001_v0  ;;  %20545 = vrot.lane.b32.xlu1 %v21865_v60, %s21005_s6 }
 0x1a9   : > { %18814 = vmatmul.mubr.msk.f32.gmra.mrb[44].mxu1 %vm1113_vm1, %v22018_v18 }
 0x1aa   : > { %18806 = vmatmul.mubr.msk.f32.gmra.mrb[44].mxu0 %vm1113_vm1, %v22018_v18  ;;  %2737 = vmatprep.mubr.f32.mxu1 %v21001_v0 }
 0x1ab   : > { %2624 = vmatprep.mubr.f32.mxu0 %v21001_v0  ;;  %5577 = vrot.lane.b32.xlu1 %v21828_v19, %s21005_s6  ;;  %v22392_v19 = vld [vmem:[#allocation2 + $0x138] sm:$0xff] }
 0x1ac   : > { %5585 = vrot.lane.b32.xlu0 %v22392_v19, %s21005_s6 }
 0x1ad   : > { %18815 = vmatmul.mubr.msk.f32.gmra.mrb[46].mxu1 %vm1113_vm1, %v22033_v2 }
 0x1ae   : > { %18807 = vmatmul.mubr.msk.f32.gmra.mrb[46].mxu0 %vm1113_vm1, %v22033_v2  ;;  %2921 = vmatprep.mubr.f32.mxu1 %v21001_v0 }
 0x1af   : > { %2808 = vmatprep.mubr.f32.mxu0 %v21001_v0  ;;  %5581 = vrot.lane.b32.xlu1 %v21834_v31, %s21005_s6  ;;  %v3086_v31 = vsel %vm3081_vm2, %v20368_v51, %v20387_v17 }
 0x1b1   : > { %18824 = vmatmul.mubr.msk.f32.vlgmr.msra.gmra.mrb[48].mxu1 %vm1113_vm1, %v21922_v14 }
 0x1b2   : > { %18816 = vmatmul.mubr.msk.f32.vlgmr.msra.gmra.mrb[48].mxu0 %vm1113_vm1, %v21922_v14  ;;  %2927 = vmatprep.mubr.f32.mxu1 %v21001_v0  ;;  %v3114_v14 = vsel %vm3081_vm2, %v3048_v52, %v22186_v12  ;;  %v22347_v12 = vpop.permute.xlu1 %3059  ;;  %v22441_v52 = vld [vmem:[#allocation2 + $0x148] sm:$0xff] }
 0x1b3   : > { %2814 = vmatprep.mubr.f32.mxu0 %v21001_v0  ;;  %19283 = vmatpush1.bf16.msra.mxu0 %v19282_v23 }
 0x1b4   : > { %19287 = vmatpush1.bf16.msra.mxu1 %v19286_v28  ;;  %3206 = vmatprep.subr.mxu0 %v3115_v62 }
 0x1b5   : > { %18825 = vmatmul.mubr.msk.f32.gmra.mrb[50].mxu1 %vm1113_vm1, %v21938_v36  ;;  %3319 = vmatprep.subr.mxu1 %v3117_v63  ;;  %v20885_v63 = vld [vmem:[#allocation2 + $0x48] sm:$0xff] }
 0x1b6   : > { %18817 = vmatmul.mubr.msk.f32.gmra.mrb[50].mxu0 %vm1113_vm1, %v21938_v36  ;;  %2933 = vmatprep.mubr.f32.mxu1 %v21001_v0  ;;  %v22341_v36 = vpop.permute.xlu0 %3057  ;;  %v22361_v40 = vpop.permute.xlu1 %3063  ;;  %v22509_v9 = vpack.i.bf16 %v20886_v44, %v20885_v63 }
 0x1b7   : > { %2820 = vmatprep.mubr.f32.mxu0 %v21001_v0  ;;  %3207 = vmatpush1.msra.mxu0 %v3114_v14  ;;  %v3119_v7 = vsel %vm3081_vm2, %v22341_v36, %v22347_v12  ;;  %v3118_v56 = vsel %vm3081_vm2, %v22220_v27, %v22341_v36  ;;  %v22507_v27 = vld [vmem:[%s28820_s1 + $0x98] sm:$0xff]  ;;  %v22528_v36 = vld [vmem:[%s28820_s1 + $0xa0] sm:$0xff] }
 0x1b8   : > { %3320 = vmatpush1.msra.mxu1 %v3116_v25  ;;  %19289 = vmatprep.subr.bf16.mxu0 %v19288_v34 }
 0x1b9   : > { %18826 = vmatmul.mubr.msk.f32.gmra.mrb[52].mxu1 %vm1113_vm1, %v21955_v57  ;;  %19293 = vmatprep.subr.bf16.mxu1 %v19292_v37 }
 0x1ba   : > { %18818 = vmatmul.mubr.msk.f32.gmra.mrb[52].mxu0 %vm1113_vm1, %v21955_v57  ;;  %2939 = vmatprep.mubr.f32.mxu1 %v21001_v0  ;;  %v22355_v35 = vpop.permute.xlu0 %3061  ;;  %v22381_v57 = vpop.permute.xlu1 %20410 }
 0x1bb   : > { %2826 = vmatprep.mubr.f32.mxu0 %v21001_v0  ;;  %5575 = vrot.lane.b32.xlu1 %v21845_v1, %s21005_s6  ;;  %v20413_v47 = vunpack.i.h.bf16 %v22381_v57  ;;  %v20412_v51 = vunpack.i.l.bf16 %v22381_v57  ;;  %v3120_v28 = vsel %vm3081_vm2, %v22347_v12, %v22355_v35  ;;  %v20888_v12 = vld [vmem:[#allocation2 + $0xd8] sm:$0xff] }
 0x1bc   : > { %5589 = vrot.lane.b32.xlu0 %v22441_v52, %s21005_s6 }
 0x1bd   : > { %18827 = vmatmul.mubr.msk.f32.gmra.mrb[54].mxu1 %vm1113_vm1, %v21971_v8  ;;  %v3093_v17 = vsel %vm3081_vm2, %v20412_v51, %v20413_v47 }
 0x1be   : > { %18819 = vmatmul.mubr.msk.f32.gmra.mrb[54].mxu0 %vm1113_vm1, %v21971_v8  ;;  %2945 = vmatprep.mubr.f32.mxu1 %v21001_v0  ;;  %v22378_v60 = vpop.permute.xlu0 %20405  ;;  %v28831_v8 = vunpack.i.h.bf16 %v22263_v16  ;;  %v22424_v1 = vpop.permute.xlu1 %20420  ;;  %v19290_v16 = vpack.c.bf16 %v3102_v42, %v3086_v31  ;;  %v22549_v42 = vld [vmem:[%s28820_s1 + $0xa8] sm:$0xff] }
 0x1bf   : > { %2832 = vmatprep.mubr.f32.mxu0 %v21001_v0  ;;  %v20423_v45 = vunpack.i.h.bf16 %v22424_v1  ;;  %v20422_v6 = vunpack.i.l.bf16 %v22424_v1  ;;  %v20407_v22 = vunpack.i.l.bf16 %v22378_v60  ;;  %20560 = vrot.lane.b32.xlu1 %v21961_v5, %s21005_s6  ;;  %v20887_v5 = vld [vmem:[#allocation2 + $0xd0] sm:$0xff] }
 0x1c0   : > { %20575 = vrot.lane.b32.xlu0 %v22509_v9, %s21005_s6 }
 0x1c1   : > { %18828 = vmatmul.mubr.msk.f32.gmra.mrb[56].mxu1 %vm1113_vm1, %v21988_v53  ;;  %v3109_v15 = vsel %vm3081_vm2, %v20422_v6, %v20423_v45 }
 0x1c2   : > { %18820 = vmatmul.mubr.msk.f32.gmra.mrb[56].mxu0 %vm1113_vm1, %v21988_v53  ;;  %2951 = vmatprep.mubr.f32.mxu1 %v21001_v0  ;;  %v22406_v48 = vpop.permute.xlu0 %20415  ;;  %v3104_v53 = vsel %vm3081_vm2, %v28831_v8, %v20402_v50  ;;  %v3121_v50 = vsel %vm3081_vm2, %v22355_v35, %v22361_v40  ;;  %v19300_v62 = vpack.c.bf16 %v3109_v15, %v3093_v17  ;;  %v22520_v34 = vpop.permute.xlu1 %3067  ;;  %v22568_v8 = vld [vmem:[%s28820_s1 + $0xb0] sm:$0xff] }
 0x1c3   : > { %2838 = vmatprep.mubr.f32.mxu0 %v21001_v0  ;;  %v19294_v39 = vpack.c.bf16 %v3104_v53, %v3088_v21  ;;  %v22530_v35 = vpack.i.bf16 %v20888_v12, %v20887_v5  ;;  %20570 = vrot.lane.b32.xlu1 %v21976_v43, %s21005_s6  ;;  %v22552_v43 = vld [vmem:[#allocation2 + $0x140] sm:$0xff]  ;;  %v22556_v21 = vld [vmem:[#allocation2 + $0x158] sm:$0xff] }
 0x1c5   : > { %18829 = vmatmul.mubr.msk.f32.gmra.mrb[58].mxu1 %vm1113_vm1, %v22003_v10  ;;  %20585 = vrot.lane.b32.xlu0 %v22530_v35, %s21005_s6 }
 0x1c6   : > { %18821 = vmatmul.mubr.msk.f32.gmra.mrb[58].mxu0 %vm1113_vm1, %v22003_v10  ;;  %2957 = vmatprep.mubr.f32.mxu1 %v21001_v0  ;;  %v20408_v10 = vunpack.i.h.bf16 %v22378_v60  ;;  %v22514_v14 = vpop.permute.xlu0 %3065  ;;  %v22541_v31 = vpop.permute.xlu1 %3071 }
 0x1c7   : > { %2844 = vmatprep.mubr.f32.mxu0 %v21001_v0  ;;  %5587 = vrot.lane.b32.xlu1 %v22552_v43, %s21005_s6 }
 0x1c8   : > { %v3091_v37 = vsel %vm3081_vm2, %v20407_v22, %v20408_v10  ;;  %v3092_v17 = vsel %vm3081_vm2, %v20408_v10, %v20412_v51 }
 0x1c9   : > { %18830 = vmatmul.mubr.msk.f32.gmra.mrb[60].mxu1 %vm1113_vm1, %v22018_v18  ;;  %5593 = vrot.lane.b32.xlu0 %v22556_v21, %s21005_s6 }
 0x1ca   : > { %18822 = vmatmul.mubr.msk.f32.gmra.mrb[60].mxu0 %vm1113_vm1, %v22018_v18  ;;  %2963 = vmatprep.mubr.f32.mxu1 %v21001_v0  ;;  %v20418_v18 = vunpack.i.h.bf16 %v22406_v48  ;;  %v22535_v26 = vpop.permute.xlu0 %3069 }
 0x1cb   : > { %2850 = vmatprep.mubr.f32.mxu0 %v21001_v0  ;;  %5591 = vrot.lane.b32.xlu1 %v22062_v13, %s21005_s6  ;;  %v28832_v13 = vunpack.i.h.bf16 %v22238_v29  ;;  %v3124_v12 = vsel %vm3081_vm2, %v22520_v34, %v22535_v26 }
 0x1cc   : > { %v3108_v29 = vsel %vm3081_vm2, %v20418_v18, %v20422_v6 }
 0x1cd   : > { %18831 = vmatmul.mubr.msk.f32.gmra.mrb[62].mxu1 %vm1113_vm1, %v22033_v2 }
 0x1ce   : > { %18823 = vmatmul.mubr.msk.f32.gmra.mrb[62].mxu0 %vm1113_vm1, %v22033_v2  ;;  %3379 = vmatprep.mubr.f32.mxu1 %v21001_v0  ;;  %v20417_v2 = vunpack.i.l.bf16 %v22406_v48  ;;  %v22570_v53 = vpop.permute.xlu0 %20425 }
 0x1cf   : > { %3266 = vmatprep.mubr.f32.mxu0 %v21001_v0  ;;  %v20428_v38 = vunpack.i.h.bf16 %v22570_v53  ;;  %20580 = vrot.lane.b32.xlu1 %v22069_v24, %s21005_s6 }
 0x1d0   : > { %v3107_v25 = vsel %vm3081_vm2, %v20417_v2, %v20418_v18  ;;  %v20427_v18 = vunpack.i.l.bf16 %v22570_v53 }
 0x1d1   : > { %18848 = vmatmul.mubr.msk.f32.vlgmr.msra.gmra.mrb[0].mxu1 %vm1113_vm1, %v22432_v41  ;;  %v19296_v23 = vpack.c.bf16 %v3107_v25, %v3091_v37  ;;  %v3090_v37 = vsel %vm3081_vm2, %v28832_v13, %v20407_v22  ;;  %v3106_v25 = vsel %vm3081_vm2, %v20403_v11, %v20417_v2  ;;  %v19302_v2 = vpack.c.bf16 %v3108_v29, %v3092_v17 }
 0x1d2   : > { %18840 = vmatmul.mubr.msk.f32.vlgmr.msra.gmra.mrb[0].mxu0 %vm1113_vm1, %v22432_v41  ;;  %3385 = vmatprep.mubr.f32.mxu1 %v21001_v0  ;;  %v19298_v15 = vpack.c.bf16 %v3106_v25, %v3090_v37  ;;  %v3122_v37 = vsel %vm3081_vm2, %v22361_v40, %v22514_v14 }
 0x1d3   : > { %19291 = vmatpush1.bf16.msra.mxu0 %v19290_v16  ;;  %3272 = vmatprep.mubr.f32.mxu0 %v21001_v0  ;;  %v22577_v16 = vld [vmem:[#allocation2 + $0x168] sm:$0xff] }
 0x1d4   : > { %3432 = vmatprep.subr.mxu0 %v3119_v7  ;;  %19295 = vmatpush1.bf16.msra.mxu1 %v19294_v39  ;;  %v22573_v39 = vpop.permute.xlu1 %20430  ;;  %v22589_v7 = vld [vmem:[%s28820_s1 + $0xb8] sm:$0xff] }
 0x1d5   : > { %18849 = vmatmul.mubr.msk.f32.gmra.mrb[2].mxu1 %vm1113_vm1, %v22466_v46  ;;  %3545 = vmatprep.subr.mxu1 %v3121_v50  ;;  %v22602_v50 = vpop.permute.xlu0 %20435  ;;  %v20433_v60 = vunpack.i.h.bf16 %v22573_v39  ;;  %v20432_v10 = vunpack.i.l.bf16 %v22573_v39 }
 0x1d6   : > { %18841 = vmatmul.mubr.msk.f32.gmra.mrb[2].mxu0 %vm1113_vm1, %v22466_v46  ;;  %3391 = vmatprep.mubr.f32.mxu1 %v21001_v0  ;;  %v20438_v11 = vunpack.i.h.bf16 %v22602_v50  ;;  %v20437_v6 = vunpack.i.l.bf16 %v22602_v50 }
 0x1d7   : > { %3433 = vmatpush1.msra.mxu0 %v3118_v56  ;;  %3278 = vmatprep.mubr.f32.mxu0 %v21001_v0  ;;  %v3125_v56 = vsel %vm3081_vm2, %v22535_v26, %v22541_v31  ;;  %v3097_v63 = vsel %vm3081_vm2, %v20432_v10, %v20433_v60  ;;  %v22690_v26 = vld [vmem:[#allocation2 + $0xf0] sm:$0xff] }
 0x1d8   : > { %3546 = vmatpush1.msra.mxu1 %v3120_v28  ;;  %19297 = vmatprep.subr.bf16.mxu0 %v19296_v23  ;;  %v22618_v22 = vpop.permute.xlu1 %20440  ;;  %v3123_v23 = vsel %vm3081_vm2, %v22514_v14, %v22520_v34  ;;  %v3095_v28 = vsel %vm3081_vm2, %v20427_v18, %v20428_v38  ;;  %v22675_v34 = vld [vmem:[#allocation2 + $0x68] sm:$0xff] }
 0x1d9   : > { %18850 = vmatmul.mubr.msk.f32.gmra.mrb[4].mxu1 %vm1113_vm1, %v22496_v4  ;;  %19301 = vmatprep.subr.bf16.mxu1 %v19300_v62  ;;  %v20443_v51 = vunpack.i.h.bf16 %v22618_v22  ;;  %v20442_v48 = vunpack.i.l.bf16 %v22618_v22  ;;  %v3111_v62 = vsel %vm3081_vm2, %v20437_v6, %v20438_v11  ;;  %v20594_v40 = vpack.i.bf16 %v22146_v54, %v22675_v34  ;;  %v22682_v14 = vpop.permute.xlu0 %3073 }
 0x1da   : > { %18842 = vmatmul.mubr.msk.f32.gmra.mrb[4].mxu0 %vm1113_vm1, %v22496_v4  ;;  %3397 = vmatprep.mubr.f32.mxu1 %v21001_v0  ;;  %v19304_v5 = vpack.c.bf16 %v3111_v62, %v3095_v28  ;;  %v20604_v54 = vpack.i.bf16 %v22148_v49, %v22690_v26 }
 0x1db   : > { %3284 = vmatprep.mubr.f32.mxu0 %v21001_v0  ;;  %5597 = vrot.lane.b32.xlu0 %v22577_v16, %s21005_s6  ;;  %v3113_v44 = vsel %vm3081_vm2, %v20442_v48, %v20443_v51 }
 0x1dc   : > { %v19308_v13 = vpack.c.bf16 %v3113_v44, %v3097_v63  ;;  %v3076_v24 = vpop.permute.xlu1 %3075  ;;  %20590 = vrot.lane.b32.xlu1 %v22079_v33, %s21005_s6  ;;  %v3126_v63 = vsel %vm3081_vm2, %v22541_v31, %v22682_v14 }
 0x1dd   : > { %18851 = vmatmul.mubr.msk.f32.gmra.mrb[6].mxu1 %vm1113_vm1, %v22507_v27  ;;  %v3078_v25 = vpop.permute.xlu0 %3077 }
 0x1de   : > { %18843 = vmatmul.mubr.msk.f32.gmra.mrb[6].mxu0 %vm1113_vm1, %v22507_v27  ;;  %3403 = vmatprep.mubr.f32.mxu1 %v21001_v0  ;;  %v3128_v28 = vsel %vm3081_vm2, %v3076_v24, %v3078_v25 }
 0x1df   : > { %3290 = vmatprep.mubr.f32.mxu0 %v21001_v0  ;;  %20595 = vrot.lane.b32.xlu0 %v20594_v40, %s21005_s6 }
 0x1e0   : > { %v3080_v49 = vpop.permute.xlu1 %3079  ;;  %5595 = vrot.lane.b32.xlu1 %v22099_v32, %s21005_s6  ;;  %v3094_v32 = vsel %vm3081_vm2, %v20413_v47, %v20427_v18 }
 0x1e1   : > { %18852 = vmatmul.mubr.msk.f32.gmra.mrb[8].mxu1 %vm1113_vm1, %v22528_v36  ;;  %v22713_v33 = vpop.permute.xlu0 %20445  ;;  %v3129_v18 = vsel %vm3081_vm2, %v3078_v25, %v3080_v49 }
 0x1e2   : > { %18844 = vmatmul.mubr.msk.f32.gmra.mrb[8].mxu0 %vm1113_vm1, %v22528_v36  ;;  %3409 = vmatprep.mubr.f32.mxu1 %v21001_v0  ;;  %v20448_v57 = vunpack.i.h.bf16 %v22713_v33  ;;  %v20447_v1 = vunpack.i.l.bf16 %v22713_v33 }
 0x1e3   : > { %3296 = vmatprep.mubr.f32.mxu0 %v21001_v0  ;;  %20605 = vrot.lane.b32.xlu0 %v20604_v54, %s21005_s6  ;;  %v20896_v54 = vld [vmem:[#allocation2 + $0x98] sm:$0xff] }
 0x1e4   : > { %v22716_v17 = vpop.permute.xlu1 %20450  ;;  %5599 = vrot.lane.b32.xlu1 %v22115_v61, %s21005_s6  ;;  %v3110_v61 = vsel %vm3081_vm2, %v20423_v45, %v20437_v6  ;;  %v4347_v51 = vsel %vm4345_vm3, %v20447_v1, %v20448_v57 }
 0x1e5   : > { %18853 = vmatmul.mubr.msk.f32.gmra.mrb[10].mxu1 %vm1113_vm1, %v22549_v42  ;;  %v22749_v47 = vpop.permute.xlu0 %20455  ;;  %v20453_v50 = vunpack.i.h.bf16 %v22716_v17  ;;  %v20452_v29 = vunpack.i.l.bf16 %v22716_v17  ;;  %v19306_v60 = vpack.c.bf16 %v3110_v61, %v3094_v32 }
 0x1e6   : > { %18845 = vmatmul.mubr.msk.f32.gmra.mrb[10].mxu0 %vm1113_vm1, %v22549_v42  ;;  %3415 = vmatprep.mubr.f32.mxu1 %v21001_v0  ;;  %v20458_v45 = vunpack.i.h.bf16 %v22749_v47  ;;  %v20457_v53 = vunpack.i.l.bf16 %v22749_v47 }
 0x1e7   : > { %3302 = vmatprep.mubr.f32.mxu0 %v21001_v0  ;;  %5601 = vrot.lane.b32.xlu0 %v22178_v59, %s21005_s6  ;;  %v3096_v59 = vsel %vm3081_vm2, %v20428_v38, %v20432_v10  ;;  %v3127_v10 = vsel %vm3081_vm2, %v22682_v14, %v3076_v24  ;;  %v4349_v6 = vsel %vm4345_vm3, %v20452_v29, %v20453_v50  ;;  %v20897_v24 = vld [vmem:[#allocation2 + $0x90] sm:$0xff] }
 0x1e8   : > { %v22756_v39 = vpop.permute.xlu1 %20460  ;;  %20600 = vrot.lane.b32.xlu1 %v22193_v3, %s21005_s6  ;;  %v22860_v25 = vpack.i.bf16 %v20896_v54, %v20897_v24  ;;  %v4348_v32 = vsel %vm4345_vm3, %v20448_v57, %v20452_v29  ;;  %v20898_v29 = vld [vmem:[#allocation2] sm:$0xff]  ;;  %v22973_v54 = vld [vmem:[#allocation2 + $0x130] sm:$0xff]  ;;  %v20906_v24 = vld [vmem:[#allocation2 + $0x28] sm:$0xff] }
 0x1e9   : > { %18854 = vmatmul.mubr.msk.f32.gmra.mrb[12].mxu1 %vm1113_vm1, %v22568_v8  ;;  %v20463_v38 = vunpack.i.h.bf16 %v22756_v39 }
 0x1ea   : > { %18846 = vmatmul.mubr.msk.f32.gmra.mrb[12].mxu0 %vm1113_vm1, %v22568_v8  ;;  %3421 = vmatprep.mubr.f32.mxu1 %v21001_v0 }
 0x1eb   : > { %3308 = vmatprep.mubr.f32.mxu0 %v21001_v0  ;;  %5605 = vrot.lane.b32.xlu0 %v22183_v20, %s21005_s6  ;;  %v3112_v20 = vsel %vm3081_vm2, %v20438_v11, %v20442_v48  ;;  %v20462_v11 = vunpack.i.l.bf16 %v22756_v39  ;;  %v4363_v48 = vsel %vm4345_vm3, %v20457_v53, %v20458_v45 }
 0x1ec   : > { %v19310_v22 = vpack.c.bf16 %v3112_v20, %v3096_v59  ;;  %20610 = vrot.lane.b32.xlu1 %v22210_v30, %s21005_s6 }
 0x1ed   : > { %18855 = vmatmul.mubr.msk.f32.gmra.mrb[14].mxu1 %vm1113_vm1, %v22589_v7  ;;  %v4364_v59 = vsel %vm4345_vm3, %v20458_v45, %v20462_v11 }
 0x1ee   : > { %18847 = vmatmul.mubr.msk.f32.gmra.mrb[14].mxu0 %vm1113_vm1, %v22589_v7  ;;  %3605 = vmatprep.mubr.f32.mxu1 %v21001_v0 }
 0x1ef   : > { %3492 = vmatprep.mubr.f32.mxu0 %v21001_v0 }
 0x1f0   : > { %5603 = vrot.lane.b32.xlu1 %v22195_v58, %s21005_s6 }
 0x1f1   : > { %18864 = vmatmul.mubr.msk.f32.vlgmr.msra.gmra.mrb[16].mxu1 %vm1113_vm1, %v22432_v41 }
 0x1f2   : > { %18856 = vmatmul.mubr.msk.f32.vlgmr.msra.gmra.mrb[16].mxu0 %vm1113_vm1, %v22432_v41  ;;  %3611 = vmatprep.mubr.f32.mxu1 %v21001_v0 }
 0x1f3   : > { %19299 = vmatpush1.bf16.msra.mxu0 %v19298_v15  ;;  %3498 = vmatprep.mubr.f32.mxu0 %v21001_v0  ;;  %v20466_v15 = vpop.permute.xlu0 %20465 }
 0x1f4   : > { %3658 = vmatprep.subr.mxu0 %v3123_v23  ;;  %19303 = vmatpush1.bf16.msra.mxu1 %v19302_v2  ;;  %v4365_v2 = vsel %vm4345_vm3, %v20462_v11, %v20463_v38  ;;  %v19312_v23 = vpack.c.bf16 %v4363_v48, %v4347_v51  ;;  %v20468_v58 = vunpack.i.h.bf16 %v20466_v15  ;;  %v20467_v14 = vunpack.i.l.bf16 %v20466_v15  ;;  %v20899_v11 = vld [vmem:[#allocation2 + $0x88] sm:$0xff] }
 0x1f5   : > { %18865 = vmatmul.mubr.msk.f32.gmra.mrb[18].mxu1 %vm1113_vm1, %v22466_v46  ;;  %3771 = vmatprep.subr.mxu1 %v3125_v56  ;;  %v19316_v62 = vpack.c.bf16 %v4365_v2, %v4349_v6  ;;  %v22798_v56 = vpop.permute.xlu1 %4313  ;;  %v19318_v48 = vpack.c.bf16 %v4364_v59, %v4348_v32  ;;  %v20908_v59 = vld [vmem:[#allocation2 + $0xb0] sm:$0xff] }
 0x1f6   : > { %18857 = vmatmul.mubr.msk.f32.gmra.mrb[18].mxu0 %vm1113_vm1, %v22466_v46  ;;  %3617 = vmatprep.mubr.f32.mxu1 %v21001_v0  ;;  %v4362_v49 = vsel %vm4345_vm3, %v20468_v58, %v20457_v53  ;;  %v20904_v58 = vld [vmem:[#allocation2 + $0xa8] sm:$0xff] }
 0x1f7   : > { %3659 = vmatpush1.msra.mxu0 %v3122_v37  ;;  %3504 = vmatprep.mubr.f32.mxu0 %v21001_v0  ;;  %v22812_v44 = vpop.permute.xlu0 %4315  ;;  %v20895_v37 = vld [vmem:[#allocation2 + $0x10] sm:$0xff] }
 0x1f8   : > { %3772 = vmatpush1.msra.mxu1 %v3124_v12  ;;  %19305 = vmatprep.subr.bf16.mxu0 %v19304_v5 }
 0x1f9   : > { %18866 = vmatmul.mubr.msk.f32.gmra.mrb[20].mxu1 %vm1113_vm1, %v22496_v4  ;;  %19309 = vmatprep.subr.bf16.mxu1 %v19308_v13  ;;  %v22815_v31 = vpop.permute.xlu1 %4317  ;;  %v20894_v13 = vld [vmem:[#allocation2 + $0x8] sm:$0xff] }
 0x1fa   : > { %18858 = vmatmul.mubr.msk.f32.gmra.mrb[20].mxu0 %vm1113_vm1, %v22496_v4  ;;  %3623 = vmatprep.mubr.f32.mxu1 %v21001_v0  ;;  %v22849_v40 = vpack.i.bf16 %v20895_v37, %v20894_v13 }
 0x1fb   : > { %3510 = vmatprep.mubr.f32.mxu0 %v21001_v0  ;;  %v22827_v5 = vpop.permute.xlu0 %4319  ;;  %5607 = vrot.lane.b32.xlu1 %v22240_v55, %s21005_s6  ;;  %v4346_v55 = vsel %vm4345_vm3, %v20467_v14, %v20447_v1 }
 0x1fc   : > { %20615 = vrot.lane.b32.xlu0 %v22849_v40, %s21006_s8  ;;  %v19314_v51 = vpack.c.bf16 %v4362_v49, %v4346_v55  ;;  %v4381_v15 = vsel %vm4345_vm3, %v22815_v31, %v22827_v5  ;;  %v20907_v55 = vld [vmem:[#allocation2 + $0x30] sm:$0xff] }
 0x1fd   : > { %18867 = vmatmul.mubr.msk.f32.gmra.mrb[22].mxu1 %vm1113_vm1, %v22507_v27  ;;  %v22831_v12 = vpop.permute.xlu1 %4311  ;;  %v22977_v49 = vpack.i.bf16 %v20907_v55, %v20906_v24  ;;  %v20914_v24 = vld [vmem:[#allocation2 + $0x40] sm:$0xff] }
 0x1fe   : > { %18859 = vmatmul.mubr.msk.f32.gmra.mrb[22].mxu0 %vm1113_vm1, %v22507_v27  ;;  %3629 = vmatprep.mubr.f32.mxu1 %v21001_v0 }
 0x1ff   : > { %3516 = vmatprep.mubr.f32.mxu0 %v21001_v0  ;;  %v22844_v3 = vpop.permute.xlu0 %20470 }
 0x200   : > { %v20473_v20 = vunpack.i.h.bf16 %v22844_v3  ;;  %20625 = vrot.lane.b32.xlu0 %v22860_v25, %s21006_s8 }
 0x201   : > { %18868 = vmatmul.mubr.msk.f32.gmra.mrb[24].mxu1 %vm1113_vm1, %v22528_v36  ;;  %v22847_v30 = vpop.permute.xlu1 %20475 }
 0x202   : > { %18860 = vmatmul.mubr.msk.f32.gmra.mrb[24].mxu0 %vm1113_vm1, %v22528_v36  ;;  %3635 = vmatprep.mubr.f32.mxu1 %v21001_v0  ;;  %v20478_v53 = vunpack.i.h.bf16 %v22847_v30  ;;  %v20477_v57 = vunpack.i.l.bf16 %v22847_v30 }
 0x203   : > { %3522 = vmatprep.mubr.f32.mxu0 %v21001_v0  ;;  %v22874_v61 = vpop.permute.xlu0 %20480 }
 0x204   : > { %v20483_v1 = vunpack.i.h.bf16 %v22874_v61 }
 0x205   : > { %18869 = vmatmul.mubr.msk.f32.gmra.mrb[26].mxu1 %vm1113_vm1, %v22549_v42  ;;  %v22886_v33 = vpop.permute.xlu1 %20485 }
 0x206   : > { %18861 = vmatmul.mubr.msk.f32.gmra.mrb[26].mxu0 %vm1113_vm1, %v22549_v42  ;;  %3641 = vmatprep.mubr.f32.mxu1 %v21001_v0  ;;  %v20488_v47 = vunpack.i.h.bf16 %v22886_v33  ;;  %v20487_v45 = vunpack.i.l.bf16 %v22886_v33 }
 0x207   : > { %3528 = vmatprep.mubr.f32.mxu0 %v21001_v0 }
 0x208   : > { %v4368_v17 = vsel %vm4345_vm3, %v20483_v1, %v20487_v45 }
 0x209   : > { %18870 = vmatmul.mubr.msk.f32.gmra.mrb[28].mxu1 %vm1113_vm1, %v22568_v8 }
 0x20a   : > { %18862 = vmatmul.mubr.msk.f32.gmra.mrb[28].mxu0 %vm1113_vm1, %v22568_v8  ;;  %3647 = vmatprep.mubr.f32.mxu1 %v21001_v0 }
 0x20b   : > { %3534 = vmatprep.mubr.f32.mxu0 %v21001_v0 }
 0x20d   : > { %18871 = vmatmul.mubr.msk.f32.gmra.mrb[30].mxu1 %vm1113_vm1, %v22589_v7 }
 0x20e   : > { %18863 = vmatmul.mubr.msk.f32.gmra.mrb[30].mxu0 %vm1113_vm1, %v22589_v7  ;;  %3831 = vmatprep.mubr.f32.mxu1 %v21001_v0 }
 0x20f   : > { %3718 = vmatprep.mubr.f32.mxu0 %v21001_v0 }
 0x211   : > { %18880 = vmatmul.mubr.msk.f32.vlgmr.msra.gmra.mrb[32].mxu1 %vm1113_vm1, %v22432_v41 }
 0x212   : > { %18872 = vmatmul.mubr.msk.f32.vlgmr.msra.gmra.mrb[32].mxu0 %vm1113_vm1, %v22432_v41  ;;  %3837 = vmatprep.mubr.f32.mxu1 %v21001_v0 }
 0x213   : > { %19307 = vmatpush1.bf16.msra.mxu0 %v19306_v60  ;;  %3724 = vmatprep.mubr.f32.mxu0 %v21001_v0  ;;  %v20472_v60 = vunpack.i.l.bf16 %v22844_v3  ;;  %v23061_v3 = vld [vmem:[%s28820_s1 + $0xc0] sm:$0xff] }
 0x214   : > { %3884 = vmatprep.subr.mxu0 %v3127_v10  ;;  %19311 = vmatpush1.bf16.msra.mxu1 %v19310_v22  ;;  %v22896_v22 = vpack.i.bf16 %v20899_v11, %v20898_v29  ;;  %v20482_v10 = vunpack.i.l.bf16 %v22874_v61  ;;  %v20909_v29 = vld [vmem:[#allocation2 + $0xb8] sm:$0xff] }
 0x215   : > { %18881 = vmatmul.mubr.msk.f32.gmra.mrb[34].mxu1 %vm1113_vm1, %v22466_v46  ;;  %3997 = vmatprep.subr.mxu1 %v3129_v18  ;;  %v4379_v18 = vsel %vm4345_vm3, %v22798_v56, %v22812_v44  ;;  %v4351_v6 = vsel %vm4345_vm3, %v20472_v60, %v20473_v20  ;;  %v22993_v11 = vpack.i.bf16 %v20909_v29, %v20908_v59 }
 0x216   : > { %18873 = vmatmul.mubr.msk.f32.gmra.mrb[34].mxu0 %vm1113_vm1, %v22466_v46  ;;  %3843 = vmatprep.mubr.f32.mxu1 %v21001_v0  ;;  %v4367_v2 = vsel %vm4345_vm3, %v20482_v10, %v20483_v1 }
 0x217   : > { %3885 = vmatpush1.msra.mxu0 %v3126_v63  ;;  %3730 = vmatprep.mubr.f32.mxu0 %v21001_v0  ;;  %v4380_v63 = vsel %vm4345_vm3, %v22812_v44, %v22815_v31  ;;  %v22959_v44 = vpop.permute.xlu0 %4321  ;;  %v20903_v31 = vld [vmem:[#allocation2 + $0xa0] sm:$0xff] }
 0x218   : > { %3998 = vmatpush1.msra.mxu1 %v3128_v28  ;;  %19313 = vmatprep.subr.bf16.mxu0 %v19312_v23  ;;  %v4353_v23 = vsel %vm4345_vm3, %v20477_v57, %v20478_v53  ;;  %v4369_v28 = vsel %vm4345_vm3, %v20487_v45, %v20488_v47  ;;  %v22963_v14 = vpack.i.bf16 %v20904_v58, %v20903_v31  ;;  %v23123_v58 = vld [vmem:[%s28820_s1 + $0xd0] sm:$0xff] }
 0x219   : > { %18882 = vmatmul.mubr.msk.f32.gmra.mrb[36].mxu1 %vm1113_vm1, %v22496_v4  ;;  %19317 = vmatprep.subr.bf16.mxu1 %v19316_v62  ;;  %v19320_v62 = vpack.c.bf16 %v4367_v2, %v4351_v6  ;;  %v19324_v13 = vpack.c.bf16 %v4369_v28, %v4353_v23  ;;  %v4366_v6 = vsel %vm4345_vm3, %v20463_v38, %v20482_v10  ;;  %v23035_v2 = vld [vmem:[#allocation2 + $0x110] sm:$0xff]  ;;  %v23093_v28 = vld [vmem:[%s28820_s1 + $0xc8] sm:$0xff] }
 0x21a   : > { %18874 = vmatmul.mubr.msk.f32.gmra.mrb[36].mxu0 %vm1113_vm1, %v22496_v4  ;;  %3849 = vmatprep.mubr.f32.mxu1 %v21001_v0  ;;  %v4382_v31 = vsel %vm4345_vm3, %v22827_v5, %v22959_v44  ;;  %v23136_v5 = vld [vmem:[%s28820_s1 + $0xd8] sm:$0xff] }
 0x21b   : > { %3736 = vmatprep.mubr.f32.mxu0 %v21001_v0  ;;  %20635 = vrot.lane.b32.xlu0 %v22896_v22, %s21006_s8  ;;  %v22979_v32 = vpop.permute.xlu0 %4325 }
 0x21d   : > { %18883 = vmatmul.mubr.msk.f32.gmra.mrb[38].mxu1 %vm1113_vm1, %v22507_v27 }
 0x21e   : > { %18875 = vmatmul.mubr.msk.f32.gmra.mrb[38].mxu0 %vm1113_vm1, %v22507_v27  ;;  %3855 = vmatprep.mubr.f32.mxu1 %v21001_v0 }
 0x21f   : > { %3742 = vmatprep.mubr.f32.mxu0 %v21001_v0 }
 0x221   : > { %18884 = vmatmul.mubr.msk.f32.gmra.mrb[40].mxu1 %vm1113_vm1, %v22528_v36 }
 0x222   : > { %18876 = vmatmul.mubr.msk.f32.gmra.mrb[40].mxu0 %vm1113_vm1, %v22528_v36  ;;  %3861 = vmatprep.mubr.f32.mxu1 %v21001_v0 }
 0x223   : > { %3748 = vmatprep.mubr.f32.mxu0 %v21001_v0 }
 0x225   : > { %18885 = vmatmul.mubr.msk.f32.gmra.mrb[42].mxu1 %vm1113_vm1, %v22549_v42 }
 0x226   : > { %18877 = vmatmul.mubr.msk.f32.gmra.mrb[42].mxu0 %vm1113_vm1, %v22549_v42  ;;  %3867 = vmatprep.mubr.f32.mxu1 %v21001_v0 }
 0x227   : > { %3754 = vmatprep.mubr.f32.mxu0 %v21001_v0 }
 0x229   : > { %18886 = vmatmul.mubr.msk.f32.gmra.mrb[44].mxu1 %vm1113_vm1, %v22568_v8 }
 0x22a   : > { %18878 = vmatmul.mubr.msk.f32.gmra.mrb[44].mxu0 %vm1113_vm1, %v22568_v8  ;;  %3873 = vmatprep.mubr.f32.mxu1 %v21001_v0 }
 0x22b   : > { %3760 = vmatprep.mubr.f32.mxu0 %v21001_v0 }
 0x22d   : > { %18887 = vmatmul.mubr.msk.f32.gmra.mrb[46].mxu1 %vm1113_vm1, %v22589_v7 }
 0x22e   : > { %18879 = vmatmul.mubr.msk.f32.gmra.mrb[46].mxu0 %vm1113_vm1, %v22589_v7  ;;  %4057 = vmatprep.mubr.f32.mxu1 %v21001_v0 }
 0x22f   : > { %3944 = vmatprep.mubr.f32.mxu0 %v21001_v0 }
 0x231   : > { %18896 = vmatmul.mubr.msk.f32.vlgmr.msra.gmra.mrb[48].mxu1 %vm1113_vm1, %v22432_v41 }
 0x232   : > { %18888 = vmatmul.mubr.msk.f32.vlgmr.msra.gmra.mrb[48].mxu0 %vm1113_vm1, %v22432_v41  ;;  %4063 = vmatprep.mubr.f32.mxu1 %v21001_v0  ;;  %v4378_v41 = vsel %vm4345_vm3, %v22831_v12, %v22798_v56  ;;  %v20900_v56 = vld [vmem:[#allocation2 + $0x18] sm:$0xff]  ;;  %v20901_v12 = vld [vmem:[#allocation2 + $0x20] sm:$0xff] }
 0x233   : > { %3950 = vmatprep.mubr.f32.mxu0 %v21001_v0  ;;  %19315 = vmatpush1.bf16.msra.mxu0 %v19314_v51  ;;  %v22947_v37 = vpack.i.bf16 %v20901_v12, %v20900_v56  ;;  %v22995_v51 = vld [vmem:[#allocation2 + $0x118] sm:$0xff] }
 0x234   : > { %19319 = vmatpush1.bf16.msra.mxu1 %v19318_v48  ;;  %4470 = vmatprep.subr.mxu0 %v4379_v18  ;;  %v23011_v18 = vld [vmem:[#allocation2 + $0x128] sm:$0xff] }
 0x235   : > { %18897 = vmatmul.mubr.msk.f32.gmra.mrb[50].mxu1 %vm1113_vm1, %v22466_v46  ;;  %4583 = vmatprep.subr.mxu1 %v4381_v15 }
 0x236   : > { %18889 = vmatmul.mubr.msk.f32.gmra.mrb[50].mxu0 %vm1113_vm1, %v22466_v46  ;;  %4069 = vmatprep.mubr.f32.mxu1 %v21001_v0  ;;  %v22955_v46 = vld [vmem:[#allocation2 + $0x120] sm:$0xff] }
 0x237   : > { %3956 = vmatprep.mubr.f32.mxu0 %v21001_v0  ;;  %4471 = vmatpush1.msra.mxu0 %v4378_v41 }
 0x238   : > { %4584 = vmatpush1.msra.mxu1 %v4380_v63  ;;  %19321 = vmatprep.subr.bf16.mxu0 %v19320_v62 }
 0x239   : > { %18898 = vmatmul.mubr.msk.f32.gmra.mrb[52].mxu1 %vm1113_vm1, %v22496_v4  ;;  %19325 = vmatprep.subr.bf16.mxu1 %v19324_v13 }
 0x23a   : > { %18890 = vmatmul.mubr.msk.f32.gmra.mrb[52].mxu0 %vm1113_vm1, %v22496_v4  ;;  %4075 = vmatprep.mubr.f32.mxu1 %v21001_v0  ;;  %v22967_v4 = vpop.permute.xlu1 %4323 }
 0x23b   : > { %3962 = vmatprep.mubr.f32.mxu0 %v21001_v0  ;;  %6843 = vrot.lane.b32.xlu0 %v22955_v46, %s21006_s8  ;;  %v4383_v15 = vsel %vm4345_vm3, %v22959_v44, %v22967_v4  ;;  %v4384_v56 = vsel %vm4345_vm3, %v22967_v4, %v22979_v32  ;;  %v20913_v4 = vld [vmem:[#allocation2 + $0x38] sm:$0xff]  ;;  %v20915_v44 = vld [vmem:[#allocation2 + $0xc8] sm:$0xff] }
 0x23c   : > { %20620 = vrot.lane.b32.xlu1 %v22947_v37, %s21006_s8  ;;  %v23126_v55 = vpack.i.bf16 %v20914_v24, %v20913_v4 }
 0x23d   : > { %18899 = vmatmul.mubr.msk.f32.gmra.mrb[54].mxu1 %vm1113_vm1, %v22507_v27 }
 0x23e   : > { %18891 = vmatmul.mubr.msk.f32.gmra.mrb[54].mxu0 %vm1113_vm1, %v22507_v27  ;;  %4081 = vmatprep.mubr.f32.mxu1 %v21001_v0  ;;  %v22985_v27 = vpop.permute.xlu1 %4327 }
 0x23f   : > { %3968 = vmatprep.mubr.f32.mxu0 %v21001_v0  ;;  %6847 = vrot.lane.b32.xlu0 %v22973_v54, %s21006_s8  ;;  %v4385_v41 = vsel %vm4345_vm3, %v22979_v32, %v22985_v27  ;;  %v20916_v32 = vld [vmem:[#allocation2 + $0xc0] sm:$0xff] }
 0x240   : > { %20630 = vrot.lane.b32.xlu1 %v22963_v14, %s21006_s8  ;;  %v23141_v59 = vpack.i.bf16 %v20915_v44, %v20916_v32  ;;  %v20918_v32 = vld [vmem:[#allocation2 + $0x58] sm:$0xff] }
 0x241   : > { %18900 = vmatmul.mubr.msk.f32.gmra.mrb[56].mxu1 %vm1113_vm1, %v22528_v36 }
 0x242   : > { %18892 = vmatmul.mubr.msk.f32.gmra.mrb[56].mxu0 %vm1113_vm1, %v22528_v36  ;;  %4087 = vmatprep.mubr.f32.mxu1 %v21001_v0  ;;  %v23004_v36 = vpop.permute.xlu0 %20490  ;;  %v23007_v48 = vpop.permute.xlu1 %20495 }
 0x243   : > { %3974 = vmatprep.mubr.f32.mxu0 %v21001_v0  ;;  %20640 = vrot.lane.b32.xlu0 %v22977_v49, %s21006_s8  ;;  %v20493_v39 = vunpack.i.h.bf16 %v23004_v36  ;;  %v20498_v61 = vunpack.i.h.bf16 %v23007_v48  ;;  %v20492_v45 = vunpack.i.l.bf16 %v23004_v36 }
 0x244   : > { %6841 = vrot.lane.b32.xlu1 %v22995_v51, %s21006_s8 }
 0x245   : > { %18901 = vmatmul.mubr.msk.f32.gmra.mrb[58].mxu1 %vm1113_vm1, %v22549_v42  ;;  %v4355_v23 = vsel %vm4345_vm3, %v20492_v45, %v20493_v39 }
 0x246   : > { %18893 = vmatmul.mubr.msk.f32.gmra.mrb[58].mxu0 %vm1113_vm1, %v22549_v42  ;;  %4093 = vmatprep.mubr.f32.mxu1 %v21001_v0  ;;  %v4350_v42 = vsel %vm4345_vm3, %v20453_v50, %v20472_v60  ;;  %v23053_v38 = vpop.permute.xlu1 %20505 }
 0x247   : > { %3980 = vmatprep.mubr.f32.mxu0 %v21001_v0  ;;  %20650 = vrot.lane.b32.xlu0 %v22993_v11, %s21006_s8  ;;  %v20508_v1 = vunpack.i.h.bf16 %v23053_v38  ;;  %v19322_v10 = vpack.c.bf16 %v4366_v6, %v4350_v42  ;;  %v23157_v6 = vld [vmem:[%s28820_s1 + $0xe0] sm:$0xff] }
 0x248   : > { %6845 = vrot.lane.b32.xlu1 %v23011_v18, %s21006_s8 }
 0x249   : > { %18902 = vmatmul.mubr.msk.f32.gmra.mrb[60].mxu1 %vm1113_vm1, %v22568_v8 }
 0x24a   : > { %18894 = vmatmul.mubr.msk.f32.gmra.mrb[60].mxu0 %vm1113_vm1, %v22568_v8  ;;  %4099 = vmatprep.mubr.f32.mxu1 %v21001_v0  ;;  %v23033_v8 = vpop.permute.xlu0 %20500  ;;  %v23149_v42 = vpop.permute.xlu1 %4331 }
 0x24b   : > { %3986 = vmatprep.mubr.f32.mxu0 %v21001_v0  ;;  %6849 = vrot.lane.b32.xlu0 %v22392_v19, %s21006_s8  ;;  %v4352_v19 = vsel %vm4345_vm3, %v20473_v20, %v20477_v57  ;;  %v20503_v50 = vunpack.i.h.bf16 %v23033_v8  ;;  %v20497_v20 = vunpack.i.l.bf16 %v23007_v48  ;;  %v20507_v57 = vunpack.i.l.bf16 %v23053_v38 }
 0x24c   : > { %6839 = vrot.lane.b32.xlu1 %v23035_v2, %s21006_s8  ;;  %v19326_v60 = vpack.c.bf16 %v4368_v17, %v4352_v19  ;;  %v23174_v17 = vld [vmem:[%s28820_s1 + $0xe8] sm:$0xff] }
 0x24d   : > { %18903 = vmatmul.mubr.msk.f32.gmra.mrb[62].mxu1 %vm1113_vm1, %v22589_v7  ;;  %v4357_v62 = vsel %vm4345_vm3, %v20497_v20, %v20498_v61  ;;  %v4373_v63 = vsel %vm4345_vm3, %v20507_v57, %v20508_v1  ;;  %v4372_v30 = vsel %vm4345_vm3, %v20503_v50, %v20507_v57 }
 0x24e   : > { %18895 = vmatmul.mubr.msk.f32.gmra.mrb[62].mxu0 %vm1113_vm1, %v22589_v7  ;;  %4643 = vmatprep.mubr.f32.mxu1 %v21001_v0  ;;  %v20502_v7 = vunpack.i.l.bf16 %v23033_v8  ;;  %v19332_v12 = vpack.c.bf16 %v4373_v63, %v4357_v62  ;;  %v23143_v29 = vpop.permute.xlu0 %4329  ;;  %v23166_v19 = vpop.permute.xlu1 %4335 }
 0x24f   : > { %4530 = vmatprep.mubr.f32.mxu0 %v21001_v0  ;;  %6853 = vrot.lane.b32.xlu0 %v22441_v52, %s21006_s8  ;;  %v4386_v44 = vsel %vm4345_vm3, %v22985_v27, %v23143_v29  ;;  %v23296_v27 = vld [vmem:[#allocation2 + $0x70] sm:$0xff] }
 0x250   : > { %v4371_v52 = vsel %vm4345_vm3, %v20502_v7, %v20503_v50  ;;  %20645 = vrot.lane.b32.xlu1 %v23126_v55, %s21006_s8 }
 0x251   : > { %18920 = vmatmul.mubr.msk.f32.vlgmr.msra.gmra.mrb[0].mxu1 %vm1113_vm1, %v23061_v3  ;;  %v19328_v13 = vpack.c.bf16 %v4371_v52, %v4355_v23  ;;  %v4356_v52 = vsel %vm4345_vm3, %v20493_v39, %v20497_v20 }
 0x252   : > { %18912 = vmatmul.mubr.msk.f32.vlgmr.msra.gmra.mrb[0].mxu0 %vm1113_vm1, %v23061_v3  ;;  %4649 = vmatprep.mubr.f32.mxu1 %v21001_v0 }
 0x253   : > { %19323 = vmatpush1.bf16.msra.mxu0 %v19322_v10  ;;  %4536 = vmatprep.mubr.f32.mxu0 %v21001_v0  ;;  %v23210_v10 = vld [vmem:[%s28820_s1 + $0xf8] sm:$0xff] }
 0x254   : > { %4696 = vmatprep.subr.mxu0 %v4383_v15  ;;  %19327 = vmatpush1.bf16.msra.mxu1 %v19326_v60  ;;  %v4370_v15 = vsel %vm4345_vm3, %v20488_v47, %v20502_v7 }
 0x255   : > { %18921 = vmatmul.mubr.msk.f32.gmra.mrb[2].mxu1 %vm1113_vm1, %v23093_v28  ;;  %4809 = vmatprep.subr.mxu1 %v4385_v41  ;;  %v4387_v41 = vsel %vm4345_vm3, %v23143_v29, %v23149_v42  ;;  %v20679_v29 = vpack.i.bf16 %v23296_v27, %v22675_v34  ;;  %v23313_v34 = vld [vmem:[#allocation2 + $0xf8] sm:$0xff] }
 0x256   : > { %18913 = vmatmul.mubr.msk.f32.gmra.mrb[2].mxu0 %vm1113_vm1, %v23093_v28  ;;  %4655 = vmatprep.mubr.f32.mxu1 %v21001_v0 }
 0x257   : > { %4697 = vmatpush1.msra.mxu0 %v4382_v31  ;;  %4542 = vmatprep.mubr.f32.mxu0 %v21001_v0 }
 0x258   : > { %4810 = vmatpush1.msra.mxu1 %v4384_v56  ;;  %19329 = vmatprep.subr.bf16.mxu0 %v19328_v13 }
 0x259   : > { %18922 = vmatmul.mubr.msk.f32.gmra.mrb[4].mxu1 %vm1113_vm1, %v23123_v58  ;;  %19333 = vmatprep.subr.bf16.mxu1 %v19332_v12 }
 0x25a   : > { %18914 = vmatmul.mubr.msk.f32.gmra.mrb[4].mxu0 %vm1113_vm1, %v23123_v58  ;;  %4661 = vmatprep.mubr.f32.mxu1 %v21001_v0 }
 0x25b   : > { %4548 = vmatprep.mubr.f32.mxu0 %v21001_v0  ;;  %20660 = vrot.lane.b32.xlu0 %v22509_v9, %s21006_s8  ;;  %v4334_v9 = vpop.permute.xlu0 %4333 }
 0x25c   : > { %20655 = vrot.lane.b32.xlu1 %v23141_v59, %s21006_s8  ;;  %v4389_v13 = vsel %vm4345_vm3, %v4334_v9, %v23166_v19  ;;  %v4388_v4 = vsel %vm4345_vm3, %v23149_v42, %v4334_v9  ;;  %v20921_v42 = vld [vmem:[#allocation2 + $0xe0] sm:$0xff]  ;;  %v20922_v9 = vld [vmem:[#allocation2 + $0xe8] sm:$0xff] }
 0x25d   : > { %18923 = vmatmul.mubr.msk.f32.gmra.mrb[6].mxu1 %vm1113_vm1, %v23136_v5 }
 0x25e   : > { %18915 = vmatmul.mubr.msk.f32.gmra.mrb[6].mxu0 %vm1113_vm1, %v23136_v5  ;;  %4667 = vmatprep.mubr.f32.mxu1 %v21001_v0 }
 0x25f   : > { %4554 = vmatprep.mubr.f32.mxu0 %v21001_v0  ;;  %20670 = vrot.lane.b32.xlu0 %v22530_v35, %s21006_s8  ;;  %v23189_v35 = vld [vmem:[%s28820_s1 + $0xf0] sm:$0xff]  ;;  %v23191_v60 = vpop.permute.xlu0 %20510 }
 0x260   : > { %6851 = vrot.lane.b32.xlu1 %v22552_v43, %s21006_s8  ;;  %v23194_v43 = vpop.permute.xlu1 %20515  ;;  %v20512_v50 = vunpack.i.l.bf16 %v23191_v60 }
 0x261   : > { %18924 = vmatmul.mubr.msk.f32.gmra.mrb[8].mxu1 %vm1113_vm1, %v23157_v6  ;;  %v20518_v36 = vunpack.i.h.bf16 %v23194_v43  ;;  %v20517_v39 = vunpack.i.l.bf16 %v23194_v43 }
 0x262   : > { %18916 = vmatmul.mubr.msk.f32.gmra.mrb[8].mxu0 %vm1113_vm1, %v23157_v6  ;;  %4673 = vmatprep.mubr.f32.mxu1 %v21001_v0 }
 0x263   : > { %4560 = vmatprep.mubr.f32.mxu0 %v21001_v0  ;;  %6857 = vrot.lane.b32.xlu0 %v22556_v21, %s21006_s8  ;;  %v23196_v21 = vld [vmem:[#allocation2 + $0x150] sm:$0xff]  ;;  %v23223_v23 = vpop.permute.xlu0 %20520  ;;  %v4361_v56 = vsel %vm4345_vm3, %v20517_v39, %v20518_v36  ;;  %v20689_v36 = vpack.i.bf16 %v23313_v34, %v22690_v26 }
 0x264   : > { %6855 = vrot.lane.b32.xlu1 %v23196_v21, %s21006_s8  ;;  %v20523_v33 = vunpack.i.h.bf16 %v23223_v23  ;;  %v23239_v47 = vpop.permute.xlu1 %20525  ;;  %v20522_v57 = vunpack.i.l.bf16 %v23223_v23 }
 0x265   : > { %18925 = vmatmul.mubr.msk.f32.gmra.mrb[10].mxu1 %vm1113_vm1, %v23174_v17  ;;  %v20528_v20 = vunpack.i.h.bf16 %v23239_v47  ;;  %v20527_v8 = vunpack.i.l.bf16 %v23239_v47 }
 0x266   : > { %18917 = vmatmul.mubr.msk.f32.gmra.mrb[10].mxu0 %vm1113_vm1, %v23174_v17  ;;  %4679 = vmatprep.mubr.f32.mxu1 %v21001_v0  ;;  %v4375_v63 = vsel %vm4345_vm3, %v20522_v57, %v20523_v33 }
 0x267   : > { %4566 = vmatprep.mubr.f32.mxu0 %v21001_v0  ;;  %6861 = vrot.lane.b32.xlu0 %v22577_v16, %s21006_s8  ;;  %v4354_v16 = vsel %vm4345_vm3, %v20478_v53, %v20492_v45  ;;  %v20513_v53 = vunpack.i.h.bf16 %v23191_v60  ;;  %v19334_v45 = vpack.c.bf16 %v4372_v30, %v4356_v52  ;;  %v4377_v12 = vsel %vm4345_vm3, %v20527_v8, %v20528_v20  ;;  %v23305_v30 = vpop.permute.xlu0 %4337 }
 0x268   : > { %v19330_v7 = vpack.c.bf16 %v4370_v15, %v4354_v16  ;;  %v19340_v24 = vpack.c.bf16 %v4377_v12, %v4361_v56  ;;  %v20919_v16 = vld [vmem:[#allocation2 + $0x60] sm:$0xff]  ;;  %v23303_v52 = vpack.i.bf16 %v20922_v9, %v20921_v42  ;;  %v23318_v20 = vpop.permute.xlu1 %4339  ;;  %v23353_v56 = vld [vmem:[#allocation2 + $0x188] sm:$0xff]  ;;  %v4358_v12 = vsel %vm4345_vm3, %v20498_v61, %v20512_v50 }
 0x269   : > { %18926 = vmatmul.mubr.msk.f32.gmra.mrb[12].mxu1 %vm1113_vm1, %v23189_v35  ;;  %v4359_v62 = vsel %vm4345_vm3, %v20512_v50, %v20513_v53  ;;  %v23289_v15 = vpack.i.bf16 %v20919_v16, %v20918_v32  ;;  %v4376_v48 = vsel %vm4345_vm3, %v20523_v33, %v20527_v8 }
 0x26a   : > { %18918 = vmatmul.mubr.msk.f32.gmra.mrb[12].mxu0 %vm1113_vm1, %v23189_v35  ;;  %4685 = vmatprep.mubr.f32.mxu1 %v21001_v0  ;;  %v19336_v31 = vpack.c.bf16 %v4375_v63, %v4359_v62 }
 0x26b   : > { %4572 = vmatprep.mubr.f32.mxu0 %v21001_v0  ;;  %20665 = vrot.lane.b32.xlu1 %v23289_v15, %s21006_s8 }
 0x26c   : > { %20680 = vrot.lane.b32.xlu0 %v20679_v29, %s21006_s8  ;;  %v4344_v26 = vpop.permute.xlu1 %4343 }
 0x26d   : > { %18927 = vmatmul.mubr.msk.f32.gmra.mrb[14].mxu1 %vm1113_vm1, %v23210_v10 }
 0x26e   : > { %18919 = vmatmul.mubr.msk.f32.gmra.mrb[14].mxu0 %vm1113_vm1, %v23210_v10  ;;  %4869 = vmatprep.mubr.f32.mxu1 %v21001_v0 }
 0x26f   : > { %4756 = vmatprep.mubr.f32.mxu0 %v21001_v0  ;;  %20675 = vrot.lane.b32.xlu1 %v23303_v52, %s21006_s8 }
 0x270   : > { %20690 = vrot.lane.b32.xlu0 %v20689_v36, %s21006_s8  ;;  %v23347_v63 = vpop.permute.xlu1 %20535 }
 0x271   : > { %18936 = vmatmul.mubr.msk.f32.vlgmr.msra.gmra.mrb[16].mxu1 %vm1113_vm1, %v23061_v3  ;;  %v20538_v23 = vunpack.i.h.bf16 %v23347_v63 }
 0x272   : > { %18928 = vmatmul.mubr.msk.f32.vlgmr.msra.gmra.mrb[16].mxu0 %vm1113_vm1, %v23061_v3  ;;  %4875 = vmatprep.mubr.f32.mxu1 %v21001_v0 }
 0x273   : > { %19331 = vmatpush1.bf16.msra.mxu0 %v19330_v7  ;;  %4762 = vmatprep.mubr.f32.mxu0 %v21001_v0  ;;  %v23331_v7 = vld [vmem:[#allocation2 + $0x160] sm:$0xff] }
 0x274   : > { %4922 = vmatprep.subr.mxu0 %v4387_v41  ;;  %19335 = vmatpush1.bf16.msra.mxu1 %v19334_v45  ;;  %v23322_v45 = vpop.permute.xlu0 %4341  ;;  %v23335_v41 = vld [vmem:[#allocation2 + $0x178] sm:$0xff]  ;;  %v23391_v43 = vpop.permute.xlu1 %20545 }
 0x275   : > { %18937 = vmatmul.mubr.msk.f32.gmra.mrb[18].mxu1 %vm1113_vm1, %v23093_v28  ;;  %5035 = vmatprep.subr.mxu1 %v4389_v13  ;;  %v23349_v13 = vld [vmem:[#allocation2 + $0x170] sm:$0xff]  ;;  %v20548_v33 = vunpack.i.h.bf16 %v23391_v43  ;;  %v20547_v47 = vunpack.i.l.bf16 %v23391_v43  ;;  %v4393_v32 = vsel %vm4345_vm3, %v23322_v45, %v4344_v26  ;;  %v4392_v36 = vsel %vm4345_vm3, %v23318_v20, %v23322_v45  ;;  %v20931_v45 = vld [vmem:[#allocation2 + $0x108] sm:$0xff] }
 0x276   : > { %18929 = vmatmul.mubr.msk.f32.gmra.mrb[18].mxu0 %vm1113_vm1, %v23093_v28  ;;  %4881 = vmatprep.mubr.f32.mxu1 %v21001_v0 }
 0x277   : > { %4923 = vmatpush1.msra.mxu0 %v4386_v44  ;;  %4768 = vmatprep.mubr.f32.mxu0 %v21001_v0  ;;  %v5629_v29 = vsel %vm5609_vm4, %v20547_v47, %v20548_v33 }
 0x278   : > { %5036 = vmatpush1.msra.mxu1 %v4388_v4  ;;  %19337 = vmatprep.subr.bf16.mxu0 %v19336_v31  ;;  %v23344_v62 = vpop.permute.xlu0 %20530  ;;  %v4374_v31 = vsel %vm4345_vm3, %v20508_v1, %v20522_v57  ;;  %v4360_v4 = vsel %vm4345_vm3, %v20513_v53, %v20517_v39  ;;  %v20537_v53 = vunpack.i.l.bf16 %v23347_v63  ;;  %v4391_v57 = vsel %vm4345_vm3, %v23305_v30, %v23318_v20  ;;  %v20930_v20 = vld [vmem:[#allocation2 + $0x100] sm:$0xff] }
 0x279   : > { %18938 = vmatmul.mubr.msk.f32.gmra.mrb[20].mxu1 %vm1113_vm1, %v23123_v58  ;;  %19341 = vmatprep.subr.bf16.mxu1 %v19340_v24  ;;  %v20533_v61 = vunpack.i.h.bf16 %v23344_v62  ;;  %v20532_v38 = vunpack.i.l.bf16 %v23344_v62  ;;  %v19342_v39 = vpack.c.bf16 %v4376_v48, %v4360_v4  ;;  %v19338_v8 = vpack.c.bf16 %v4374_v31, %v4358_v12  ;;  %v23437_v12 = vpop.permute.xlu1 %5577  ;;  %v20928_v4 = vld [vmem:[#allocation2 + $0x78] sm:$0xff]  ;;  %v20929_v48 = vld [vmem:[#allocation2 + $0x80] sm:$0xff] }
 0x27a   : > { %18930 = vmatmul.mubr.msk.f32.gmra.mrb[20].mxu0 %vm1113_vm1, %v23123_v58  ;;  %4887 = vmatprep.mubr.f32.mxu1 %v21001_v0  ;;  %v5613_v16 = vsel %vm5609_vm4, %v20537_v53, %v20538_v23  ;;  %v4390_v31 = vsel %vm4345_vm3, %v23166_v19, %v23305_v30 }
 0x27b   : > { %4774 = vmatprep.mubr.f32.mxu0 %v21001_v0  ;;  %6859 = vrot.lane.b32.xlu1 %v23331_v7, %s21006_s8  ;;  %v5611_v24 = vsel %vm5609_vm4, %v20532_v38, %v20533_v61  ;;  %v19348_v26 = vpack.c.bf16 %v5629_v29, %v5613_v16  ;;  %v23492_v29 = vld [vmem:[#allocation2 + $0x190] sm:$0xff] }
 0x27c   : > { %6865 = vrot.lane.b32.xlu0 %v23335_v41, %s21006_s8  ;;  %v23384_v50 = vpop.permute.xlu0 %20540 }
 0x27d   : > { %18939 = vmatmul.mubr.msk.f32.gmra.mrb[22].mxu1 %vm1113_vm1, %v23136_v5  ;;  %v20543_v1 = vunpack.i.h.bf16 %v23384_v50  ;;  %v20542_v60 = vunpack.i.l.bf16 %v23384_v50  ;;  %v23456_v30 = vpop.permute.xlu1 %5581 }
 0x27e   : > { %18931 = vmatmul.mubr.msk.f32.gmra.mrb[22].mxu0 %vm1113_vm1, %v23136_v5  ;;  %4893 = vmatprep.mubr.f32.mxu1 %v21001_v0 }
 0x27f   : > { %4780 = vmatprep.mubr.f32.mxu0 %v21001_v0  ;;  %6863 = vrot.lane.b32.xlu1 %v23349_v13, %s21006_s8  ;;  %v5627_v44 = vsel %vm5609_vm4, %v20542_v60, %v20543_v1 }
 0x280   : > { %6869 = vrot.lane.b32.xlu0 %v23353_v56, %s21006_s8  ;;  %v20551_v42 = vpop.permute.xlu0 %20550  ;;  %v19344_v9 = vpack.c.bf16 %v5627_v44, %v5611_v24  ;;  %v23478_v44 = vld [vmem:[#allocation2 + $0x180] sm:$0xff] }
 0x281   : > { %18940 = vmatmul.mubr.msk.f32.gmra.mrb[24].mxu1 %vm1113_vm1, %v23157_v6  ;;  %v5576_v24 = vpop.permute.xlu1 %5575 }
 0x282   : > { %18932 = vmatmul.mubr.msk.f32.gmra.mrb[24].mxu0 %vm1113_vm1, %v23157_v6  ;;  %4899 = vmatprep.mubr.f32.mxu1 %v21001_v0 }
 0x283   : > { %4786 = vmatprep.mubr.f32.mxu0 %v21001_v0 }
 0x284   : > { %v23453_v19 = vpop.permute.xlu0 %5579  ;;  %20700 = vrot.lane.b32.xlu0 %v22849_v40, %s21007_s9  ;;  %v5612_v40 = vsel %vm5609_vm4, %v20533_v61, %v20537_v53 }
 0x285   : > { %18941 = vmatmul.mubr.msk.f32.gmra.mrb[26].mxu1 %vm1113_vm1, %v23174_v17  ;;  %v23490_v16 = vpop.permute.xlu1 %20560 }
 0x286   : > { %18933 = vmatmul.mubr.msk.f32.gmra.mrb[26].mxu0 %vm1113_vm1, %v23174_v17  ;;  %4905 = vmatprep.mubr.f32.mxu1 %v21001_v0  ;;  %v20562_v61 = vunpack.i.l.bf16 %v23490_v16 }
 0x287   : > { %4792 = vmatprep.mubr.f32.mxu0 %v21001_v0 }
 0x288   : > { %20710 = vrot.lane.b32.xlu0 %v22860_v25, %s21007_s9  ;;  %v5643_v25 = vsel %vm5609_vm4, %v23437_v12, %v23453_v19 }
 0x289   : > { %18942 = vmatmul.mubr.msk.f32.gmra.mrb[28].mxu1 %vm1113_vm1, %v23189_v35  ;;  %v23527_v62 = vpop.permute.xlu1 %20570 }
 0x28a   : > { %18934 = vmatmul.mubr.msk.f32.gmra.mrb[28].mxu0 %vm1113_vm1, %v23189_v35  ;;  %4911 = vmatprep.mubr.f32.mxu1 %v21001_v0  ;;  %v20573_v50 = vunpack.i.h.bf16 %v23527_v62 }
 0x28b   : > { %4798 = vmatprep.mubr.f32.mxu0 %v21001_v0 }
 0x28c   : > { %20720 = vrot.lane.b32.xlu0 %v22896_v22, %s21007_s9 }
 0x28d   : > { %18943 = vmatmul.mubr.msk.f32.gmra.mrb[30].mxu1 %vm1113_vm1, %v23210_v10 }
 0x28e   : > { %18935 = vmatmul.mubr.msk.f32.gmra.mrb[30].mxu0 %vm1113_vm1, %v23210_v10  ;;  %5095 = vmatprep.mubr.f32.mxu1 %v21001_v0 }
 0x28f   : > { %4982 = vmatprep.mubr.f32.mxu0 %v21001_v0 }
 0x290   : > { %8107 = vrot.lane.b32.xlu0 %v22955_v46, %s21007_s9 }
 0x291   : > { %18952 = vmatmul.mubr.msk.f32.vlgmr.msra.gmra.mrb[32].mxu1 %vm1113_vm1, %v23061_v3 }
 0x292   : > { %18944 = vmatmul.mubr.msk.f32.vlgmr.msra.gmra.mrb[32].mxu0 %vm1113_vm1, %v23061_v3  ;;  %5101 = vmatprep.mubr.f32.mxu1 %v21001_v0 }
 0x293   : > { %19339 = vmatpush1.bf16.msra.mxu0 %v19338_v8  ;;  %4988 = vmatprep.mubr.f32.mxu0 %v21001_v0  ;;  %v23460_v8 = vpack.i.bf16 %v20931_v45, %v20930_v20 }
 0x294   : > { %5148 = vmatprep.subr.mxu0 %v4391_v57  ;;  %19343 = vmatpush1.bf16.msra.mxu1 %v19342_v39  ;;  %v23446_v39 = vpack.i.bf16 %v20929_v48, %v20928_v4  ;;  %v23470_v57 = vpop.permute.xlu0 %5583  ;;  %v28827_v48 = vunpack.i.h.bf16 %v23490_v16 }
 0x295   : > { %18953 = vmatmul.mubr.msk.f32.gmra.mrb[34].mxu1 %vm1113_vm1, %v23093_v28  ;;  %5261 = vmatprep.subr.mxu1 %v4393_v32 }
 0x296   : > { %18945 = vmatmul.mubr.msk.f32.gmra.mrb[34].mxu0 %vm1113_vm1, %v23093_v28  ;;  %5107 = vmatprep.mubr.f32.mxu1 %v21001_v0 }
 0x297   : > { %5149 = vmatpush1.msra.mxu0 %v4390_v31  ;;  %4994 = vmatprep.mubr.f32.mxu0 %v21001_v0 }
 0x298   : > { %5262 = vmatpush1.msra.mxu1 %v4392_v36  ;;  %19345 = vmatprep.subr.bf16.mxu0 %v19344_v9  ;;  %v23487_v32 = vpop.permute.xlu0 %20555  ;;  %v20553_v9 = vunpack.i.h.bf16 %v20551_v42  ;;  %v20552_v36 = vunpack.i.l.bf16 %v20551_v42 }
 0x299   : > { %18954 = vmatmul.mubr.msk.f32.gmra.mrb[36].mxu1 %vm1113_vm1, %v23123_v58  ;;  %19349 = vmatprep.subr.bf16.mxu1 %v19348_v26  ;;  %v20558_v4 = vunpack.i.h.bf16 %v23487_v32  ;;  %v20557_v53 = vunpack.i.l.bf16 %v23487_v32 }
 0x29a   : > { %18946 = vmatmul.mubr.msk.f32.gmra.mrb[36].mxu0 %vm1113_vm1, %v23123_v58  ;;  %5113 = vmatprep.mubr.f32.mxu1 %v21001_v0  ;;  %v5610_v26 = vsel %vm5609_vm4, %v20552_v36, %v20532_v38  ;;  %v5626_v42 = vsel %vm5609_vm4, %v20553_v9, %v20542_v60  ;;  %v5628_v38 = vsel %vm5609_vm4, %v20543_v1, %v20547_v47  ;;  %v20572_v1 = vunpack.i.l.bf16 %v23527_v62 }
 0x29b   : > { %5000 = vmatprep.mubr.f32.mxu0 %v21001_v0  ;;  %20685 = vrot.lane.b32.xlu1 %v23446_v39, %s21006_s8  ;;  %v19346_v20 = vpack.c.bf16 %v5626_v42, %v5610_v26  ;;  %v19350_v45 = vpack.c.bf16 %v5628_v38, %v5612_v40  ;;  %v5615_v9 = vsel %vm5609_vm4, %v20557_v53, %v20558_v4 }
 0x29c   : > { %v23515_v31 = vpop.permute.xlu0 %20565  ;;  %v5645_v26 = vsel %vm5609_vm4, %v23456_v30, %v23470_v57  ;;  %v5617_v42 = vsel %vm5609_vm4, %v20562_v61, %v28827_v48  ;;  %v5633_v22 = vsel %vm5609_vm4, %v20572_v1, %v20573_v50  ;;  %v5644_v38 = vsel %vm5609_vm4, %v23453_v19, %v23456_v30  ;;  %8111 = vrot.lane.b32.xlu0 %v22973_v54, %s21007_s9  ;;  %v20935_v30 = vld [vmem:[#allocation2 + $0x148] sm:$0xff] }
 0x29d   : > { %18955 = vmatmul.mubr.msk.f32.gmra.mrb[38].mxu1 %vm1113_vm1, %v23136_v5  ;;  %v20568_v60 = vunpack.i.h.bf16 %v23515_v31  ;;  %v20567_v47 = vunpack.i.l.bf16 %v23515_v31  ;;  %v19356_v48 = vpack.c.bf16 %v5633_v22, %v5617_v42 }
 0x29e   : > { %18947 = vmatmul.mubr.msk.f32.gmra.mrb[38].mxu0 %vm1113_vm1, %v23136_v5  ;;  %5119 = vmatprep.mubr.f32.mxu1 %v21001_v0 }
 0x29f   : > { %5006 = vmatprep.mubr.f32.mxu0 %v21001_v0  ;;  %20695 = vrot.lane.b32.xlu1 %v23460_v8, %s21006_s8  ;;  %v5631_v36 = vsel %vm5609_vm4, %v20567_v47, %v20568_v60 }
 0x2a0   : > { %v19352_v40 = vpack.c.bf16 %v5631_v36, %v5615_v9  ;;  %20725 = vrot.lane.b32.xlu0 %v22977_v49, %s21007_s9  ;;  %v20934_v49 = vld [vmem:[#allocation2 + $0x138] sm:$0xff]  ;;  %v23741_v9 = vld [vmem:[%s28820_s1 + $0x110] sm:$0xff]  ;;  %v20936_v36 = vld [vmem:[#allocation2 + $0x48] sm:$0xff] }
 0x2a1   : > { %18956 = vmatmul.mubr.msk.f32.gmra.mrb[40].mxu1 %vm1113_vm1, %v23157_v6 }
 0x2a2   : > { %18948 = vmatmul.mubr.msk.f32.gmra.mrb[40].mxu0 %vm1113_vm1, %v23157_v6  ;;  %5125 = vmatprep.mubr.f32.mxu1 %v21001_v0 }
 0x2a3   : > { %5012 = vmatprep.mubr.f32.mxu0 %v21001_v0  ;;  %6867 = vrot.lane.b32.xlu1 %v23478_v44, %s21006_s8 }
 0x2a4   : > { %20735 = vrot.lane.b32.xlu0 %v22993_v11, %s21007_s9  ;;  %v5614_v11 = vsel %vm5609_vm4, %v20538_v23, %v20557_v53 }
 0x2a5   : > { %18957 = vmatmul.mubr.msk.f32.gmra.mrb[42].mxu1 %vm1113_vm1, %v23174_v17 }
 0x2a6   : > { %18949 = vmatmul.mubr.msk.f32.gmra.mrb[42].mxu0 %vm1113_vm1, %v23174_v17  ;;  %5131 = vmatprep.mubr.f32.mxu1 %v21001_v0 }
 0x2a7   : > { %5018 = vmatprep.mubr.f32.mxu0 %v21001_v0  ;;  %6871 = vrot.lane.b32.xlu1 %v23492_v29, %s21006_s8 }
 0x2a8   : > { %8113 = vrot.lane.b32.xlu0 %v20934_v49, %s21007_s9  ;;  %v23786_v49 = vld [vmem:[%s28820_s1 + $0x128] sm:$0xff] }
 0x2a9   : > { %18958 = vmatmul.mubr.msk.f32.gmra.mrb[44].mxu1 %vm1113_vm1, %v23189_v35 }
 0x2aa   : > { %18950 = vmatmul.mubr.msk.f32.gmra.mrb[44].mxu0 %vm1113_vm1, %v23189_v35  ;;  %5137 = vmatprep.mubr.f32.mxu1 %v21001_v0 }
 0x2ab   : > { %5024 = vmatprep.mubr.f32.mxu0 %v21001_v0  ;;  %20705 = vrot.lane.b32.xlu1 %v22947_v37, %s21007_s9 }
 0x2ac   : > { %8117 = vrot.lane.b32.xlu0 %v20935_v30, %s21007_s9  ;;  %v20942_v30 = vld [vmem:[#allocation2 + $0x168] sm:$0xff] }
 0x2ad   : > { %18959 = vmatmul.mubr.msk.f32.gmra.mrb[46].mxu1 %vm1113_vm1, %v23210_v10 }
 0x2ae   : > { %18951 = vmatmul.mubr.msk.f32.gmra.mrb[46].mxu0 %vm1113_vm1, %v23210_v10  ;;  %5321 = vmatprep.mubr.f32.mxu1 %v21001_v0 }
 0x2af   : > { %5208 = vmatprep.mubr.f32.mxu0 %v21001_v0  ;;  %20715 = vrot.lane.b32.xlu1 %v22963_v14, %s21007_s9 }
 0x2b1   : > { %18968 = vmatmul.mubr.msk.f32.vlgmr.msra.gmra.mrb[48].mxu1 %vm1113_vm1, %v23061_v3 }
 0x2b2   : > { %18960 = vmatmul.mubr.msk.f32.vlgmr.msra.gmra.mrb[48].mxu0 %vm1113_vm1, %v23061_v3  ;;  %5327 = vmatprep.mubr.f32.mxu1 %v21001_v0  ;;  %v5642_v3 = vsel %vm5609_vm4, %v5576_v24, %v23437_v12  ;;  %v23599_v12 = vpop.permute.xlu1 %5587 }
 0x2b3   : > { %5214 = vmatprep.mubr.f32.mxu0 %v21001_v0  ;;  %19347 = vmatpush1.bf16.msra.mxu0 %v19346_v20 }
 0x2b4   : > { %19351 = vmatpush1.bf16.msra.mxu1 %v19350_v45  ;;  %5734 = vmatprep.subr.mxu0 %v5643_v25 }
 0x2b5   : > { %18969 = vmatmul.mubr.msk.f32.gmra.mrb[50].mxu1 %vm1113_vm1, %v23093_v28  ;;  %5847 = vmatprep.subr.mxu1 %v5645_v26  ;;  %v20937_v26 = vld [vmem:[#allocation2 + $0x50] sm:$0xff] }
 0x2b6   : > { %18961 = vmatmul.mubr.msk.f32.gmra.mrb[50].mxu0 %vm1113_vm1, %v23093_v28  ;;  %5333 = vmatprep.mubr.f32.mxu1 %v21001_v0  ;;  %v23593_v28 = vpop.permute.xlu0 %5585  ;;  %v23613_v37 = vpop.permute.xlu1 %5591  ;;  %v20744_v42 = vpack.i.bf16 %v20937_v26, %v20936_v36 }
 0x2b7   : > { %5220 = vmatprep.mubr.f32.mxu0 %v21001_v0  ;;  %5735 = vmatpush1.msra.mxu0 %v5642_v3  ;;  %v5647_v31 = vsel %vm5609_vm4, %v23593_v28, %v23599_v12  ;;  %v5646_v25 = vsel %vm5609_vm4, %v23470_v57, %v23593_v28  ;;  %v23752_v57 = vld [vmem:[%s28820_s1 + $0x118] sm:$0xff] }
 0x2b8   : > { %5848 = vmatpush1.msra.mxu1 %v5644_v38  ;;  %19353 = vmatprep.subr.bf16.mxu0 %v19352_v40  ;;  %v23770_v40 = vld [vmem:[%s28820_s1 + $0x120] sm:$0xff]  ;;  %v20939_v38 = vld [vmem:[#allocation2 + $0xd8] sm:$0xff] }
 0x2b9   : > { %18970 = vmatmul.mubr.msk.f32.gmra.mrb[52].mxu1 %vm1113_vm1, %v23123_v58  ;;  %19357 = vmatprep.subr.bf16.mxu1 %v19356_v48  ;;  %v23711_v48 = vld [vmem:[%s28820_s1 + $0x108] sm:$0xff] }
 0x2ba   : > { %18962 = vmatmul.mubr.msk.f32.gmra.mrb[52].mxu0 %vm1113_vm1, %v23123_v58  ;;  %5339 = vmatprep.mubr.f32.mxu1 %v21001_v0  ;;  %v23607_v46 = vpop.permute.xlu0 %5589  ;;  %v23631_v54 = vpop.permute.xlu1 %20580  ;;  %v5616_v58 = vsel %vm5609_vm4, %v20558_v4, %v20562_v61 }
 0x2bb   : > { %5226 = vmatprep.mubr.f32.mxu0 %v21001_v0  ;;  %8105 = vrot.lane.b32.xlu1 %v22995_v51, %s21007_s9  ;;  %v5630_v51 = vsel %vm5609_vm4, %v20548_v33, %v20567_v47  ;;  %v20583_v63 = vunpack.i.h.bf16 %v23631_v54  ;;  %v20582_v43 = vunpack.i.l.bf16 %v23631_v54  ;;  %v5649_v61 = vsel %vm5609_vm4, %v23607_v46, %v23613_v37 }
 0x2bc   : > { %v19354_v32 = vpack.c.bf16 %v5630_v51, %v5614_v11  ;;  %v5648_v20 = vsel %vm5609_vm4, %v23599_v12, %v23607_v46  ;;  %20745 = vrot.lane.b32.xlu0 %v20744_v42, %s21007_s9  ;;  %v20941_v11 = vld [vmem:[#allocation2 + $0x158] sm:$0xff]  ;;  %v23799_v51 = vld [vmem:[%s28820_s1 + $0x130] sm:$0xff] }
 0x2bd   : > { %18971 = vmatmul.mubr.msk.f32.gmra.mrb[54].mxu1 %vm1113_vm1, %v23136_v5 }
 0x2be   : > { %18963 = vmatmul.mubr.msk.f32.gmra.mrb[54].mxu0 %vm1113_vm1, %v23136_v5  ;;  %5345 = vmatprep.mubr.f32.mxu1 %v21001_v0  ;;  %v23628_v14 = vpop.permute.xlu0 %20575  ;;  %v5632_v5 = vsel %vm5609_vm4, %v20568_v60, %v20572_v1  ;;  %v5621_v1 = vsel %vm5609_vm4, %v20582_v43, %v20583_v63 }
 0x2bf   : > { %5232 = vmatprep.mubr.f32.mxu0 %v21001_v0  ;;  %8109 = vrot.lane.b32.xlu1 %v23011_v18, %s21007_s9  ;;  %v20577_v19 = vunpack.i.l.bf16 %v23628_v14  ;;  %v19358_v24 = vpack.c.bf16 %v5632_v5, %v5616_v58 }
 0x2c1   : > { %18972 = vmatmul.mubr.msk.f32.gmra.mrb[56].mxu1 %vm1113_vm1, %v23157_v6 }
 0x2c2   : > { %18964 = vmatmul.mubr.msk.f32.gmra.mrb[56].mxu0 %vm1113_vm1, %v23157_v6  ;;  %5351 = vmatprep.mubr.f32.mxu1 %v21001_v0  ;;  %v23654_v18 = vpop.permute.xlu0 %20585  ;;  %v20578_v6 = vunpack.i.h.bf16 %v23628_v14 }
 0x2c3   : > { %5238 = vmatprep.mubr.f32.mxu0 %v21001_v0  ;;  %8103 = vrot.lane.b32.xlu1 %v23035_v2, %s21007_s9  ;;  %v23672_v2 = vpop.permute.xlu1 %20590 }
 0x2c4   : > { %v20593_v23 = vunpack.i.h.bf16 %v23672_v2  ;;  %v20592_v33 = vunpack.i.l.bf16 %v23672_v2  ;;  %v5619_v4 = vsel %vm5609_vm4, %v20577_v19, %v20578_v6 }
 0x2c5   : > { %18973 = vmatmul.mubr.msk.f32.gmra.mrb[58].mxu1 %vm1113_vm1, %v23174_v17 }
 0x2c6   : > { %18965 = vmatmul.mubr.msk.f32.gmra.mrb[58].mxu0 %vm1113_vm1, %v23174_v17  ;;  %5357 = vmatprep.mubr.f32.mxu1 %v21001_v0  ;;  %v20588_v17 = vunpack.i.h.bf16 %v23654_v18  ;;  %v5637_v53 = vsel %vm5609_vm4, %v20592_v33, %v20593_v23  ;;  %v23757_v22 = vpop.permute.xlu0 %5593 }
 0x2c7   : > { %5244 = vmatprep.mubr.f32.mxu0 %v21001_v0  ;;  %v19364_v45 = vpack.c.bf16 %v5637_v53, %v5621_v1  ;;  %20730 = vrot.lane.b32.xlu1 %v23126_v55, %s21007_s9  ;;  %v23762_v3 = vpop.permute.xlu1 %5595  ;;  %v20938_v55 = vld [vmem:[#allocation2 + $0xd0] sm:$0xff] }
 0x2c8   : > { %v20754_v28 = vpack.i.bf16 %v20939_v38, %v20938_v55  ;;  %v5651_v1 = vsel %vm5609_vm4, %v23757_v22, %v23762_v3  ;;  %v5650_v55 = vsel %vm5609_vm4, %v23613_v37, %v23757_v22  ;;  %v20943_v37 = vld [vmem:[#allocation2 + $0x68] sm:$0xff]  ;;  %v20944_v38 = vld [vmem:[#allocation2 + $0xf0] sm:$0xff] }
 0x2c9   : > { %18974 = vmatmul.mubr.msk.f32.gmra.mrb[60].mxu1 %vm1113_vm1, %v23189_v35  ;;  %v20764_v22 = vpack.i.bf16 %v23296_v27, %v20943_v37  ;;  %v20774_v27 = vpack.i.bf16 %v23313_v34, %v20944_v38 }
 0x2ca   : > { %18966 = vmatmul.mubr.msk.f32.gmra.mrb[60].mxu0 %vm1113_vm1, %v23189_v35  ;;  %5363 = vmatprep.mubr.f32.mxu1 %v21001_v0  ;;  %v23680_v35 = vld [vmem:[%s28820_s1 + $0x100] sm:$0xff]  ;;  %v5598_v12 = vpop.permute.xlu0 %5597 }
 0x2cb   : > { %5250 = vmatprep.mubr.f32.mxu0 %v21001_v0  ;;  %20740 = vrot.lane.b32.xlu1 %v23141_v59, %s21007_s9  ;;  %v23778_v46 = vpop.permute.xlu1 %5599  ;;  %v20940_v59 = vld [vmem:[#allocation2 + $0x140] sm:$0xff]  ;;  %v5652_v26 = vsel %vm5609_vm4, %v23762_v3, %v5598_v12 }
 0x2cc   : > { %20755 = vrot.lane.b32.xlu0 %v20754_v28, %s21007_s9 }
 0x2cd   : > { %18975 = vmatmul.mubr.msk.f32.gmra.mrb[62].mxu1 %vm1113_vm1, %v23210_v10 }
 0x2ce   : > { %18967 = vmatmul.mubr.msk.f32.gmra.mrb[62].mxu0 %vm1113_vm1, %v23210_v10  ;;  %5907 = vmatprep.mubr.f32.mxu1 %v21001_v0  ;;  %v20587_v10 = vunpack.i.l.bf16 %v23654_v18  ;;  %v23801_v58 = vpop.permute.xlu0 %20595 }
 0x2cf   : > { %5794 = vmatprep.mubr.f32.mxu0 %v21001_v0  ;;  %8115 = vrot.lane.b32.xlu1 %v20940_v59, %s21007_s9  ;;  %v23804_v5 = vpop.permute.xlu1 %20600  ;;  %v20598_v62 = vunpack.i.h.bf16 %v23801_v58 }
 0x2d0   : > { %v5635_v60 = vsel %vm5609_vm4, %v20587_v10, %v20588_v17  ;;  %8121 = vrot.lane.b32.xlu0 %v20941_v11, %s21007_s9  ;;  %v20603_v14 = vunpack.i.h.bf16 %v23804_v5 }
 0x2d1   : > { %18992 = vmatmul.mubr.msk.f32.vlgmr.msra.gmra.mrb[0].mxu1 %vm1113_vm1, %v23680_v35  ;;  %v19360_v47 = vpack.c.bf16 %v5635_v60, %v5619_v4  ;;  %v5620_v60 = vsel %vm5609_vm4, %v20578_v6, %v20582_v43  ;;  %v20602_v6 = vunpack.i.l.bf16 %v23804_v5 }
 0x2d2   : > { %18984 = vmatmul.mubr.msk.f32.vlgmr.msra.gmra.mrb[0].mxu0 %vm1113_vm1, %v23680_v35  ;;  %5913 = vmatprep.mubr.f32.mxu1 %v21001_v0  ;;  %v23830_v4 = vpop.permute.xlu0 %20605 }
 0x2d3   : > { %19355 = vmatpush1.bf16.msra.mxu0 %v19354_v32  ;;  %5800 = vmatprep.mubr.f32.mxu0 %v21001_v0 }
 0x2d4   : > { %5960 = vmatprep.subr.mxu0 %v5647_v31  ;;  %19359 = vmatpush1.bf16.msra.mxu1 %v19358_v24  ;;  %v23817_v24 = vld [vmem:[%s28820_s1 + $0x138] sm:$0xff]  ;;  %v5634_v31 = vsel %vm5609_vm4, %v20573_v50, %v20587_v10  ;;  %v20608_v50 = vunpack.i.h.bf16 %v23830_v4 }
 0x2d5   : > { %18993 = vmatmul.mubr.msk.f32.gmra.mrb[2].mxu1 %vm1113_vm1, %v23711_v48  ;;  %6073 = vmatprep.subr.mxu1 %v5649_v61 }
 0x2d6   : > { %18985 = vmatmul.mubr.msk.f32.gmra.mrb[2].mxu0 %vm1113_vm1, %v23711_v48  ;;  %5919 = vmatprep.mubr.f32.mxu1 %v21001_v0  ;;  %v23905_v3 = vpop.permute.xlu0 %5601 }
 0x2d7   : > { %5961 = vmatpush1.msra.mxu0 %v5646_v25  ;;  %5806 = vmatprep.mubr.f32.mxu0 %v21001_v0 }
 0x2d8   : > { %6074 = vmatpush1.msra.mxu1 %v5648_v20  ;;  %19361 = vmatprep.subr.bf16.mxu0 %v19360_v47  ;;  %v5653_v20 = vsel %vm5609_vm4, %v5598_v12, %v23778_v46 }
 0x2d9   : > { %18994 = vmatmul.mubr.msk.f32.gmra.mrb[4].mxu1 %vm1113_vm1, %v23741_v9  ;;  %19365 = vmatprep.subr.bf16.mxu1 %v19364_v45  ;;  %v5625_v45 = vsel %vm5609_vm4, %v20602_v6, %v20603_v14 }
 0x2da   : > { %18986 = vmatmul.mubr.msk.f32.gmra.mrb[4].mxu0 %vm1113_vm1, %v23741_v9  ;;  %5925 = vmatprep.mubr.f32.mxu1 %v21001_v0 }
 0x2db   : > { %5812 = vmatprep.mubr.f32.mxu0 %v21001_v0  ;;  %8119 = vrot.lane.b32.xlu1 %v23196_v21, %s21007_s9  ;;  %v28833_v21 = vunpack.i.h.bf16 %v23490_v16  ;;  %v5636_v16 = vsel %vm5609_vm4, %v20588_v17, %v20592_v33  ;;  %v20597_v17 = vunpack.i.l.bf16 %v23801_v58  ;;  %v20607_v33 = vunpack.i.l.bf16 %v23830_v4 }
 0x2dc   : > { %8125 = vrot.lane.b32.xlu0 %v20942_v30, %s21007_s9  ;;  %v19366_v10 = vpack.c.bf16 %v5636_v16, %v5620_v60 }
 0x2dd   : > { %18995 = vmatmul.mubr.msk.f32.gmra.mrb[6].mxu1 %vm1113_vm1, %v23752_v57  ;;  %v5618_v32 = vsel %vm5609_vm4, %v28833_v21, %v20577_v19  ;;  %v23846_v19 = vpop.permute.xlu1 %20610  ;;  %v5623_v53 = vsel %vm5609_vm4, %v20597_v17, %v20598_v62  ;;  %v5639_v47 = vsel %vm5609_vm4, %v20607_v33, %v20608_v50 }
 0x2de   : > { %18987 = vmatmul.mubr.msk.f32.gmra.mrb[6].mxu0 %vm1113_vm1, %v23752_v57  ;;  %5931 = vmatprep.mubr.f32.mxu1 %v21001_v0  ;;  %v20613_v43 = vunpack.i.h.bf16 %v23846_v19  ;;  %v20612_v18 = vunpack.i.l.bf16 %v23846_v19  ;;  %v19362_v61 = vpack.c.bf16 %v5634_v31, %v5618_v32  ;;  %v19368_v36 = vpack.c.bf16 %v5639_v47, %v5623_v53 }
 0x2df   : > { %5818 = vmatprep.mubr.f32.mxu0 %v21001_v0  ;;  %20750 = vrot.lane.b32.xlu1 %v23289_v15, %s21007_s9  ;;  %v5606_v15 = vpop.permute.xlu0 %5605 }
 0x2e0   : > { %v5641_v25 = vsel %vm5609_vm4, %v20612_v18, %v20613_v43  ;;  %20765 = vrot.lane.b32.xlu0 %v20764_v22, %s21007_s9 }
 0x2e1   : > { %18996 = vmatmul.mubr.msk.f32.gmra.mrb[8].mxu1 %vm1113_vm1, %v23770_v40  ;;  %v19372_v42 = vpack.c.bf16 %v5641_v25, %v5625_v45  ;;  %v5604_v28 = vpop.permute.xlu1 %5603 }
 0x2e2   : > { %18988 = vmatmul.mubr.msk.f32.gmra.mrb[8].mxu0 %vm1113_vm1, %v23770_v40  ;;  %5937 = vmatprep.mubr.f32.mxu1 %v21001_v0  ;;  %v5655_v4 = vsel %vm5609_vm4, %v23905_v3, %v5604_v28  ;;  %v5656_v43 = vsel %vm5609_vm4, %v5604_v28, %v5606_v15 }
 0x2e3   : > { %5824 = vmatprep.mubr.f32.mxu0 %v21001_v0  ;;  %20760 = vrot.lane.b32.xlu1 %v23303_v52, %s21007_s9  ;;  %v23933_v52 = vpop.permute.xlu0 %20615 }
 0x2e4   : > { %20775 = vrot.lane.b32.xlu0 %v20774_v27, %s21007_s9  ;;  %v20618_v54 = vunpack.i.h.bf16 %v23933_v52  ;;  %v20617_v2 = vunpack.i.l.bf16 %v23933_v52 }
 0x2e5   : > { %18997 = vmatmul.mubr.msk.f32.gmra.mrb[10].mxu1 %vm1113_vm1, %v23786_v49  ;;  %v5608_v34 = vpop.permute.xlu1 %5607 }
 0x2e6   : > { %18989 = vmatmul.mubr.msk.f32.gmra.mrb[10].mxu0 %vm1113_vm1, %v23786_v49  ;;  %5943 = vmatprep.mubr.f32.mxu1 %v21001_v0  ;;  %v6875_v60 = vsel %vm6873_vm5, %v20617_v2, %v20618_v54 }
 0x2e7   : > { %5830 = vmatprep.mubr.f32.mxu0 %v21001_v0  ;;  %8123 = vrot.lane.b32.xlu1 %v23331_v7, %s21007_s9  ;;  %v5622_v7 = vsel %vm5609_vm4, %v20583_v63, %v20597_v17  ;;  %v23969_v63 = vpop.permute.xlu0 %20625 }
 0x2e8   : > { %8129 = vrot.lane.b32.xlu0 %v23335_v41, %s21007_s9  ;;  %v5638_v41 = vsel %vm5609_vm4, %v20593_v23, %v20607_v33  ;;  %v20628_v23 = vunpack.i.h.bf16 %v23969_v63  ;;  %v20627_v59 = vunpack.i.l.bf16 %v23969_v63  ;;  %v5654_v33 = vsel %vm5609_vm4, %v23778_v46, %v23905_v3 }
 0x2e9   : > { %18998 = vmatmul.mubr.msk.f32.gmra.mrb[12].mxu1 %vm1113_vm1, %v23799_v51  ;;  %v23936_v12 = vpop.permute.xlu1 %20620  ;;  %v19370_v31 = vpack.c.bf16 %v5638_v41, %v5622_v7 }
 0x2ea   : > { %18990 = vmatmul.mubr.msk.f32.gmra.mrb[12].mxu0 %vm1113_vm1, %v23799_v51  ;;  %5949 = vmatprep.mubr.f32.mxu1 %v21001_v0  ;;  %v20623_v58 = vunpack.i.h.bf16 %v23936_v12  ;;  %v20622_v5 = vunpack.i.l.bf16 %v23936_v12  ;;  %v6891_v16 = vsel %vm6873_vm5, %v20627_v59, %v20628_v23 }
 0x2eb   : > { %5836 = vmatprep.mubr.f32.mxu0 %v21001_v0  ;;  %8127 = vrot.lane.b32.xlu1 %v23349_v13, %s21007_s9  ;;  %v5624_v13 = vsel %vm5609_vm4, %v20598_v62, %v20602_v6  ;;  %v5657_v62 = vsel %vm5609_vm4, %v5606_v15, %v5608_v34  ;;  %v20636_v14 = vpop.permute.xlu0 %20635  ;;  %v19376_v6 = vpack.c.bf16 %v6891_v16, %v6875_v60 }
 0x2ec   : > { %8133 = vrot.lane.b32.xlu0 %v23353_v56, %s21007_s9  ;;  %v5640_v56 = vsel %vm5609_vm4, %v20608_v50, %v20612_v18  ;;  %v6877_v50 = vsel %vm6873_vm5, %v20622_v5, %v20623_v58  ;;  %v20638_v53 = vunpack.i.h.bf16 %v20636_v14  ;;  %v20637_v47 = vunpack.i.l.bf16 %v20636_v14 }
 0x2ed   : > { %18999 = vmatmul.mubr.msk.f32.gmra.mrb[14].mxu1 %vm1113_vm1, %v23817_v24  ;;  %v23976_v11 = vpop.permute.xlu1 %20630  ;;  %v19374_v32 = vpack.c.bf16 %v5640_v56, %v5624_v13  ;;  %v6876_v45 = vsel %vm6873_vm5, %v20618_v54, %v20622_v5 }
 0x2ee   : > { %18991 = vmatmul.mubr.msk.f32.gmra.mrb[14].mxu0 %vm1113_vm1, %v23817_v24  ;;  %6133 = vmatprep.mubr.f32.mxu1 %v21001_v0  ;;  %v20633_v30 = vunpack.i.h.bf16 %v23976_v11  ;;  %v20632_v21 = vunpack.i.l.bf16 %v23976_v11 }
 0x2ef   : > { %6020 = vmatprep.mubr.f32.mxu0 %v21001_v0  ;;  %v24032_v46 = vpop.permute.xlu0 %6843  ;;  %20770 = vrot.lane.b32.xlu1 %v23446_v39, %s21007_s9 }
 0x2f0   : > { %v6893_v19 = vsel %vm6873_vm5, %v20632_v21, %v20633_v30  ;;  %v6892_v25 = vsel %vm6873_vm5, %v20628_v23, %v20632_v21 }
 0x2f1   : > { %19008 = vmatmul.mubr.msk.f32.vlgmr.msra.gmra.mrb[16].mxu1 %vm1113_vm1, %v23680_v35  ;;  %v19380_v18 = vpack.c.bf16 %v6893_v19, %v6877_v50  ;;  %v24018_v17 = vpop.permute.xlu1 %6841  ;;  %v19382_v15 = vpack.c.bf16 %v6892_v25, %v6876_v45 }
 0x2f2   : > { %19000 = vmatmul.mubr.msk.f32.vlgmr.msra.gmra.mrb[16].mxu0 %vm1113_vm1, %v23680_v35  ;;  %6139 = vmatprep.mubr.f32.mxu1 %v21001_v0  ;;  %v6907_v34 = vsel %vm6873_vm5, %v24018_v17, %v24032_v46 }
 0x2f3   : > { %19363 = vmatpush1.bf16.msra.mxu0 %v19362_v61  ;;  %6026 = vmatprep.mubr.f32.mxu0 %v21001_v0  ;;  %v24047_v61 = vpop.permute.xlu0 %6847 }
 0x2f4   : > { %6186 = vmatprep.subr.mxu0 %v5651_v1  ;;  %19367 = vmatpush1.bf16.msra.mxu1 %v19366_v10 }
 0x2f5   : > { %19009 = vmatmul.mubr.msk.f32.gmra.mrb[18].mxu1 %vm1113_vm1, %v23711_v48  ;;  %6299 = vmatprep.subr.mxu1 %v5653_v20  ;;  %v24035_v10 = vpop.permute.xlu1 %6845 }
 0x2f6   : > { %19001 = vmatmul.mubr.msk.f32.gmra.mrb[18].mxu0 %vm1113_vm1, %v23711_v48  ;;  %6145 = vmatprep.mubr.f32.mxu1 %v21001_v0  ;;  %v6909_v41 = vsel %vm6873_vm5, %v24035_v10, %v24047_v61  ;;  %v6908_v63 = vsel %vm6873_vm5, %v24032_v46, %v24035_v10 }
 0x2f7   : > { %6187 = vmatpush1.msra.mxu0 %v5650_v55  ;;  %6032 = vmatprep.mubr.f32.mxu0 %v21001_v0  ;;  %v24062_v39 = vpop.permute.xlu0 %20640 }
 0x2f8   : > { %6300 = vmatpush1.msra.mxu1 %v5652_v26  ;;  %19369 = vmatprep.subr.bf16.mxu0 %v19368_v36  ;;  %v20643_v36 = vunpack.i.h.bf16 %v24062_v39  ;;  %v20642_v27 = vunpack.i.l.bf16 %v24062_v39 }
 0x2f9   : > { %19010 = vmatmul.mubr.msk.f32.gmra.mrb[20].mxu1 %vm1113_vm1, %v23741_v9  ;;  %19373 = vmatprep.subr.bf16.mxu1 %v19372_v42  ;;  %v6840_v1 = vpop.permute.xlu1 %6839 }
 0x2fa   : > { %19002 = vmatmul.mubr.msk.f32.gmra.mrb[20].mxu0 %vm1113_vm1, %v23741_v9  ;;  %6151 = vmatprep.mubr.f32.mxu1 %v21001_v0  ;;  %v6879_v52 = vsel %vm6873_vm5, %v20642_v27, %v20643_v36 }
 0x2fb   : > { %6038 = vmatprep.mubr.f32.mxu0 %v21001_v0  ;;  %20780 = vrot.lane.b32.xlu1 %v23460_v8, %s21007_s9  ;;  %v24081_v20 = vpop.permute.xlu0 %20650 }
 0x2fc   : > { %v20653_v26 = vunpack.i.h.bf16 %v24081_v20  ;;  %v20652_v28 = vunpack.i.l.bf16 %v24081_v20  ;;  %v24296_v20 = vld [vmem:[%s28820_s1 + $0x160] sm:$0xff] }
 0x2fd   : > { %19011 = vmatmul.mubr.msk.f32.gmra.mrb[22].mxu1 %vm1113_vm1, %v23752_v57  ;;  %v24065_v8 = vpop.permute.xlu1 %20645 }
 0x2fe   : > { %19003 = vmatmul.mubr.msk.f32.gmra.mrb[22].mxu0 %vm1113_vm1, %v23752_v57  ;;  %6157 = vmatprep.mubr.f32.mxu1 %v21001_v0  ;;  %v20648_v55 = vunpack.i.h.bf16 %v24065_v8  ;;  %v20647_v37 = vunpack.i.l.bf16 %v24065_v8  ;;  %v6895_v7 = vsel %vm6873_vm5, %v20652_v28, %v20653_v26 }
 0x2ff   : > { %6044 = vmatprep.mubr.f32.mxu0 %v21001_v0  ;;  %8131 = vrot.lane.b32.xlu1 %v23478_v44, %s21007_s9  ;;  %v6874_v44 = vsel %vm6873_vm5, %v20637_v47, %v20617_v2  ;;  %v19384_v54 = vpack.c.bf16 %v6895_v7, %v6879_v52  ;;  %v24154_v23 = vpop.permute.xlu0 %6849  ;;  %v24272_v47 = vld [vmem:[%s28820_s1 + $0x150] sm:$0xff] }
 0x300   : > { %v6881_v13 = vsel %vm6873_vm5, %v20647_v37, %v20648_v55 }
 0x301   : > { %19012 = vmatmul.mubr.msk.f32.gmra.mrb[24].mxu1 %vm1113_vm1, %v23770_v40  ;;  %v24097_v42 = vpop.permute.xlu1 %20655 }
 0x302   : > { %19004 = vmatmul.mubr.msk.f32.gmra.mrb[24].mxu0 %vm1113_vm1, %v23770_v40  ;;  %6163 = vmatprep.mubr.f32.mxu1 %v21001_v0  ;;  %v20658_v22 = vunpack.i.h.bf16 %v24097_v42  ;;  %v20657_v3 = vunpack.i.l.bf16 %v24097_v42 }
 0x303   : > { %6050 = vmatprep.mubr.f32.mxu0 %v21001_v0  ;;  %8135 = vrot.lane.b32.xlu1 %v23492_v29, %s21007_s9  ;;  %v6890_v29 = vsel %vm6873_vm5, %v20638_v53, %v20627_v59  ;;  %v6854_v59 = vpop.permute.xlu0 %6853  ;;  %v6910_v53 = vsel %vm6873_vm5, %v24047_v61, %v24154_v23  ;;  %v24283_v61 = vld [vmem:[%s28820_s1 + $0x158] sm:$0xff]  ;;  %s171_s9 = sand.u32 1, %s20975_s12  }
 0x304   : > { %v19378_v38 = vpack.c.bf16 %v6890_v29, %v6874_v44  ;;  %v6897_v56 = vsel %vm6873_vm5, %v20657_v3, %v20658_v22  ;;  %v6896_v12 = vsel %vm6873_vm5, %v20653_v26, %v20657_v3  ;;  %v24320_v26 = vld [vmem:[%s28820_s1 + $0x170] sm:$0xff]  ;;  %s25073_s10 = sshll.u32 %s171_s9, 10 }
 0x305   : > { %19013 = vmatmul.mubr.msk.f32.gmra.mrb[26].mxu1 %vm1113_vm1, %v23786_v49  ;;  %v19388_v2 = vpack.c.bf16 %v6897_v56, %v6881_v13  ;;  %s25102_s12 = scalar_lea.vmem [#allocation3], %s25073_s10 }
 0x306   : > { %19005 = vmatmul.mubr.msk.f32.gmra.mrb[26].mxu0 %vm1113_vm1, %v23786_v49  ;;  %6169 = vmatprep.mubr.f32.mxu1 %v21001_v0 }
 0x307   : > { %6056 = vmatprep.mubr.f32.mxu0 %v21001_v0 }
 0x309   : > { %19014 = vmatmul.mubr.msk.f32.gmra.mrb[28].mxu1 %vm1113_vm1, %v23799_v51 }
 0x30a   : > { %19006 = vmatmul.mubr.msk.f32.gmra.mrb[28].mxu0 %vm1113_vm1, %v23799_v51  ;;  %6175 = vmatprep.mubr.f32.mxu1 %v21001_v0 }
 0x30b   : > { %6062 = vmatprep.mubr.f32.mxu0 %v21001_v0 }
 0x30d   : > { %19015 = vmatmul.mubr.msk.f32.gmra.mrb[30].mxu1 %vm1113_vm1, %v23817_v24 }
 0x30e   : > { %19007 = vmatmul.mubr.msk.f32.gmra.mrb[30].mxu0 %vm1113_vm1, %v23817_v24  ;;  %6359 = vmatprep.mubr.f32.mxu1 %v21001_v0 }
 0x30f   : > { %6246 = vmatprep.mubr.f32.mxu0 %v21001_v0 }
 0x311   : > { %19024 = vmatmul.mubr.msk.f32.vlgmr.msra.gmra.mrb[32].mxu1 %vm1113_vm1, %v23680_v35 }
 0x312   : > { %19016 = vmatmul.mubr.msk.f32.vlgmr.msra.gmra.mrb[32].mxu0 %vm1113_vm1, %v23680_v35  ;;  %6365 = vmatprep.mubr.f32.mxu1 %v21001_v0 }
 0x313   : > { %19371 = vmatpush1.bf16.msra.mxu0 %v19370_v31  ;;  %6252 = vmatprep.mubr.f32.mxu0 %v21001_v0 }
 0x314   : > { %6412 = vmatprep.subr.mxu0 %v5655_v4  ;;  %19375 = vmatpush1.bf16.msra.mxu1 %v19374_v32  ;;  %v24216_v32 = vld [vmem:[%s28820_s1 + $0x140] sm:$0xff] }
 0x315   : > { %19025 = vmatmul.mubr.msk.f32.gmra.mrb[34].mxu1 %vm1113_vm1, %v23711_v48  ;;  %6525 = vmatprep.subr.mxu1 %v5657_v62 }
 0x316   : > { %19017 = vmatmul.mubr.msk.f32.gmra.mrb[34].mxu0 %vm1113_vm1, %v23711_v48  ;;  %6371 = vmatprep.mubr.f32.mxu1 %v21001_v0 }
 0x317   : > { %6413 = vmatpush1.msra.mxu0 %v5654_v33  ;;  %6258 = vmatprep.mubr.f32.mxu0 %v21001_v0 }
 0x318   : > { %6526 = vmatpush1.msra.mxu1 %v5656_v43  ;;  %19377 = vmatprep.subr.bf16.mxu0 %v19376_v6 }
 0x319   : > { %19026 = vmatmul.mubr.msk.f32.gmra.mrb[36].mxu1 %vm1113_vm1, %v23741_v9  ;;  %19381 = vmatprep.subr.bf16.mxu1 %v19380_v18  ;;  %v24245_v18 = vld [vmem:[%s28820_s1 + $0x148] sm:$0xff] }
 0x31a   : > { %19018 = vmatmul.mubr.msk.f32.gmra.mrb[36].mxu0 %vm1113_vm1, %v23741_v9  ;;  %6377 = vmatprep.mubr.f32.mxu1 %v21001_v0 }
 0x31b   : > { %6264 = vmatprep.mubr.f32.mxu0 %v21001_v0 }
 0x31d   : > { %19027 = vmatmul.mubr.msk.f32.gmra.mrb[38].mxu1 %vm1113_vm1, %v23752_v57 }
 0x31e   : > { %19019 = vmatmul.mubr.msk.f32.gmra.mrb[38].mxu0 %vm1113_vm1, %v23752_v57  ;;  %6383 = vmatprep.mubr.f32.mxu1 %v21001_v0 }
 0x31f   : > { %6270 = vmatprep.mubr.f32.mxu0 %v21001_v0 }
 0x321   : > { %19028 = vmatmul.mubr.msk.f32.gmra.mrb[40].mxu1 %vm1113_vm1, %v23770_v40 }
 0x322   : > { %19020 = vmatmul.mubr.msk.f32.gmra.mrb[40].mxu0 %vm1113_vm1, %v23770_v40  ;;  %6389 = vmatprep.mubr.f32.mxu1 %v21001_v0 }
 0x323   : > { %6276 = vmatprep.mubr.f32.mxu0 %v21001_v0 }
 0x325   : > { %19029 = vmatmul.mubr.msk.f32.gmra.mrb[42].mxu1 %vm1113_vm1, %v23786_v49 }
 0x326   : > { %19021 = vmatmul.mubr.msk.f32.gmra.mrb[42].mxu0 %vm1113_vm1, %v23786_v49  ;;  %6395 = vmatprep.mubr.f32.mxu1 %v21001_v0 }
 0x327   : > { %6282 = vmatprep.mubr.f32.mxu0 %v21001_v0 }
 0x329   : > { %19030 = vmatmul.mubr.msk.f32.gmra.mrb[44].mxu1 %vm1113_vm1, %v23799_v51 }
 0x32a   : > { %19022 = vmatmul.mubr.msk.f32.gmra.mrb[44].mxu0 %vm1113_vm1, %v23799_v51  ;;  %6401 = vmatprep.mubr.f32.mxu1 %v21001_v0 }
 0x32b   : > { %6288 = vmatprep.mubr.f32.mxu0 %v21001_v0 }
 0x32d   : > { %19031 = vmatmul.mubr.msk.f32.gmra.mrb[46].mxu1 %vm1113_vm1, %v23817_v24 }
 0x32e   : > { %19023 = vmatmul.mubr.msk.f32.gmra.mrb[46].mxu0 %vm1113_vm1, %v23817_v24  ;;  %6585 = vmatprep.mubr.f32.mxu1 %v21001_v0 }
 0x32f   : > { %6472 = vmatprep.mubr.f32.mxu0 %v21001_v0 }
 0x331   : > { %19040 = vmatmul.mubr.msk.f32.vlgmr.msra.gmra.mrb[48].mxu1 %vm1113_vm1, %v23680_v35 }
 0x332   : > { %19032 = vmatmul.mubr.msk.f32.vlgmr.msra.gmra.mrb[48].mxu0 %vm1113_vm1, %v23680_v35  ;;  %6591 = vmatprep.mubr.f32.mxu1 %v21001_v0  ;;  %v6906_v35 = vsel %vm6873_vm5, %v6840_v1, %v24018_v17 }
 0x333   : > { %6478 = vmatprep.mubr.f32.mxu0 %v21001_v0  ;;  %19379 = vmatpush1.bf16.msra.mxu0 %v19378_v38  ;;  %v24335_v38 = vld [vmem:[%s28820_s1 + $0x178] sm:$0xff] }
 0x334   : > { %19383 = vmatpush1.bf16.msra.mxu1 %v19382_v15  ;;  %6998 = vmatprep.subr.mxu0 %v6907_v34 }
 0x335   : > { %19041 = vmatmul.mubr.msk.f32.gmra.mrb[50].mxu1 %vm1113_vm1, %v23711_v48  ;;  %7111 = vmatprep.subr.mxu1 %v6909_v41 }
 0x336   : > { %19033 = vmatmul.mubr.msk.f32.gmra.mrb[50].mxu0 %vm1113_vm1, %v23711_v48  ;;  %6597 = vmatprep.mubr.f32.mxu1 %v21001_v0  ;;  %v6852_v48 = vpop.permute.xlu1 %6851 }
 0x337   : > { %6484 = vmatprep.mubr.f32.mxu0 %v21001_v0  ;;  %6999 = vmatpush1.msra.mxu0 %v6906_v35  ;;  %v6911_v14 = vsel %vm6873_vm5, %v24154_v23, %v6852_v48  ;;  %v6912_v1 = vsel %vm6873_vm5, %v6852_v48, %v6854_v59 }
 0x338   : > { %7112 = vmatpush1.msra.mxu1 %v6908_v63  ;;  %19385 = vmatprep.subr.bf16.mxu0 %v19384_v54 }
 0x339   : > { %19042 = vmatmul.mubr.msk.f32.gmra.mrb[52].mxu1 %vm1113_vm1, %v23741_v9  ;;  %19389 = vmatprep.subr.bf16.mxu1 %v19388_v2 }
 0x33a   : > { %19034 = vmatmul.mubr.msk.f32.gmra.mrb[52].mxu0 %vm1113_vm1, %v23741_v9  ;;  %6603 = vmatprep.mubr.f32.mxu1 %v21001_v0  ;;  %v24164_v9 = vpop.permute.xlu1 %6855 }
 0x33b   : > { %6490 = vmatprep.mubr.f32.mxu0 %v21001_v0  ;;  %v6913_v17 = vsel %vm6873_vm5, %v6854_v59, %v24164_v9 }
 0x33d   : > { %19043 = vmatmul.mubr.msk.f32.gmra.mrb[54].mxu1 %vm1113_vm1, %v23752_v57 }
 0x33e   : > { %19035 = vmatmul.mubr.msk.f32.gmra.mrb[54].mxu0 %vm1113_vm1, %v23752_v57  ;;  %6609 = vmatprep.mubr.f32.mxu1 %v21001_v0  ;;  %v24175_v57 = vpop.permute.xlu0 %20660  ;;  %v24178_v5 = vpop.permute.xlu1 %20665 }
 0x33f   : > { %6496 = vmatprep.mubr.f32.mxu0 %v21001_v0  ;;  %v20663_v11 = vunpack.i.h.bf16 %v24175_v57  ;;  %v20668_v31 = vunpack.i.h.bf16 %v24178_v5  ;;  %v20667_v4 = vunpack.i.l.bf16 %v24178_v5  ;;  %v20662_v62 = vunpack.i.l.bf16 %v24175_v57 }
 0x341   : > { %19044 = vmatmul.mubr.msk.f32.gmra.mrb[56].mxu1 %vm1113_vm1, %v23770_v40  ;;  %v6883_v6 = vsel %vm6873_vm5, %v20662_v62, %v20663_v11  ;;  %v6885_v33 = vsel %vm6873_vm5, %v20667_v4, %v20668_v31  ;;  %v6884_v34 = vsel %vm6873_vm5, %v20663_v11, %v20667_v4 }
 0x342   : > { %19036 = vmatmul.mubr.msk.f32.gmra.mrb[56].mxu0 %vm1113_vm1, %v23770_v40  ;;  %6615 = vmatprep.mubr.f32.mxu1 %v21001_v0  ;;  %v6878_v40 = vsel %vm6873_vm5, %v20623_v58, %v20642_v27  ;;  %v24192_v21 = vpop.permute.xlu0 %20670  ;;  %v6882_v27 = vsel %vm6873_vm5, %v20648_v55, %v20662_v62 }
 0x343   : > { %6502 = vmatprep.mubr.f32.mxu0 %v21001_v0  ;;  %v20673_v58 = vunpack.i.h.bf16 %v24192_v21 }
 0x345   : > { %19045 = vmatmul.mubr.msk.f32.gmra.mrb[58].mxu1 %vm1113_vm1, %v23786_v49 }
 0x346   : > { %19037 = vmatmul.mubr.msk.f32.gmra.mrb[58].mxu0 %vm1113_vm1, %v23786_v49  ;;  %6621 = vmatprep.mubr.f32.mxu1 %v21001_v0  ;;  %v6894_v49 = vsel %vm6873_vm5, %v20633_v30, %v20652_v28  ;;  %v24208_v30 = vpop.permute.xlu1 %20675  ;;  %v24286_v44 = vpop.permute.xlu0 %6857 }
 0x347   : > { %6508 = vmatprep.mubr.f32.mxu0 %v21001_v0  ;;  %v20678_v60 = vunpack.i.h.bf16 %v24208_v30  ;;  %v20677_v16 = vunpack.i.l.bf16 %v24208_v30  ;;  %v19386_v19 = vpack.c.bf16 %v6894_v49, %v6878_v40 }
 0x349   : > { %19046 = vmatmul.mubr.msk.f32.gmra.mrb[60].mxu1 %vm1113_vm1, %v23799_v51  ;;  %v6901_v46 = vsel %vm6873_vm5, %v20677_v16, %v20678_v60  ;;  %v6900_v8 = vsel %vm6873_vm5, %v20673_v58, %v20677_v16 }
 0x34a   : > { %19038 = vmatmul.mubr.msk.f32.gmra.mrb[60].mxu0 %vm1113_vm1, %v23799_v51  ;;  %6627 = vmatprep.mubr.f32.mxu1 %v21001_v0  ;;  %v6880_v51 = vsel %vm6873_vm5, %v20643_v36, %v20647_v37  ;;  %v19396_v39 = vpack.c.bf16 %v6901_v46, %v6885_v33  ;;  %v6860_v29 = vpop.permute.xlu1 %6859  ;;  %v6862_v45 = vpop.permute.xlu0 %6861  ;;  %v24309_v36 = vld [vmem:[%s28820_s1 + $0x168] sm:$0xff]  ;;  %v19398_v54 = vpack.c.bf16 %v6900_v8, %v6884_v34 }
 0x34b   : > { %6514 = vmatprep.mubr.f32.mxu0 %v21001_v0  ;;  %v19390_v50 = vpack.c.bf16 %v6896_v12, %v6880_v51  ;;  %v6915_v2 = vsel %vm6873_vm5, %v24286_v44, %v6860_v29  ;;  %v6914_v12 = vsel %vm6873_vm5, %v24164_v9, %v24286_v44 }
 0x34d   : > { %19047 = vmatmul.mubr.msk.f32.gmra.mrb[62].mxu1 %vm1113_vm1, %v23817_v24 }
 0x34e   : > { %19039 = vmatmul.mubr.msk.f32.gmra.mrb[62].mxu0 %vm1113_vm1, %v23817_v24  ;;  %7171 = vmatprep.mubr.f32.mxu1 %v21001_v0  ;;  %v20672_v24 = vunpack.i.l.bf16 %v24192_v21  ;;  %v24301_v25 = vpop.permute.xlu1 %6863  ;;  %v24322_v37 = vpop.permute.xlu0 %20680  ;;  %v6916_v21 = vsel %vm6873_vm5, %v6860_v29, %v6862_v45 }
 0x34f   : > { %7058 = vmatprep.mubr.f32.mxu0 %v21001_v0  ;;  %v20683_v42 = vunpack.i.h.bf16 %v24322_v37  ;;  %v20682_v56 = vunpack.i.l.bf16 %v24322_v37  ;;  %v6917_v59 = vsel %vm6873_vm5, %v6862_v45, %v24301_v25 }
 0x350   : > { %v6899_v43 = vsel %vm6873_vm5, %v20672_v24, %v20673_v58  ;;  %v6898_v28 = vsel %vm6873_vm5, %v20658_v22, %v20672_v24 }
 0x351   : > { %19064 = vmatmul.mubr.msk.f32.vlgmr.msra.gmra.mrb[0].mxu1 %vm1113_vm1, %v24216_v32  ;;  %v19392_v10 = vpack.c.bf16 %v6899_v43, %v6883_v6  ;;  %v19394_v63 = vpack.c.bf16 %v6898_v28, %v6882_v27  ;;  %v6887_v23 = vsel %vm6873_vm5, %v20682_v56, %v20683_v42  ;;  %v6886_v24 = vsel %vm6873_vm5, %v20668_v31, %v20682_v56  ;;  %v9291_v56 = vld [vmem:[%s28821_s2 + $0x8] sm:$0xff] }
 0x352   : > { %19056 = vmatmul.mubr.msk.f32.vlgmr.msra.gmra.mrb[0].mxu0 %vm1113_vm1, %v24216_v32  ;;  %7177 = vmatprep.mubr.f32.mxu1 %v21001_v0  ;;  %v24325_v3 = vpop.permute.xlu1 %20685  ;;  %v24348_v15 = vpop.permute.xlu0 %20690 }
 0x353   : > { %19387 = vmatpush1.bf16.msra.mxu0 %v19386_v19  ;;  %7064 = vmatprep.mubr.f32.mxu0 %v21001_v0  ;;  %v20693_v55 = vunpack.i.h.bf16 %v24348_v15  ;;  %v20688_v52 = vunpack.i.h.bf16 %v24325_v3  ;;  %v20687_v7 = vunpack.i.l.bf16 %v24325_v3  ;;  %v20692_v35 = vunpack.i.l.bf16 %v24348_v15 }
 0x354   : > { %7224 = vmatprep.subr.mxu0 %v6911_v14  ;;  %19391 = vmatpush1.bf16.msra.mxu1 %v19390_v50 }
 0x355   : > { %19065 = vmatmul.mubr.msk.f32.gmra.mrb[2].mxu1 %vm1113_vm1, %v24245_v18  ;;  %7337 = vmatprep.subr.mxu1 %v6913_v17  ;;  %v6903_v48 = vsel %vm6873_vm5, %v20692_v35, %v20693_v55  ;;  %v6889_v57 = vsel %vm6873_vm5, %v20687_v7, %v20688_v52  ;;  %v6902_v50 = vsel %vm6873_vm5, %v20678_v60, %v20692_v35 }
 0x356   : > { %19057 = vmatmul.mubr.msk.f32.gmra.mrb[2].mxu0 %vm1113_vm1, %v24245_v18  ;;  %7183 = vmatprep.mubr.f32.mxu1 %v21001_v0  ;;  %v24364_v22 = vpop.permute.xlu1 %20695  ;;  %v19400_v49 = vpack.c.bf16 %v6903_v48, %v6887_v23  ;;  %v24412_v9 = vpop.permute.xlu0 %6865  ;;  %v6888_v19 = vsel %vm6873_vm5, %v20683_v42, %v20687_v7  ;;  %v9290_v7 = vld [vmem:[%s28821_s2] sm:$0xff] }
 0x357   : > { %7225 = vmatpush1.msra.mxu0 %v6910_v53  ;;  %7070 = vmatprep.mubr.f32.mxu0 %v21001_v0  ;;  %v20698_v41 = vunpack.i.h.bf16 %v24364_v22  ;;  %v20697_v13 = vunpack.i.l.bf16 %v24364_v22  ;;  %v6918_v42 = vsel %vm6873_vm5, %v24301_v25, %v24412_v9 }
 0x358   : > { %7338 = vmatpush1.msra.mxu1 %v6912_v1  ;;  %19393 = vmatprep.subr.bf16.mxu0 %v19392_v10 }
 0x359   : > { %19066 = vmatmul.mubr.msk.f32.gmra.mrb[4].mxu1 %vm1113_vm1, %v24272_v47  ;;  %19397 = vmatprep.subr.bf16.mxu1 %v19396_v39  ;;  %v6905_v40 = vsel %vm6873_vm5, %v20697_v13, %v20698_v41  ;;  %v6904_v14 = vsel %vm6873_vm5, %v20693_v55, %v20697_v13  ;;  %v19402_v39 = vpack.c.bf16 %v6902_v50, %v6886_v24  ;;  %v21008_v41 = vmov 0  }
 0x35a   : > { %19058 = vmatmul.mubr.msk.f32.gmra.mrb[4].mxu0 %vm1113_vm1, %v24272_v47  ;;  %7189 = vmatprep.mubr.f32.mxu1 %v21001_v0  ;;  %v19404_v51 = vpack.c.bf16 %v6905_v40, %v6889_v57  ;;  %v6868_v11 = vpop.permute.xlu1 %6867  ;;  %v6870_v58 = vpop.permute.xlu0 %6869  ;;  %v19406_v1 = vpack.c.bf16 %v6904_v14, %v6888_v19 }
 0x35b   : > { %7076 = vmatprep.mubr.f32.mxu0 %v21001_v0  ;;  %v6919_v53 = vsel %vm6873_vm5, %v24412_v9, %v6868_v11  ;;  %v6920_v15 = vsel %vm6873_vm5, %v6868_v11, %v6870_v58  ;;  %20784 = vset.pattern.permute.xlu0 %v21008_v41 }
 0x35c   : > { %9300 = vperm.xlu0 %20784, %v9290_v7   ;;  %20785 = vset.pattern.permute.xlu1 %v21008_v41 }
 0x35d   : > { %19067 = vmatmul.mubr.msk.f32.gmra.mrb[6].mxu1 %vm1113_vm1, %v24283_v61  ;;  %9305 = vperm.xlu1 %20785, %v9291_v56   ;;  %v24757_v56 = vld [vmem:[%s28820_s1 + $0x188] sm:$0xff] }
 0x35e   : > { %19059 = vmatmul.mubr.msk.f32.gmra.mrb[6].mxu0 %vm1113_vm1, %v24283_v61  ;;  %7195 = vmatprep.mubr.f32.mxu1 %v21001_v0  ;;  %v6872_v4 = vpop.permute.xlu1 %6871  ;;  %v24431_v16 = vpop.permute.xlu0 %20700 }
 0x35f   : > { %7082 = vmatprep.mubr.f32.mxu0 %v21001_v0  ;;  %v20703_v5 = vunpack.i.h.bf16 %v24431_v16  ;;  %v20702_v30 = vunpack.i.l.bf16 %v24431_v16  ;;  %v6921_v45 = vsel %vm6873_vm5, %v6870_v58, %v6872_v4  ;;  %v9293_v4 = vld [vmem:[%s28821_s2 + $0x18] sm:$0xff] }
 0x360   : > { %9315 = vperm.xlu0 %20784, %v9293_v4  }
 0x361   : > { %19068 = vmatmul.mubr.msk.f32.gmra.mrb[8].mxu1 %vm1113_vm1, %v24296_v20  ;;  %v8139_v44 = vsel %vm8137_vm6, %v20702_v30, %v20703_v5 }
 0x362   : > { %19060 = vmatmul.mubr.msk.f32.gmra.mrb[8].mxu0 %vm1113_vm1, %v24296_v20  ;;  %7201 = vmatprep.mubr.f32.mxu1 %v21001_v0  ;;  %v24434_v62 = vpop.permute.xlu1 %20705  ;;  %v24457_v6 = vpop.permute.xlu0 %20710 }
 0x363   : > { %7088 = vmatprep.mubr.f32.mxu0 %v21001_v0  ;;  %v20713_v31 = vunpack.i.h.bf16 %v24457_v6  ;;  %v20712_v60 = vunpack.i.l.bf16 %v24457_v6  ;;  %v20708_v17 = vunpack.i.h.bf16 %v24434_v62  ;;  %v20707_v33 = vunpack.i.l.bf16 %v24434_v62 }
 0x365   : > { %19069 = vmatmul.mubr.msk.f32.gmra.mrb[10].mxu1 %vm1113_vm1, %v24309_v36  ;;  %v8155_v29 = vsel %vm8137_vm6, %v20712_v60, %v20713_v31  ;;  %v8141_v37 = vsel %vm8137_vm6, %v20707_v33, %v20708_v17  ;;  %v8140_v57 = vsel %vm8137_vm6, %v20703_v5, %v20707_v33 }
 0x366   : > { %19061 = vmatmul.mubr.msk.f32.gmra.mrb[10].mxu0 %vm1113_vm1, %v24309_v36  ;;  %7207 = vmatprep.mubr.f32.mxu1 %v21001_v0  ;;  %v24464_v43 = vpop.permute.xlu1 %20715  ;;  %v20721_v27 = vpop.permute.xlu0 %20720  ;;  %v19408_v28 = vpack.c.bf16 %v8155_v29, %v8139_v44  ;;  %v9296_v44 = vld [vmem:[%s28821_s2 + $0x30] sm:$0xff] }
 0x367   : > { %7094 = vmatprep.mubr.f32.mxu0 %v21001_v0  ;;  %v20718_v46 = vunpack.i.h.bf16 %v24464_v43  ;;  %v20717_v10 = vunpack.i.l.bf16 %v24464_v43 }
 0x369   : > { %19070 = vmatmul.mubr.msk.f32.gmra.mrb[12].mxu1 %vm1113_vm1, %v24320_v26  ;;  %v8157_v3 = vsel %vm8137_vm6, %v20717_v10, %v20718_v46  ;;  %v8156_v40 = vsel %vm8137_vm6, %v20713_v31, %v20717_v10 }
 0x36a   : > { %19062 = vmatmul.mubr.msk.f32.gmra.mrb[12].mxu0 %vm1113_vm1, %v24320_v26  ;;  %7213 = vmatprep.mubr.f32.mxu1 %v21001_v0  ;;  %v19412_v34 = vpack.c.bf16 %v8157_v3, %v8141_v37  ;;  %v24506_v8 = vpop.permute.xlu1 %8105  ;;  %v24520_v25 = vpop.permute.xlu0 %8107  ;;  %v19414_v19 = vpack.c.bf16 %v8156_v40, %v8140_v57  ;;  %v24784_v40 = vld [vmem:[%s28820_s1 + $0x190] sm:$0xff] }
 0x36b   : > { %7100 = vmatprep.mubr.f32.mxu0 %v21001_v0  ;;  %v8171_v14 = vsel %vm8137_vm6, %v24506_v8, %v24520_v25 }
 0x36d   : > { %19071 = vmatmul.mubr.msk.f32.gmra.mrb[14].mxu1 %vm1113_vm1, %v24335_v38 }
 0x36e   : > { %19063 = vmatmul.mubr.msk.f32.gmra.mrb[14].mxu0 %vm1113_vm1, %v24335_v38  ;;  %7397 = vmatprep.mubr.f32.mxu1 %v21001_v0  ;;  %v24523_v55 = vpop.permute.xlu1 %8109  ;;  %v24531_v22 = vpop.permute.xlu0 %8111 }
 0x36f   : > { %7284 = vmatprep.mubr.f32.mxu0 %v21001_v0  ;;  %v8172_v10 = vsel %vm8137_vm6, %v24520_v25, %v24523_v55 }
 0x371   : > { %19080 = vmatmul.mubr.msk.f32.vlgmr.msra.gmra.mrb[16].mxu1 %vm1113_vm1, %v24216_v32 }
 0x372   : > { %19072 = vmatmul.mubr.msk.f32.vlgmr.msra.gmra.mrb[16].mxu0 %vm1113_vm1, %v24216_v32  ;;  %7403 = vmatprep.mubr.f32.mxu1 %v21001_v0  ;;  %v8104_v52 = vpop.permute.xlu1 %8103  ;;  %v24547_v13 = vpop.permute.xlu0 %20725 }
 0x373   : > { %19395 = vmatpush1.bf16.msra.mxu0 %v19394_v63  ;;  %7290 = vmatprep.mubr.f32.mxu0 %v21001_v0  ;;  %v20722_v63 = vunpack.i.l.bf16 %v20721_v27  ;;  %v20727_v24 = vunpack.i.l.bf16 %v24547_v13 }
 0x374   : > { %7450 = vmatprep.subr.mxu0 %v6915_v2  ;;  %19399 = vmatpush1.bf16.msra.mxu1 %v19398_v54  ;;  %v20723_v54 = vunpack.i.h.bf16 %v20721_v27  ;;  %v9292_v2 = vld [vmem:[%s28821_s2 + $0x10] sm:$0xff] }
 0x375   : > { %19081 = vmatmul.mubr.msk.f32.gmra.mrb[18].mxu1 %vm1113_vm1, %v24245_v18  ;;  %7563 = vmatprep.subr.mxu1 %v6917_v59  ;;  %v8138_v23 = vsel %vm8137_vm6, %v20722_v63, %v20702_v30  ;;  %v8173_v30 = vsel %vm8137_vm6, %v24523_v55, %v24531_v22 }
 0x376   : > { %19073 = vmatmul.mubr.msk.f32.gmra.mrb[18].mxu0 %vm1113_vm1, %v24245_v18  ;;  %7409 = vmatprep.mubr.f32.mxu1 %v21001_v0  ;;  %v24553_v35 = vpop.permute.xlu1 %20730  ;;  %v8154_v48 = vsel %vm8137_vm6, %v20723_v54, %v20712_v60  ;;  %v24570_v59 = vpop.permute.xlu0 %20735 }
 0x377   : > { %7451 = vmatpush1.msra.mxu0 %v6914_v12  ;;  %7296 = vmatprep.mubr.f32.mxu0 %v21001_v0  ;;  %v20733_v12 = vunpack.i.h.bf16 %v24553_v35  ;;  %v20732_v9 = vunpack.i.l.bf16 %v24553_v35  ;;  %v19410_v16 = vpack.c.bf16 %v8154_v48, %v8138_v23  ;;  %v20737_v50 = vunpack.i.l.bf16 %v24570_v59 }
 0x378   : > { %7564 = vmatpush1.msra.mxu1 %v6916_v21  ;;  %19401 = vmatprep.subr.bf16.mxu0 %v19400_v49  ;;  %v20728_v49 = vunpack.i.h.bf16 %v24547_v13  ;;  %v20738_v21 = vunpack.i.h.bf16 %v24570_v59 }
 0x379   : > { %19082 = vmatmul.mubr.msk.f32.gmra.mrb[20].mxu1 %vm1113_vm1, %v24272_v47  ;;  %19405 = vmatprep.subr.bf16.mxu1 %v19404_v51  ;;  %v8145_v31 = vsel %vm8137_vm6, %v20732_v9, %v20733_v12 }
 0x37a   : > { %19074 = vmatmul.mubr.msk.f32.gmra.mrb[20].mxu0 %vm1113_vm1, %v24272_v47  ;;  %7415 = vmatprep.mubr.f32.mxu1 %v21001_v0  ;;  %v24586_v51 = vpop.permute.xlu1 %20740  ;;  %v8143_v5 = vsel %vm8137_vm6, %v20727_v24, %v20728_v49  ;;  %v8159_v6 = vsel %vm8137_vm6, %v20737_v50, %v20738_v21 }
 0x37b   : > { %7302 = vmatprep.mubr.f32.mxu0 %v21001_v0  ;;  %9310 = vperm.xlu1 %20785, %v9292_v2   ;;  %v20743_v11 = vunpack.i.h.bf16 %v24586_v51  ;;  %v20742_v58 = vunpack.i.l.bf16 %v24586_v51  ;;  %v19416_v33 = vpack.c.bf16 %v8159_v6, %v8143_v5 }
 0x37d   : > { %19083 = vmatmul.mubr.msk.f32.gmra.mrb[22].mxu1 %vm1113_vm1, %v24283_v61  ;;  %v8161_v60 = vsel %vm8137_vm6, %v20742_v58, %v20743_v11  ;;  %v8160_v62 = vsel %vm8137_vm6, %v20738_v21, %v20742_v58 }
 0x37e   : > { %19075 = vmatmul.mubr.msk.f32.gmra.mrb[22].mxu0 %vm1113_vm1, %v24283_v61  ;;  %7421 = vmatprep.mubr.f32.mxu1 %v21001_v0  ;;  %v8116_v29 = vpop.permute.xlu1 %8115 }
 0x37f   : > { %7308 = vmatprep.mubr.f32.mxu0 %v21001_v0 }
 0x381   : > { %19084 = vmatmul.mubr.msk.f32.gmra.mrb[24].mxu1 %vm1113_vm1, %v24296_v20 }
 0x382   : > { %19076 = vmatmul.mubr.msk.f32.gmra.mrb[24].mxu0 %vm1113_vm1, %v24296_v20  ;;  %7427 = vmatprep.mubr.f32.mxu1 %v21001_v0  ;;  %v24672_v37 = vpop.permute.xlu1 %8119 }
 0x383   : > { %7314 = vmatprep.mubr.f32.mxu0 %v21001_v0 }
 0x385   : > { %19085 = vmatmul.mubr.msk.f32.gmra.mrb[26].mxu1 %vm1113_vm1, %v24309_v36 }
 0x386   : > { %19077 = vmatmul.mubr.msk.f32.gmra.mrb[26].mxu0 %vm1113_vm1, %v24309_v36  ;;  %7433 = vmatprep.mubr.f32.mxu1 %v21001_v0  ;;  %v24686_v3 = vpop.permute.xlu1 %20750 }
 0x387   : > { %7320 = vmatprep.mubr.f32.mxu0 %v21001_v0 }
 0x389   : > { %19086 = vmatmul.mubr.msk.f32.gmra.mrb[28].mxu1 %vm1113_vm1, %v24320_v26 }
 0x38a   : > { %19078 = vmatmul.mubr.msk.f32.gmra.mrb[28].mxu0 %vm1113_vm1, %v24320_v26  ;;  %7439 = vmatprep.mubr.f32.mxu1 %v21001_v0 }
 0x38b   : > { %7326 = vmatprep.mubr.f32.mxu0 %v21001_v0 }
 0x38d   : > { %19087 = vmatmul.mubr.msk.f32.gmra.mrb[30].mxu1 %vm1113_vm1, %v24335_v38 }
 0x38e   : > { %19079 = vmatmul.mubr.msk.f32.gmra.mrb[30].mxu0 %vm1113_vm1, %v24335_v38  ;;  %7623 = vmatprep.mubr.f32.mxu1 %v21001_v0 }
 0x38f   : > { %7510 = vmatprep.mubr.f32.mxu0 %v21001_v0 }
 0x391   : > { %19096 = vmatmul.mubr.msk.f32.vlgmr.msra.gmra.mrb[32].mxu1 %vm1113_vm1, %v24216_v32 }
 0x392   : > { %19088 = vmatmul.mubr.msk.f32.vlgmr.msra.gmra.mrb[32].mxu0 %vm1113_vm1, %v24216_v32  ;;  %7629 = vmatprep.mubr.f32.mxu1 %v21001_v0 }
 0x393   : > { %19403 = vmatpush1.bf16.msra.mxu0 %v19402_v39  ;;  %7516 = vmatprep.mubr.f32.mxu0 %v21001_v0  ;;  %v9294_v39 = vld [vmem:[%s28821_s2 + $0x20] sm:$0xff] }
 0x394   : > { %7676 = vmatprep.subr.mxu0 %v6919_v53  ;;  %19407 = vmatpush1.bf16.msra.mxu1 %v19406_v1  ;;  %v19420_v1 = vpack.c.bf16 %v8161_v60, %v8145_v31  ;;  %v9295_v53 = vld [vmem:[%s28821_s2 + $0x28] sm:$0xff] }
 0x395   : > { %19097 = vmatmul.mubr.msk.f32.gmra.mrb[34].mxu1 %vm1113_vm1, %v24245_v18  ;;  %7789 = vmatprep.subr.mxu1 %v6921_v45 }
 0x396   : > { %19089 = vmatmul.mubr.msk.f32.gmra.mrb[34].mxu0 %vm1113_vm1, %v24245_v18  ;;  %7635 = vmatprep.mubr.f32.mxu1 %v21001_v0 }
 0x397   : > { %7677 = vmatpush1.msra.mxu0 %v6918_v42  ;;  %7522 = vmatprep.mubr.f32.mxu0 %v21001_v0 }
 0x398   : > { %7790 = vmatpush1.msra.mxu1 %v6920_v15  ;;  %19409 = vmatprep.subr.bf16.mxu0 %v19408_v28  ;;  %v24728_v28 = vld [vmem:[%s28820_s1 + $0x180] sm:$0xff]  ;;  %v20753_v15 = vunpack.i.h.bf16 %v24686_v3 }
 0x399   : > { %19098 = vmatmul.mubr.msk.f32.gmra.mrb[36].mxu1 %vm1113_vm1, %v24272_v47  ;;  %19413 = vmatprep.subr.bf16.mxu1 %v19412_v34  ;;  %v20752_v34 = vunpack.i.l.bf16 %v24686_v3 }
 0x39a   : > { %19090 = vmatmul.mubr.msk.f32.gmra.mrb[36].mxu0 %vm1113_vm1, %v24272_v47  ;;  %7641 = vmatprep.mubr.f32.mxu1 %v21001_v0 }
 0x39b   : > { %7528 = vmatprep.mubr.f32.mxu0 %v21001_v0  ;;  %9320 = vperm.xlu1 %20785, %v9294_v39   ;;  %v8149_v63 = vsel %vm8137_vm6, %v20752_v34, %v20753_v15 }
 0x39c   : > { %9325 = vperm.xlu0 %20784, %v9295_v53  }
 0x39d   : > { %19099 = vmatmul.mubr.msk.f32.gmra.mrb[38].mxu1 %vm1113_vm1, %v24283_v61 }
 0x39e   : > { %19091 = vmatmul.mubr.msk.f32.gmra.mrb[38].mxu0 %vm1113_vm1, %v24283_v61  ;;  %7647 = vmatprep.mubr.f32.mxu1 %v21001_v0 }
 0x39f   : > { %7534 = vmatprep.mubr.f32.mxu0 %v21001_v0  ;;  %9330 = vperm.xlu1 %20785, %v9296_v44  }
 0x3a1   : > { %19100 = vmatmul.mubr.msk.f32.gmra.mrb[40].mxu1 %vm1113_vm1, %v24296_v20 }
 0x3a2   : > { %19092 = vmatmul.mubr.msk.f32.gmra.mrb[40].mxu0 %vm1113_vm1, %v24296_v20  ;;  %7653 = vmatprep.mubr.f32.mxu1 %v21001_v0 }
 0x3a3   : > { %7540 = vmatprep.mubr.f32.mxu0 %v21001_v0 }
 0x3a5   : > { %19101 = vmatmul.mubr.msk.f32.gmra.mrb[42].mxu1 %vm1113_vm1, %v24309_v36 }
 0x3a6   : > { %19093 = vmatmul.mubr.msk.f32.gmra.mrb[42].mxu0 %vm1113_vm1, %v24309_v36  ;;  %7659 = vmatprep.mubr.f32.mxu1 %v21001_v0 }
 0x3a7   : > { %7546 = vmatprep.mubr.f32.mxu0 %v21001_v0 }
 0x3a9   : > { %19102 = vmatmul.mubr.msk.f32.gmra.mrb[44].mxu1 %vm1113_vm1, %v24320_v26 }
 0x3aa   : > { %19094 = vmatmul.mubr.msk.f32.gmra.mrb[44].mxu0 %vm1113_vm1, %v24320_v26  ;;  %7665 = vmatprep.mubr.f32.mxu1 %v21001_v0 }
 0x3ab   : > { %7552 = vmatprep.mubr.f32.mxu0 %v21001_v0 }
 0x3ad   : > { %19103 = vmatmul.mubr.msk.f32.gmra.mrb[46].mxu1 %vm1113_vm1, %v24335_v38 }
 0x3ae   : > { %19095 = vmatmul.mubr.msk.f32.gmra.mrb[46].mxu0 %vm1113_vm1, %v24335_v38  ;;  %7849 = vmatprep.mubr.f32.mxu1 %v21001_v0 }
 0x3af   : > { %7736 = vmatprep.mubr.f32.mxu0 %v21001_v0 }
 0x3b1   : > { %19112 = vmatmul.mubr.msk.f32.vlgmr.msra.gmra.mrb[48].mxu1 %vm1113_vm1, %v24216_v32 }
 0x3b2   : > { %19104 = vmatmul.mubr.msk.f32.vlgmr.msra.gmra.mrb[48].mxu0 %vm1113_vm1, %v24216_v32  ;;  %7855 = vmatprep.mubr.f32.mxu1 %v21001_v0  ;;  %v8170_v32 = vsel %vm8137_vm6, %v8104_v52, %v24506_v8 }
 0x3b3   : > { %7742 = vmatprep.mubr.f32.mxu0 %v21001_v0  ;;  %19411 = vmatpush1.bf16.msra.mxu0 %v19410_v16  ;;  %v24821_v16 = vld [vmem:[%s28820_s1 + $0x1a8] sm:$0xff] }
 0x3b4   : > { %19415 = vmatpush1.bf16.msra.mxu1 %v19414_v19  ;;  %8262 = vmatprep.subr.mxu0 %v8171_v14  ;;  %v24847_v14 = vld [vmem:[%s28820_s1 + $0x1b8] sm:$0xff] }
 0x3b5   : > { %19113 = vmatmul.mubr.msk.f32.gmra.mrb[50].mxu1 %vm1113_vm1, %v24245_v18  ;;  %8375 = vmatprep.subr.mxu1 %v8173_v30 }
 0x3b6   : > { %19105 = vmatmul.mubr.msk.f32.gmra.mrb[50].mxu0 %vm1113_vm1, %v24245_v18  ;;  %7861 = vmatprep.mubr.f32.mxu1 %v21001_v0  ;;  %v24656_v18 = vpop.permute.xlu0 %8113 }
 0x3b7   : > { %7748 = vmatprep.mubr.f32.mxu0 %v21001_v0  ;;  %8263 = vmatpush1.msra.mxu0 %v8170_v32  ;;  %v8175_v7 = vsel %vm8137_vm6, %v24656_v18, %v8116_v29  ;;  %v8174_v57 = vsel %vm8137_vm6, %v24531_v22, %v24656_v18  ;;  %v24795_v22 = vld [vmem:[%s28820_s1 + $0x198] sm:$0xff] }
 0x3b8   : > { %8376 = vmatpush1.msra.mxu1 %v8172_v10  ;;  %19417 = vmatprep.subr.bf16.mxu0 %v19416_v33 }
 0x3b9   : > { %19114 = vmatmul.mubr.msk.f32.gmra.mrb[52].mxu1 %vm1113_vm1, %v24272_v47  ;;  %19421 = vmatprep.subr.bf16.mxu1 %v19420_v1 }
 0x3ba   : > { %19106 = vmatmul.mubr.msk.f32.gmra.mrb[52].mxu0 %vm1113_vm1, %v24272_v47  ;;  %7867 = vmatprep.mubr.f32.mxu1 %v21001_v0  ;;  %v9297_v47 = vld [vmem:[%s28821_s2 + $0x38] sm:$0xff]  ;;  %v8118_v45 = vpop.permute.xlu0 %8117 }
 0x3bb   : > { %7754 = vmatprep.mubr.f32.mxu0 %v21001_v0  ;;  %9335 = vperm.xlu0 %20784, %v9297_v47   ;;  %v8177_v54 = vsel %vm8137_vm6, %v8118_v45, %v24672_v37  ;;  %v8176_v48 = vsel %vm8137_vm6, %v8116_v29, %v8118_v45 }
 0x3bd   : > { %19115 = vmatmul.mubr.msk.f32.gmra.mrb[54].mxu1 %vm1113_vm1, %v24283_v61 }
 0x3be   : > { %19107 = vmatmul.mubr.msk.f32.gmra.mrb[54].mxu0 %vm1113_vm1, %v24283_v61  ;;  %7873 = vmatprep.mubr.f32.mxu1 %v21001_v0  ;;  %v24683_v61 = vpop.permute.xlu0 %20745 }
 0x3bf   : > { %7760 = vmatprep.mubr.f32.mxu0 %v21001_v0  ;;  %v20748_v43 = vunpack.i.h.bf16 %v24683_v61  ;;  %v20747_v25 = vunpack.i.l.bf16 %v24683_v61 }
 0x3c1   : > { %19116 = vmatmul.mubr.msk.f32.gmra.mrb[56].mxu1 %vm1113_vm1, %v24296_v20  ;;  %v8147_v41 = vsel %vm8137_vm6, %v20747_v25, %v20748_v43  ;;  %v8146_v5 = vsel %vm8137_vm6, %v20733_v12, %v20747_v25  ;;  %v8148_v31 = vsel %vm8137_vm6, %v20748_v43, %v20752_v34 }
 0x3c2   : > { %19108 = vmatmul.mubr.msk.f32.gmra.mrb[56].mxu0 %vm1113_vm1, %v24296_v20  ;;  %7879 = vmatprep.mubr.f32.mxu1 %v21001_v0  ;;  %v8142_v20 = vsel %vm8137_vm6, %v20708_v17, %v20727_v24  ;;  %v24704_v27 = vpop.permute.xlu0 %20755  ;;  %v24832_v24 = vld [vmem:[%s28820_s1 + $0x1b0] sm:$0xff] }
 0x3c3   : > { %7766 = vmatprep.mubr.f32.mxu0 %v21001_v0  ;;  %v20758_v17 = vunpack.i.h.bf16 %v24704_v27 }
 0x3c5   : > { %19117 = vmatmul.mubr.msk.f32.gmra.mrb[58].mxu1 %vm1113_vm1, %v24309_v36 }
 0x3c6   : > { %19109 = vmatmul.mubr.msk.f32.gmra.mrb[58].mxu0 %vm1113_vm1, %v24309_v36  ;;  %7885 = vmatprep.mubr.f32.mxu1 %v21001_v0  ;;  %v8158_v36 = vsel %vm8137_vm6, %v20718_v46, %v20737_v50  ;;  %v24720_v46 = vpop.permute.xlu1 %20760 }
 0x3c7   : > { %7772 = vmatprep.mubr.f32.mxu0 %v21001_v0  ;;  %v20763_v8 = vunpack.i.h.bf16 %v24720_v46  ;;  %v20762_v42 = vunpack.i.l.bf16 %v24720_v46  ;;  %v19418_v52 = vpack.c.bf16 %v8158_v36, %v8142_v20 }
 0x3c9   : > { %19118 = vmatmul.mubr.msk.f32.gmra.mrb[60].mxu1 %vm1113_vm1, %v24320_v26  ;;  %v8165_v2 = vsel %vm8137_vm6, %v20762_v42, %v20763_v8  ;;  %v8164_v35 = vsel %vm8137_vm6, %v20758_v17, %v20762_v42 }
 0x3ca   : > { %19110 = vmatmul.mubr.msk.f32.gmra.mrb[60].mxu0 %vm1113_vm1, %v24320_v26  ;;  %7891 = vmatprep.mubr.f32.mxu1 %v21001_v0  ;;  %v8144_v26 = vsel %vm8137_vm6, %v20728_v49, %v20732_v9  ;;  %v19428_v59 = vpack.c.bf16 %v8165_v2, %v8149_v63  ;;  %v24798_v49 = vpop.permute.xlu0 %8121  ;;  %v8124_v21 = vpop.permute.xlu1 %8123  ;;  %v24808_v9 = vld [vmem:[%s28820_s1 + $0x1a0] sm:$0xff]  ;;  %v19430_v53 = vpack.c.bf16 %v8164_v35, %v8148_v31 }
 0x3cb   : > { %7778 = vmatprep.mubr.f32.mxu0 %v21001_v0  ;;  %v19422_v55 = vpack.c.bf16 %v8160_v62, %v8144_v26  ;;  %v8179_v44 = vsel %vm8137_vm6, %v24798_v49, %v8124_v21  ;;  %v8178_v62 = vsel %vm8137_vm6, %v24672_v37, %v24798_v49 }
 0x3cd   : > { %19119 = vmatmul.mubr.msk.f32.gmra.mrb[62].mxu1 %vm1113_vm1, %v24335_v38 }
 0x3ce   : > { %19111 = vmatmul.mubr.msk.f32.gmra.mrb[62].mxu0 %vm1113_vm1, %v24335_v38  ;;  %8435 = vmatprep.mubr.f32.mxu1 %v21001_v0  ;;  %v20757_v38 = vunpack.i.l.bf16 %v24704_v27  ;;  %v8126_v58 = vpop.permute.xlu0 %8125  ;;  %v24813_v4 = vpop.permute.xlu1 %8127 }
 0x3cf   : > { %8322 = vmatprep.mubr.f32.mxu0 %v21001_v0  ;;  %v8181_v45 = vsel %vm8137_vm6, %v8126_v58, %v24813_v4  ;;  %v8180_v27 = vsel %vm8137_vm6, %v8124_v21, %v8126_v58 }
 0x3d0   : > { %v8163_v13 = vsel %vm8137_vm6, %v20757_v38, %v20758_v17  ;;  %v8162_v6 = vsel %vm8137_vm6, %v20743_v11, %v20757_v38 }
 0x3d1   : > { %19136 = vmatmul.mubr.msk.f32.vlgmr.msra.gmra.mrb[0].mxu1 %vm1113_vm1, %v24728_v28  ;;  %v19424_v23 = vpack.c.bf16 %v8163_v13, %v8147_v41  ;;  %v19426_v18 = vpack.c.bf16 %v8162_v6, %v8146_v5  ;;  %v9606_v13 = vlaneseq }
 0x3d2   : > { %19128 = vmatmul.mubr.msk.f32.vlgmr.msra.gmra.mrb[0].mxu0 %vm1113_vm1, %v24728_v28  ;;  %8441 = vmatprep.mubr.f32.mxu1 %v21001_v0  ;;  %v24834_v50 = vpop.permute.xlu0 %20765  ;;  %v24837_v19 = vpop.permute.xlu1 %20770 }
 0x3d3   : > { %19419 = vmatpush1.bf16.msra.mxu0 %v19418_v52  ;;  %8328 = vmatprep.mubr.f32.mxu0 %v21001_v0  ;;  %v20768_v51 = vunpack.i.h.bf16 %v24834_v50  ;;  %v20773_v60 = vunpack.i.h.bf16 %v24837_v19  ;;  %v20772_v32 = vunpack.i.l.bf16 %v24837_v19  ;;  %v20767_v1 = vunpack.i.l.bf16 %v24834_v50 }
 0x3d4   : > { %8488 = vmatprep.subr.mxu0 %v8175_v7  ;;  %19423 = vmatpush1.bf16.msra.mxu1 %v19422_v55 }
 0x3d5   : > { %19137 = vmatmul.mubr.msk.f32.gmra.mrb[2].mxu1 %vm1113_vm1, %v24757_v56  ;;  %8601 = vmatprep.subr.mxu1 %v8177_v54  ;;  %v8151_v29 = vsel %vm8137_vm6, %v20767_v1, %v20768_v51  ;;  %v8153_v61 = vsel %vm8137_vm6, %v20772_v32, %v20773_v60  ;;  %v8152_v17 = vsel %vm8137_vm6, %v20768_v51, %v20772_v32  ;;  %v9607_v54 = vshrl.u32 %v9606_v13, 7 }
 0x3d6   : > { %19129 = vmatmul.mubr.msk.f32.gmra.mrb[2].mxu0 %vm1113_vm1, %v24757_v56  ;;  %8447 = vmatprep.mubr.f32.mxu1 %v21001_v0  ;;  %v24860_v30 = vpop.permute.xlu0 %20775  ;;  %v24876_v11 = vpop.permute.xlu1 %20780  ;;  %v8150_v42 = vsel %vm8137_vm6, %v20753_v15, %v20767_v1 }
 0x3d7   : > { %8489 = vmatpush1.msra.mxu0 %v8174_v57  ;;  %8334 = vmatprep.mubr.f32.mxu0 %v21001_v0  ;;  %v20778_v12 = vunpack.i.h.bf16 %v24860_v30  ;;  %v20783_v33 = vunpack.i.h.bf16 %v24876_v11  ;;  %v20782_v10 = vunpack.i.l.bf16 %v24876_v11  ;;  %v20777_v39 = vunpack.i.l.bf16 %v24860_v30 }
 0x3d8   : > { %8602 = vmatpush1.msra.mxu1 %v8176_v48  ;;  %19425 = vmatprep.subr.bf16.mxu0 %v19424_v23 }
 0x3d9   : > { %19138 = vmatmul.mubr.msk.f32.gmra.mrb[4].mxu1 %vm1113_vm1, %v24784_v40  ;;  %19429 = vmatprep.subr.bf16.mxu1 %v19428_v59  ;;  %v8167_v47 = vsel %vm8137_vm6, %v20777_v39, %v20778_v12  ;;  %v8169_v20 = vsel %vm8137_vm6, %v20782_v10, %v20783_v33  ;;  %v8168_v34 = vsel %vm8137_vm6, %v20778_v12, %v20782_v10 }
 0x3da   : > { %19130 = vmatmul.mubr.msk.f32.gmra.mrb[4].mxu0 %vm1113_vm1, %v24784_v40  ;;  %8453 = vmatprep.mubr.f32.mxu1 %v21001_v0  ;;  %v19432_v36 = vpack.c.bf16 %v8167_v47, %v8151_v29  ;;  %v19436_v26 = vpack.c.bf16 %v8169_v20, %v8153_v61  ;;  %v8130_v37 = vpop.permute.xlu0 %8129  ;;  %v8132_v43 = vpop.permute.xlu1 %8131  ;;  %v8166_v25 = vsel %vm8137_vm6, %v20763_v8, %v20777_v39 }
 0x3db   : > { %8340 = vmatprep.mubr.f32.mxu0 %v21001_v0  ;;  %v19438_v52 = vpack.c.bf16 %v8168_v34, %v8152_v17  ;;  %v19434_v7 = vpack.c.bf16 %v8166_v25, %v8150_v42  ;;  %v8183_v3 = vsel %vm8137_vm6, %v8130_v37, %v8132_v43  ;;  %v8182_v8 = vsel %vm8137_vm6, %v24813_v4, %v8130_v37 }
 0x3dd   : > { %19139 = vmatmul.mubr.msk.f32.gmra.mrb[6].mxu1 %vm1113_vm1, %v24795_v22 }
 0x3de   : > { %19131 = vmatmul.mubr.msk.f32.gmra.mrb[6].mxu0 %vm1113_vm1, %v24795_v22  ;;  %8459 = vmatprep.mubr.f32.mxu1 %v21001_v0  ;;  %v8136_v38 = vpop.permute.xlu1 %8135  ;;  %v8134_v55 = vpop.permute.xlu0 %8133 }
 0x3df   : > { %8346 = vmatprep.mubr.f32.mxu0 %v21001_v0  ;;  %v8185_v46 = vsel %vm8137_vm6, %v8134_v55, %v8136_v38  ;;  %v8184_v15 = vsel %vm8137_vm6, %v8132_v43, %v8134_v55 }
 0x3e1   : > { %19140 = vmatmul.mubr.msk.f32.gmra.mrb[8].mxu1 %vm1113_vm1, %v24808_v9 }
 0x3e2   : > { %19132 = vmatmul.mubr.msk.f32.gmra.mrb[8].mxu0 %vm1113_vm1, %v24808_v9  ;;  %8465 = vmatprep.mubr.f32.mxu1 %v21001_v0  ;;  %v25063_v63 = vpop.permute.xlu0 %9300  ;;  %v25071_v49 = vpop.permute.xlu1 %9305 }
 0x3e3   : > { %8352 = vmatprep.mubr.f32.mxu0 %v21001_v0 }
 0x3e5   : > { %19141 = vmatmul.mubr.msk.f32.gmra.mrb[10].mxu1 %vm1113_vm1, %v24821_v16 }
 0x3e6   : > { %19133 = vmatmul.mubr.msk.f32.gmra.mrb[10].mxu0 %vm1113_vm1, %v24821_v16  ;;  %8471 = vmatprep.mubr.f32.mxu1 %v21001_v0 }
 0x3e7   : > { %8358 = vmatprep.mubr.f32.mxu0 %v21001_v0 }
 0x3e9   : > { %19142 = vmatmul.mubr.msk.f32.gmra.mrb[12].mxu1 %vm1113_vm1, %v24832_v24 }
 0x3ea   : > { %19134 = vmatmul.mubr.msk.f32.gmra.mrb[12].mxu0 %vm1113_vm1, %v24832_v24  ;;  %8477 = vmatprep.mubr.f32.mxu1 %v21001_v0 }
 0x3eb   : > { %8364 = vmatprep.mubr.f32.mxu0 %v21001_v0 }
 0x3ed   : > { %19143 = vmatmul.mubr.msk.f32.gmra.mrb[14].mxu1 %vm1113_vm1, %v24847_v14 }
 0x3ee   : > { %19135 = vmatmul.mubr.msk.f32.gmra.mrb[14].mxu0 %vm1113_vm1, %v24847_v14  ;;  %8661 = vmatprep.mubr.f32.mxu1 %v21001_v0 }
 0x3ef   : > { %8548 = vmatprep.mubr.f32.mxu0 %v21001_v0 }
 0x3f1   : > { %19152 = vmatmul.mubr.msk.f32.vlgmr.msra.gmra.mrb[16].mxu1 %vm1113_vm1, %v24728_v28 }
 0x3f2   : > { %19144 = vmatmul.mubr.msk.f32.vlgmr.msra.gmra.mrb[16].mxu0 %vm1113_vm1, %v24728_v28  ;;  %8667 = vmatprep.mubr.f32.mxu1 %v21001_v0 }
 0x3f3   : > { %19427 = vmatpush1.bf16.msra.mxu0 %v19426_v18  ;;  %8554 = vmatprep.mubr.f32.mxu0 %v21001_v0 }
 0x3f4   : > { %8714 = vmatprep.subr.mxu0 %v8179_v44  ;;  %19431 = vmatpush1.bf16.msra.mxu1 %v19430_v53 }
 0x3f5   : > { %19153 = vmatmul.mubr.msk.f32.gmra.mrb[18].mxu1 %vm1113_vm1, %v24757_v56  ;;  %8827 = vmatprep.subr.mxu1 %v8181_v45 }
 0x3f6   : > { %19145 = vmatmul.mubr.msk.f32.gmra.mrb[18].mxu0 %vm1113_vm1, %v24757_v56  ;;  %8673 = vmatprep.mubr.f32.mxu1 %v21001_v0 }
 0x3f7   : > { %8715 = vmatpush1.msra.mxu0 %v8178_v62  ;;  %8560 = vmatprep.mubr.f32.mxu0 %v21001_v0 }
 0x3f8   : > { %8828 = vmatpush1.msra.mxu1 %v8180_v27  ;;  %19433 = vmatprep.subr.bf16.mxu0 %v19432_v36 }
 0x3f9   : > { %19154 = vmatmul.mubr.msk.f32.gmra.mrb[20].mxu1 %vm1113_vm1, %v24784_v40  ;;  %19437 = vmatprep.subr.bf16.mxu1 %v19436_v26 }
 0x3fa   : > { %19146 = vmatmul.mubr.msk.f32.gmra.mrb[20].mxu0 %vm1113_vm1, %v24784_v40  ;;  %8679 = vmatprep.mubr.f32.mxu1 %v21001_v0 }
 0x3fb   : > { %8566 = vmatprep.mubr.f32.mxu0 %v21001_v0 }
 0x3fd   : > { %19155 = vmatmul.mubr.msk.f32.gmra.mrb[22].mxu1 %vm1113_vm1, %v24795_v22 }
 0x3fe   : > { %19147 = vmatmul.mubr.msk.f32.gmra.mrb[22].mxu0 %vm1113_vm1, %v24795_v22  ;;  %8685 = vmatprep.mubr.f32.mxu1 %v21001_v0 }
 0x3ff   : > { %8572 = vmatprep.mubr.f32.mxu0 %v21001_v0 }
 0x401   : > { %19156 = vmatmul.mubr.msk.f32.gmra.mrb[24].mxu1 %vm1113_vm1, %v24808_v9 }
 0x402   : > { %19148 = vmatmul.mubr.msk.f32.gmra.mrb[24].mxu0 %vm1113_vm1, %v24808_v9  ;;  %8691 = vmatprep.mubr.f32.mxu1 %v21001_v0 }
 0x403   : > { %8578 = vmatprep.mubr.f32.mxu0 %v21001_v0 }
 0x405   : > { %19157 = vmatmul.mubr.msk.f32.gmra.mrb[26].mxu1 %vm1113_vm1, %v24821_v16 }
 0x406   : > { %19149 = vmatmul.mubr.msk.f32.gmra.mrb[26].mxu0 %vm1113_vm1, %v24821_v16  ;;  %8697 = vmatprep.mubr.f32.mxu1 %v21001_v0 }
 0x407   : > { %8584 = vmatprep.mubr.f32.mxu0 %v21001_v0 }
 0x409   : > { %19158 = vmatmul.mubr.msk.f32.gmra.mrb[28].mxu1 %vm1113_vm1, %v24832_v24 }
 0x40a   : > { %19150 = vmatmul.mubr.msk.f32.gmra.mrb[28].mxu0 %vm1113_vm1, %v24832_v24  ;;  %8703 = vmatprep.mubr.f32.mxu1 %v21001_v0 }
 0x40b   : > { %8590 = vmatprep.mubr.f32.mxu0 %v21001_v0 }
 0x40d   : > { %19159 = vmatmul.mubr.msk.f32.gmra.mrb[30].mxu1 %vm1113_vm1, %v24847_v14 }
 0x40e   : > { %19151 = vmatmul.mubr.msk.f32.gmra.mrb[30].mxu0 %vm1113_vm1, %v24847_v14  ;;  %8887 = vmatprep.mubr.f32.mxu1 %v21001_v0 }
 0x40f   : > { %8774 = vmatprep.mubr.f32.mxu0 %v21001_v0 }
 0x411   : > { %19168 = vmatmul.mubr.msk.f32.vlgmr.msra.gmra.mrb[32].mxu1 %vm1113_vm1, %v24728_v28 }
 0x412   : > { %19160 = vmatmul.mubr.msk.f32.vlgmr.msra.gmra.mrb[32].mxu0 %vm1113_vm1, %v24728_v28  ;;  %8893 = vmatprep.mubr.f32.mxu1 %v21001_v0 }
 0x413   : > { %19435 = vmatpush1.bf16.msra.mxu0 %v19434_v7  ;;  %8780 = vmatprep.mubr.f32.mxu0 %v21001_v0 }
 0x414   : > { %8940 = vmatprep.subr.mxu0 %v8183_v3  ;;  %19439 = vmatpush1.bf16.msra.mxu1 %v19438_v52 }
 0x415   : > { %19169 = vmatmul.mubr.msk.f32.gmra.mrb[34].mxu1 %vm1113_vm1, %v24757_v56  ;;  %9053 = vmatprep.subr.mxu1 %v8185_v46 }
 0x416   : > { %19161 = vmatmul.mubr.msk.f32.gmra.mrb[34].mxu0 %vm1113_vm1, %v24757_v56  ;;  %8899 = vmatprep.mubr.f32.mxu1 %v21001_v0 }
 0x417   : > { %8941 = vmatpush1.msra.mxu0 %v8182_v8  ;;  %8786 = vmatprep.mubr.f32.mxu0 %v21001_v0 }
 0x418   : > { %9054 = vmatpush1.msra.mxu1 %v8184_v15 }
 0x419   : > { %19170 = vmatmul.mubr.msk.f32.gmra.mrb[36].mxu1 %vm1113_vm1, %v24784_v40 }
 0x41a   : > { %19162 = vmatmul.mubr.msk.f32.gmra.mrb[36].mxu0 %vm1113_vm1, %v24784_v40  ;;  %8905 = vmatprep.mubr.f32.mxu1 %v21001_v0 }
 0x41b   : > { %8792 = vmatprep.mubr.f32.mxu0 %v21001_v0 }
 0x41d   : > { %19171 = vmatmul.mubr.msk.f32.gmra.mrb[38].mxu1 %vm1113_vm1, %v24795_v22 }
 0x41e   : > { %19163 = vmatmul.mubr.msk.f32.gmra.mrb[38].mxu0 %vm1113_vm1, %v24795_v22  ;;  %8911 = vmatprep.mubr.f32.mxu1 %v21001_v0 }
 0x41f   : > { %8798 = vmatprep.mubr.f32.mxu0 %v21001_v0 }
 0x421   : > { %19172 = vmatmul.mubr.msk.f32.gmra.mrb[40].mxu1 %vm1113_vm1, %v24808_v9 }
 0x422   : > { %19164 = vmatmul.mubr.msk.f32.gmra.mrb[40].mxu0 %vm1113_vm1, %v24808_v9  ;;  %8917 = vmatprep.mubr.f32.mxu1 %v21001_v0 }
 0x423   : > { %8804 = vmatprep.mubr.f32.mxu0 %v21001_v0 }
 0x425   : > { %19173 = vmatmul.mubr.msk.f32.gmra.mrb[42].mxu1 %vm1113_vm1, %v24821_v16 }
 0x426   : > { %19165 = vmatmul.mubr.msk.f32.gmra.mrb[42].mxu0 %vm1113_vm1, %v24821_v16  ;;  %8923 = vmatprep.mubr.f32.mxu1 %v21001_v0 }
 0x427   : > { %8810 = vmatprep.mubr.f32.mxu0 %v21001_v0 }
 0x429   : > { %19174 = vmatmul.mubr.msk.f32.gmra.mrb[44].mxu1 %vm1113_vm1, %v24832_v24 }
 0x42a   : > { %19166 = vmatmul.mubr.msk.f32.gmra.mrb[44].mxu0 %vm1113_vm1, %v24832_v24  ;;  %8929 = vmatprep.mubr.f32.mxu1 %v21001_v0 }
 0x42b   : > { %8816 = vmatprep.mubr.f32.mxu0 %v21001_v0 }
 0x42d   : > { %19175 = vmatmul.mubr.msk.f32.gmra.mrb[46].mxu1 %vm1113_vm1, %v24847_v14 }
 0x42e   : > { %19167 = vmatmul.mubr.msk.f32.gmra.mrb[46].mxu0 %vm1113_vm1, %v24847_v14  ;;  %9113 = vmatprep.mubr.f32.mxu1 %v21001_v0 }
 0x42f   : > { %9000 = vmatprep.mubr.f32.mxu0 %v21001_v0 }
 0x431   : > { %19184 = vmatmul.mubr.msk.f32.vlgmr.msra.gmra.mrb[48].mxu1 %vm1113_vm1, %v24728_v28 }
 0x432   : > { %19176 = vmatmul.mubr.msk.f32.vlgmr.msra.gmra.mrb[48].mxu0 %vm1113_vm1, %v24728_v28  ;;  %9119 = vmatprep.mubr.f32.mxu1 %v21001_v0  ;;  %v21009_v28 = vmov 1966171168  }
 0x433   : > { %9006 = vmatprep.mubr.f32.mxu0 %v21001_v0  ;;  %v9604_v41 = vunpack.c.l.s4 %v21009_v28 }
 0x435   : > { %19185 = vmatmul.mubr.msk.f32.gmra.mrb[50].mxu1 %vm1113_vm1, %v24757_v56 }
 0x436   : > { %19177 = vmatmul.mubr.msk.f32.gmra.mrb[50].mxu0 %vm1113_vm1, %v24757_v56  ;;  %9125 = vmatprep.mubr.f32.mxu1 %v21001_v0  ;;  %v9605_v56 = vunpack.c.0.s8 %v9604_v41 }
 0x437   : > { %9012 = vmatprep.mubr.f32.mxu0 %v21001_v0 }
 0x438   : > { %v25067_v48 = vsub.s32 %v9605_v56, %v9607_v54 }
 0x439   : > { %19186 = vmatmul.mubr.msk.f32.gmra.mrb[52].mxu1 %vm1113_vm1, %v24784_v40 }
 0x43a   : > { %19178 = vmatmul.mubr.msk.f32.gmra.mrb[52].mxu0 %vm1113_vm1, %v24784_v40  ;;  %9131 = vmatprep.mubr.f32.mxu1 %v21001_v0 }
 0x43b   : > { %9018 = vmatprep.mubr.f32.mxu0 %v21001_v0 }
 0x43d   : > { %19187 = vmatmul.mubr.msk.f32.gmra.mrb[54].mxu1 %vm1113_vm1, %v24795_v22 }
 0x43e   : > { %19179 = vmatmul.mubr.msk.f32.gmra.mrb[54].mxu0 %vm1113_vm1, %v24795_v22  ;;  %9137 = vmatprep.mubr.f32.mxu1 %v21001_v0 }
 0x43f   : > { %9024 = vmatprep.mubr.f32.mxu0 %v21001_v0 }
 0x441   : > { %19188 = vmatmul.mubr.msk.f32.gmra.mrb[56].mxu1 %vm1113_vm1, %v24808_v9 }
 0x442   : > { %19180 = vmatmul.mubr.msk.f32.gmra.mrb[56].mxu0 %vm1113_vm1, %v24808_v9  ;;  %9143 = vmatprep.mubr.f32.mxu1 %v21001_v0 }
 0x443   : > { %9030 = vmatprep.mubr.f32.mxu0 %v21001_v0 }
 0x445   : > { %19189 = vmatmul.mubr.msk.f32.gmra.mrb[58].mxu1 %vm1113_vm1, %v24821_v16 }
 0x446   : > { %19181 = vmatmul.mubr.msk.f32.gmra.mrb[58].mxu0 %vm1113_vm1, %v24821_v16  ;;  %9149 = vmatprep.mubr.f32.mxu1 %v21001_v0 }
 0x447   : > { %9036 = vmatprep.mubr.f32.mxu0 %v21001_v0 }
 0x449   : > { %19190 = vmatmul.mubr.msk.f32.gmra.mrb[60].mxu1 %vm1113_vm1, %v24832_v24 }
 0x44a   : > { %19182 = vmatmul.mubr.msk.f32.gmra.mrb[60].mxu0 %vm1113_vm1, %v24832_v24  ;;  %9155 = vmatprep.mubr.f32.mxu1 %v21001_v0 }
 0x44b   : > { %9042 = vmatprep.mubr.f32.mxu0 %v21001_v0 }
 0x44d   : > { %19191 = vmatmul.mubr.msk.f32.gmra.mrb[62].mxu1 %vm1113_vm1, %v24847_v14 }
 0x44e   : > { %19183 = vmatmul.mubr.msk.f32.gmra.mrb[62].mxu0 %vm1113_vm1, %v24847_v14 }
 0x4a4   : > { %v8437_v2 = vpop.f32.mrb[0].mxu1 }
 0x4a5   : > { %v9340_v23 = vadd.f32 %v25063_v63, %v8437_v2  ;;  %v8324_v0 = vpop.f32.mrb[0].mxu0  ;;  %v8439_v59 = vpop.f32.mrb[1].mxu1 }
 0x4a6   : > { %v9338_v57 = vadd.f32 %v25063_v63, %v8324_v0  ;;  %v9341_v40 = vadd.f32 %v25063_v63, %v8439_v59  ;;  %v8326_v22 = vpop.f32.mrb[1].mxu0 }
 0x4a7   : > { %v9468_v21 = vmax.f32 %v9340_v23, 0.0  ;;  %v9339_v9 = vadd.f32 %v25063_v63, %v8326_v22 }
 0x4a8   : > { %v9466_v58 = vmax.f32 %v9338_v57, 0.0  ;;  %v9469_v4 = vmax.f32 %v9341_v40, 0.0  ;;  %v8443_v16 = vpop.f32.mrb[2].mxu1 }
 0x4a9   : > { %v10659_v24 = vcombine.high %v9468_v21, %v9468_v21  ;;  %v10666_v50 = vrot.slane %v9468_v21, %v25067_v48  ;;  %v25077_v19 = vmax.f32 %v9339_v9, 0.0  ;;  %v25080_v14 = vadd.f32 %v25071_v49, %v8443_v16  ;;  %v25082_v5 = vpop.f32.mrb[2].mxu0  ;;  %v25084_v6 = vpop.f32.mrb[3].mxu1 }
 0x4aa   : > { %v9602_v30 = vcombine.high %v9466_v58, %v9466_v58  ;;  %v9609_v31 = vrot.slane %v9466_v58, %v25067_v48  ;;  %v11187_v35 = vcombine.high %v9469_v4, %v9469_v4  ;;  %v11194_v51 = vrot.slane %v9469_v4, %v25067_v48  ;;  %v25088_v12 = vpop.f32.mrb[3].mxu0 }
 0x4ab   : > { %v10673_v11 = vrot.slane %v10659_v24, %v25067_v48  ;;  %v10674_v60 = vcombine.high %v10666_v50, %v10666_v50  ;;  %v10682_v32 = vrot.slane %v10666_v50, %v25067_v48  ;;  %v10131_v33 = vcombine.high %v25077_v19, %v25077_v19 }
 0x4ac   : > { %v9616_v10 = vrot.slane %v9602_v30, %v25067_v48  ;;  %v9617_v1 = vcombine.high %v9609_v31, %v9609_v31  ;;  %v9625_v39 = vrot.slane %v9609_v31, %v25067_v48  ;;  %v11201_v53 = vrot.slane %v11187_v35, %v25067_v48  ;;  %v25097_v18 = vpop.f32.mrb[4].mxu1 }
 0x4ad   : > { %v10675_v44 = vcombine.high %v10673_v11, %v10673_v11  ;;  %v10689_v29 = vrot.slane %v10673_v11, %v25067_v48  ;;  %v10696_v47 = vrot.slane %v10674_v60, %v25067_v48  ;;  %v10704_v45 = vcombine.high %v10682_v32, %v10682_v32  ;;  %11115 = vst.msk [vmem:[%s25102_s12 + $0x2] sm:$0x1] %vm10058_vm7, %v10682_v32  ;;  %v25106_v61 = vpop.f32.mrb[4].mxu0  ;;  %v25108_v20 = vpop.f32.mrb[5].mxu1 }
 0x4ae   : > { %v9618_v36 = vcombine.high %v9616_v10, %v9616_v10  ;;  %v9632_v27 = vrot.slane %v9616_v10, %v25067_v48  ;;  %v9639_v26 = vrot.slane %v9617_v1, %v25067_v48  ;;  %v9647_v62 = vcombine.high %v9625_v39, %v9625_v39  ;;  %10059 = vst.msk [vmem:[%s25102_s12] sm:$0x1] %vm10058_vm7, %v9625_v39  ;;  %v25114_v37 = vpop.f32.mrb[5].mxu0 }
 0x4af   : > { %v10703_v43 = vrot.slane %v10675_v44, %v25067_v48  ;;  %v10705_v17 = vcombine.high %v10689_v29, %v10689_v29  ;;  %v10706_v34 = vcombine.high %v10696_v47, %v10696_v47  ;;  %11116 = vst.msk [vmem:[%s25102_s12 + $0x12] sm:$0x1] %vm10058_vm7, %v10696_v47  ;;  %11117 = vst.msk [vmem:[%s25102_s12 + $0x22] sm:$0x1] %vm10058_vm7, %v10704_v45  ;;  %v9484_v40 = vmax.f32 %v25080_v14, 0.0 }
 0x4b0   : > { %11119 = vst.msk [vmem:[%s25102_s12 + $0x42] sm:$0x1] %vm10058_vm7, %v10689_v29  ;;  %v11202_v42 = vcombine.high %v11194_v51, %v11194_v51  ;;  %v9646_v25 = vrot.slane %v9618_v36, %v25067_v48  ;;  %v9648_v38 = vcombine.high %v9632_v27, %v9632_v27  ;;  %v9649_v55 = vcombine.high %v9639_v26, %v9639_v26  ;;  %v25130_v7 = vpop.f32.mrb[6].mxu1 }
 0x4b1   : > { %10060 = vst.msk [vmem:[%s25102_s12 + $0x10] sm:$0x1] %vm10058_vm7, %v9639_v26  ;;  %10061 = vst.msk [vmem:[%s25102_s12 + $0x20] sm:$0x1] %vm10058_vm7, %v9647_v62  ;;  %v11203_v52 = vcombine.high %v11201_v53, %v11201_v53  ;;  %v10707_v3 = vcombine.high %v10703_v43, %v10703_v43  ;;  %v11210_v46 = vrot.slane %v11194_v51, %v25067_v48  ;;  %v25141_v28 = vpop.f32.mrb[6].mxu0  ;;  %v25143_v41 = vpop.f32.mrb[7].mxu1 }
 0x4b2   : > { %10063 = vst.msk [vmem:[%s25102_s12 + $0x40] sm:$0x1] %vm10058_vm7, %v9632_v27  ;;  %11118 = vst.msk [vmem:[%s25102_s12 + $0x32] sm:$0x1] %vm10058_vm7, %v10706_v34  ;;  %v11217_v15 = vrot.slane %v11201_v53, %v25067_v48  ;;  %v11224_v8 = vrot.slane %v11202_v42, %v25067_v48  ;;  %v9650_v13 = vcombine.high %v9646_v25, %v9646_v25  ;;  %v25155_v23 = vpop.f32.mrb[7].mxu0 }
 0x4b3   : > { %11120 = vst.msk [vmem:[%s25102_s12 + $0x52] sm:$0x1] %vm10058_vm7, %v10703_v43  ;;  %11121 = vst.msk [vmem:[%s25102_s12 + $0x62] sm:$0x1] %vm10058_vm7, %v10705_v17  ;;  %v11231_v56 = vrot.slane %v11203_v52, %v25067_v48  ;;  %v10138_v54 = vrot.slane %v25077_v19, %v25067_v48  ;;  %v10145_v2 = vrot.slane %v10131_v33, %v25067_v48 }
 0x4b4   : > { %10062 = vst.msk [vmem:[%s25102_s12 + $0x30] sm:$0x1] %vm10058_vm7, %v9649_v55  ;;  %10064 = vst.msk [vmem:[%s25102_s12 + $0x50] sm:$0x1] %vm10058_vm7, %v9646_v25  ;;  %v11232_v0 = vcombine.high %v11210_v46, %v11210_v46  ;;  %v11233_v59 = vcombine.high %v11217_v15, %v11217_v15  ;;  %v11234_v57 = vcombine.high %v11224_v8, %v11224_v8  ;;  %v25171_v4 = vpop.f32.mrb[8].mxu1 }
 0x4b5   : > { %10065 = vst.msk [vmem:[%s25102_s12 + $0x60] sm:$0x1] %vm10058_vm7, %v9648_v38  ;;  %11122 = vst.msk [vmem:[%s25102_s12 + $0x72] sm:$0x1] %vm10058_vm7, %v10707_v3  ;;  %v11235_v22 = vcombine.high %v11231_v56, %v11231_v56  ;;  %v10146_v21 = vcombine.high %v10138_v54, %v10138_v54  ;;  %v10147_v9 = vcombine.high %v10145_v2, %v10145_v2  ;;  %v25183_v14 = vpop.f32.mrb[8].mxu0  ;;  %v25185_v30 = vpop.f32.mrb[9].mxu1 }
 0x4b6   : > { %11643 = vst.msk [vmem:[%s25102_s12 + $0x3] sm:$0x1] %vm10058_vm7, %v11210_v46  ;;  %11644 = vst.msk [vmem:[%s25102_s12 + $0x13] sm:$0x1] %vm10058_vm7, %v11224_v8  ;;  %v10154_v58 = vrot.slane %v10138_v54, %v25067_v48  ;;  %v10161_v16 = vrot.slane %v10145_v2, %v25067_v48  ;;  %v10708_v24 = vcombine.high %v9484_v40, %v9484_v40  ;;  %v25195_v11 = vpop.f32.mrb[9].mxu0 }
 0x4b7   : > { %11647 = vst.msk [vmem:[%s25102_s12 + $0x43] sm:$0x1] %vm10058_vm7, %v11217_v15  ;;  %10066 = vst.msk [vmem:[%s25102_s12 + $0x70] sm:$0x1] %vm10058_vm7, %v9650_v13  ;;  %v10715_v50 = vrot.slane %v9484_v40, %v25067_v48  ;;  %v9354_v19 = vadd.f32 %v25071_v49, %v25082_v5  ;;  %v10168_v31 = vrot.slane %v10146_v21, %v25067_v48 }
 0x4b8   : > { %11648 = vst.msk [vmem:[%s25102_s12 + $0x53] sm:$0x1] %vm10058_vm7, %v11231_v56  ;;  %11645 = vst.msk [vmem:[%s25102_s12 + $0x23] sm:$0x1] %vm10058_vm7, %v11232_v0  ;;  %v10175_v35 = vrot.slane %v10147_v9, %v25067_v48  ;;  %v10176_v51 = vcombine.high %v10154_v58, %v10154_v58  ;;  %v9357_v5 = vadd.f32 %v25071_v49, %v25084_v6  ;;  %v25207_v44 = vpop.f32.mrb[10].mxu1 }
 0x4b9   : > { %11646 = vst.msk [vmem:[%s25102_s12 + $0x33] sm:$0x1] %vm10058_vm7, %v11234_v57  ;;  %11649 = vst.msk [vmem:[%s25102_s12 + $0x63] sm:$0x1] %vm10058_vm7, %v11233_v59  ;;  %v10177_v60 = vcombine.high %v10161_v16, %v10161_v16  ;;  %v10722_v32 = vrot.slane %v10708_v24, %v25067_v48  ;;  %v10723_v33 = vcombine.high %v10715_v50, %v10715_v50  ;;  %v9482_v6 = vmax.f32 %v9354_v19, 0.0  ;;  %v25215_v27 = vpop.f32.mrb[10].mxu0  ;;  %v25264_v19 = vpop.permute.xlu1 %9310 }
 0x4ba   : > { %11650 = vst.msk [vmem:[%s25102_s12 + $0x73] sm:$0x1] %vm10058_vm7, %v11235_v22  ;;  %10587 = vst.msk [vmem:[%s25102_s12 + $0x1] sm:$0x1] %vm10058_vm7, %v10154_v58  ;;  %v10731_v10 = vrot.slane %v10715_v50, %v25067_v48  ;;  %v10178_v1 = vcombine.high %v10168_v31, %v10168_v31  ;;  %v10179_v39 = vcombine.high %v10175_v35, %v10175_v35  ;;  %v9485_v53 = vmax.f32 %v9357_v5, 0.0  ;;  %v25217_v26 = vpop.f32.mrb[11].mxu1 }
 0x4bb   : > { %10591 = vst.msk [vmem:[%s25102_s12 + $0x41] sm:$0x1] %vm10058_vm7, %v10161_v16  ;;  %10588 = vst.msk [vmem:[%s25102_s12 + $0x11] sm:$0x1] %vm10058_vm7, %v10168_v31  ;;  %v10724_v29 = vcombine.high %v10722_v32, %v10722_v32  ;;  %v10738_v47 = vrot.slane %v10722_v32, %v25067_v48  ;;  %v10745_v45 = vrot.slane %v10723_v33, %v25067_v48  ;;  %v25225_v42 = vpop.f32.mrb[11].mxu0 }
 0x4bc   : > { %10589 = vst.msk [vmem:[%s25102_s12 + $0x21] sm:$0x1] %vm10058_vm7, %v10176_v51  ;;  %10592 = vst.msk [vmem:[%s25102_s12 + $0x51] sm:$0x1] %vm10058_vm7, %v10175_v35  ;;  %v10753_v36 = vcombine.high %v10731_v10, %v10731_v10  ;;  %v9651_v62 = vcombine.high %v9482_v6, %v9482_v6  ;;  %v9658_v43 = vrot.slane %v9482_v6, %v25067_v48  ;;  %v25239_v13 = vpop.f32.mrb[12].mxu1 }
 0x4bd   : > { %10593 = vst.msk [vmem:[%s25102_s12 + $0x61] sm:$0x1] %vm10058_vm7, %v10177_v60  ;;  %11123 = vst.msk [vmem:[%s25102_s12 + $0x82] sm:$0x1] %vm10058_vm7, %v10731_v10  ;;  %v11236_v17 = vcombine.high %v9485_v53, %v9485_v53  ;;  %v11243_v34 = vrot.slane %v9485_v53, %v25067_v48  ;;  %v10752_v25 = vrot.slane %v10724_v29, %v25067_v48  ;;  %v25248_v0 = vpop.f32.mrb[12].mxu0  ;;  %v25250_v59 = vpop.f32.mrb[13].mxu1 }
 0x4be   : > { %10590 = vst.msk [vmem:[%s25102_s12 + $0x31] sm:$0x1] %vm10058_vm7, %v10178_v1  ;;  %10594 = vst.msk [vmem:[%s25102_s12 + $0x71] sm:$0x1] %vm10058_vm7, %v10179_v39  ;;  %v10754_v38 = vcombine.high %v10738_v47, %v10738_v47  ;;  %v10755_v55 = vcombine.high %v10745_v45, %v10745_v45  ;;  %v9355_v52 = vadd.f32 %v25071_v49, %v25088_v12  ;;  %v25256_v9 = vpop.f32.mrb[13].mxu0 }
 0x4bf   : > { %11124 = vst.msk [vmem:[%s25102_s12 + $0x92] sm:$0x1] %vm10058_vm7, %v10745_v45  ;;  %11125 = vst.msk [vmem:[%s25102_s12 + $0xa2] sm:$0x1] %vm10058_vm7, %v10753_v36  ;;  %v9665_v3 = vrot.slane %v9651_v62, %v25067_v48  ;;  %v9666_v46 = vcombine.high %v9658_v43, %v9658_v43  ;;  %v9674_v15 = vrot.slane %v9658_v43, %v25067_v48 }
 0x4c0   : > { %11127 = vst.msk [vmem:[%s25102_s12 + $0xc2] sm:$0x1] %vm10058_vm7, %v10738_v47  ;;  %v11250_v8 = vrot.slane %v11236_v17, %v25067_v48  ;;  %v10756_v56 = vcombine.high %v10752_v25, %v10752_v25  ;;  %11126 = vst.msk [vmem:[%s25102_s12 + $0xb2] sm:$0x1] %vm10058_vm7, %v10755_v55  ;;  %v11251_v54 = vcombine.high %v11243_v34, %v11243_v34  ;;  %v9483_v2 = vmax.f32 %v9355_v52, 0.0  ;;  %v25273_v60 = vpop.f32.mrb[14].mxu1 }
 0x4c1   : > { %11128 = vst.msk [vmem:[%s25102_s12 + $0xd2] sm:$0x1] %vm10058_vm7, %v10752_v25  ;;  %11129 = vst.msk [vmem:[%s25102_s12 + $0xe2] sm:$0x1] %vm10058_vm7, %v10754_v38  ;;  %v11259_v12 = vrot.slane %v11243_v34, %v25067_v48  ;;  %v9667_v57 = vcombine.high %v9665_v3, %v9665_v3  ;;  %v9681_v40 = vrot.slane %v9665_v3, %v25067_v48  ;;  %v25283_v39 = vpop.f32.mrb[14].mxu0  ;;  %v25285_v6 = vpop.f32.mrb[15].mxu1 }
 0x4c2   : > { %v9688_v22 = vrot.slane %v9666_v46, %v25067_v48  ;;  %v9696_v21 = vcombine.high %v9674_v15, %v9674_v15  ;;  %10067 = vst.msk [vmem:[%s25102_s12 + $0x80] sm:$0x1] %vm10058_vm7, %v9674_v15  ;;  %11130 = vst.msk [vmem:[%s25102_s12 + $0xf2] sm:$0x1] %vm10058_vm7, %v10756_v56  ;;  %v11252_v58 = vcombine.high %v11250_v8, %v11250_v8  ;;  %v25298_v36 = vpop.f32.mrb[15].mxu0 }
 0x4c3   : > { %v11266_v16 = vrot.slane %v11250_v8, %v25067_v48  ;;  %v11273_v24 = vrot.slane %v11251_v54, %v25067_v48  ;;  %v11281_v50 = vcombine.high %v11259_v12, %v11259_v12  ;;  %11651 = vst.msk [vmem:[%s25102_s12 + $0x83] sm:$0x1] %vm10058_vm7, %v11259_v12  ;;  %v9695_v31 = vrot.slane %v9667_v57, %v25067_v48 }
 0x4c4   : > { %v9697_v35 = vcombine.high %v9681_v40, %v9681_v40  ;;  %v9698_v51 = vcombine.high %v9688_v22, %v9688_v22  ;;  %10068 = vst.msk [vmem:[%s25102_s12 + $0x90] sm:$0x1] %vm10058_vm7, %v9688_v22  ;;  %10069 = vst.msk [vmem:[%s25102_s12 + $0xa0] sm:$0x1] %vm10058_vm7, %v9696_v21  ;;  %v10180_v5 = vcombine.high %v9483_v2, %v9483_v2  ;;  %v25312_v55 = vpop.f32.mrb[16].mxu1 }
 0x4c5   : > { %10071 = vst.msk [vmem:[%s25102_s12 + $0xc0] sm:$0x1] %vm10058_vm7, %v9681_v40  ;;  %v11280_v32 = vrot.slane %v11252_v58, %v25067_v48  ;;  %v11282_v33 = vcombine.high %v11266_v16, %v11266_v16  ;;  %v11283_v10 = vcombine.high %v11273_v24, %v11273_v24  ;;  %11652 = vst.msk [vmem:[%s25102_s12 + $0x93] sm:$0x1] %vm10058_vm7, %v11273_v24  ;;  %v25323_v15 = vpop.f32.mrb[16].mxu0  ;;  %v25325_v8 = vpop.f32.mrb[17].mxu1 }
 0x4c6   : > { %11653 = vst.msk [vmem:[%s25102_s12 + $0xa3] sm:$0x1] %vm10058_vm7, %v11281_v50  ;;  %11655 = vst.msk [vmem:[%s25102_s12 + $0xc3] sm:$0x1] %vm10058_vm7, %v11266_v16  ;;  %v10187_v1 = vrot.slane %v9483_v2, %v25067_v48  ;;  %v9699_v53 = vcombine.high %v9695_v31, %v9695_v31  ;;  %v10194_v29 = vrot.slane %v10180_v5, %v25067_v48  ;;  %v25331_v57 = vpop.f32.mrb[17].mxu0 }
 0x4c7   : > { %10070 = vst.msk [vmem:[%s25102_s12 + $0xb0] sm:$0x1] %vm10058_vm7, %v9698_v51  ;;  %10072 = vst.msk [vmem:[%s25102_s12 + $0xd0] sm:$0x1] %vm10058_vm7, %v9695_v31  ;;  %v9372_v47 = vadd.f32 %v25264_v19, %v25097_v18  ;;  %v9370_v45 = vadd.f32 %v25264_v19, %v25106_v61  ;;  %v11284_v62 = vcombine.high %v11280_v32, %v11280_v32 }
 0x4c8   : > { %10073 = vst.msk [vmem:[%s25102_s12 + $0xe0] sm:$0x1] %vm10058_vm7, %v9697_v35  ;;  %11654 = vst.msk [vmem:[%s25102_s12 + $0xb3] sm:$0x1] %vm10058_vm7, %v11283_v10  ;;  %v10195_v43 = vcombine.high %v10187_v1, %v10187_v1  ;;  %v10203_v17 = vrot.slane %v10187_v1, %v25067_v48  ;;  %v9373_v18 = vadd.f32 %v25264_v19, %v25108_v20  ;;  %v25344_v31 = vpop.f32.mrb[18].mxu1 }
 0x4c9   : > { %11656 = vst.msk [vmem:[%s25102_s12 + $0xd3] sm:$0x1] %vm10058_vm7, %v11280_v32  ;;  %11657 = vst.msk [vmem:[%s25102_s12 + $0xe3] sm:$0x1] %vm10058_vm7, %v11282_v33  ;;  %v10196_v61 = vcombine.high %v10194_v29, %v10194_v29  ;;  %v10210_v34 = vrot.slane %v10194_v29, %v25067_v48  ;;  %v9500_v25 = vmax.f32 %v9372_v47, 0.0  ;;  %v9498_v38 = vmax.f32 %v9370_v45, 0.0 }
 0x4ca   : > { %10074 = vst.msk [vmem:[%s25102_s12 + $0xf0] sm:$0x1] %vm10058_vm7, %v9699_v53  ;;  %11658 = vst.msk [vmem:[%s25102_s12 + $0xf3] sm:$0x1] %vm10058_vm7, %v11284_v62  ;;  %v10217_v52 = vrot.slane %v10195_v43, %v25067_v48  ;;  %v10225_v3 = vcombine.high %v10203_v17, %v10203_v17  ;;  %v9501_v20 = vmax.f32 %v9373_v18, 0.0  ;;  %v25321_v46 = vadd.f32 %v25264_v19, %v25114_v37  ;;  %v25351_v33 = vpop.f32.mrb[18].mxu0 }
 0x4cb   : > { %10595 = vst.msk [vmem:[%s25102_s12 + $0x81] sm:$0x1] %vm10058_vm7, %v10203_v17  ;;  %v10224_v56 = vrot.slane %v10196_v61, %v25067_v48  ;;  %v10226_v54 = vcombine.high %v10210_v34, %v10210_v34  ;;  %10599 = vst.msk [vmem:[%s25102_s12 + $0xc1] sm:$0x1] %vm10058_vm7, %v10210_v34  ;;  %v10757_v12 = vcombine.high %v9500_v25, %v9500_v25  ;;  %v25353_v10 = vpop.f32.mrb[19].mxu1  ;;  %v25361_v45 = vpop.f32.mrb[19].mxu0 }
 0x4cc   : > { %v10764_v2 = vrot.slane %v9500_v25, %v25067_v48  ;;  %v10227_v40 = vcombine.high %v10217_v52, %v10217_v52  ;;  %10596 = vst.msk [vmem:[%s25102_s12 + $0x91] sm:$0x1] %vm10058_vm7, %v10217_v52  ;;  %10597 = vst.msk [vmem:[%s25102_s12 + $0xa1] sm:$0x1] %vm10058_vm7, %v10225_v3  ;;  %v9700_v37 = vcombine.high %v9498_v38, %v9498_v38  ;;  %v25375_v52 = vpop.permute.xlu0 %9315  ;;  %v25377_v3 = vpop.f32.mrb[20].mxu1 }
 0x4cd   : > { %v9707_v22 = vrot.slane %v9498_v38, %v25067_v48  ;;  %v11285_v21 = vcombine.high %v9501_v20, %v9501_v20  ;;  %v10228_v58 = vcombine.high %v10224_v56, %v10224_v56  ;;  %10600 = vst.msk [vmem:[%s25102_s12 + $0xd1] sm:$0x1] %vm10058_vm7, %v10224_v56  ;;  %10601 = vst.msk [vmem:[%s25102_s12 + $0xe1] sm:$0x1] %vm10058_vm7, %v10226_v54 }
 0x4ce   : > { %v10771_v16 = vrot.slane %v10757_v12, %v25067_v48  ;;  %v10772_v24 = vcombine.high %v10764_v2, %v10764_v2  ;;  %v10780_v50 = vrot.slane %v10764_v2, %v25067_v48  ;;  %10598 = vst.msk [vmem:[%s25102_s12 + $0xb1] sm:$0x1] %vm10058_vm7, %v10227_v40  ;;  %v9714_v35 = vrot.slane %v9700_v37, %v25067_v48  ;;  %v25386_v2 = vpop.f32.mrb[20].mxu0  ;;  %v25388_v40 = vpop.f32.mrb[21].mxu1 }
 0x4cf   : > { %v9715_v51 = vcombine.high %v9707_v22, %v9707_v22  ;;  %v9723_v5 = vrot.slane %v9707_v22, %v25067_v48  ;;  %v11292_v32 = vrot.slane %v9501_v20, %v25067_v48  ;;  %10602 = vst.msk [vmem:[%s25102_s12 + $0xf1] sm:$0x1] %vm10058_vm7, %v10228_v58  ;;  %v11299_v38 = vrot.slane %v11285_v21, %v25067_v48 }
 0x4d0   : > { %v10773_v1 = vcombine.high %v10771_v16, %v10771_v16  ;;  %v10787_v53 = vrot.slane %v10771_v16, %v25067_v48  ;;  %v10794_v29 = vrot.slane %v10772_v24, %v25067_v48  ;;  %v10802_v47 = vcombine.high %v10780_v50, %v10780_v50  ;;  %11131 = vst.msk [vmem:[%s25102_s12 + $0x102] sm:$0x1] %vm10058_vm7, %v10780_v50  ;;  %v25398_v16 = vpop.f32.mrb[21].mxu0 }
 0x4d1   : > { %v9716_v62 = vcombine.high %v9714_v35, %v9714_v35  ;;  %v9730_v43 = vrot.slane %v9714_v35, %v25067_v48  ;;  %v9737_v17 = vrot.slane %v9715_v51, %v25067_v48  ;;  %v9745_v18 = vcombine.high %v9723_v5, %v9723_v5  ;;  %10075 = vst.msk [vmem:[%s25102_s12 + $0x100] sm:$0x1] %vm10058_vm7, %v9723_v5 }
 0x4d2   : > { %v10801_v61 = vrot.slane %v10773_v1, %v25067_v48  ;;  %v10803_v34 = vcombine.high %v10787_v53, %v10787_v53  ;;  %v10804_v25 = vcombine.high %v10794_v29, %v10794_v29  ;;  %11132 = vst.msk [vmem:[%s25102_s12 + $0x112] sm:$0x1] %vm10058_vm7, %v10794_v29  ;;  %11133 = vst.msk [vmem:[%s25102_s12 + $0x122] sm:$0x1] %vm10058_vm7, %v10802_v47  ;;  %v9499_v35 = vmax.f32 %v25321_v46, 0.0  ;;  %v25419_v46 = vpop.f32.mrb[22].mxu1 }
 0x4d3   : > { %11135 = vst.msk [vmem:[%s25102_s12 + $0x142] sm:$0x1] %vm10058_vm7, %v10787_v53  ;;  %v9744_v20 = vrot.slane %v9716_v62, %v25067_v48  ;;  %v9746_v56 = vcombine.high %v9730_v43, %v9730_v43  ;;  %v9747_v54 = vcombine.high %v9737_v17, %v9737_v17  ;;  %10076 = vst.msk [vmem:[%s25102_s12 + $0x110] sm:$0x1] %vm10058_vm7, %v9737_v17  ;;  %v25428_v17 = vpop.f32.mrb[23].mxu1 }
 0x4d4   : > { %10077 = vst.msk [vmem:[%s25102_s12 + $0x120] sm:$0x1] %vm10058_vm7, %v9745_v18  ;;  %10079 = vst.msk [vmem:[%s25102_s12 + $0x140] sm:$0x1] %vm10058_vm7, %v9730_v43  ;;  %v11300_v12 = vcombine.high %v11292_v32, %v11292_v32  ;;  %v10805_v37 = vcombine.high %v10801_v61, %v10801_v61  ;;  %v11301_v22 = vcombine.high %v11299_v38, %v11299_v38  ;;  %v25426_v43 = vpop.f32.mrb[22].mxu0 }
 0x4d5   : > { %11134 = vst.msk [vmem:[%s25102_s12 + $0x132] sm:$0x1] %vm10058_vm7, %v10804_v25  ;;  %11136 = vst.msk [vmem:[%s25102_s12 + $0x152] sm:$0x1] %vm10058_vm7, %v10801_v61  ;;  %v11308_v21 = vrot.slane %v11292_v32, %v25067_v48  ;;  %v11315_v58 = vrot.slane %v11299_v38, %v25067_v48  ;;  %v9748_v24 = vcombine.high %v9744_v20, %v9744_v20  ;;  %v25442_v25 = vpop.f32.mrb[23].mxu0 }
 0x4d6   : > { %11137 = vst.msk [vmem:[%s25102_s12 + $0x162] sm:$0x1] %vm10058_vm7, %v10803_v34  ;;  %10078 = vst.msk [vmem:[%s25102_s12 + $0x130] sm:$0x1] %vm10058_vm7, %v9747_v54  ;;  %v11322_v50 = vrot.slane %v11300_v12, %v25067_v48  ;;  %v9388_v51 = vadd.f32 %v25375_v52, %v25130_v7  ;;  %v11329_v5 = vrot.slane %v11301_v22, %v25067_v48  ;;  %v25452_v22 = vpop.f32.mrb[24].mxu1 }
 0x4d7   : > { %10080 = vst.msk [vmem:[%s25102_s12 + $0x150] sm:$0x1] %vm10058_vm7, %v9744_v20  ;;  %10081 = vst.msk [vmem:[%s25102_s12 + $0x160] sm:$0x1] %vm10058_vm7, %v9746_v56  ;;  %v11330_v32 = vcombine.high %v11308_v21, %v11308_v21  ;;  %v11331_v1 = vcombine.high %v11315_v58, %v11315_v58  ;;  %v9386_v53 = vadd.f32 %v25375_v52, %v25141_v28 }
 0x4d8   : > { %11138 = vst.msk [vmem:[%s25102_s12 + $0x172] sm:$0x1] %vm10058_vm7, %v10805_v37  ;;  %11659 = vst.msk [vmem:[%s25102_s12 + $0x103] sm:$0x1] %vm10058_vm7, %v11308_v21  ;;  %v11332_v7 = vcombine.high %v11322_v50, %v11322_v50  ;;  %v10229_v29 = vcombine.high %v9499_v35, %v9499_v35  ;;  %v10236_v47 = vrot.slane %v9499_v35, %v25067_v48  ;;  %v9516_v62 = vmax.f32 %v9388_v51, 0.0 }
 0x4d9   : > { %11663 = vst.msk [vmem:[%s25102_s12 + $0x143] sm:$0x1] %vm10058_vm7, %v11315_v58  ;;  %10082 = vst.msk [vmem:[%s25102_s12 + $0x170] sm:$0x1] %vm10058_vm7, %v9748_v24  ;;  %v11333_v18 = vcombine.high %v11329_v5, %v11329_v5  ;;  %v9514_v28 = vmax.f32 %v9386_v53, 0.0  ;;  %v9389_v61 = vadd.f32 %v25375_v52, %v25143_v41  ;;  %v25440_v34 = vadd.f32 %v25375_v52, %v25155_v23 }
 0x4da   : > { %11660 = vst.msk [vmem:[%s25102_s12 + $0x113] sm:$0x1] %vm10058_vm7, %v11322_v50  ;;  %11661 = vst.msk [vmem:[%s25102_s12 + $0x123] sm:$0x1] %vm10058_vm7, %v11330_v32  ;;  %v10243_v38 = vrot.slane %v10229_v29, %v25067_v48  ;;  %v10244_v20 = vcombine.high %v10236_v47, %v10236_v47  ;;  %v10252_v56 = vrot.slane %v10236_v47, %v25067_v48 }
 0x4db   : > { %11664 = vst.msk [vmem:[%s25102_s12 + $0x153] sm:$0x1] %vm10058_vm7, %v11329_v5  ;;  %11665 = vst.msk [vmem:[%s25102_s12 + $0x163] sm:$0x1] %vm10058_vm7, %v11331_v1  ;;  %v10806_v54 = vcombine.high %v9516_v62, %v9516_v62  ;;  %v10813_v12 = vrot.slane %v9516_v62, %v25067_v48  ;;  %v9749_v41 = vcombine.high %v9514_v28, %v9514_v28  ;;  %v9517_v37 = vmax.f32 %v9389_v61, 0.0  ;;  %v25472_v61 = vpop.f32.mrb[24].mxu0 }
 0x4dc   : > { %11662 = vst.msk [vmem:[%s25102_s12 + $0x133] sm:$0x1] %vm10058_vm7, %v11332_v7  ;;  %11666 = vst.msk [vmem:[%s25102_s12 + $0x173] sm:$0x1] %vm10058_vm7, %v11333_v18  ;;  %v9756_v23 = vrot.slane %v9514_v28, %v25067_v48  ;;  %v10245_v21 = vcombine.high %v10243_v38, %v10243_v38  ;;  %v10259_v58 = vrot.slane %v10243_v38, %v25067_v48  ;;  %v25474_v38 = vpop.f32.mrb[25].mxu1 }
 0x4dd   : > { %v10266_v24 = vrot.slane %v10244_v20, %v25067_v48  ;;  %v10274_v50 = vcombine.high %v10252_v56, %v10252_v56  ;;  %10603 = vst.msk [vmem:[%s25102_s12 + $0x101] sm:$0x1] %vm10058_vm7, %v10252_v56  ;;  %v10820_v35 = vrot.slane %v10806_v54, %v25067_v48  ;;  %v10821_v51 = vcombine.high %v10813_v12, %v10813_v12 }
 0x4de   : > { %v10829_v5 = vrot.slane %v10813_v12, %v25067_v48  ;;  %v9763_v32 = vrot.slane %v9749_v41, %v25067_v48  ;;  %v10273_v1 = vrot.slane %v10245_v21, %v25067_v48  ;;  %v10275_v53 = vcombine.high %v10259_v58, %v10259_v58  ;;  %10607 = vst.msk [vmem:[%s25102_s12 + $0x141] sm:$0x1] %vm10058_vm7, %v10259_v58 }
 0x4df   : > { %v10276_v7 = vcombine.high %v10266_v24, %v10266_v24  ;;  %10604 = vst.msk [vmem:[%s25102_s12 + $0x111] sm:$0x1] %vm10058_vm7, %v10266_v24  ;;  %10605 = vst.msk [vmem:[%s25102_s12 + $0x121] sm:$0x1] %vm10058_vm7, %v10274_v50  ;;  %v9764_v29 = vcombine.high %v9756_v23, %v9756_v23  ;;  %v10822_v47 = vcombine.high %v10820_v35, %v10820_v35  ;;  %v25492_v50 = vpop.permute.xlu1 %9320 }
 0x4e0   : > { %v10836_v62 = vrot.slane %v10820_v35, %v25067_v48  ;;  %v10843_v18 = vrot.slane %v10821_v51, %v25067_v48  ;;  %v10851_v28 = vcombine.high %v10829_v5, %v10829_v5  ;;  %11139 = vst.msk [vmem:[%s25102_s12 + $0x182] sm:$0x1] %vm10058_vm7, %v10829_v5  ;;  %v10277_v20 = vcombine.high %v10273_v1, %v10273_v1 }
 0x4e1   : > { %10606 = vst.msk [vmem:[%s25102_s12 + $0x131] sm:$0x1] %vm10058_vm7, %v10276_v7  ;;  %10608 = vst.msk [vmem:[%s25102_s12 + $0x151] sm:$0x1] %vm10058_vm7, %v10273_v1  ;;  %v9765_v56 = vcombine.high %v9763_v32, %v9763_v32  ;;  %v9772_v54 = vrot.slane %v9756_v23, %v25067_v48  ;;  %v9779_v12 = vrot.slane %v9763_v32, %v25067_v48  ;;  %v9515_v7 = vmax.f32 %v25440_v34, 0.0 }
 0x4e2   : > { %10609 = vst.msk [vmem:[%s25102_s12 + $0x161] sm:$0x1] %vm10058_vm7, %v10275_v53  ;;  %v10850_v41 = vrot.slane %v10822_v47, %v25067_v48  ;;  %v10852_v21 = vcombine.high %v10836_v62, %v10836_v62  ;;  %v10853_v58 = vcombine.high %v10843_v18, %v10843_v18  ;;  %11140 = vst.msk [vmem:[%s25102_s12 + $0x192] sm:$0x1] %vm10058_vm7, %v10843_v18 }
 0x4e3   : > { %11141 = vst.msk [vmem:[%s25102_s12 + $0x1a2] sm:$0x1] %vm10058_vm7, %v10851_v28  ;;  %11143 = vst.msk [vmem:[%s25102_s12 + $0x1c2] sm:$0x1] %vm10058_vm7, %v10836_v62  ;;  %v9786_v24 = vrot.slane %v9764_v29, %v25067_v48  ;;  %v9793_v23 = vrot.slane %v9765_v56, %v25067_v48  ;;  %v9794_v35 = vcombine.high %v9772_v54, %v9772_v54  ;;  %v25528_v56 = vpop.f32.mrb[25].mxu0 }
 0x4e4   : > { %10610 = vst.msk [vmem:[%s25102_s12 + $0x171] sm:$0x1] %vm10058_vm7, %v10277_v20  ;;  %v9795_v51 = vcombine.high %v9779_v12, %v9779_v12  ;;  %10083 = vst.msk [vmem:[%s25102_s12 + $0x180] sm:$0x1] %vm10058_vm7, %v9772_v54  ;;  %v11334_v5 = vcombine.high %v9517_v37, %v9517_v37  ;;  %v10854_v32 = vcombine.high %v10850_v41, %v10850_v41 }
 0x4e5   : > { %10087 = vst.msk [vmem:[%s25102_s12 + $0x1c0] sm:$0x1] %vm10058_vm7, %v9779_v12  ;;  %11142 = vst.msk [vmem:[%s25102_s12 + $0x1b2] sm:$0x1] %vm10058_vm7, %v10853_v58  ;;  %v9796_v1 = vcombine.high %v9786_v24, %v9786_v24  ;;  %v11341_v53 = vrot.slane %v9517_v37, %v25067_v48  ;;  %v9797_v29 = vcombine.high %v9793_v23, %v9793_v23 }
 0x4e6   : > { %11144 = vst.msk [vmem:[%s25102_s12 + $0x1d2] sm:$0x1] %vm10058_vm7, %v10850_v41  ;;  %11145 = vst.msk [vmem:[%s25102_s12 + $0x1e2] sm:$0x1] %vm10058_vm7, %v10852_v21  ;;  %v11348_v47 = vrot.slane %v11334_v5, %v25067_v48  ;;  %v9404_v62 = vadd.f32 %v25492_v50, %v25171_v4  ;;  %v9402_v18 = vadd.f32 %v25492_v50, %v25183_v14 }
 0x4e7   : > { %10084 = vst.msk [vmem:[%s25102_s12 + $0x190] sm:$0x1] %vm10058_vm7, %v9786_v24  ;;  %10085 = vst.msk [vmem:[%s25102_s12 + $0x1a0] sm:$0x1] %vm10058_vm7, %v9794_v35  ;;  %v11349_v34 = vcombine.high %v11341_v53, %v11341_v53  ;;  %v11357_v37 = vrot.slane %v11341_v53, %v25067_v48  ;;  %v10278_v28 = vcombine.high %v9515_v7, %v9515_v7 }
 0x4e8   : > { %10088 = vst.msk [vmem:[%s25102_s12 + $0x1d0] sm:$0x1] %vm10058_vm7, %v9793_v23  ;;  %10089 = vst.msk [vmem:[%s25102_s12 + $0x1e0] sm:$0x1] %vm10058_vm7, %v9795_v51  ;;  %v10285_v20 = vrot.slane %v9515_v7, %v25067_v48  ;;  %v11350_v4 = vcombine.high %v11348_v47, %v11348_v47  ;;  %v11364_v14 = vrot.slane %v11348_v47, %v25067_v48  ;;  %v9532_v54 = vmax.f32 %v9404_v62, 0.0 }
 0x4e9   : > { %11146 = vst.msk [vmem:[%s25102_s12 + $0x1f2] sm:$0x1] %vm10058_vm7, %v10854_v32  ;;  %10086 = vst.msk [vmem:[%s25102_s12 + $0x1b0] sm:$0x1] %vm10058_vm7, %v9796_v1  ;;  %v9530_v12 = vmax.f32 %v9402_v18, 0.0  ;;  %v11371_v41 = vrot.slane %v11349_v34, %v25067_v48  ;;  %v11379_v21 = vcombine.high %v11357_v37, %v11357_v37  ;;  %v10292_v58 = vrot.slane %v10278_v28, %v25067_v48 }
 0x4ea   : > { %10090 = vst.msk [vmem:[%s25102_s12 + $0x1f0] sm:$0x1] %vm10058_vm7, %v9797_v29  ;;  %11667 = vst.msk [vmem:[%s25102_s12 + $0x183] sm:$0x1] %vm10058_vm7, %v11357_v37  ;;  %v10293_v24 = vcombine.high %v10285_v20, %v10285_v20  ;;  %v11378_v23 = vrot.slane %v11350_v4, %v25067_v48  ;;  %v11380_v35 = vcombine.high %v11364_v14, %v11364_v14  ;;  %v25562_v4 = vpop.f32.mrb[26].mxu1 }
 0x4eb   : > { %11671 = vst.msk [vmem:[%s25102_s12 + $0x1c3] sm:$0x1] %vm10058_vm7, %v11364_v14  ;;  %v10301_v51 = vrot.slane %v10285_v20, %v25067_v48  ;;  %v10855_v5 = vcombine.high %v9532_v54, %v9532_v54  ;;  %v11381_v32 = vcombine.high %v11371_v41, %v11371_v41  ;;  %11668 = vst.msk [vmem:[%s25102_s12 + $0x193] sm:$0x1] %vm10058_vm7, %v11371_v41 }
 0x4ec   : > { %11669 = vst.msk [vmem:[%s25102_s12 + $0x1a3] sm:$0x1] %vm10058_vm7, %v11379_v21  ;;  %v10294_v1 = vcombine.high %v10292_v58, %v10292_v58  ;;  %v10308_v53 = vrot.slane %v10292_v58, %v25067_v48  ;;  %v10315_v7 = vrot.slane %v10293_v24, %v25067_v48  ;;  %v11382_v29 = vcombine.high %v11378_v23, %v11378_v23 }
 0x4ed   : > { %11672 = vst.msk [vmem:[%s25102_s12 + $0x1d3] sm:$0x1] %vm10058_vm7, %v11378_v23  ;;  %11673 = vst.msk [vmem:[%s25102_s12 + $0x1e3] sm:$0x1] %vm10058_vm7, %v11380_v35  ;;  %v10323_v47 = vcombine.high %v10301_v51, %v10301_v51  ;;  %v10862_v62 = vrot.slane %v9532_v54, %v25067_v48  ;;  %v10869_v18 = vrot.slane %v10855_v5, %v25067_v48 }
 0x4ee   : > { %10611 = vst.msk [vmem:[%s25102_s12 + $0x181] sm:$0x1] %vm10058_vm7, %v10301_v51  ;;  %11670 = vst.msk [vmem:[%s25102_s12 + $0x1b3] sm:$0x1] %vm10058_vm7, %v11381_v32  ;;  %v10322_v34 = vrot.slane %v10294_v1, %v25067_v48  ;;  %v10324_v37 = vcombine.high %v10308_v53, %v10308_v53  ;;  %v10325_v28 = vcombine.high %v10315_v7, %v10315_v7  ;;  %v25580_v51 = vpop.f32.mrb[26].mxu0 }
 0x4ef   : > { %10612 = vst.msk [vmem:[%s25102_s12 + $0x191] sm:$0x1] %vm10058_vm7, %v10315_v7  ;;  %10615 = vst.msk [vmem:[%s25102_s12 + $0x1c1] sm:$0x1] %vm10058_vm7, %v10308_v53  ;;  %v9798_v20 = vcombine.high %v9530_v12, %v9530_v12  ;;  %v10870_v14 = vcombine.high %v10862_v62, %v10862_v62  ;;  %v10871_v54 = vcombine.high %v10869_v18, %v10869_v18 }
 0x4f0   : > { %11674 = vst.msk [vmem:[%s25102_s12 + $0x1f3] sm:$0x1] %vm10058_vm7, %v11382_v29  ;;  %10613 = vst.msk [vmem:[%s25102_s12 + $0x1a1] sm:$0x1] %vm10058_vm7, %v10323_v47  ;;  %v10878_v41 = vrot.slane %v10862_v62, %v25067_v48  ;;  %v10885_v21 = vrot.slane %v10869_v18, %v25067_v48  ;;  %v10326_v58 = vcombine.high %v10322_v34, %v10322_v34  ;;  %v25592_v47 = vpop.permute.xlu0 %9325  ;;  %v25594_v62 = vpop.f32.mrb[27].mxu1 }
 0x4f1   : > { %10614 = vst.msk [vmem:[%s25102_s12 + $0x1b1] sm:$0x1] %vm10058_vm7, %v10325_v28  ;;  %10616 = vst.msk [vmem:[%s25102_s12 + $0x1d1] sm:$0x1] %vm10058_vm7, %v10322_v34  ;;  %v9805_v24 = vrot.slane %v9530_v12, %v25067_v48  ;;  %v9812_v23 = vrot.slane %v9798_v20, %v25067_v48  ;;  %v9405_v35 = vadd.f32 %v25492_v50, %v25185_v30 }
 0x4f2   : > { %10617 = vst.msk [vmem:[%s25102_s12 + $0x1e1] sm:$0x1] %vm10058_vm7, %v10324_v37  ;;  %v10892_v5 = vrot.slane %v10870_v14, %v25067_v48  ;;  %v10899_v32 = vrot.slane %v10871_v54, %v25067_v48  ;;  %v10900_v1 = vcombine.high %v10878_v41, %v10878_v41  ;;  %v10901_v53 = vcombine.high %v10885_v21, %v10885_v21 }
 0x4f3   : > { %11147 = vst.msk [vmem:[%s25102_s12 + $0x202] sm:$0x1] %vm10058_vm7, %v10878_v41  ;;  %11151 = vst.msk [vmem:[%s25102_s12 + $0x242] sm:$0x1] %vm10058_vm7, %v10885_v21  ;;  %v9813_v12 = vcombine.high %v9805_v24, %v9805_v24  ;;  %v9814_v30 = vcombine.high %v9812_v23, %v9812_v23  ;;  %v9821_v7 = vrot.slane %v9805_v24, %v25067_v48  ;;  %v9533_v37 = vmax.f32 %v9405_v35, 0.0 }
 0x4f4   : > { %10618 = vst.msk [vmem:[%s25102_s12 + $0x1f1] sm:$0x1] %vm10058_vm7, %v10326_v58  ;;  %v9828_v29 = vrot.slane %v9812_v23, %v25067_v48  ;;  %v10902_v18 = vcombine.high %v10892_v5, %v10892_v5  ;;  %v10903_v34 = vcombine.high %v10899_v32, %v10899_v32  ;;  %11148 = vst.msk [vmem:[%s25102_s12 + $0x212] sm:$0x1] %vm10058_vm7, %v10892_v5 }
 0x4f5   : > { %11149 = vst.msk [vmem:[%s25102_s12 + $0x222] sm:$0x1] %vm10058_vm7, %v10900_v1  ;;  %11152 = vst.msk [vmem:[%s25102_s12 + $0x252] sm:$0x1] %vm10058_vm7, %v10899_v32  ;;  %v9403_v28 = vadd.f32 %v25492_v50, %v25195_v11  ;;  %v9835_v20 = vrot.slane %v9813_v12, %v25067_v48  ;;  %v9842_v14 = vrot.slane %v9814_v30, %v25067_v48 }
 0x4f6   : > { %11153 = vst.msk [vmem:[%s25102_s12 + $0x262] sm:$0x1] %vm10058_vm7, %v10901_v53  ;;  %v9843_v54 = vcombine.high %v9821_v7, %v9821_v7  ;;  %v9844_v41 = vcombine.high %v9828_v29, %v9828_v29  ;;  %10091 = vst.msk [vmem:[%s25102_s12 + $0x200] sm:$0x1] %vm10058_vm7, %v9821_v7  ;;  %v11383_v21 = vcombine.high %v9533_v37, %v9533_v37 }
 0x4f7   : > { %10095 = vst.msk [vmem:[%s25102_s12 + $0x240] sm:$0x1] %vm10058_vm7, %v9828_v29  ;;  %11150 = vst.msk [vmem:[%s25102_s12 + $0x232] sm:$0x1] %vm10058_vm7, %v10902_v18  ;;  %v11390_v11 = vrot.slane %v9533_v37, %v25067_v48  ;;  %v9531_v58 = vmax.f32 %v9403_v28, 0.0  ;;  %v9420_v24 = vadd.f32 %v25592_v47, %v25207_v44  ;;  %v9845_v23 = vcombine.high %v9835_v20, %v9835_v20 }
 0x4f8   : > { %11154 = vst.msk [vmem:[%s25102_s12 + $0x272] sm:$0x1] %vm10058_vm7, %v10903_v34  ;;  %v9846_v35 = vcombine.high %v9842_v14, %v9842_v14  ;;  %10092 = vst.msk [vmem:[%s25102_s12 + $0x210] sm:$0x1] %vm10058_vm7, %v9835_v20  ;;  %v9418_v5 = vadd.f32 %v25592_v47, %v25215_v27  ;;  %v9421_v32 = vadd.f32 %v25592_v47, %v25217_v26  ;;  %v25640_v26 = vpop.f32.mrb[27].mxu0 }
 0x4f9   : > { %10093 = vst.msk [vmem:[%s25102_s12 + $0x220] sm:$0x1] %vm10058_vm7, %v9843_v54  ;;  %10096 = vst.msk [vmem:[%s25102_s12 + $0x250] sm:$0x1] %vm10058_vm7, %v9842_v14  ;;  %v11397_v1 = vrot.slane %v11383_v21, %v25067_v48  ;;  %v11398_v44 = vcombine.high %v11390_v11, %v11390_v11  ;;  %v11406_v53 = vrot.slane %v11390_v11, %v25067_v48  ;;  %v9548_v7 = vmax.f32 %v9420_v24, 0.0 }
 0x4fa   : > { %10097 = vst.msk [vmem:[%s25102_s12 + $0x260] sm:$0x1] %vm10058_vm7, %v9844_v41  ;;  %v10327_v12 = vcombine.high %v9531_v58, %v9531_v58  ;;  %10094 = vst.msk [vmem:[%s25102_s12 + $0x230] sm:$0x1] %vm10058_vm7, %v9845_v23  ;;  %v10334_v30 = vrot.slane %v9531_v58, %v25067_v48  ;;  %v9546_v29 = vmax.f32 %v9418_v5, 0.0  ;;  %v25638_v27 = vmax.f32 %v9421_v32, 0.0 }
 0x4fb   : > { %10098 = vst.msk [vmem:[%s25102_s12 + $0x270] sm:$0x1] %vm10058_vm7, %v9846_v35  ;;  %v11399_v18 = vcombine.high %v11397_v1, %v11397_v1  ;;  %v11413_v34 = vrot.slane %v11397_v1, %v25067_v48  ;;  %v11420_v37 = vrot.slane %v11398_v44, %v25067_v48  ;;  %v11428_v28 = vcombine.high %v11406_v53, %v11406_v53  ;;  %v25660_v1 = vpop.f32.mrb[28].mxu1 }
 0x4fc   : > { %11675 = vst.msk [vmem:[%s25102_s12 + $0x203] sm:$0x1] %vm10058_vm7, %v11406_v53  ;;  %v10341_v20 = vrot.slane %v10327_v12, %v25067_v48  ;;  %v10342_v14 = vcombine.high %v10334_v30, %v10334_v30  ;;  %v10350_v54 = vrot.slane %v10334_v30, %v25067_v48  ;;  %v10904_v41 = vcombine.high %v9548_v7, %v9548_v7 }
 0x4fd   : > { %v11427_v21 = vrot.slane %v11399_v18, %v25067_v48  ;;  %v11429_v11 = vcombine.high %v11413_v34, %v11413_v34  ;;  %v11430_v58 = vcombine.high %v11420_v37, %v11420_v37  ;;  %11676 = vst.msk [vmem:[%s25102_s12 + $0x213] sm:$0x1] %vm10058_vm7, %v11420_v37  ;;  %11677 = vst.msk [vmem:[%s25102_s12 + $0x223] sm:$0x1] %vm10058_vm7, %v11428_v28 }
 0x4fe   : > { %11679 = vst.msk [vmem:[%s25102_s12 + $0x243] sm:$0x1] %vm10058_vm7, %v11413_v34  ;;  %v10911_v24 = vrot.slane %v9548_v7, %v25067_v48  ;;  %v10343_v23 = vcombine.high %v10341_v20, %v10341_v20  ;;  %v10357_v35 = vrot.slane %v10341_v20, %v25067_v48  ;;  %v10364_v5 = vrot.slane %v10342_v14, %v25067_v48 }
 0x4ff   : > { %v10372_v32 = vcombine.high %v10350_v54, %v10350_v54  ;;  %10619 = vst.msk [vmem:[%s25102_s12 + $0x201] sm:$0x1] %vm10058_vm7, %v10350_v54  ;;  %v11431_v44 = vcombine.high %v11427_v21, %v11427_v21  ;;  %11678 = vst.msk [vmem:[%s25102_s12 + $0x233] sm:$0x1] %vm10058_vm7, %v11430_v58  ;;  %v10918_v53 = vrot.slane %v10904_v41, %v25067_v48  ;;  %v25683_v41 = vpop.f32.mrb[28].mxu0 }
 0x500   : > { %11680 = vst.msk [vmem:[%s25102_s12 + $0x253] sm:$0x1] %vm10058_vm7, %v11427_v21  ;;  %11681 = vst.msk [vmem:[%s25102_s12 + $0x263] sm:$0x1] %vm10058_vm7, %v11429_v11  ;;  %v10919_v12 = vcombine.high %v10911_v24, %v10911_v24  ;;  %v10927_v30 = vrot.slane %v10911_v24, %v25067_v48  ;;  %v10371_v7 = vrot.slane %v10343_v23, %v25067_v48 }
 0x501   : > { %v10373_v18 = vcombine.high %v10357_v35, %v10357_v35  ;;  %v10374_v34 = vcombine.high %v10364_v5, %v10364_v5  ;;  %10620 = vst.msk [vmem:[%s25102_s12 + $0x211] sm:$0x1] %vm10058_vm7, %v10364_v5  ;;  %10621 = vst.msk [vmem:[%s25102_s12 + $0x221] sm:$0x1] %vm10058_vm7, %v10372_v32  ;;  %v9847_v37 = vcombine.high %v9546_v29, %v9546_v29  ;;  %v25704_v32 = vpop.f32.mrb[29].mxu1 }
 0x502   : > { %10623 = vst.msk [vmem:[%s25102_s12 + $0x241] sm:$0x1] %vm10058_vm7, %v10357_v35  ;;  %11682 = vst.msk [vmem:[%s25102_s12 + $0x273] sm:$0x1] %vm10058_vm7, %v11431_v44  ;;  %v10920_v28 = vcombine.high %v10918_v53, %v10918_v53  ;;  %v10934_v20 = vrot.slane %v10918_v53, %v25067_v48  ;;  %v10941_v14 = vrot.slane %v10919_v12, %v25067_v48 }
 0x503   : > { %v10949_v54 = vcombine.high %v10927_v30, %v10927_v30  ;;  %11155 = vst.msk [vmem:[%s25102_s12 + $0x282] sm:$0x1] %vm10058_vm7, %v10927_v30  ;;  %v10375_v21 = vcombine.high %v10371_v7, %v10371_v7  ;;  %10622 = vst.msk [vmem:[%s25102_s12 + $0x231] sm:$0x1] %vm10058_vm7, %v10374_v34  ;;  %v9854_v11 = vrot.slane %v9546_v29, %v25067_v48 }
 0x504   : > { %10624 = vst.msk [vmem:[%s25102_s12 + $0x251] sm:$0x1] %vm10058_vm7, %v10371_v7  ;;  %10625 = vst.msk [vmem:[%s25102_s12 + $0x261] sm:$0x1] %vm10058_vm7, %v10373_v18  ;;  %v9861_v58 = vrot.slane %v9847_v37, %v25067_v48  ;;  %v11432_v24 = vcombine.high %v25638_v27, %v25638_v27  ;;  %v10948_v23 = vrot.slane %v10920_v28, %v25067_v48  ;;  %v25718_v37 = vpop.permute.xlu1 %9330 }
 0x505   : > { %v10950_v35 = vcombine.high %v10934_v20, %v10934_v20  ;;  %v10951_v5 = vcombine.high %v10941_v14, %v10941_v14  ;;  %11156 = vst.msk [vmem:[%s25102_s12 + $0x292] sm:$0x1] %vm10058_vm7, %v10941_v14  ;;  %11157 = vst.msk [vmem:[%s25102_s12 + $0x2a2] sm:$0x1] %vm10058_vm7, %v10949_v54  ;;  %v11439_v29 = vrot.slane %v25638_v27, %v25067_v48 }
 0x506   : > { %11159 = vst.msk [vmem:[%s25102_s12 + $0x2c2] sm:$0x1] %vm10058_vm7, %v10934_v20  ;;  %10626 = vst.msk [vmem:[%s25102_s12 + $0x271] sm:$0x1] %vm10058_vm7, %v10375_v21  ;;  %v9862_v44 = vcombine.high %v9854_v11, %v9854_v11  ;;  %v9863_v53 = vcombine.high %v9861_v58, %v9861_v58  ;;  %v9870_v12 = vrot.slane %v9854_v11, %v25067_v48 }
 0x507   : > { %v9877_v30 = vrot.slane %v9861_v58, %v25067_v48  ;;  %v10952_v7 = vcombine.high %v10948_v23, %v10948_v23  ;;  %11158 = vst.msk [vmem:[%s25102_s12 + $0x2b2] sm:$0x1] %vm10058_vm7, %v10951_v5  ;;  %11160 = vst.msk [vmem:[%s25102_s12 + $0x2d2] sm:$0x1] %vm10058_vm7, %v10948_v23  ;;  %v11446_v27 = vrot.slane %v11432_v24, %v25067_v48 }
 0x508   : > { %11161 = vst.msk [vmem:[%s25102_s12 + $0x2e2] sm:$0x1] %vm10058_vm7, %v10950_v35  ;;  %v11447_v18 = vcombine.high %v11439_v29, %v11439_v29  ;;  %v11455_v34 = vrot.slane %v11439_v29, %v25067_v48  ;;  %v9884_v28 = vrot.slane %v9862_v44, %v25067_v48  ;;  %v9891_v20 = vrot.slane %v9863_v53, %v25067_v48  ;;  %v25744_v44 = vpop.permute.xlu0 %9335 }
 0x509   : > { %v9892_v14 = vcombine.high %v9870_v12, %v9870_v12  ;;  %v9893_v54 = vcombine.high %v9877_v30, %v9877_v30  ;;  %10099 = vst.msk [vmem:[%s25102_s12 + $0x280] sm:$0x1] %vm10058_vm7, %v9870_v12  ;;  %10103 = vst.msk [vmem:[%s25102_s12 + $0x2c0] sm:$0x1] %vm10058_vm7, %v9877_v30  ;;  %v11448_v21 = vcombine.high %v11446_v27, %v11446_v27 }
 0x50a   : > { %11162 = vst.msk [vmem:[%s25102_s12 + $0x2f2] sm:$0x1] %vm10058_vm7, %v10952_v7  ;;  %v11462_v11 = vrot.slane %v11446_v27, %v25067_v48  ;;  %v11469_v58 = vrot.slane %v11447_v18, %v25067_v48  ;;  %v11477_v24 = vcombine.high %v11455_v34, %v11455_v34  ;;  %11683 = vst.msk [vmem:[%s25102_s12 + $0x283] sm:$0x1] %vm10058_vm7, %v11455_v34  ;;  %v25755_v7 = vpop.f32.mrb[29].mxu0 }
 0x50b   : > { %v9894_v23 = vcombine.high %v9884_v28, %v9884_v28  ;;  %v9895_v35 = vcombine.high %v9891_v20, %v9891_v20  ;;  %10100 = vst.msk [vmem:[%s25102_s12 + $0x290] sm:$0x1] %vm10058_vm7, %v9884_v28  ;;  %10101 = vst.msk [vmem:[%s25102_s12 + $0x2a0] sm:$0x1] %vm10058_vm7, %v9892_v14  ;;  %v9419_v5 = vadd.f32 %v25592_v47, %v25225_v42 }
 0x50c   : > { %10104 = vst.msk [vmem:[%s25102_s12 + $0x2d0] sm:$0x1] %vm10058_vm7, %v9891_v20  ;;  %10105 = vst.msk [vmem:[%s25102_s12 + $0x2e0] sm:$0x1] %vm10058_vm7, %v9893_v54  ;;  %v9436_v29 = vadd.f32 %v25718_v37, %v25239_v13  ;;  %v11476_v53 = vrot.slane %v11448_v21, %v25067_v48  ;;  %v11478_v12 = vcombine.high %v11462_v11, %v11462_v11 }
 0x50d   : > { %v11479_v30 = vcombine.high %v11469_v58, %v11469_v58  ;;  %11684 = vst.msk [vmem:[%s25102_s12 + $0x293] sm:$0x1] %vm10058_vm7, %v11469_v58  ;;  %11685 = vst.msk [vmem:[%s25102_s12 + $0x2a3] sm:$0x1] %vm10058_vm7, %v11477_v24  ;;  %v9434_v42 = vadd.f32 %v25718_v37, %v25248_v0  ;;  %v9547_v13 = vmax.f32 %v9419_v5, 0.0  ;;  %v9437_v18 = vadd.f32 %v25718_v37, %v25250_v59 }
 0x50e   : > { %11687 = vst.msk [vmem:[%s25102_s12 + $0x2c3] sm:$0x1] %vm10058_vm7, %v11462_v11  ;;  %10102 = vst.msk [vmem:[%s25102_s12 + $0x2b0] sm:$0x1] %vm10058_vm7, %v9894_v23  ;;  %v9564_v27 = vmax.f32 %v9436_v29, 0.0  ;;  %v9435_v34 = vadd.f32 %v25718_v37, %v25256_v9  ;;  %v11480_v28 = vcombine.high %v11476_v53, %v11476_v53  ;;  %v25773_v20 = vadd.f32 %v25744_v44, %v25273_v60  ;;  %v25788_v23 = vpop.f32.mrb[30].mxu1 }
 0x50f   : > { %10106 = vst.msk [vmem:[%s25102_s12 + $0x2f0] sm:$0x1] %vm10058_vm7, %v9895_v35  ;;  %11686 = vst.msk [vmem:[%s25102_s12 + $0x2b3] sm:$0x1] %vm10058_vm7, %v11479_v30  ;;  %v9562_v0 = vmax.f32 %v9434_v42, 0.0  ;;  %v25777_v14 = vadd.f32 %v25744_v44, %v25283_v39  ;;  %v10376_v59 = vcombine.high %v9547_v13, %v9547_v13  ;;  %v10383_v54 = vrot.slane %v9547_v13, %v25067_v48  ;;  %v25795_v13 = vpop.f32.mrb[30].mxu0 }
 0x510   : > { %11688 = vst.msk [vmem:[%s25102_s12 + $0x2d3] sm:$0x1] %vm10058_vm7, %v11476_v53  ;;  %11689 = vst.msk [vmem:[%s25102_s12 + $0x2e3] sm:$0x1] %vm10058_vm7, %v11478_v12  ;;  %v10953_v9 = vcombine.high %v9564_v27, %v9564_v27  ;;  %v10960_v21 = vrot.slane %v9564_v27, %v25067_v48  ;;  %v25784_v24 = vmax.f32 %v9437_v18, 0.0  ;;  %v25786_v60 = vmax.f32 %v9435_v34, 0.0 }
 0x511   : > { %11690 = vst.msk [vmem:[%s25102_s12 + $0x2f3] sm:$0x1] %vm10058_vm7, %v11480_v28  ;;  %v9896_v11 = vcombine.high %v9562_v0, %v9562_v0  ;;  %v9903_v58 = vrot.slane %v9562_v0, %v25067_v48  ;;  %v10390_v39 = vrot.slane %v10376_v59, %v25067_v48  ;;  %v10391_v35 = vcombine.high %v10383_v54, %v10383_v54 }
 0x512   : > { %v10399_v5 = vrot.slane %v10383_v54, %v25067_v48  ;;  %v10967_v29 = vrot.slane %v10953_v9, %v25067_v48  ;;  %v10968_v53 = vcombine.high %v10960_v21, %v10960_v21  ;;  %v10976_v12 = vrot.slane %v10960_v21, %v25067_v48 }
 0x513   : > { %v9910_v30 = vrot.slane %v9896_v11, %v25067_v48  ;;  %v9911_v42 = vcombine.high %v9903_v58, %v9903_v58  ;;  %v10392_v27 = vcombine.high %v10390_v39, %v10390_v39  ;;  %v10406_v18 = vrot.slane %v10390_v39, %v25067_v48 }
 0x514   : > { %v10413_v34 = vrot.slane %v10391_v35, %v25067_v48  ;;  %v10421_v28 = vcombine.high %v10399_v5, %v10399_v5  ;;  %10627 = vst.msk [vmem:[%s25102_s12 + $0x281] sm:$0x1] %vm10058_vm7, %v10399_v5  ;;  %v10969_v0 = vcombine.high %v10967_v29, %v10967_v29  ;;  %v10983_v59 = vrot.slane %v10967_v29, %v25067_v48 }
 0x515   : > { %v10990_v54 = vrot.slane %v10968_v53, %v25067_v48  ;;  %v10998_v9 = vcombine.high %v10976_v12, %v10976_v12  ;;  %11163 = vst.msk [vmem:[%s25102_s12 + $0x302] sm:$0x1] %vm10058_vm7, %v10976_v12  ;;  %v10420_v21 = vrot.slane %v10392_v27, %v25067_v48  ;;  %v10422_v11 = vcombine.high %v10406_v18, %v10406_v18  ;;  %v25820_v27 = vpop.f32.mrb[31].mxu1 }
 0x516   : > { %v10423_v39 = vcombine.high %v10413_v34, %v10413_v34  ;;  %10628 = vst.msk [vmem:[%s25102_s12 + $0x291] sm:$0x1] %vm10058_vm7, %v10413_v34  ;;  %10629 = vst.msk [vmem:[%s25102_s12 + $0x2a1] sm:$0x1] %vm10058_vm7, %v10421_v28  ;;  %v9912_v35 = vcombine.high %v9910_v30, %v9910_v30  ;;  %v10997_v5 = vrot.slane %v10969_v0, %v25067_v48 }
 0x517   : > { %10631 = vst.msk [vmem:[%s25102_s12 + $0x2c1] sm:$0x1] %vm10058_vm7, %v10406_v18  ;;  %v10999_v29 = vcombine.high %v10983_v59, %v10983_v59  ;;  %v11000_v53 = vcombine.high %v10990_v54, %v10990_v54  ;;  %11164 = vst.msk [vmem:[%s25102_s12 + $0x312] sm:$0x1] %vm10058_vm7, %v10990_v54  ;;  %v9919_v12 = vrot.slane %v9903_v58, %v25067_v48  ;;  %v25843_v54 = vpop.f32.mrb[31].mxu0 }
 0x518   : > { %11165 = vst.msk [vmem:[%s25102_s12 + $0x322] sm:$0x1] %vm10058_vm7, %v10998_v9  ;;  %11167 = vst.msk [vmem:[%s25102_s12 + $0x342] sm:$0x1] %vm10058_vm7, %v10983_v59  ;;  %v10424_v18 = vcombine.high %v10420_v21, %v10420_v21  ;;  %v9926_v34 = vrot.slane %v9910_v30, %v25067_v48  ;;  %v9933_v28 = vrot.slane %v9911_v42, %v25067_v48 }
 0x519   : > { %10630 = vst.msk [vmem:[%s25102_s12 + $0x2b1] sm:$0x1] %vm10058_vm7, %v10423_v39  ;;  %10632 = vst.msk [vmem:[%s25102_s12 + $0x2d1] sm:$0x1] %vm10058_vm7, %v10420_v21  ;;  %v9940_v0 = vrot.slane %v9912_v35, %v25067_v48  ;;  %v11001_v58 = vcombine.high %v10997_v5, %v10997_v5  ;;  %v9941_v59 = vcombine.high %v9919_v12, %v9919_v12 }
 0x51a   : > { %10633 = vst.msk [vmem:[%s25102_s12 + $0x2e1] sm:$0x1] %vm10058_vm7, %v10422_v11  ;;  %11166 = vst.msk [vmem:[%s25102_s12 + $0x332] sm:$0x1] %vm10058_vm7, %v11000_v53  ;;  %v11481_v30 = vcombine.high %v25784_v24, %v25784_v24  ;;  %v11488_v42 = vrot.slane %v25784_v24, %v25067_v48  ;;  %v9942_v9 = vcombine.high %v9926_v34, %v9926_v34 }
 0x51b   : > { %11168 = vst.msk [vmem:[%s25102_s12 + $0x352] sm:$0x1] %vm10058_vm7, %v10997_v5  ;;  %11169 = vst.msk [vmem:[%s25102_s12 + $0x362] sm:$0x1] %vm10058_vm7, %v10999_v29  ;;  %v9943_v21 = vcombine.high %v9933_v28, %v9933_v28  ;;  %v9944_v11 = vcombine.high %v9940_v0, %v9940_v0  ;;  %v10425_v39 = vcombine.high %v25786_v60, %v25786_v60 }
 0x51c   : > { %10107 = vst.msk [vmem:[%s25102_s12 + $0x300] sm:$0x1] %vm10058_vm7, %v9919_v12  ;;  %10634 = vst.msk [vmem:[%s25102_s12 + $0x2f1] sm:$0x1] %vm10058_vm7, %v10424_v18  ;;  %v11495_v24 = vrot.slane %v11481_v30, %v25067_v48  ;;  %v11496_v35 = vcombine.high %v11488_v42, %v11488_v42  ;;  %v11504_v5 = vrot.slane %v11488_v42, %v25067_v48  ;;  %v9580_v12 = vmax.f32 %v25773_v20, 0.0 }
 0x51d   : > { %10108 = vst.msk [vmem:[%s25102_s12 + $0x310] sm:$0x1] %vm10058_vm7, %v9933_v28  ;;  %10111 = vst.msk [vmem:[%s25102_s12 + $0x340] sm:$0x1] %vm10058_vm7, %v9926_v34  ;;  %v10432_v29 = vrot.slane %v25786_v60, %v25067_v48  ;;  %v10439_v53 = vrot.slane %v10425_v39, %v25067_v48  ;;  %v9578_v18 = vmax.f32 %v25777_v14, 0.0  ;;  %v9453_v34 = vadd.f32 %v25744_v44, %v25285_v6 }
 0x51e   : > { %10112 = vst.msk [vmem:[%s25102_s12 + $0x350] sm:$0x1] %vm10058_vm7, %v9940_v0  ;;  %11170 = vst.msk [vmem:[%s25102_s12 + $0x372] sm:$0x1] %vm10058_vm7, %v11001_v58  ;;  %v11497_v28 = vcombine.high %v11495_v24, %v11495_v24  ;;  %v11511_v60 = vrot.slane %v11495_v24, %v25067_v48  ;;  %v11518_v0 = vrot.slane %v11496_v35, %v25067_v48 }
 0x51f   : > { %10109 = vst.msk [vmem:[%s25102_s12 + $0x320] sm:$0x1] %vm10058_vm7, %v9941_v59  ;;  %10110 = vst.msk [vmem:[%s25102_s12 + $0x330] sm:$0x1] %vm10058_vm7, %v9943_v21  ;;  %v11526_v58 = vcombine.high %v11504_v5, %v11504_v5  ;;  %v10440_v59 = vcombine.high %v10432_v29, %v10432_v29  ;;  %v10441_v30 = vcombine.high %v10439_v53, %v10439_v53 }
 0x520   : > { %10113 = vst.msk [vmem:[%s25102_s12 + $0x360] sm:$0x1] %vm10058_vm7, %v9942_v9  ;;  %10114 = vst.msk [vmem:[%s25102_s12 + $0x370] sm:$0x1] %vm10058_vm7, %v9944_v11  ;;  %v10448_v20 = vrot.slane %v10432_v29, %v25067_v48  ;;  %v10455_v14 = vrot.slane %v10439_v53, %v25067_v48  ;;  %v11525_v6 = vrot.slane %v11497_v28, %v25067_v48 }
 0x521   : > { %11691 = vst.msk [vmem:[%s25102_s12 + $0x303] sm:$0x1] %vm10058_vm7, %v11504_v5  ;;  %v11527_v42 = vcombine.high %v11511_v60, %v11511_v60  ;;  %v11528_v9 = vcombine.high %v11518_v0, %v11518_v0  ;;  %11692 = vst.msk [vmem:[%s25102_s12 + $0x313] sm:$0x1] %vm10058_vm7, %v11518_v0  ;;  %v11002_v21 = vcombine.high %v9580_v12, %v9580_v12 }
 0x522   : > { %11693 = vst.msk [vmem:[%s25102_s12 + $0x323] sm:$0x1] %vm10058_vm7, %v11526_v58  ;;  %11695 = vst.msk [vmem:[%s25102_s12 + $0x343] sm:$0x1] %vm10058_vm7, %v11511_v60  ;;  %v10462_v11 = vrot.slane %v10440_v59, %v25067_v48  ;;  %v10469_v39 = vrot.slane %v10441_v30, %v25067_v48  ;;  %v10470_v24 = vcombine.high %v10448_v20, %v10448_v20  ;;  %v9581_v59 = vmax.f32 %v9453_v34, 0.0 }
 0x523   : > { %v10471_v35 = vcombine.high %v10455_v14, %v10455_v14  ;;  %10635 = vst.msk [vmem:[%s25102_s12 + $0x301] sm:$0x1] %vm10058_vm7, %v10448_v20  ;;  %10639 = vst.msk [vmem:[%s25102_s12 + $0x341] sm:$0x1] %vm10058_vm7, %v10455_v14  ;;  %v11529_v5 = vcombine.high %v11525_v6, %v11525_v6  ;;  %v11009_v29 = vrot.slane %v9580_v12, %v25067_v48 }
 0x524   : > { %11694 = vst.msk [vmem:[%s25102_s12 + $0x333] sm:$0x1] %vm10058_vm7, %v11528_v9  ;;  %11696 = vst.msk [vmem:[%s25102_s12 + $0x353] sm:$0x1] %vm10058_vm7, %v11525_v6  ;;  %v11016_v53 = vrot.slane %v11002_v21, %v25067_v48  ;;  %v9945_v28 = vcombine.high %v9578_v18, %v9578_v18  ;;  %v10472_v60 = vcombine.high %v10462_v11, %v10462_v11  ;;  %v25914_v6 = vpop.f32.mrb[32].mxu1  ;;  %v25922_v21 = vpop.f32.mrb[32].mxu0 }
 0x525   : > { %11697 = vst.msk [vmem:[%s25102_s12 + $0x363] sm:$0x1] %vm10058_vm7, %v11527_v42  ;;  %v10473_v0 = vcombine.high %v10469_v39, %v10469_v39  ;;  %10636 = vst.msk [vmem:[%s25102_s12 + $0x311] sm:$0x1] %vm10058_vm7, %v10462_v11  ;;  %v9952_v58 = vrot.slane %v9578_v18, %v25067_v48  ;;  %v11017_v12 = vcombine.high %v11009_v29, %v11009_v29 }
 0x526   : > { %10637 = vst.msk [vmem:[%s25102_s12 + $0x321] sm:$0x1] %vm10058_vm7, %v10470_v24  ;;  %10640 = vst.msk [vmem:[%s25102_s12 + $0x351] sm:$0x1] %vm10058_vm7, %v10469_v39  ;;  %v11018_v30 = vcombine.high %v11016_v53, %v11016_v53  ;;  %v11025_v20 = vrot.slane %v11009_v29, %v25067_v48  ;;  %v11032_v14 = vrot.slane %v11016_v53, %v25067_v48 }
 0x527   : > { %10641 = vst.msk [vmem:[%s25102_s12 + $0x361] sm:$0x1] %vm10058_vm7, %v10471_v35  ;;  %11698 = vst.msk [vmem:[%s25102_s12 + $0x373] sm:$0x1] %vm10058_vm7, %v11529_v5  ;;  %v9959_v18 = vrot.slane %v9945_v28, %v25067_v48  ;;  %v9960_v34 = vcombine.high %v9952_v58, %v9952_v58  ;;  %v9968_v42 = vrot.slane %v9952_v58, %v25067_v48 }
 0x528   : > { %10638 = vst.msk [vmem:[%s25102_s12 + $0x331] sm:$0x1] %vm10058_vm7, %v10472_v60  ;;  %10642 = vst.msk [vmem:[%s25102_s12 + $0x371] sm:$0x1] %vm10058_vm7, %v10473_v0  ;;  %v11530_v9 = vcombine.high %v9581_v59, %v9581_v59  ;;  %v11039_v11 = vrot.slane %v11017_v12, %v25067_v48  ;;  %v11046_v39 = vrot.slane %v11018_v30, %v25067_v48  ;;  %v25934_v60 = vpop.f32.mrb[33].mxu1 }
 0x529   : > { %v11047_v24 = vcombine.high %v11025_v20, %v11025_v20  ;;  %v11048_v35 = vcombine.high %v11032_v14, %v11032_v14  ;;  %11171 = vst.msk [vmem:[%s25102_s12 + $0x382] sm:$0x1] %vm10058_vm7, %v11025_v20  ;;  %11175 = vst.msk [vmem:[%s25102_s12 + $0x3c2] sm:$0x1] %vm10058_vm7, %v11032_v14  ;;  %v9961_v5 = vcombine.high %v9959_v18, %v9959_v18 }
 0x52a   : > { %v9975_v29 = vrot.slane %v9959_v18, %v25067_v48  ;;  %v9982_v53 = vrot.slane %v9960_v34, %v25067_v48  ;;  %v9990_v28 = vcombine.high %v9968_v42, %v9968_v42  ;;  %10115 = vst.msk [vmem:[%s25102_s12 + $0x380] sm:$0x1] %vm10058_vm7, %v9968_v42  ;;  %v11049_v0 = vcombine.high %v11039_v11, %v11039_v11 }
 0x52b   : > { %v11050_v58 = vcombine.high %v11046_v39, %v11046_v39  ;;  %11172 = vst.msk [vmem:[%s25102_s12 + $0x392] sm:$0x1] %vm10058_vm7, %v11039_v11  ;;  %11173 = vst.msk [vmem:[%s25102_s12 + $0x3a2] sm:$0x1] %vm10058_vm7, %v11047_v24  ;;  %v11537_v12 = vrot.slane %v9581_v59, %v25067_v48  ;;  %v11544_v30 = vrot.slane %v11530_v9, %v25067_v48 }
 0x52c   : > { %11176 = vst.msk [vmem:[%s25102_s12 + $0x3d2] sm:$0x1] %vm10058_vm7, %v11046_v39  ;;  %11177 = vst.msk [vmem:[%s25102_s12 + $0x3e2] sm:$0x1] %vm10058_vm7, %v11048_v35  ;;  %v9989_v20 = vrot.slane %v9961_v5, %v25067_v48  ;;  %v9991_v14 = vcombine.high %v9975_v29, %v9975_v29  ;;  %v9992_v18 = vcombine.high %v9982_v53, %v9982_v53 }
 0x52d   : > { %10116 = vst.msk [vmem:[%s25102_s12 + $0x390] sm:$0x1] %vm10058_vm7, %v9982_v53  ;;  %10117 = vst.msk [vmem:[%s25102_s12 + $0x3a0] sm:$0x1] %vm10058_vm7, %v9990_v28  ;;  %v9451_v34 = vadd.f32 %v25744_v44, %v25298_v36  ;;  %v11545_v59 = vcombine.high %v11537_v12, %v11537_v12  ;;  %v11546_v42 = vcombine.high %v11544_v30, %v11544_v30 }
 0x52e   : > { %10119 = vst.msk [vmem:[%s25102_s12 + $0x3c0] sm:$0x1] %vm10058_vm7, %v9975_v29  ;;  %11174 = vst.msk [vmem:[%s25102_s12 + $0x3b2] sm:$0x1] %vm10058_vm7, %v11049_v0  ;;  %v11553_v9 = vrot.slane %v11537_v12, %v25067_v48  ;;  %v11560_v11 = vrot.slane %v11544_v30, %v25067_v48  ;;  %v9993_v39 = vcombine.high %v9989_v20, %v9989_v20  ;;  %v25977_v0 = vpop.f32.mrb[33].mxu0 }
 0x52f   : > { %11178 = vst.msk [vmem:[%s25102_s12 + $0x3f2] sm:$0x1] %vm10058_vm7, %v11050_v58  ;;  %10118 = vst.msk [vmem:[%s25102_s12 + $0x3b0] sm:$0x1] %vm10058_vm7, %v9992_v18  ;;  %v9579_v36 = vmax.f32 %v9451_v34, 0.0  ;;  %v9344_v24 = vadd.f32 %v25063_v63, %v25312_v55  ;;  %v9342_v35 = vadd.f32 %v25063_v63, %v25323_v15  ;;  %v11567_v5 = vrot.slane %v11545_v59, %v25067_v48 }
 0x530   : > { %10120 = vst.msk [vmem:[%s25102_s12 + $0x3d0] sm:$0x1] %vm10058_vm7, %v9989_v20  ;;  %10121 = vst.msk [vmem:[%s25102_s12 + $0x3e0] sm:$0x1] %vm10058_vm7, %v9991_v14  ;;  %v11574_v29 = vrot.slane %v11546_v42, %v25067_v48  ;;  %v11575_v53 = vcombine.high %v11553_v9, %v11553_v9  ;;  %v11576_v28 = vcombine.high %v11560_v11, %v11560_v11 }
 0x531   : > { %11699 = vst.msk [vmem:[%s25102_s12 + $0x383] sm:$0x1] %vm10058_vm7, %v11553_v9  ;;  %11703 = vst.msk [vmem:[%s25102_s12 + $0x3c3] sm:$0x1] %vm10058_vm7, %v11560_v11  ;;  %v10474_v55 = vcombine.high %v9579_v36, %v9579_v36  ;;  %v10481_v15 = vrot.slane %v9579_v36, %v25067_v48  ;;  %v9472_v58 = vmax.f32 %v9344_v24, 0.0  ;;  %v9470_v12 = vmax.f32 %v9342_v35, 0.0 }
 0x532   : > { %10122 = vst.msk [vmem:[%s25102_s12 + $0x3f0] sm:$0x1] %vm10058_vm7, %v9993_v39  ;;  %v11577_v30 = vcombine.high %v11567_v5, %v11567_v5  ;;  %v11578_v20 = vcombine.high %v11574_v29, %v11574_v29  ;;  %11700 = vst.msk [vmem:[%s25102_s12 + $0x393] sm:$0x1] %vm10058_vm7, %v11567_v5  ;;  %v9345_v14 = vadd.f32 %v25063_v63, %v25325_v8  ;;  %v26004_v36 = vpop.f32.mrb[34].mxu1 }
 0x533   : > { %11701 = vst.msk [vmem:[%s25102_s12 + $0x3a3] sm:$0x1] %vm10058_vm7, %v11575_v53  ;;  %11704 = vst.msk [vmem:[%s25102_s12 + $0x3d3] sm:$0x1] %vm10058_vm7, %v11574_v29  ;;  %v25994_v18 = vadd.f32 %v25063_v63, %v25331_v57  ;;  %v10488_v34 = vrot.slane %v10474_v55, %v25067_v48  ;;  %v10489_v59 = vcombine.high %v10481_v15, %v10481_v15 }
 0x534   : > { %11705 = vst.msk [vmem:[%s25102_s12 + $0x3e3] sm:$0x1] %vm10058_vm7, %v11576_v28  ;;  %v10497_v42 = vrot.slane %v10481_v15, %v25067_v48  ;;  %v12771_v9 = vcombine.high %v9472_v58, %v9472_v58  ;;  %11702 = vst.msk [vmem:[%s25102_s12 + $0x3b3] sm:$0x1] %vm10058_vm7, %v11577_v30  ;;  %v12778_v11 = vrot.slane %v9472_v58, %v25067_v48  ;;  %v9473_v57 = vmax.f32 %v9345_v14, 0.0 }
 0x535   : > { %11706 = vst.msk [vmem:[%s25102_s12 + $0x3f3] sm:$0x1] %vm10058_vm7, %v11578_v20  ;;  %v11715_v39 = vcombine.high %v9470_v12, %v9470_v12  ;;  %v11722_v8 = vrot.slane %v9470_v12, %v25067_v48  ;;  %v10490_v24 = vcombine.high %v10488_v34, %v10488_v34  ;;  %v10504_v35 = vrot.slane %v10488_v34, %v25067_v48 }
 0x536   : > { %v10511_v5 = vrot.slane %v10489_v59, %v25067_v48  ;;  %v10519_v29 = vcombine.high %v10497_v42, %v10497_v42  ;;  %10643 = vst.msk [vmem:[%s25102_s12 + $0x381] sm:$0x1] %vm10058_vm7, %v10497_v42  ;;  %v12785_v53 = vrot.slane %v12771_v9, %v25067_v48  ;;  %v12786_v28 = vcombine.high %v12778_v11, %v12778_v11  ;;  %v26024_v9 = vpop.f32.mrb[34].mxu0 }
 0x537   : > { %v12794_v55 = vrot.slane %v12778_v11, %v25067_v48  ;;  %v11729_v15 = vrot.slane %v11715_v39, %v25067_v48  ;;  %v10518_v58 = vrot.slane %v10490_v24, %v25067_v48  ;;  %v10520_v12 = vcombine.high %v10504_v35, %v10504_v35  ;;  %10647 = vst.msk [vmem:[%s25102_s12 + $0x3c1] sm:$0x1] %vm10058_vm7, %v10504_v35  ;;  %v26026_v11 = vpop.f32.mrb[35].mxu1 }
 0x538   : > { %v10521_v30 = vcombine.high %v10511_v5, %v10511_v5  ;;  %10644 = vst.msk [vmem:[%s25102_s12 + $0x391] sm:$0x1] %vm10058_vm7, %v10511_v5  ;;  %10645 = vst.msk [vmem:[%s25102_s12 + $0x3a1] sm:$0x1] %vm10058_vm7, %v10519_v29  ;;  %v11730_v20 = vcombine.high %v11722_v8, %v11722_v8  ;;  %v12787_v14 = vcombine.high %v12785_v53, %v12785_v53 }
 0x539   : > { %v12801_v34 = vrot.slane %v12785_v53, %v25067_v48  ;;  %v12808_v59 = vrot.slane %v12786_v28, %v25067_v48  ;;  %v12816_v42 = vcombine.high %v12794_v55, %v12794_v55  ;;  %13227 = vst.msk [vmem:[%s25102_s12 + $0x6] sm:$0x1] %vm10058_vm7, %v12794_v55  ;;  %v10522_v39 = vcombine.high %v10518_v58, %v10518_v58 }
 0x53a   : > { %10646 = vst.msk [vmem:[%s25102_s12 + $0x3b1] sm:$0x1] %vm10058_vm7, %v10521_v30  ;;  %10648 = vst.msk [vmem:[%s25102_s12 + $0x3d1] sm:$0x1] %vm10058_vm7, %v10518_v58  ;;  %v11731_v24 = vcombine.high %v11729_v15, %v11729_v15  ;;  %v11738_v35 = vrot.slane %v11722_v8, %v25067_v48  ;;  %v11745_v5 = vrot.slane %v11729_v15, %v25067_v48 }
 0x53b   : > { %10649 = vst.msk [vmem:[%s25102_s12 + $0x3e1] sm:$0x1] %vm10058_vm7, %v10520_v12  ;;  %v12815_v29 = vrot.slane %v12787_v14, %v25067_v48  ;;  %v12817_v53 = vcombine.high %v12801_v34, %v12801_v34  ;;  %v12818_v28 = vcombine.high %v12808_v59, %v12808_v59  ;;  %13228 = vst.msk [vmem:[%s25102_s12 + $0x16] sm:$0x1] %vm10058_vm7, %v12808_v59 }
 0x53c   : > { %13229 = vst.msk [vmem:[%s25102_s12 + $0x26] sm:$0x1] %vm10058_vm7, %v12816_v42  ;;  %13231 = vst.msk [vmem:[%s25102_s12 + $0x46] sm:$0x1] %vm10058_vm7, %v12801_v34  ;;  %v11752_v55 = vrot.slane %v11730_v20, %v25067_v48  ;;  %v11759_v8 = vrot.slane %v11731_v24, %v25067_v48  ;;  %v11760_v15 = vcombine.high %v11738_v35, %v11738_v35  ;;  %v9471_v34 = vmax.f32 %v25994_v18, 0.0 }
 0x53d   : > { %10650 = vst.msk [vmem:[%s25102_s12 + $0x3f1] sm:$0x1] %vm10058_vm7, %v10522_v39  ;;  %v11761_v58 = vcombine.high %v11745_v5, %v11745_v5  ;;  %12171 = vst.msk [vmem:[%s25102_s12 + $0x4] sm:$0x1] %vm10058_vm7, %v11738_v35  ;;  %v13299_v12 = vcombine.high %v9473_v57, %v9473_v57  ;;  %v12819_v30 = vcombine.high %v12815_v29, %v12815_v29 }
 0x53e   : > { %12175 = vst.msk [vmem:[%s25102_s12 + $0x44] sm:$0x1] %vm10058_vm7, %v11745_v5  ;;  %13230 = vst.msk [vmem:[%s25102_s12 + $0x36] sm:$0x1] %vm10058_vm7, %v12818_v28  ;;  %v11762_v20 = vcombine.high %v11752_v55, %v11752_v55  ;;  %v13306_v14 = vrot.slane %v9473_v57, %v25067_v48  ;;  %v11763_v59 = vcombine.high %v11759_v8, %v11759_v8 }
 0x53f   : > { %13232 = vst.msk [vmem:[%s25102_s12 + $0x56] sm:$0x1] %vm10058_vm7, %v12815_v29  ;;  %13233 = vst.msk [vmem:[%s25102_s12 + $0x66] sm:$0x1] %vm10058_vm7, %v12817_v53  ;;  %v13313_v42 = vrot.slane %v13299_v12, %v25067_v48  ;;  %v9360_v39 = vadd.f32 %v25071_v49, %v25344_v31  ;;  %v9358_v24 = vadd.f32 %v25071_v49, %v25351_v33  ;;  %v26078_v29 = vpop.f32.mrb[35].mxu0 }
 0x540   : > { %12172 = vst.msk [vmem:[%s25102_s12 + $0x14] sm:$0x1] %vm10058_vm7, %v11752_v55  ;;  %12173 = vst.msk [vmem:[%s25102_s12 + $0x24] sm:$0x1] %vm10058_vm7, %v11760_v15  ;;  %v13314_v18 = vcombine.high %v13306_v14, %v13306_v14  ;;  %v13322_v57 = vrot.slane %v13306_v14, %v25067_v48  ;;  %v12243_v35 = vcombine.high %v9471_v34, %v9471_v34 }
 0x541   : > { %12176 = vst.msk [vmem:[%s25102_s12 + $0x54] sm:$0x1] %vm10058_vm7, %v11759_v8  ;;  %12177 = vst.msk [vmem:[%s25102_s12 + $0x64] sm:$0x1] %vm10058_vm7, %v11761_v58  ;;  %v12250_v5 = vrot.slane %v9471_v34, %v25067_v48  ;;  %v13315_v31 = vcombine.high %v13313_v42, %v13313_v42  ;;  %v13329_v33 = vrot.slane %v13313_v42, %v25067_v48  ;;  %v9488_v53 = vmax.f32 %v9360_v39, 0.0 }
 0x542   : > { %13234 = vst.msk [vmem:[%s25102_s12 + $0x76] sm:$0x1] %vm10058_vm7, %v12819_v30  ;;  %12174 = vst.msk [vmem:[%s25102_s12 + $0x34] sm:$0x1] %vm10058_vm7, %v11762_v20  ;;  %v9486_v28 = vmax.f32 %v9358_v24, 0.0  ;;  %v13336_v55 = vrot.slane %v13314_v18, %v25067_v48  ;;  %v13344_v8 = vcombine.high %v13322_v57, %v13322_v57  ;;  %v12257_v15 = vrot.slane %v12243_v35, %v25067_v48 }
 0x543   : > { %12178 = vst.msk [vmem:[%s25102_s12 + $0x74] sm:$0x1] %vm10058_vm7, %v11763_v59  ;;  %13755 = vst.msk [vmem:[%s25102_s12 + $0x7] sm:$0x1] %vm10058_vm7, %v13322_v57  ;;  %v12258_v58 = vcombine.high %v12250_v5, %v12250_v5  ;;  %v13343_v12 = vrot.slane %v13315_v31, %v25067_v48  ;;  %v13345_v30 = vcombine.high %v13329_v33, %v13329_v33 }
 0x544   : > { %13759 = vst.msk [vmem:[%s25102_s12 + $0x47] sm:$0x1] %vm10058_vm7, %v13329_v33  ;;  %v12266_v20 = vrot.slane %v12250_v5, %v25067_v48  ;;  %v12820_v14 = vcombine.high %v9488_v53, %v9488_v53  ;;  %v13346_v34 = vcombine.high %v13336_v55, %v13336_v55  ;;  %13756 = vst.msk [vmem:[%s25102_s12 + $0x17] sm:$0x1] %vm10058_vm7, %v13336_v55 }
 0x545   : > { %13757 = vst.msk [vmem:[%s25102_s12 + $0x27] sm:$0x1] %vm10058_vm7, %v13344_v8  ;;  %v12259_v59 = vcombine.high %v12257_v15, %v12257_v15  ;;  %v12273_v42 = vrot.slane %v12257_v15, %v25067_v48  ;;  %v12280_v39 = vrot.slane %v12258_v58, %v25067_v48  ;;  %v13347_v24 = vcombine.high %v13343_v12, %v13343_v12  ;;  %v26112_v8 = vpop.f32.mrb[36].mxu1 }
 0x546   : > { %13760 = vst.msk [vmem:[%s25102_s12 + $0x57] sm:$0x1] %vm10058_vm7, %v13343_v12  ;;  %13761 = vst.msk [vmem:[%s25102_s12 + $0x67] sm:$0x1] %vm10058_vm7, %v13345_v30  ;;  %v12288_v18 = vcombine.high %v12266_v20, %v12266_v20  ;;  %v12827_v57 = vrot.slane %v9488_v53, %v25067_v48  ;;  %v12834_v35 = vrot.slane %v12820_v14, %v25067_v48 }
 0x547   : > { %12699 = vst.msk [vmem:[%s25102_s12 + $0x5] sm:$0x1] %vm10058_vm7, %v12266_v20  ;;  %13758 = vst.msk [vmem:[%s25102_s12 + $0x37] sm:$0x1] %vm10058_vm7, %v13346_v34  ;;  %v12287_v5 = vrot.slane %v12259_v59, %v25067_v48  ;;  %v12289_v31 = vcombine.high %v12273_v42, %v12273_v42  ;;  %v12290_v33 = vcombine.high %v12280_v39, %v12280_v39  ;;  %v26130_v59 = vpop.f32.mrb[36].mxu0 }
 0x548   : > { %12700 = vst.msk [vmem:[%s25102_s12 + $0x15] sm:$0x1] %vm10058_vm7, %v12280_v39  ;;  %12703 = vst.msk [vmem:[%s25102_s12 + $0x45] sm:$0x1] %vm10058_vm7, %v12273_v42  ;;  %v11764_v55 = vcombine.high %v9486_v28, %v9486_v28  ;;  %v12835_v53 = vcombine.high %v12827_v57, %v12827_v57  ;;  %v12836_v15 = vcombine.high %v12834_v35, %v12834_v35 }
 0x549   : > { %13762 = vst.msk [vmem:[%s25102_s12 + $0x77] sm:$0x1] %vm10058_vm7, %v13347_v24  ;;  %12701 = vst.msk [vmem:[%s25102_s12 + $0x25] sm:$0x1] %vm10058_vm7, %v12288_v18  ;;  %v12843_v58 = vrot.slane %v12827_v57, %v25067_v48  ;;  %v12850_v12 = vrot.slane %v12834_v35, %v25067_v48  ;;  %v12291_v30 = vcombine.high %v12287_v5, %v12287_v5 }
 0x54a   : > { %12702 = vst.msk [vmem:[%s25102_s12 + $0x35] sm:$0x1] %vm10058_vm7, %v12290_v33  ;;  %12704 = vst.msk [vmem:[%s25102_s12 + $0x55] sm:$0x1] %vm10058_vm7, %v12287_v5  ;;  %v11771_v20 = vrot.slane %v9486_v28, %v25067_v48  ;;  %v11778_v14 = vrot.slane %v11764_v55, %v25067_v48  ;;  %v9361_v34 = vadd.f32 %v25071_v49, %v25353_v10  ;;  %v26142_v5 = vpop.f32.mrb[37].mxu1 }
 0x54b   : > { %12705 = vst.msk [vmem:[%s25102_s12 + $0x65] sm:$0x1] %vm10058_vm7, %v12289_v31  ;;  %v12857_v42 = vrot.slane %v12835_v53, %v25067_v48  ;;  %v12864_v39 = vrot.slane %v12836_v15, %v25067_v48  ;;  %v12865_v24 = vcombine.high %v12843_v58, %v12843_v58  ;;  %v12866_v18 = vcombine.high %v12850_v12, %v12850_v12 }
 0x54c   : > { %13235 = vst.msk [vmem:[%s25102_s12 + $0x86] sm:$0x1] %vm10058_vm7, %v12843_v58  ;;  %13239 = vst.msk [vmem:[%s25102_s12 + $0xc6] sm:$0x1] %vm10058_vm7, %v12850_v12  ;;  %v11779_v28 = vcombine.high %v11771_v20, %v11771_v20  ;;  %v11780_v10 = vcombine.high %v11778_v14, %v11778_v14  ;;  %v11787_v57 = vrot.slane %v11771_v20, %v25067_v48  ;;  %v9489_v55 = vmax.f32 %v9361_v34, 0.0 }
 0x54d   : > { %12706 = vst.msk [vmem:[%s25102_s12 + $0x75] sm:$0x1] %vm10058_vm7, %v12291_v30  ;;  %v11794_v35 = vrot.slane %v11778_v14, %v25067_v48  ;;  %v12867_v31 = vcombine.high %v12857_v42, %v12857_v42  ;;  %v12868_v33 = vcombine.high %v12864_v39, %v12864_v39  ;;  %13236 = vst.msk [vmem:[%s25102_s12 + $0x96] sm:$0x1] %vm10058_vm7, %v12857_v42 }
 0x54e   : > { %13237 = vst.msk [vmem:[%s25102_s12 + $0xa6] sm:$0x1] %vm10058_vm7, %v12865_v24  ;;  %13240 = vst.msk [vmem:[%s25102_s12 + $0xd6] sm:$0x1] %vm10058_vm7, %v12864_v39  ;;  %v9359_v53 = vadd.f32 %v25071_v49, %v25361_v45  ;;  %v11801_v15 = vrot.slane %v11779_v28, %v25067_v48  ;;  %v11808_v58 = vrot.slane %v11780_v10, %v25067_v48 }
 0x54f   : > { %13241 = vst.msk [vmem:[%s25102_s12 + $0xe6] sm:$0x1] %vm10058_vm7, %v12866_v18  ;;  %v11809_v12 = vcombine.high %v11787_v57, %v11787_v57  ;;  %v11810_v30 = vcombine.high %v11794_v35, %v11794_v35  ;;  %12179 = vst.msk [vmem:[%s25102_s12 + $0x84] sm:$0x1] %vm10058_vm7, %v11787_v57  ;;  %v13348_v20 = vcombine.high %v9489_v55, %v9489_v55 }
 0x550   : > { %12183 = vst.msk [vmem:[%s25102_s12 + $0xc4] sm:$0x1] %vm10058_vm7, %v11794_v35  ;;  %13238 = vst.msk [vmem:[%s25102_s12 + $0xb6] sm:$0x1] %vm10058_vm7, %v12867_v31  ;;  %v13355_v45 = vrot.slane %v9489_v55, %v25067_v48  ;;  %v9487_v14 = vmax.f32 %v9359_v53, 0.0  ;;  %v9376_v34 = vadd.f32 %v25264_v19, %v25377_v3  ;;  %v11811_v42 = vcombine.high %v11801_v15, %v11801_v15 }
 0x551   : > { %13242 = vst.msk [vmem:[%s25102_s12 + $0xf6] sm:$0x1] %vm10058_vm7, %v12868_v33  ;;  %v11812_v39 = vcombine.high %v11808_v58, %v11808_v58  ;;  %12180 = vst.msk [vmem:[%s25102_s12 + $0x94] sm:$0x1] %vm10058_vm7, %v11801_v15  ;;  %v9374_v24 = vadd.f32 %v25264_v19, %v25386_v2  ;;  %v9377_v18 = vadd.f32 %v25264_v19, %v25388_v40  ;;  %v26188_v40 = vpop.f32.mrb[37].mxu0 }
 0x552   : > { %12181 = vst.msk [vmem:[%s25102_s12 + $0xa4] sm:$0x1] %vm10058_vm7, %v11809_v12  ;;  %12184 = vst.msk [vmem:[%s25102_s12 + $0xd4] sm:$0x1] %vm10058_vm7, %v11808_v58  ;;  %v13362_v28 = vrot.slane %v13348_v20, %v25067_v48  ;;  %v13363_v3 = vcombine.high %v13355_v45, %v13355_v45  ;;  %v13371_v10 = vrot.slane %v13355_v45, %v25067_v48  ;;  %v9504_v31 = vmax.f32 %v9376_v34, 0.0 }
 0x553   : > { %12185 = vst.msk [vmem:[%s25102_s12 + $0xe4] sm:$0x1] %vm10058_vm7, %v11810_v30  ;;  %v12292_v57 = vcombine.high %v9487_v14, %v9487_v14  ;;  %12182 = vst.msk [vmem:[%s25102_s12 + $0xb4] sm:$0x1] %vm10058_vm7, %v11811_v42  ;;  %v12299_v35 = vrot.slane %v9487_v14, %v25067_v48  ;;  %v9502_v33 = vmax.f32 %v9374_v24, 0.0  ;;  %v26186_v2 = vmax.f32 %v9377_v18, 0.0 }
 0x554   : > { %12186 = vst.msk [vmem:[%s25102_s12 + $0xf4] sm:$0x1] %vm10058_vm7, %v11812_v39  ;;  %v13364_v55 = vcombine.high %v13362_v28, %v13362_v28  ;;  %v13378_v53 = vrot.slane %v13362_v28, %v25067_v48  ;;  %v13385_v15 = vrot.slane %v13363_v3, %v25067_v48  ;;  %v13393_v58 = vcombine.high %v13371_v10, %v13371_v10 }
 0x555   : > { %13763 = vst.msk [vmem:[%s25102_s12 + $0x87] sm:$0x1] %vm10058_vm7, %v13371_v10  ;;  %v12306_v12 = vrot.slane %v12292_v57, %v25067_v48  ;;  %v12307_v30 = vcombine.high %v12299_v35, %v12299_v35  ;;  %v12315_v20 = vrot.slane %v12299_v35, %v25067_v48  ;;  %v12869_v45 = vcombine.high %v9504_v31, %v9504_v31  ;;  %v26208_v10 = vpop.f32.mrb[38].mxu1 }
 0x556   : > { %v13392_v14 = vrot.slane %v13364_v55, %v25067_v48  ;;  %v13394_v34 = vcombine.high %v13378_v53, %v13378_v53  ;;  %v13395_v42 = vcombine.high %v13385_v15, %v13385_v15  ;;  %13764 = vst.msk [vmem:[%s25102_s12 + $0x97] sm:$0x1] %vm10058_vm7, %v13385_v15  ;;  %13765 = vst.msk [vmem:[%s25102_s12 + $0xa7] sm:$0x1] %vm10058_vm7, %v13393_v58 }
 0x557   : > { %13767 = vst.msk [vmem:[%s25102_s12 + $0xc7] sm:$0x1] %vm10058_vm7, %v13378_v53  ;;  %v12876_v39 = vrot.slane %v9504_v31, %v25067_v48  ;;  %v12308_v24 = vcombine.high %v12306_v12, %v12306_v12  ;;  %v12322_v18 = vrot.slane %v12306_v12, %v25067_v48  ;;  %v12329_v28 = vrot.slane %v12307_v30, %v25067_v48 }
 0x558   : > { %v12337_v3 = vcombine.high %v12315_v20, %v12315_v20  ;;  %12707 = vst.msk [vmem:[%s25102_s12 + $0x85] sm:$0x1] %vm10058_vm7, %v12315_v20  ;;  %v13396_v57 = vcombine.high %v13392_v14, %v13392_v14  ;;  %13766 = vst.msk [vmem:[%s25102_s12 + $0xb7] sm:$0x1] %vm10058_vm7, %v13395_v42  ;;  %v12883_v35 = vrot.slane %v12869_v45, %v25067_v48 }
 0x559   : > { %13768 = vst.msk [vmem:[%s25102_s12 + $0xd7] sm:$0x1] %vm10058_vm7, %v13392_v14  ;;  %13769 = vst.msk [vmem:[%s25102_s12 + $0xe7] sm:$0x1] %vm10058_vm7, %v13394_v34  ;;  %v12884_v31 = vcombine.high %v12876_v39, %v12876_v39  ;;  %v12892_v55 = vrot.slane %v12876_v39, %v25067_v48  ;;  %v12336_v53 = vrot.slane %v12308_v24, %v25067_v48  ;;  %v26231_v34 = vpop.f32.mrb[38].mxu0 }
 0x55a   : > { %v12338_v15 = vcombine.high %v12322_v18, %v12322_v18  ;;  %v12339_v58 = vcombine.high %v12329_v28, %v12329_v28  ;;  %12708 = vst.msk [vmem:[%s25102_s12 + $0x95] sm:$0x1] %vm10058_vm7, %v12329_v28  ;;  %12709 = vst.msk [vmem:[%s25102_s12 + $0xa5] sm:$0x1] %vm10058_vm7, %v12337_v3  ;;  %v11813_v12 = vcombine.high %v9502_v33, %v9502_v33 }
 0x55b   : > { %12711 = vst.msk [vmem:[%s25102_s12 + $0xc5] sm:$0x1] %vm10058_vm7, %v12322_v18  ;;  %13770 = vst.msk [vmem:[%s25102_s12 + $0xf7] sm:$0x1] %vm10058_vm7, %v13396_v57  ;;  %v12885_v30 = vcombine.high %v12883_v35, %v12883_v35  ;;  %v12899_v20 = vrot.slane %v12883_v35, %v25067_v48  ;;  %v12906_v45 = vrot.slane %v12884_v31, %v25067_v48  ;;  %v26252_v35 = vpop.f32.mrb[39].mxu1 }
 0x55c   : > { %v12914_v14 = vcombine.high %v12892_v55, %v12892_v55  ;;  %13243 = vst.msk [vmem:[%s25102_s12 + $0x106] sm:$0x1] %vm10058_vm7, %v12892_v55  ;;  %v12340_v42 = vcombine.high %v12336_v53, %v12336_v53  ;;  %12710 = vst.msk [vmem:[%s25102_s12 + $0xb5] sm:$0x1] %vm10058_vm7, %v12339_v58  ;;  %v11820_v39 = vrot.slane %v9502_v33, %v25067_v48 }
 0x55d   : > { %12712 = vst.msk [vmem:[%s25102_s12 + $0xd5] sm:$0x1] %vm10058_vm7, %v12336_v53  ;;  %12713 = vst.msk [vmem:[%s25102_s12 + $0xe5] sm:$0x1] %vm10058_vm7, %v12338_v15  ;;  %v11827_v24 = vrot.slane %v11813_v12, %v25067_v48  ;;  %v13397_v18 = vcombine.high %v26186_v2, %v26186_v2  ;;  %v12913_v28 = vrot.slane %v12885_v30, %v25067_v48 }
 0x55e   : > { %v12915_v3 = vcombine.high %v12899_v20, %v12899_v20  ;;  %v12916_v57 = vcombine.high %v12906_v45, %v12906_v45  ;;  %13244 = vst.msk [vmem:[%s25102_s12 + $0x116] sm:$0x1] %vm10058_vm7, %v12906_v45  ;;  %13245 = vst.msk [vmem:[%s25102_s12 + $0x126] sm:$0x1] %vm10058_vm7, %v12914_v14  ;;  %v13404_v33 = vrot.slane %v26186_v2, %v25067_v48 }
 0x55f   : > { %13247 = vst.msk [vmem:[%s25102_s12 + $0x146] sm:$0x1] %vm10058_vm7, %v12899_v20  ;;  %12714 = vst.msk [vmem:[%s25102_s12 + $0xf5] sm:$0x1] %vm10058_vm7, %v12340_v42  ;;  %v11828_v31 = vcombine.high %v11820_v39, %v11820_v39  ;;  %v11829_v55 = vcombine.high %v11827_v24, %v11827_v24  ;;  %v11836_v53 = vrot.slane %v11820_v39, %v25067_v48 }
 0x560   : > { %v11843_v15 = vrot.slane %v11827_v24, %v25067_v48  ;;  %v12917_v58 = vcombine.high %v12913_v28, %v12913_v28  ;;  %13246 = vst.msk [vmem:[%s25102_s12 + $0x136] sm:$0x1] %vm10058_vm7, %v12916_v57  ;;  %13248 = vst.msk [vmem:[%s25102_s12 + $0x156] sm:$0x1] %vm10058_vm7, %v12913_v28  ;;  %v13411_v2 = vrot.slane %v13397_v18, %v25067_v48 }
 0x561   : > { %13249 = vst.msk [vmem:[%s25102_s12 + $0x166] sm:$0x1] %vm10058_vm7, %v12915_v3  ;;  %v13412_v12 = vcombine.high %v13404_v33, %v13404_v33  ;;  %v13420_v30 = vrot.slane %v13404_v33, %v25067_v48  ;;  %v11850_v20 = vrot.slane %v11828_v31, %v25067_v48  ;;  %v11857_v45 = vrot.slane %v11829_v55, %v25067_v48 }
 0x562   : > { %v11858_v14 = vcombine.high %v11836_v53, %v11836_v53  ;;  %v11859_v42 = vcombine.high %v11843_v15, %v11843_v15  ;;  %12187 = vst.msk [vmem:[%s25102_s12 + $0x104] sm:$0x1] %vm10058_vm7, %v11836_v53  ;;  %12191 = vst.msk [vmem:[%s25102_s12 + $0x144] sm:$0x1] %vm10058_vm7, %v11843_v15  ;;  %v13413_v39 = vcombine.high %v13411_v2, %v13411_v2 }
 0x563   : > { %13250 = vst.msk [vmem:[%s25102_s12 + $0x176] sm:$0x1] %vm10058_vm7, %v12917_v58  ;;  %v13427_v24 = vrot.slane %v13411_v2, %v25067_v48  ;;  %v13434_v18 = vrot.slane %v13412_v12, %v25067_v48  ;;  %v13442_v28 = vcombine.high %v13420_v30, %v13420_v30  ;;  %13771 = vst.msk [vmem:[%s25102_s12 + $0x107] sm:$0x1] %vm10058_vm7, %v13420_v30 }
 0x564   : > { %v11860_v3 = vcombine.high %v11850_v20, %v11850_v20  ;;  %v11861_v57 = vcombine.high %v11857_v45, %v11857_v45  ;;  %12188 = vst.msk [vmem:[%s25102_s12 + $0x114] sm:$0x1] %vm10058_vm7, %v11850_v20  ;;  %12189 = vst.msk [vmem:[%s25102_s12 + $0x124] sm:$0x1] %vm10058_vm7, %v11858_v14  ;;  %v9375_v33 = vadd.f32 %v25264_v19, %v25398_v16  ;;  %v26299_v16 = vpop.f32.mrb[39].mxu0 }
 0x565   : > { %12192 = vst.msk [vmem:[%s25102_s12 + $0x154] sm:$0x1] %vm10058_vm7, %v11857_v45  ;;  %12193 = vst.msk [vmem:[%s25102_s12 + $0x164] sm:$0x1] %vm10058_vm7, %v11859_v42  ;;  %v9392_v31 = vadd.f32 %v25375_v52, %v25419_v46  ;;  %v13441_v55 = vrot.slane %v13413_v39, %v25067_v48  ;;  %v13443_v53 = vcombine.high %v13427_v24, %v13427_v24 }
 0x566   : > { %v13444_v15 = vcombine.high %v13434_v18, %v13434_v18  ;;  %13772 = vst.msk [vmem:[%s25102_s12 + $0x117] sm:$0x1] %vm10058_vm7, %v13434_v18  ;;  %13773 = vst.msk [vmem:[%s25102_s12 + $0x127] sm:$0x1] %vm10058_vm7, %v13442_v28  ;;  %v9390_v58 = vadd.f32 %v25375_v52, %v25426_v43  ;;  %v9503_v46 = vmax.f32 %v9375_v33, 0.0  ;;  %v9393_v12 = vadd.f32 %v25375_v52, %v25428_v17 }
 0x567   : > { %13775 = vst.msk [vmem:[%s25102_s12 + $0x147] sm:$0x1] %vm10058_vm7, %v13427_v24  ;;  %12190 = vst.msk [vmem:[%s25102_s12 + $0x134] sm:$0x1] %vm10058_vm7, %v11860_v3  ;;  %v9520_v2 = vmax.f32 %v9392_v31, 0.0  ;;  %v9391_v30 = vadd.f32 %v25375_v52, %v25442_v25  ;;  %v13445_v20 = vcombine.high %v13441_v55, %v13441_v55  ;;  %v26317_v45 = vadd.f32 %v25492_v50, %v25452_v22  ;;  %v26332_v3 = vpop.f32.mrb[40].mxu1 }
 0x568   : > { %12194 = vst.msk [vmem:[%s25102_s12 + $0x174] sm:$0x1] %vm10058_vm7, %v11861_v57  ;;  %13774 = vst.msk [vmem:[%s25102_s12 + $0x137] sm:$0x1] %vm10058_vm7, %v13444_v15  ;;  %v9518_v43 = vmax.f32 %v9390_v58, 0.0  ;;  %v26321_v14 = vadd.f32 %v25492_v50, %v25472_v61  ;;  %v12341_v17 = vcombine.high %v9503_v46, %v9503_v46  ;;  %v12348_v42 = vrot.slane %v9503_v46, %v25067_v48  ;;  %v26339_v46 = vpop.f32.mrb[40].mxu0 }
 0x569   : > { %13776 = vst.msk [vmem:[%s25102_s12 + $0x157] sm:$0x1] %vm10058_vm7, %v13441_v55  ;;  %13777 = vst.msk [vmem:[%s25102_s12 + $0x167] sm:$0x1] %vm10058_vm7, %v13443_v53  ;;  %v12918_v25 = vcombine.high %v9520_v2, %v9520_v2  ;;  %v12925_v39 = vrot.slane %v9520_v2, %v25067_v48  ;;  %v26328_v28 = vmax.f32 %v9393_v12, 0.0  ;;  %v26330_v22 = vmax.f32 %v9391_v30, 0.0 }
 0x56a   : > { %13778 = vst.msk [vmem:[%s25102_s12 + $0x177] sm:$0x1] %vm10058_vm7, %v13445_v20  ;;  %v11862_v24 = vcombine.high %v9518_v43, %v9518_v43  ;;  %v11869_v18 = vrot.slane %v9518_v43, %v25067_v48  ;;  %v12355_v61 = vrot.slane %v12341_v17, %v25067_v48  ;;  %v12356_v57 = vcombine.high %v12348_v42, %v12348_v42 }
 0x56b   : > { %v12364_v33 = vrot.slane %v12348_v42, %v25067_v48  ;;  %v12932_v31 = vrot.slane %v12918_v25, %v25067_v48  ;;  %v12933_v55 = vcombine.high %v12925_v39, %v12925_v39  ;;  %v12941_v53 = vrot.slane %v12925_v39, %v25067_v48 }
 0x56c   : > { %v11876_v15 = vrot.slane %v11862_v24, %v25067_v48  ;;  %v11877_v58 = vcombine.high %v11869_v18, %v11869_v18  ;;  %v12357_v2 = vcombine.high %v12355_v61, %v12355_v61  ;;  %v12371_v12 = vrot.slane %v12355_v61, %v25067_v48 }
 0x56d   : > { %v12378_v30 = vrot.slane %v12356_v57, %v25067_v48  ;;  %v12386_v20 = vcombine.high %v12364_v33, %v12364_v33  ;;  %12715 = vst.msk [vmem:[%s25102_s12 + $0x105] sm:$0x1] %vm10058_vm7, %v12364_v33  ;;  %v12934_v43 = vcombine.high %v12932_v31, %v12932_v31  ;;  %v12948_v17 = vrot.slane %v12932_v31, %v25067_v48 }
 0x56e   : > { %v12955_v42 = vrot.slane %v12933_v55, %v25067_v48  ;;  %v12963_v25 = vcombine.high %v12941_v53, %v12941_v53  ;;  %13251 = vst.msk [vmem:[%s25102_s12 + $0x186] sm:$0x1] %vm10058_vm7, %v12941_v53  ;;  %v12385_v39 = vrot.slane %v12357_v2, %v25067_v48  ;;  %v12387_v24 = vcombine.high %v12371_v12, %v12371_v12  ;;  %v26364_v2 = vpop.f32.mrb[41].mxu1 }
 0x56f   : > { %v12388_v61 = vcombine.high %v12378_v30, %v12378_v30  ;;  %12716 = vst.msk [vmem:[%s25102_s12 + $0x115] sm:$0x1] %vm10058_vm7, %v12378_v30  ;;  %12717 = vst.msk [vmem:[%s25102_s12 + $0x125] sm:$0x1] %vm10058_vm7, %v12386_v20  ;;  %v11878_v57 = vcombine.high %v11876_v15, %v11876_v15  ;;  %v12962_v33 = vrot.slane %v12934_v43, %v25067_v48 }
 0x570   : > { %12719 = vst.msk [vmem:[%s25102_s12 + $0x145] sm:$0x1] %vm10058_vm7, %v12371_v12  ;;  %v12964_v31 = vcombine.high %v12948_v17, %v12948_v17  ;;  %v12965_v55 = vcombine.high %v12955_v42, %v12955_v42  ;;  %13252 = vst.msk [vmem:[%s25102_s12 + $0x196] sm:$0x1] %vm10058_vm7, %v12955_v42  ;;  %v11885_v53 = vrot.slane %v11869_v18, %v25067_v48  ;;  %v26387_v42 = vpop.f32.mrb[41].mxu0 }
 0x571   : > { %13253 = vst.msk [vmem:[%s25102_s12 + $0x1a6] sm:$0x1] %vm10058_vm7, %v12963_v25  ;;  %13255 = vst.msk [vmem:[%s25102_s12 + $0x1c6] sm:$0x1] %vm10058_vm7, %v12948_v17  ;;  %v12389_v12 = vcombine.high %v12385_v39, %v12385_v39  ;;  %v11892_v30 = vrot.slane %v11876_v15, %v25067_v48  ;;  %v11899_v20 = vrot.slane %v11877_v58, %v25067_v48 }
 0x572   : > { %12718 = vst.msk [vmem:[%s25102_s12 + $0x135] sm:$0x1] %vm10058_vm7, %v12388_v61  ;;  %12720 = vst.msk [vmem:[%s25102_s12 + $0x155] sm:$0x1] %vm10058_vm7, %v12385_v39  ;;  %v11906_v43 = vrot.slane %v11878_v57, %v25067_v48  ;;  %v12966_v18 = vcombine.high %v12962_v33, %v12962_v33  ;;  %v11907_v17 = vcombine.high %v11885_v53, %v11885_v53 }
 0x573   : > { %12721 = vst.msk [vmem:[%s25102_s12 + $0x165] sm:$0x1] %vm10058_vm7, %v12387_v24  ;;  %13254 = vst.msk [vmem:[%s25102_s12 + $0x1b6] sm:$0x1] %vm10058_vm7, %v12965_v55  ;;  %v13446_v15 = vcombine.high %v26328_v28, %v26328_v28  ;;  %v13453_v58 = vrot.slane %v26328_v28, %v25067_v48  ;;  %v11908_v25 = vcombine.high %v11892_v30, %v11892_v30 }
 0x574   : > { %13256 = vst.msk [vmem:[%s25102_s12 + $0x1d6] sm:$0x1] %vm10058_vm7, %v12962_v33  ;;  %13257 = vst.msk [vmem:[%s25102_s12 + $0x1e6] sm:$0x1] %vm10058_vm7, %v12964_v31  ;;  %v11909_v39 = vcombine.high %v11899_v20, %v11899_v20  ;;  %v11910_v24 = vcombine.high %v11906_v43, %v11906_v43  ;;  %v12390_v61 = vcombine.high %v26330_v22, %v26330_v22 }
 0x575   : > { %12195 = vst.msk [vmem:[%s25102_s12 + $0x184] sm:$0x1] %vm10058_vm7, %v11885_v53  ;;  %12722 = vst.msk [vmem:[%s25102_s12 + $0x175] sm:$0x1] %vm10058_vm7, %v12389_v12  ;;  %v13460_v28 = vrot.slane %v13446_v15, %v25067_v48  ;;  %v13461_v57 = vcombine.high %v13453_v58, %v13453_v58  ;;  %v13469_v33 = vrot.slane %v13453_v58, %v25067_v48  ;;  %v9536_v53 = vmax.f32 %v26317_v45, 0.0 }
 0x576   : > { %12196 = vst.msk [vmem:[%s25102_s12 + $0x194] sm:$0x1] %vm10058_vm7, %v11899_v20  ;;  %12199 = vst.msk [vmem:[%s25102_s12 + $0x1c4] sm:$0x1] %vm10058_vm7, %v11892_v30  ;;  %v12397_v31 = vrot.slane %v26330_v22, %v25067_v48  ;;  %v12404_v55 = vrot.slane %v12390_v61, %v25067_v48  ;;  %v9534_v12 = vmax.f32 %v26321_v14, 0.0  ;;  %v9409_v30 = vadd.f32 %v25492_v50, %v25474_v38 }
 0x577   : > { %12200 = vst.msk [vmem:[%s25102_s12 + $0x1d4] sm:$0x1] %vm10058_vm7, %v11906_v43  ;;  %13258 = vst.msk [vmem:[%s25102_s12 + $0x1f6] sm:$0x1] %vm10058_vm7, %v12966_v18  ;;  %v13462_v20 = vcombine.high %v13460_v28, %v13460_v28  ;;  %v13476_v22 = vrot.slane %v13460_v28, %v25067_v48  ;;  %v13483_v43 = vrot.slane %v13461_v57, %v25067_v48 }
 0x578   : > { %12197 = vst.msk [vmem:[%s25102_s12 + $0x1a4] sm:$0x1] %vm10058_vm7, %v11907_v17  ;;  %12198 = vst.msk [vmem:[%s25102_s12 + $0x1b4] sm:$0x1] %vm10058_vm7, %v11909_v39  ;;  %v13491_v18 = vcombine.high %v13469_v33, %v13469_v33  ;;  %v12405_v17 = vcombine.high %v12397_v31, %v12397_v31  ;;  %v12406_v15 = vcombine.high %v12404_v55, %v12404_v55 }
 0x579   : > { %12201 = vst.msk [vmem:[%s25102_s12 + $0x1e4] sm:$0x1] %vm10058_vm7, %v11908_v25  ;;  %12202 = vst.msk [vmem:[%s25102_s12 + $0x1f4] sm:$0x1] %vm10058_vm7, %v11910_v24  ;;  %v12413_v45 = vrot.slane %v12397_v31, %v25067_v48  ;;  %v12420_v14 = vrot.slane %v12404_v55, %v25067_v48  ;;  %v13490_v38 = vrot.slane %v13462_v20, %v25067_v48 }
 0x57a   : > { %13779 = vst.msk [vmem:[%s25102_s12 + $0x187] sm:$0x1] %vm10058_vm7, %v13469_v33  ;;  %v13492_v58 = vcombine.high %v13476_v22, %v13476_v22  ;;  %v13493_v25 = vcombine.high %v13483_v43, %v13483_v43  ;;  %13780 = vst.msk [vmem:[%s25102_s12 + $0x197] sm:$0x1] %vm10058_vm7, %v13483_v43  ;;  %v12967_v39 = vcombine.high %v9536_v53, %v9536_v53 }
 0x57b   : > { %13781 = vst.msk [vmem:[%s25102_s12 + $0x1a7] sm:$0x1] %vm10058_vm7, %v13491_v18  ;;  %13783 = vst.msk [vmem:[%s25102_s12 + $0x1c7] sm:$0x1] %vm10058_vm7, %v13476_v22  ;;  %v12427_v24 = vrot.slane %v12405_v17, %v25067_v48  ;;  %v12434_v61 = vrot.slane %v12406_v15, %v25067_v48  ;;  %v12435_v28 = vcombine.high %v12413_v45, %v12413_v45  ;;  %v9537_v17 = vmax.f32 %v9409_v30, 0.0 }
 0x57c   : > { %v12436_v57 = vcombine.high %v12420_v14, %v12420_v14  ;;  %12723 = vst.msk [vmem:[%s25102_s12 + $0x185] sm:$0x1] %vm10058_vm7, %v12413_v45  ;;  %12727 = vst.msk [vmem:[%s25102_s12 + $0x1c5] sm:$0x1] %vm10058_vm7, %v12420_v14  ;;  %v13494_v33 = vcombine.high %v13490_v38, %v13490_v38  ;;  %v12974_v31 = vrot.slane %v9536_v53, %v25067_v48 }
 0x57d   : > { %13782 = vst.msk [vmem:[%s25102_s12 + $0x1b7] sm:$0x1] %vm10058_vm7, %v13493_v25  ;;  %13784 = vst.msk [vmem:[%s25102_s12 + $0x1d7] sm:$0x1] %vm10058_vm7, %v13490_v38  ;;  %v12981_v55 = vrot.slane %v12967_v39, %v25067_v48  ;;  %v11911_v20 = vcombine.high %v9534_v12, %v9534_v12  ;;  %v12437_v22 = vcombine.high %v12427_v24, %v12427_v24  ;;  %v26458_v38 = vpop.f32.mrb[42].mxu1  ;;  %v26466_v39 = vpop.f32.mrb[42].mxu0 }
 0x57e   : > { %13785 = vst.msk [vmem:[%s25102_s12 + $0x1e7] sm:$0x1] %vm10058_vm7, %v13492_v58  ;;  %v12438_v43 = vcombine.high %v12434_v61, %v12434_v61  ;;  %12724 = vst.msk [vmem:[%s25102_s12 + $0x195] sm:$0x1] %vm10058_vm7, %v12427_v24  ;;  %v11918_v18 = vrot.slane %v9534_v12, %v25067_v48  ;;  %v12982_v53 = vcombine.high %v12974_v31, %v12974_v31 }
 0x57f   : > { %12725 = vst.msk [vmem:[%s25102_s12 + $0x1a5] sm:$0x1] %vm10058_vm7, %v12435_v28  ;;  %12728 = vst.msk [vmem:[%s25102_s12 + $0x1d5] sm:$0x1] %vm10058_vm7, %v12434_v61  ;;  %v12983_v15 = vcombine.high %v12981_v55, %v12981_v55  ;;  %v12990_v45 = vrot.slane %v12974_v31, %v25067_v48  ;;  %v12997_v14 = vrot.slane %v12981_v55, %v25067_v48 }
 0x580   : > { %12729 = vst.msk [vmem:[%s25102_s12 + $0x1e5] sm:$0x1] %vm10058_vm7, %v12436_v57  ;;  %13786 = vst.msk [vmem:[%s25102_s12 + $0x1f7] sm:$0x1] %vm10058_vm7, %v13494_v33  ;;  %v11925_v12 = vrot.slane %v11911_v20, %v25067_v48  ;;  %v11926_v30 = vcombine.high %v11918_v18, %v11918_v18  ;;  %v11934_v58 = vrot.slane %v11918_v18, %v25067_v48 }
 0x581   : > { %12726 = vst.msk [vmem:[%s25102_s12 + $0x1b5] sm:$0x1] %vm10058_vm7, %v12437_v22  ;;  %12730 = vst.msk [vmem:[%s25102_s12 + $0x1f5] sm:$0x1] %vm10058_vm7, %v12438_v43  ;;  %v13495_v25 = vcombine.high %v9537_v17, %v9537_v17  ;;  %v13004_v24 = vrot.slane %v12982_v53, %v25067_v48  ;;  %v13011_v61 = vrot.slane %v12983_v15, %v25067_v48  ;;  %v26478_v22 = vpop.f32.mrb[43].mxu1 }
 0x582   : > { %v13012_v28 = vcombine.high %v12990_v45, %v12990_v45  ;;  %v13013_v57 = vcombine.high %v12997_v14, %v12997_v14  ;;  %13259 = vst.msk [vmem:[%s25102_s12 + $0x206] sm:$0x1] %vm10058_vm7, %v12990_v45  ;;  %13263 = vst.msk [vmem:[%s25102_s12 + $0x246] sm:$0x1] %vm10058_vm7, %v12997_v14  ;;  %v11927_v33 = vcombine.high %v11925_v12, %v11925_v12 }
 0x583   : > { %v11941_v31 = vrot.slane %v11925_v12, %v25067_v48  ;;  %v11948_v55 = vrot.slane %v11926_v30, %v25067_v48  ;;  %v11956_v20 = vcombine.high %v11934_v58, %v11934_v58  ;;  %12203 = vst.msk [vmem:[%s25102_s12 + $0x204] sm:$0x1] %vm10058_vm7, %v11934_v58  ;;  %v13014_v43 = vcombine.high %v13004_v24, %v13004_v24 }
 0x584   : > { %v13015_v18 = vcombine.high %v13011_v61, %v13011_v61  ;;  %13260 = vst.msk [vmem:[%s25102_s12 + $0x216] sm:$0x1] %vm10058_vm7, %v13004_v24  ;;  %13261 = vst.msk [vmem:[%s25102_s12 + $0x226] sm:$0x1] %vm10058_vm7, %v13012_v28  ;;  %v13502_v53 = vrot.slane %v9537_v17, %v25067_v48  ;;  %v13509_v15 = vrot.slane %v13495_v25, %v25067_v48 }
 0x585   : > { %13264 = vst.msk [vmem:[%s25102_s12 + $0x256] sm:$0x1] %vm10058_vm7, %v13011_v61  ;;  %13265 = vst.msk [vmem:[%s25102_s12 + $0x266] sm:$0x1] %vm10058_vm7, %v13013_v57  ;;  %v11955_v45 = vrot.slane %v11927_v33, %v25067_v48  ;;  %v11957_v14 = vcombine.high %v11941_v31, %v11941_v31  ;;  %v11958_v12 = vcombine.high %v11948_v55, %v11948_v55 }
 0x586   : > { %12204 = vst.msk [vmem:[%s25102_s12 + $0x214] sm:$0x1] %vm10058_vm7, %v11948_v55  ;;  %12205 = vst.msk [vmem:[%s25102_s12 + $0x224] sm:$0x1] %vm10058_vm7, %v11956_v20  ;;  %v9407_v30 = vadd.f32 %v25492_v50, %v25528_v56  ;;  %v13510_v17 = vcombine.high %v13502_v53, %v13502_v53  ;;  %v13511_v58 = vcombine.high %v13509_v15, %v13509_v15 }
 0x587   : > { %12207 = vst.msk [vmem:[%s25102_s12 + $0x244] sm:$0x1] %vm10058_vm7, %v11941_v31  ;;  %13262 = vst.msk [vmem:[%s25102_s12 + $0x236] sm:$0x1] %vm10058_vm7, %v13014_v43  ;;  %v13518_v25 = vrot.slane %v13502_v53, %v25067_v48  ;;  %v13525_v24 = vrot.slane %v13509_v15, %v25067_v48  ;;  %v11959_v61 = vcombine.high %v11955_v45, %v11955_v45  ;;  %v26521_v43 = vpop.f32.mrb[43].mxu0 }
 0x588   : > { %13266 = vst.msk [vmem:[%s25102_s12 + $0x276] sm:$0x1] %vm10058_vm7, %v13015_v18  ;;  %12206 = vst.msk [vmem:[%s25102_s12 + $0x234] sm:$0x1] %vm10058_vm7, %v11958_v12  ;;  %v9535_v56 = vmax.f32 %v9407_v30, 0.0  ;;  %v9424_v28 = vadd.f32 %v25592_v47, %v25562_v4  ;;  %v9422_v57 = vadd.f32 %v25592_v47, %v25580_v51  ;;  %v13532_v33 = vrot.slane %v13510_v17, %v25067_v48 }
 0x589   : > { %12208 = vst.msk [vmem:[%s25102_s12 + $0x254] sm:$0x1] %vm10058_vm7, %v11955_v45  ;;  %12209 = vst.msk [vmem:[%s25102_s12 + $0x264] sm:$0x1] %vm10058_vm7, %v11957_v14  ;;  %v13539_v31 = vrot.slane %v13511_v58, %v25067_v48  ;;  %v13540_v55 = vcombine.high %v13518_v25, %v13518_v25  ;;  %v13541_v20 = vcombine.high %v13525_v24, %v13525_v24 }
 0x58a   : > { %13787 = vst.msk [vmem:[%s25102_s12 + $0x207] sm:$0x1] %vm10058_vm7, %v13518_v25  ;;  %13791 = vst.msk [vmem:[%s25102_s12 + $0x247] sm:$0x1] %vm10058_vm7, %v13525_v24  ;;  %v12439_v4 = vcombine.high %v9535_v56, %v9535_v56  ;;  %v12446_v51 = vrot.slane %v9535_v56, %v25067_v48  ;;  %v9552_v18 = vmax.f32 %v9424_v28, 0.0  ;;  %v9550_v53 = vmax.f32 %v9422_v57, 0.0 }
 0x58b   : > { %12210 = vst.msk [vmem:[%s25102_s12 + $0x274] sm:$0x1] %vm10058_vm7, %v11959_v61  ;;  %v13542_v15 = vcombine.high %v13532_v33, %v13532_v33  ;;  %v13543_v45 = vcombine.high %v13539_v31, %v13539_v31  ;;  %13788 = vst.msk [vmem:[%s25102_s12 + $0x217] sm:$0x1] %vm10058_vm7, %v13532_v33  ;;  %v9425_v14 = vadd.f32 %v25592_v47, %v25594_v62  ;;  %v26548_v56 = vpop.f32.mrb[44].mxu1 }
 0x58c   : > { %13789 = vst.msk [vmem:[%s25102_s12 + $0x227] sm:$0x1] %vm10058_vm7, %v13540_v55  ;;  %13792 = vst.msk [vmem:[%s25102_s12 + $0x257] sm:$0x1] %vm10058_vm7, %v13539_v31  ;;  %v26538_v12 = vadd.f32 %v25592_v47, %v25640_v26  ;;  %v12453_v30 = vrot.slane %v12439_v4, %v25067_v48  ;;  %v12454_v17 = vcombine.high %v12446_v51, %v12446_v51 }
 0x58d   : > { %13793 = vst.msk [vmem:[%s25102_s12 + $0x267] sm:$0x1] %vm10058_vm7, %v13541_v20  ;;  %v12462_v58 = vrot.slane %v12446_v51, %v25067_v48  ;;  %v13016_v25 = vcombine.high %v9552_v18, %v9552_v18  ;;  %13790 = vst.msk [vmem:[%s25102_s12 + $0x237] sm:$0x1] %vm10058_vm7, %v13542_v15  ;;  %v13023_v24 = vrot.slane %v9552_v18, %v25067_v48  ;;  %v9553_v26 = vmax.f32 %v9425_v14, 0.0 }
 0x58e   : > { %13794 = vst.msk [vmem:[%s25102_s12 + $0x277] sm:$0x1] %vm10058_vm7, %v13543_v45  ;;  %v11960_v61 = vcombine.high %v9550_v53, %v9550_v53  ;;  %v11967_v62 = vrot.slane %v9550_v53, %v25067_v48  ;;  %v12455_v28 = vcombine.high %v12453_v30, %v12453_v30  ;;  %v12469_v57 = vrot.slane %v12453_v30, %v25067_v48 }
 0x58f   : > { %v12476_v33 = vrot.slane %v12454_v17, %v25067_v48  ;;  %v12484_v31 = vcombine.high %v12462_v58, %v12462_v58  ;;  %12731 = vst.msk [vmem:[%s25102_s12 + $0x205] sm:$0x1] %vm10058_vm7, %v12462_v58  ;;  %v13030_v55 = vrot.slane %v13016_v25, %v25067_v48  ;;  %v13031_v20 = vcombine.high %v13023_v24, %v13023_v24  ;;  %v26568_v25 = vpop.f32.mrb[44].mxu0 }
 0x590   : > { %v13039_v4 = vrot.slane %v13023_v24, %v25067_v48  ;;  %v11974_v51 = vrot.slane %v11960_v61, %v25067_v48  ;;  %v12483_v18 = vrot.slane %v12455_v28, %v25067_v48  ;;  %v12485_v53 = vcombine.high %v12469_v57, %v12469_v57  ;;  %12735 = vst.msk [vmem:[%s25102_s12 + $0x245] sm:$0x1] %vm10058_vm7, %v12469_v57  ;;  %v26570_v24 = vpop.f32.mrb[45].mxu1 }
 0x591   : > { %v12486_v15 = vcombine.high %v12476_v33, %v12476_v33  ;;  %12732 = vst.msk [vmem:[%s25102_s12 + $0x215] sm:$0x1] %vm10058_vm7, %v12476_v33  ;;  %12733 = vst.msk [vmem:[%s25102_s12 + $0x225] sm:$0x1] %vm10058_vm7, %v12484_v31  ;;  %v11975_v45 = vcombine.high %v11967_v62, %v11967_v62  ;;  %v13032_v14 = vcombine.high %v13030_v55, %v13030_v55 }
 0x592   : > { %v13046_v30 = vrot.slane %v13030_v55, %v25067_v48  ;;  %v13053_v17 = vrot.slane %v13031_v20, %v25067_v48  ;;  %v13061_v58 = vcombine.high %v13039_v4, %v13039_v4  ;;  %13267 = vst.msk [vmem:[%s25102_s12 + $0x286] sm:$0x1] %vm10058_vm7, %v13039_v4  ;;  %v12487_v61 = vcombine.high %v12483_v18, %v12483_v18 }
 0x593   : > { %12734 = vst.msk [vmem:[%s25102_s12 + $0x235] sm:$0x1] %vm10058_vm7, %v12486_v15  ;;  %12736 = vst.msk [vmem:[%s25102_s12 + $0x255] sm:$0x1] %vm10058_vm7, %v12483_v18  ;;  %v11976_v28 = vcombine.high %v11974_v51, %v11974_v51  ;;  %v11983_v57 = vrot.slane %v11967_v62, %v25067_v48  ;;  %v11990_v33 = vrot.slane %v11974_v51, %v25067_v48 }
 0x594   : > { %12737 = vst.msk [vmem:[%s25102_s12 + $0x265] sm:$0x1] %vm10058_vm7, %v12485_v53  ;;  %v13060_v31 = vrot.slane %v13032_v14, %v25067_v48  ;;  %v13062_v55 = vcombine.high %v13046_v30, %v13046_v30  ;;  %v13063_v20 = vcombine.high %v13053_v17, %v13053_v17  ;;  %13268 = vst.msk [vmem:[%s25102_s12 + $0x296] sm:$0x1] %vm10058_vm7, %v13053_v17 }
 0x595   : > { %13269 = vst.msk [vmem:[%s25102_s12 + $0x2a6] sm:$0x1] %vm10058_vm7, %v13061_v58  ;;  %13271 = vst.msk [vmem:[%s25102_s12 + $0x2c6] sm:$0x1] %vm10058_vm7, %v13046_v30  ;;  %v11997_v4 = vrot.slane %v11975_v45, %v25067_v48  ;;  %v12004_v62 = vrot.slane %v11976_v28, %v25067_v48  ;;  %v12005_v51 = vcombine.high %v11983_v57, %v11983_v57  ;;  %v9551_v30 = vmax.f32 %v26538_v12, 0.0 }
 0x596   : > { %12738 = vst.msk [vmem:[%s25102_s12 + $0x275] sm:$0x1] %vm10058_vm7, %v12487_v61  ;;  %v12006_v18 = vcombine.high %v11990_v33, %v11990_v33  ;;  %12211 = vst.msk [vmem:[%s25102_s12 + $0x284] sm:$0x1] %vm10058_vm7, %v11983_v57  ;;  %v13544_v53 = vcombine.high %v9553_v26, %v9553_v26  ;;  %v13064_v15 = vcombine.high %v13060_v31, %v13060_v31 }
 0x597   : > { %12215 = vst.msk [vmem:[%s25102_s12 + $0x2c4] sm:$0x1] %vm10058_vm7, %v11990_v33  ;;  %13270 = vst.msk [vmem:[%s25102_s12 + $0x2b6] sm:$0x1] %vm10058_vm7, %v13063_v20  ;;  %v12007_v45 = vcombine.high %v11997_v4, %v11997_v4  ;;  %v13551_v14 = vrot.slane %v9553_v26, %v25067_v48  ;;  %v12008_v17 = vcombine.high %v12004_v62, %v12004_v62 }
 0x598   : > { %13272 = vst.msk [vmem:[%s25102_s12 + $0x2d6] sm:$0x1] %vm10058_vm7, %v13060_v31  ;;  %13273 = vst.msk [vmem:[%s25102_s12 + $0x2e6] sm:$0x1] %vm10058_vm7, %v13062_v55  ;;  %v13558_v58 = vrot.slane %v13544_v53, %v25067_v48  ;;  %v9440_v61 = vadd.f32 %v25718_v37, %v25660_v1  ;;  %v9438_v28 = vadd.f32 %v25718_v37, %v25683_v41  ;;  %v26622_v31 = vpop.f32.mrb[45].mxu0 }
 0x599   : > { %12212 = vst.msk [vmem:[%s25102_s12 + $0x294] sm:$0x1] %vm10058_vm7, %v11997_v4  ;;  %12213 = vst.msk [vmem:[%s25102_s12 + $0x2a4] sm:$0x1] %vm10058_vm7, %v12005_v51  ;;  %v13559_v12 = vcombine.high %v13551_v14, %v13551_v14  ;;  %v13567_v26 = vrot.slane %v13551_v14, %v25067_v48  ;;  %v12488_v57 = vcombine.high %v9551_v30, %v9551_v30 }
 0x59a   : > { %12216 = vst.msk [vmem:[%s25102_s12 + $0x2d4] sm:$0x1] %vm10058_vm7, %v12004_v62  ;;  %12217 = vst.msk [vmem:[%s25102_s12 + $0x2e4] sm:$0x1] %vm10058_vm7, %v12006_v18  ;;  %v12495_v33 = vrot.slane %v9551_v30, %v25067_v48  ;;  %v13560_v1 = vcombine.high %v13558_v58, %v13558_v58  ;;  %v13574_v41 = vrot.slane %v13558_v58, %v25067_v48  ;;  %v9568_v55 = vmax.f32 %v9440_v61, 0.0 }
 0x59b   : > { %13274 = vst.msk [vmem:[%s25102_s12 + $0x2f6] sm:$0x1] %vm10058_vm7, %v13064_v15  ;;  %12214 = vst.msk [vmem:[%s25102_s12 + $0x2b4] sm:$0x1] %vm10058_vm7, %v12007_v45  ;;  %v9566_v20 = vmax.f32 %v9438_v28, 0.0  ;;  %v13581_v4 = vrot.slane %v13559_v12, %v25067_v48  ;;  %v13589_v62 = vcombine.high %v13567_v26, %v13567_v26  ;;  %v12502_v51 = vrot.slane %v12488_v57, %v25067_v48 }
 0x59c   : > { %12218 = vst.msk [vmem:[%s25102_s12 + $0x2f4] sm:$0x1] %vm10058_vm7, %v12008_v17  ;;  %13795 = vst.msk [vmem:[%s25102_s12 + $0x287] sm:$0x1] %vm10058_vm7, %v13567_v26  ;;  %v12503_v18 = vcombine.high %v12495_v33, %v12495_v33  ;;  %v13588_v53 = vrot.slane %v13560_v1, %v25067_v48  ;;  %v13590_v15 = vcombine.high %v13574_v41, %v13574_v41 }
 0x59d   : > { %13799 = vst.msk [vmem:[%s25102_s12 + $0x2c7] sm:$0x1] %vm10058_vm7, %v13574_v41  ;;  %v12511_v45 = vrot.slane %v12495_v33, %v25067_v48  ;;  %v13065_v14 = vcombine.high %v9568_v55, %v9568_v55  ;;  %v13591_v30 = vcombine.high %v13581_v4, %v13581_v4  ;;  %13796 = vst.msk [vmem:[%s25102_s12 + $0x297] sm:$0x1] %vm10058_vm7, %v13581_v4 }
 0x59e   : > { %13797 = vst.msk [vmem:[%s25102_s12 + $0x2a7] sm:$0x1] %vm10058_vm7, %v13589_v62  ;;  %v12504_v17 = vcombine.high %v12502_v51, %v12502_v51  ;;  %v12518_v58 = vrot.slane %v12502_v51, %v25067_v48  ;;  %v12525_v61 = vrot.slane %v12503_v18, %v25067_v48  ;;  %v13592_v28 = vcombine.high %v13588_v53, %v13588_v53  ;;  %v26656_v62 = vpop.f32.mrb[46].mxu1 }
 0x59f   : > { %13800 = vst.msk [vmem:[%s25102_s12 + $0x2d7] sm:$0x1] %vm10058_vm7, %v13588_v53  ;;  %13801 = vst.msk [vmem:[%s25102_s12 + $0x2e7] sm:$0x1] %vm10058_vm7, %v13590_v15  ;;  %v12533_v12 = vcombine.high %v12511_v45, %v12511_v45  ;;  %v13072_v26 = vrot.slane %v9568_v55, %v25067_v48  ;;  %v13079_v57 = vrot.slane %v13065_v14, %v25067_v48 }
 0x5a0   : > { %12739 = vst.msk [vmem:[%s25102_s12 + $0x285] sm:$0x1] %vm10058_vm7, %v12511_v45  ;;  %13798 = vst.msk [vmem:[%s25102_s12 + $0x2b7] sm:$0x1] %vm10058_vm7, %v13591_v30  ;;  %v12532_v33 = vrot.slane %v12504_v17, %v25067_v48  ;;  %v12534_v1 = vcombine.high %v12518_v58, %v12518_v58  ;;  %v12535_v41 = vcombine.high %v12525_v61, %v12525_v61  ;;  %v26674_v17 = vpop.f32.mrb[46].mxu0 }
 0x5a1   : > { %12740 = vst.msk [vmem:[%s25102_s12 + $0x295] sm:$0x1] %vm10058_vm7, %v12525_v61  ;;  %12743 = vst.msk [vmem:[%s25102_s12 + $0x2c5] sm:$0x1] %vm10058_vm7, %v12518_v58  ;;  %v12009_v4 = vcombine.high %v9566_v20, %v9566_v20  ;;  %v13080_v55 = vcombine.high %v13072_v26, %v13072_v26  ;;  %v13081_v51 = vcombine.high %v13079_v57, %v13079_v57 }
 0x5a2   : > { %13802 = vst.msk [vmem:[%s25102_s12 + $0x2f7] sm:$0x1] %vm10058_vm7, %v13592_v28  ;;  %12741 = vst.msk [vmem:[%s25102_s12 + $0x2a5] sm:$0x1] %vm10058_vm7, %v12533_v12  ;;  %v13088_v18 = vrot.slane %v13072_v26, %v25067_v48  ;;  %v13095_v53 = vrot.slane %v13079_v57, %v25067_v48  ;;  %v12536_v15 = vcombine.high %v12532_v33, %v12532_v33 }
 0x5a3   : > { %12742 = vst.msk [vmem:[%s25102_s12 + $0x2b5] sm:$0x1] %vm10058_vm7, %v12535_v41  ;;  %12744 = vst.msk [vmem:[%s25102_s12 + $0x2d5] sm:$0x1] %vm10058_vm7, %v12532_v33  ;;  %v12016_v45 = vrot.slane %v9566_v20, %v25067_v48  ;;  %v12023_v14 = vrot.slane %v12009_v4, %v25067_v48  ;;  %v9441_v30 = vadd.f32 %v25718_v37, %v25704_v32  ;;  %v26686_v33 = vpop.f32.mrb[47].mxu1 }
 0x5a4   : > { %12745 = vst.msk [vmem:[%s25102_s12 + $0x2e5] sm:$0x1] %vm10058_vm7, %v12534_v1  ;;  %v13102_v58 = vrot.slane %v13080_v55, %v25067_v48  ;;  %v13109_v61 = vrot.slane %v13081_v51, %v25067_v48  ;;  %v13110_v28 = vcombine.high %v13088_v18, %v13088_v18  ;;  %v13111_v12 = vcombine.high %v13095_v53, %v13095_v53 }
 0x5a5   : > { %13275 = vst.msk [vmem:[%s25102_s12 + $0x306] sm:$0x1] %vm10058_vm7, %v13088_v18  ;;  %13279 = vst.msk [vmem:[%s25102_s12 + $0x346] sm:$0x1] %vm10058_vm7, %v13095_v53  ;;  %v12024_v20 = vcombine.high %v12016_v45, %v12016_v45  ;;  %v12025_v32 = vcombine.high %v12023_v14, %v12023_v14  ;;  %v12032_v26 = vrot.slane %v12016_v45, %v25067_v48  ;;  %v9569_v4 = vmax.f32 %v9441_v30, 0.0 }
 0x5a6   : > { %12746 = vst.msk [vmem:[%s25102_s12 + $0x2f5] sm:$0x1] %vm10058_vm7, %v12536_v15  ;;  %v12039_v57 = vrot.slane %v12023_v14, %v25067_v48  ;;  %v13112_v1 = vcombine.high %v13102_v58, %v13102_v58  ;;  %v13113_v41 = vcombine.high %v13109_v61, %v13109_v61  ;;  %13276 = vst.msk [vmem:[%s25102_s12 + $0x316] sm:$0x1] %vm10058_vm7, %v13102_v58 }
 0x5a7   : > { %13277 = vst.msk [vmem:[%s25102_s12 + $0x326] sm:$0x1] %vm10058_vm7, %v13110_v28  ;;  %13280 = vst.msk [vmem:[%s25102_s12 + $0x356] sm:$0x1] %vm10058_vm7, %v13109_v61  ;;  %v9439_v55 = vadd.f32 %v25718_v37, %v25755_v7  ;;  %v12046_v51 = vrot.slane %v12024_v20, %v25067_v48  ;;  %v12053_v18 = vrot.slane %v12025_v32, %v25067_v48 }
 0x5a8   : > { %13281 = vst.msk [vmem:[%s25102_s12 + $0x366] sm:$0x1] %vm10058_vm7, %v13111_v12  ;;  %v12054_v53 = vcombine.high %v12032_v26, %v12032_v26  ;;  %v12055_v15 = vcombine.high %v12039_v57, %v12039_v57  ;;  %12219 = vst.msk [vmem:[%s25102_s12 + $0x304] sm:$0x1] %vm10058_vm7, %v12032_v26  ;;  %v13593_v45 = vcombine.high %v9569_v4, %v9569_v4 }
 0x5a9   : > { %12223 = vst.msk [vmem:[%s25102_s12 + $0x344] sm:$0x1] %vm10058_vm7, %v12039_v57  ;;  %13278 = vst.msk [vmem:[%s25102_s12 + $0x336] sm:$0x1] %vm10058_vm7, %v13112_v1  ;;  %v13600_v7 = vrot.slane %v9569_v4, %v25067_v48  ;;  %v9567_v14 = vmax.f32 %v9439_v55, 0.0  ;;  %v9456_v30 = vadd.f32 %v25744_v44, %v25788_v23  ;;  %v12056_v58 = vcombine.high %v12046_v51, %v12046_v51 }
 0x5aa   : > { %13282 = vst.msk [vmem:[%s25102_s12 + $0x376] sm:$0x1] %vm10058_vm7, %v13113_v41  ;;  %v12057_v61 = vcombine.high %v12053_v18, %v12053_v18  ;;  %12220 = vst.msk [vmem:[%s25102_s12 + $0x314] sm:$0x1] %vm10058_vm7, %v12046_v51  ;;  %v9454_v28 = vadd.f32 %v25744_v44, %v25795_v13  ;;  %v9457_v12 = vadd.f32 %v25744_v44, %v25820_v27  ;;  %v26732_v27 = vpop.f32.mrb[47].mxu0 }
 0x5ab   : > { %12221 = vst.msk [vmem:[%s25102_s12 + $0x324] sm:$0x1] %vm10058_vm7, %v12054_v53  ;;  %12224 = vst.msk [vmem:[%s25102_s12 + $0x354] sm:$0x1] %vm10058_vm7, %v12053_v18  ;;  %v13607_v20 = vrot.slane %v13593_v45, %v25067_v48  ;;  %v13608_v23 = vcombine.high %v13600_v7, %v13600_v7  ;;  %v13616_v32 = vrot.slane %v13600_v7, %v25067_v48  ;;  %v9584_v1 = vmax.f32 %v9456_v30, 0.0 }
 0x5ac   : > { %12225 = vst.msk [vmem:[%s25102_s12 + $0x364] sm:$0x1] %vm10058_vm7, %v12055_v15  ;;  %v12537_v26 = vcombine.high %v9567_v14, %v9567_v14  ;;  %12222 = vst.msk [vmem:[%s25102_s12 + $0x334] sm:$0x1] %vm10058_vm7, %v12056_v58  ;;  %v12544_v57 = vrot.slane %v9567_v14, %v25067_v48  ;;  %v9582_v41 = vmax.f32 %v9454_v28, 0.0  ;;  %v26730_v13 = vmax.f32 %v9457_v12, 0.0 }
 0x5ad   : > { %12226 = vst.msk [vmem:[%s25102_s12 + $0x374] sm:$0x1] %vm10058_vm7, %v12057_v61  ;;  %v13609_v4 = vcombine.high %v13607_v20, %v13607_v20  ;;  %v13623_v55 = vrot.slane %v13607_v20, %v25067_v48  ;;  %v13630_v51 = vrot.slane %v13608_v23, %v25067_v48  ;;  %v13638_v18 = vcombine.high %v13616_v32, %v13616_v32 }
 0x5ae   : > { %13803 = vst.msk [vmem:[%s25102_s12 + $0x307] sm:$0x1] %vm10058_vm7, %v13616_v32  ;;  %v12551_v53 = vrot.slane %v12537_v26, %v25067_v48  ;;  %v12552_v15 = vcombine.high %v12544_v57, %v12544_v57  ;;  %v12560_v45 = vrot.slane %v12544_v57, %v25067_v48  ;;  %v13114_v7 = vcombine.high %v9584_v1, %v9584_v1  ;;  %v26752_v32 = vpop.f32.mrb[48].mxu1 }
 0x5af   : > { %v13637_v14 = vrot.slane %v13609_v4, %v25067_v48  ;;  %v13639_v30 = vcombine.high %v13623_v55, %v13623_v55  ;;  %v13640_v58 = vcombine.high %v13630_v51, %v13630_v51  ;;  %13804 = vst.msk [vmem:[%s25102_s12 + $0x317] sm:$0x1] %vm10058_vm7, %v13630_v51  ;;  %13805 = vst.msk [vmem:[%s25102_s12 + $0x327] sm:$0x1] %vm10058_vm7, %v13638_v18 }
 0x5b0   : > { %13807 = vst.msk [vmem:[%s25102_s12 + $0x347] sm:$0x1] %vm10058_vm7, %v13623_v55  ;;  %v13121_v61 = vrot.slane %v9584_v1, %v25067_v48  ;;  %v12553_v28 = vcombine.high %v12551_v53, %v12551_v53  ;;  %v12567_v12 = vrot.slane %v12551_v53, %v25067_v48  ;;  %v12574_v20 = vrot.slane %v12552_v15, %v25067_v48 }
 0x5b1   : > { %v12582_v23 = vcombine.high %v12560_v45, %v12560_v45  ;;  %12747 = vst.msk [vmem:[%s25102_s12 + $0x305] sm:$0x1] %vm10058_vm7, %v12560_v45  ;;  %v13641_v26 = vcombine.high %v13637_v14, %v13637_v14  ;;  %13806 = vst.msk [vmem:[%s25102_s12 + $0x337] sm:$0x1] %vm10058_vm7, %v13640_v58  ;;  %v13128_v57 = vrot.slane %v13114_v7, %v25067_v48 }
 0x5b2   : > { %13808 = vst.msk [vmem:[%s25102_s12 + $0x357] sm:$0x1] %vm10058_vm7, %v13637_v14  ;;  %13809 = vst.msk [vmem:[%s25102_s12 + $0x367] sm:$0x1] %vm10058_vm7, %v13639_v30  ;;  %v13129_v1 = vcombine.high %v13121_v61, %v13121_v61  ;;  %v13137_v4 = vrot.slane %v13121_v61, %v25067_v48  ;;  %v12581_v55 = vrot.slane %v12553_v28, %v25067_v48  ;;  %v26775_v30 = vpop.f32.mrb[48].mxu0 }
 0x5b3   : > { %v12583_v51 = vcombine.high %v12567_v12, %v12567_v12  ;;  %v12584_v18 = vcombine.high %v12574_v20, %v12574_v20  ;;  %12748 = vst.msk [vmem:[%s25102_s12 + $0x315] sm:$0x1] %vm10058_vm7, %v12574_v20  ;;  %12749 = vst.msk [vmem:[%s25102_s12 + $0x325] sm:$0x1] %vm10058_vm7, %v12582_v23  ;;  %v12058_v53 = vcombine.high %v9582_v41, %v9582_v41 }
 0x5b4   : > { %12751 = vst.msk [vmem:[%s25102_s12 + $0x345] sm:$0x1] %vm10058_vm7, %v12567_v12  ;;  %13810 = vst.msk [vmem:[%s25102_s12 + $0x377] sm:$0x1] %vm10058_vm7, %v13641_v26  ;;  %v13130_v15 = vcombine.high %v13128_v57, %v13128_v57  ;;  %v13144_v45 = vrot.slane %v13128_v57, %v25067_v48  ;;  %v13151_v7 = vrot.slane %v13129_v1, %v25067_v48  ;;  %v26796_v57 = vpop.f32.mrb[49].mxu1 }
 0x5b5   : > { %v13159_v14 = vcombine.high %v13137_v4, %v13137_v4  ;;  %13283 = vst.msk [vmem:[%s25102_s12 + $0x386] sm:$0x1] %vm10058_vm7, %v13137_v4  ;;  %v12585_v58 = vcombine.high %v12581_v55, %v12581_v55  ;;  %12750 = vst.msk [vmem:[%s25102_s12 + $0x335] sm:$0x1] %vm10058_vm7, %v12584_v18  ;;  %v12065_v61 = vrot.slane %v9582_v41, %v25067_v48 }
 0x5b6   : > { %12752 = vst.msk [vmem:[%s25102_s12 + $0x355] sm:$0x1] %vm10058_vm7, %v12581_v55  ;;  %12753 = vst.msk [vmem:[%s25102_s12 + $0x365] sm:$0x1] %vm10058_vm7, %v12583_v51  ;;  %v12072_v28 = vrot.slane %v12058_v53, %v25067_v48  ;;  %v13642_v12 = vcombine.high %v26730_v13, %v26730_v13  ;;  %v13158_v20 = vrot.slane %v13130_v15, %v25067_v48 }
 0x5b7   : > { %v13160_v23 = vcombine.high %v13144_v45, %v13144_v45  ;;  %v13161_v26 = vcombine.high %v13151_v7, %v13151_v7  ;;  %13284 = vst.msk [vmem:[%s25102_s12 + $0x396] sm:$0x1] %vm10058_vm7, %v13151_v7  ;;  %13285 = vst.msk [vmem:[%s25102_s12 + $0x3a6] sm:$0x1] %vm10058_vm7, %v13159_v14  ;;  %v13649_v41 = vrot.slane %v26730_v13, %v25067_v48 }
 0x5b8   : > { %13287 = vst.msk [vmem:[%s25102_s12 + $0x3c6] sm:$0x1] %vm10058_vm7, %v13144_v45  ;;  %12754 = vst.msk [vmem:[%s25102_s12 + $0x375] sm:$0x1] %vm10058_vm7, %v12585_v58  ;;  %v12073_v1 = vcombine.high %v12065_v61, %v12065_v61  ;;  %v12074_v4 = vcombine.high %v12072_v28, %v12072_v28  ;;  %v12081_v55 = vrot.slane %v12065_v61, %v25067_v48 }
 0x5b9   : > { %v12088_v51 = vrot.slane %v12072_v28, %v25067_v48  ;;  %v13162_v18 = vcombine.high %v13158_v20, %v13158_v20  ;;  %13286 = vst.msk [vmem:[%s25102_s12 + $0x3b6] sm:$0x1] %vm10058_vm7, %v13161_v26  ;;  %13288 = vst.msk [vmem:[%s25102_s12 + $0x3d6] sm:$0x1] %vm10058_vm7, %v13158_v20  ;;  %v13656_v13 = vrot.slane %v13642_v12, %v25067_v48 }
 0x5ba   : > { %13289 = vst.msk [vmem:[%s25102_s12 + $0x3e6] sm:$0x1] %vm10058_vm7, %v13160_v23  ;;  %v13657_v53 = vcombine.high %v13649_v41, %v13649_v41  ;;  %v13665_v15 = vrot.slane %v13649_v41, %v25067_v48  ;;  %v12095_v45 = vrot.slane %v12073_v1, %v25067_v48  ;;  %v12102_v7 = vrot.slane %v12074_v4, %v25067_v48 }
 0x5bb   : > { %v12103_v14 = vcombine.high %v12081_v55, %v12081_v55  ;;  %v12104_v58 = vcombine.high %v12088_v51, %v12088_v51  ;;  %12227 = vst.msk [vmem:[%s25102_s12 + $0x384] sm:$0x1] %vm10058_vm7, %v12081_v55  ;;  %12231 = vst.msk [vmem:[%s25102_s12 + $0x3c4] sm:$0x1] %vm10058_vm7, %v12088_v51  ;;  %v13658_v61 = vcombine.high %v13656_v13, %v13656_v13 }
 0x5bc   : > { %13290 = vst.msk [vmem:[%s25102_s12 + $0x3f6] sm:$0x1] %vm10058_vm7, %v13162_v18  ;;  %v13672_v28 = vrot.slane %v13656_v13, %v25067_v48  ;;  %v13679_v12 = vrot.slane %v13657_v53, %v25067_v48  ;;  %v13687_v20 = vcombine.high %v13665_v15, %v13665_v15  ;;  %13811 = vst.msk [vmem:[%s25102_s12 + $0x387] sm:$0x1] %vm10058_vm7, %v13665_v15 }
 0x5bd   : > { %v12105_v23 = vcombine.high %v12095_v45, %v12095_v45  ;;  %v12106_v26 = vcombine.high %v12102_v7, %v12102_v7  ;;  %12228 = vst.msk [vmem:[%s25102_s12 + $0x394] sm:$0x1] %vm10058_vm7, %v12095_v45  ;;  %12229 = vst.msk [vmem:[%s25102_s12 + $0x3a4] sm:$0x1] %vm10058_vm7, %v12103_v14  ;;  %v9455_v41 = vadd.f32 %v25744_v44, %v25843_v54  ;;  %v26843_v54 = vpop.f32.mrb[49].mxu0 }
 0x5be   : > { %12232 = vst.msk [vmem:[%s25102_s12 + $0x3d4] sm:$0x1] %vm10058_vm7, %v12102_v7  ;;  %12233 = vst.msk [vmem:[%s25102_s12 + $0x3e4] sm:$0x1] %vm10058_vm7, %v12104_v58  ;;  %v9348_v1 = vadd.f32 %v25063_v63, %v25914_v6  ;;  %v13686_v4 = vrot.slane %v13658_v61, %v25067_v48  ;;  %v13688_v55 = vcombine.high %v13672_v28, %v13672_v28 }
 0x5bf   : > { %v13689_v51 = vcombine.high %v13679_v12, %v13679_v12  ;;  %13812 = vst.msk [vmem:[%s25102_s12 + $0x397] sm:$0x1] %vm10058_vm7, %v13679_v12  ;;  %13813 = vst.msk [vmem:[%s25102_s12 + $0x3a7] sm:$0x1] %vm10058_vm7, %v13687_v20  ;;  %v9346_v18 = vadd.f32 %v25063_v63, %v25922_v21  ;;  %v9583_v6 = vmax.f32 %v9455_v41, 0.0  ;;  %v9349_v53 = vadd.f32 %v25063_v63, %v25934_v60 }
 0x5c0   : > { %13815 = vst.msk [vmem:[%s25102_s12 + $0x3c7] sm:$0x1] %vm10058_vm7, %v13672_v28  ;;  %12230 = vst.msk [vmem:[%s25102_s12 + $0x3b4] sm:$0x1] %vm10058_vm7, %v12105_v23  ;;  %v9476_v13 = vmax.f32 %v9348_v1, 0.0  ;;  %v9347_v15 = vadd.f32 %v25063_v63, %v25977_v0  ;;  %v13690_v45 = vcombine.high %v13686_v4, %v13686_v4  ;;  %v26861_v7 = vadd.f32 %v25071_v49, %v26004_v36  ;;  %v26876_v23 = vpop.f32.mrb[50].mxu1 }
 0x5c1   : > { %12234 = vst.msk [vmem:[%s25102_s12 + $0x3f4] sm:$0x1] %vm10058_vm7, %v12106_v26  ;;  %13814 = vst.msk [vmem:[%s25102_s12 + $0x3b7] sm:$0x1] %vm10058_vm7, %v13689_v51  ;;  %v9474_v21 = vmax.f32 %v9346_v18, 0.0  ;;  %v26865_v14 = vadd.f32 %v25071_v49, %v26024_v9  ;;  %v12586_v60 = vcombine.high %v9583_v6, %v9583_v6  ;;  %v12593_v58 = vrot.slane %v9583_v6, %v25067_v48  ;;  %v26883_v6 = vpop.f32.mrb[50].mxu0 }
 0x5c2   : > { %13816 = vst.msk [vmem:[%s25102_s12 + $0x3d7] sm:$0x1] %vm10058_vm7, %v13686_v4  ;;  %13817 = vst.msk [vmem:[%s25102_s12 + $0x3e7] sm:$0x1] %vm10058_vm7, %v13688_v55  ;;  %v14883_v0 = vcombine.high %v9476_v13, %v9476_v13  ;;  %v14890_v61 = vrot.slane %v9476_v13, %v25067_v48  ;;  %v26872_v20 = vmax.f32 %v9349_v53, 0.0  ;;  %v26874_v36 = vmax.f32 %v9347_v15, 0.0 }
 0x5c3   : > { %13818 = vst.msk [vmem:[%s25102_s12 + $0x3f7] sm:$0x1] %vm10058_vm7, %v13690_v45  ;;  %v13827_v28 = vcombine.high %v9474_v21, %v9474_v21  ;;  %v13834_v12 = vrot.slane %v9474_v21, %v25067_v48  ;;  %v12600_v9 = vrot.slane %v12586_v60, %v25067_v48  ;;  %v12601_v26 = vcombine.high %v12593_v58, %v12593_v58 }
 0x5c4   : > { %v12609_v41 = vrot.slane %v12593_v58, %v25067_v48  ;;  %v14897_v1 = vrot.slane %v14883_v0, %v25067_v48  ;;  %v14898_v4 = vcombine.high %v14890_v61, %v14890_v61  ;;  %v14906_v55 = vrot.slane %v14890_v61, %v25067_v48 }
 0x5c5   : > { %v13841_v51 = vrot.slane %v13827_v28, %v25067_v48  ;;  %v13842_v18 = vcombine.high %v13834_v12, %v13834_v12  ;;  %v12602_v13 = vcombine.high %v12600_v9, %v12600_v9  ;;  %v12616_v53 = vrot.slane %v12600_v9, %v25067_v48 }
 0x5c6   : > { %v12623_v15 = vrot.slane %v12601_v26, %v25067_v48  ;;  %v12631_v45 = vcombine.high %v12609_v41, %v12609_v41  ;;  %12755 = vst.msk [vmem:[%s25102_s12 + $0x385] sm:$0x1] %vm10058_vm7, %v12609_v41  ;;  %v14899_v21 = vcombine.high %v14897_v1, %v14897_v1  ;;  %v14913_v60 = vrot.slane %v14897_v1, %v25067_v48 }
 0x5c7   : > { %v14920_v58 = vrot.slane %v14898_v4, %v25067_v48  ;;  %v14928_v0 = vcombine.high %v14906_v55, %v14906_v55  ;;  %15339 = vst.msk [vmem:[%s25102_s12 + $0xa] sm:$0x1] %vm10058_vm7, %v14906_v55  ;;  %v12630_v61 = vrot.slane %v12602_v13, %v25067_v48  ;;  %v12632_v28 = vcombine.high %v12616_v53, %v12616_v53  ;;  %v26908_v13 = vpop.f32.mrb[51].mxu1 }
 0x5c8   : > { %v12633_v9 = vcombine.high %v12623_v15, %v12623_v15  ;;  %12756 = vst.msk [vmem:[%s25102_s12 + $0x395] sm:$0x1] %vm10058_vm7, %v12623_v15  ;;  %12757 = vst.msk [vmem:[%s25102_s12 + $0x3a5] sm:$0x1] %vm10058_vm7, %v12631_v45  ;;  %v13843_v26 = vcombine.high %v13841_v51, %v13841_v51  ;;  %v14927_v41 = vrot.slane %v14899_v21, %v25067_v48 }
 0x5c9   : > { %12759 = vst.msk [vmem:[%s25102_s12 + $0x3c5] sm:$0x1] %vm10058_vm7, %v12616_v53  ;;  %v14929_v1 = vcombine.high %v14913_v60, %v14913_v60  ;;  %v14930_v4 = vcombine.high %v14920_v58, %v14920_v58  ;;  %15340 = vst.msk [vmem:[%s25102_s12 + $0x1a] sm:$0x1] %vm10058_vm7, %v14920_v58  ;;  %v13850_v55 = vrot.slane %v13834_v12, %v25067_v48  ;;  %v26931_v58 = vpop.f32.mrb[51].mxu0 }
 0x5ca   : > { %15341 = vst.msk [vmem:[%s25102_s12 + $0x2a] sm:$0x1] %vm10058_vm7, %v14928_v0  ;;  %15343 = vst.msk [vmem:[%s25102_s12 + $0x4a] sm:$0x1] %vm10058_vm7, %v14913_v60  ;;  %v12634_v53 = vcombine.high %v12630_v61, %v12630_v61  ;;  %v13857_v15 = vrot.slane %v13841_v51, %v25067_v48  ;;  %v13864_v45 = vrot.slane %v13842_v18, %v25067_v48 }
 0x5cb   : > { %12758 = vst.msk [vmem:[%s25102_s12 + $0x3b5] sm:$0x1] %vm10058_vm7, %v12633_v9  ;;  %12760 = vst.msk [vmem:[%s25102_s12 + $0x3d5] sm:$0x1] %vm10058_vm7, %v12630_v61  ;;  %v13871_v21 = vrot.slane %v13843_v26, %v25067_v48  ;;  %v14931_v12 = vcombine.high %v14927_v41, %v14927_v41  ;;  %v13872_v60 = vcombine.high %v13850_v55, %v13850_v55 }
 0x5cc   : > { %12761 = vst.msk [vmem:[%s25102_s12 + $0x3e5] sm:$0x1] %vm10058_vm7, %v12632_v28  ;;  %15342 = vst.msk [vmem:[%s25102_s12 + $0x3a] sm:$0x1] %vm10058_vm7, %v14930_v4  ;;  %v15411_v51 = vcombine.high %v26872_v20, %v26872_v20  ;;  %v15418_v18 = vrot.slane %v26872_v20, %v25067_v48  ;;  %v13873_v0 = vcombine.high %v13857_v15, %v13857_v15 }
 0x5cd   : > { %15344 = vst.msk [vmem:[%s25102_s12 + $0x5a] sm:$0x1] %vm10058_vm7, %v14927_v41  ;;  %15345 = vst.msk [vmem:[%s25102_s12 + $0x6a] sm:$0x1] %vm10058_vm7, %v14929_v1  ;;  %v13874_v61 = vcombine.high %v13864_v45, %v13864_v45  ;;  %v13875_v28 = vcombine.high %v13871_v21, %v13871_v21  ;;  %v14355_v9 = vcombine.high %v26874_v36, %v26874_v36 }
 0x5ce   : > { %14283 = vst.msk [vmem:[%s25102_s12 + $0x8] sm:$0x1] %vm10058_vm7, %v13850_v55  ;;  %12762 = vst.msk [vmem:[%s25102_s12 + $0x3f5] sm:$0x1] %vm10058_vm7, %v12634_v53  ;;  %v15425_v20 = vrot.slane %v15411_v51, %v25067_v48  ;;  %v15426_v26 = vcombine.high %v15418_v18, %v15418_v18  ;;  %v15434_v41 = vrot.slane %v15418_v18, %v25067_v48  ;;  %v9492_v55 = vmax.f32 %v26861_v7, 0.0 }
 0x5cf   : > { %14284 = vst.msk [vmem:[%s25102_s12 + $0x18] sm:$0x1] %vm10058_vm7, %v13864_v45  ;;  %14287 = vst.msk [vmem:[%s25102_s12 + $0x48] sm:$0x1] %vm10058_vm7, %v13857_v15  ;;  %v14362_v1 = vrot.slane %v26874_v36, %v25067_v48  ;;  %v14369_v4 = vrot.slane %v14355_v9, %v25067_v48  ;;  %v9490_v53 = vmax.f32 %v26865_v14, 0.0  ;;  %v9365_v15 = vadd.f32 %v25071_v49, %v26026_v11 }
 0x5d0   : > { %14288 = vst.msk [vmem:[%s25102_s12 + $0x58] sm:$0x1] %vm10058_vm7, %v13871_v21  ;;  %15346 = vst.msk [vmem:[%s25102_s12 + $0x7a] sm:$0x1] %vm10058_vm7, %v14931_v12  ;;  %v15427_v45 = vcombine.high %v15425_v20, %v15425_v20  ;;  %v15441_v36 = vrot.slane %v15425_v20, %v25067_v48  ;;  %v15448_v21 = vrot.slane %v15426_v26, %v25067_v48 }
 0x5d1   : > { %14285 = vst.msk [vmem:[%s25102_s12 + $0x28] sm:$0x1] %vm10058_vm7, %v13872_v60  ;;  %14286 = vst.msk [vmem:[%s25102_s12 + $0x38] sm:$0x1] %vm10058_vm7, %v13874_v61  ;;  %v15456_v12 = vcombine.high %v15434_v41, %v15434_v41  ;;  %v14370_v60 = vcombine.high %v14362_v1, %v14362_v1  ;;  %v14371_v51 = vcombine.high %v14369_v4, %v14369_v4 }
 0x5d2   : > { %14289 = vst.msk [vmem:[%s25102_s12 + $0x68] sm:$0x1] %vm10058_vm7, %v13873_v0  ;;  %14290 = vst.msk [vmem:[%s25102_s12 + $0x78] sm:$0x1] %vm10058_vm7, %v13875_v28  ;;  %v14378_v7 = vrot.slane %v14362_v1, %v25067_v48  ;;  %v14385_v14 = vrot.slane %v14369_v4, %v25067_v48  ;;  %v15455_v11 = vrot.slane %v15427_v45, %v25067_v48 }
 0x5d3   : > { %15867 = vst.msk [vmem:[%s25102_s12 + $0xb] sm:$0x1] %vm10058_vm7, %v15434_v41  ;;  %v15457_v18 = vcombine.high %v15441_v36, %v15441_v36  ;;  %v15458_v0 = vcombine.high %v15448_v21, %v15448_v21  ;;  %15868 = vst.msk [vmem:[%s25102_s12 + $0x1b] sm:$0x1] %vm10058_vm7, %v15448_v21  ;;  %v14932_v61 = vcombine.high %v9492_v55, %v9492_v55 }
 0x5d4   : > { %15869 = vst.msk [vmem:[%s25102_s12 + $0x2b] sm:$0x1] %vm10058_vm7, %v15456_v12  ;;  %15871 = vst.msk [vmem:[%s25102_s12 + $0x4b] sm:$0x1] %vm10058_vm7, %v15441_v36  ;;  %v14392_v28 = vrot.slane %v14370_v60, %v25067_v48  ;;  %v14399_v9 = vrot.slane %v14371_v51, %v25067_v48  ;;  %v14400_v20 = vcombine.high %v14378_v7, %v14378_v7  ;;  %v9493_v60 = vmax.f32 %v9365_v15, 0.0 }
 0x5d5   : > { %v14401_v26 = vcombine.high %v14385_v14, %v14385_v14  ;;  %14811 = vst.msk [vmem:[%s25102_s12 + $0x9] sm:$0x1] %vm10058_vm7, %v14378_v7  ;;  %14815 = vst.msk [vmem:[%s25102_s12 + $0x49] sm:$0x1] %vm10058_vm7, %v14385_v14  ;;  %v15459_v41 = vcombine.high %v15455_v11, %v15455_v11  ;;  %v14939_v1 = vrot.slane %v9492_v55, %v25067_v48 }
 0x5d6   : > { %15870 = vst.msk [vmem:[%s25102_s12 + $0x3b] sm:$0x1] %vm10058_vm7, %v15458_v0  ;;  %15872 = vst.msk [vmem:[%s25102_s12 + $0x5b] sm:$0x1] %vm10058_vm7, %v15455_v11  ;;  %v14946_v4 = vrot.slane %v14932_v61, %v25067_v48  ;;  %v13876_v45 = vcombine.high %v9490_v53, %v9490_v53  ;;  %v14402_v36 = vcombine.high %v14392_v28, %v14392_v28  ;;  %v27002_v11 = vpop.f32.mrb[52].mxu1  ;;  %v27010_v61 = vpop.f32.mrb[52].mxu0 }
 0x5d7   : > { %15873 = vst.msk [vmem:[%s25102_s12 + $0x6b] sm:$0x1] %vm10058_vm7, %v15457_v18  ;;  %v14403_v21 = vcombine.high %v14399_v9, %v14399_v9  ;;  %14812 = vst.msk [vmem:[%s25102_s12 + $0x19] sm:$0x1] %vm10058_vm7, %v14392_v28  ;;  %v13883_v12 = vrot.slane %v9490_v53, %v25067_v48  ;;  %v14947_v55 = vcombine.high %v14939_v1, %v14939_v1 }
 0x5d8   : > { %14813 = vst.msk [vmem:[%s25102_s12 + $0x29] sm:$0x1] %vm10058_vm7, %v14400_v20  ;;  %14816 = vst.msk [vmem:[%s25102_s12 + $0x59] sm:$0x1] %vm10058_vm7, %v14399_v9  ;;  %v14948_v51 = vcombine.high %v14946_v4, %v14946_v4  ;;  %v14955_v7 = vrot.slane %v14939_v1, %v25067_v48  ;;  %v14962_v14 = vrot.slane %v14946_v4, %v25067_v48 }
 0x5d9   : > { %14817 = vst.msk [vmem:[%s25102_s12 + $0x69] sm:$0x1] %vm10058_vm7, %v14401_v26  ;;  %15874 = vst.msk [vmem:[%s25102_s12 + $0x7b] sm:$0x1] %vm10058_vm7, %v15459_v41  ;;  %v13890_v53 = vrot.slane %v13876_v45, %v25067_v48  ;;  %v13891_v15 = vcombine.high %v13883_v12, %v13883_v12  ;;  %v13899_v18 = vrot.slane %v13883_v12, %v25067_v48 }
 0x5da   : > { %14814 = vst.msk [vmem:[%s25102_s12 + $0x39] sm:$0x1] %vm10058_vm7, %v14402_v36  ;;  %14818 = vst.msk [vmem:[%s25102_s12 + $0x79] sm:$0x1] %vm10058_vm7, %v14403_v21  ;;  %v15460_v0 = vcombine.high %v9493_v60, %v9493_v60  ;;  %v14969_v28 = vrot.slane %v14947_v55, %v25067_v48  ;;  %v14976_v9 = vrot.slane %v14948_v51, %v25067_v48  ;;  %v27022_v36 = vpop.f32.mrb[53].mxu1 }
 0x5db   : > { %v14977_v20 = vcombine.high %v14955_v7, %v14955_v7  ;;  %v14978_v26 = vcombine.high %v14962_v14, %v14962_v14  ;;  %15347 = vst.msk [vmem:[%s25102_s12 + $0x8a] sm:$0x1] %vm10058_vm7, %v14955_v7  ;;  %15351 = vst.msk [vmem:[%s25102_s12 + $0xca] sm:$0x1] %vm10058_vm7, %v14962_v14  ;;  %v13892_v41 = vcombine.high %v13890_v53, %v13890_v53 }
 0x5dc   : > { %v13906_v1 = vrot.slane %v13890_v53, %v25067_v48  ;;  %v13913_v4 = vrot.slane %v13891_v15, %v25067_v48  ;;  %v13921_v45 = vcombine.high %v13899_v18, %v13899_v18  ;;  %14291 = vst.msk [vmem:[%s25102_s12 + $0x88] sm:$0x1] %vm10058_vm7, %v13899_v18  ;;  %v14979_v21 = vcombine.high %v14969_v28, %v14969_v28 }
 0x5dd   : > { %v14980_v12 = vcombine.high %v14976_v9, %v14976_v9  ;;  %15348 = vst.msk [vmem:[%s25102_s12 + $0x9a] sm:$0x1] %vm10058_vm7, %v14969_v28  ;;  %15349 = vst.msk [vmem:[%s25102_s12 + $0xaa] sm:$0x1] %vm10058_vm7, %v14977_v20  ;;  %v15467_v55 = vrot.slane %v9493_v60, %v25067_v48  ;;  %v15474_v51 = vrot.slane %v15460_v0, %v25067_v48 }
 0x5de   : > { %15352 = vst.msk [vmem:[%s25102_s12 + $0xda] sm:$0x1] %vm10058_vm7, %v14976_v9  ;;  %15353 = vst.msk [vmem:[%s25102_s12 + $0xea] sm:$0x1] %vm10058_vm7, %v14978_v26  ;;  %v13920_v7 = vrot.slane %v13892_v41, %v25067_v48  ;;  %v13922_v14 = vcombine.high %v13906_v1, %v13906_v1  ;;  %v13923_v53 = vcombine.high %v13913_v4, %v13913_v4 }
 0x5df   : > { %14292 = vst.msk [vmem:[%s25102_s12 + $0x98] sm:$0x1] %vm10058_vm7, %v13913_v4  ;;  %14293 = vst.msk [vmem:[%s25102_s12 + $0xa8] sm:$0x1] %vm10058_vm7, %v13921_v45  ;;  %v9363_v15 = vadd.f32 %v25071_v49, %v26078_v29  ;;  %v15475_v60 = vcombine.high %v15467_v55, %v15467_v55  ;;  %v15476_v18 = vcombine.high %v15474_v51, %v15474_v51 }
 0x5e0   : > { %14295 = vst.msk [vmem:[%s25102_s12 + $0xc8] sm:$0x1] %vm10058_vm7, %v13906_v1  ;;  %15350 = vst.msk [vmem:[%s25102_s12 + $0xba] sm:$0x1] %vm10058_vm7, %v14979_v21  ;;  %v15483_v0 = vrot.slane %v15467_v55, %v25067_v48  ;;  %v15490_v28 = vrot.slane %v15474_v51, %v25067_v48  ;;  %v13924_v9 = vcombine.high %v13920_v7, %v13920_v7  ;;  %v27065_v21 = vpop.f32.mrb[53].mxu0 }
 0x5e1   : > { %15354 = vst.msk [vmem:[%s25102_s12 + $0xfa] sm:$0x1] %vm10058_vm7, %v14980_v12  ;;  %14294 = vst.msk [vmem:[%s25102_s12 + $0xb8] sm:$0x1] %vm10058_vm7, %v13923_v53  ;;  %v9491_v29 = vmax.f32 %v9363_v15, 0.0  ;;  %v9380_v20 = vadd.f32 %v25264_v19, %v26112_v8  ;;  %v9378_v26 = vadd.f32 %v25264_v19, %v26130_v59  ;;  %v15497_v41 = vrot.slane %v15475_v60, %v25067_v48 }
 0x5e2   : > { %14296 = vst.msk [vmem:[%s25102_s12 + $0xd8] sm:$0x1] %vm10058_vm7, %v13920_v7  ;;  %14297 = vst.msk [vmem:[%s25102_s12 + $0xe8] sm:$0x1] %vm10058_vm7, %v13922_v14  ;;  %v15504_v1 = vrot.slane %v15476_v18, %v25067_v48  ;;  %v15505_v4 = vcombine.high %v15483_v0, %v15483_v0  ;;  %v15506_v45 = vcombine.high %v15490_v28, %v15490_v28 }
 0x5e3   : > { %15875 = vst.msk [vmem:[%s25102_s12 + $0x8b] sm:$0x1] %vm10058_vm7, %v15483_v0  ;;  %15879 = vst.msk [vmem:[%s25102_s12 + $0xcb] sm:$0x1] %vm10058_vm7, %v15490_v28  ;;  %v14404_v8 = vcombine.high %v9491_v29, %v9491_v29  ;;  %v14411_v59 = vrot.slane %v9491_v29, %v25067_v48  ;;  %v9508_v12 = vmax.f32 %v9380_v20, 0.0  ;;  %v9506_v55 = vmax.f32 %v9378_v26, 0.0 }
 0x5e4   : > { %14298 = vst.msk [vmem:[%s25102_s12 + $0xf8] sm:$0x1] %vm10058_vm7, %v13924_v9  ;;  %v15507_v51 = vcombine.high %v15497_v41, %v15497_v41  ;;  %v15508_v7 = vcombine.high %v15504_v1, %v15504_v1  ;;  %15876 = vst.msk [vmem:[%s25102_s12 + $0x9b] sm:$0x1] %vm10058_vm7, %v15497_v41  ;;  %v9381_v14 = vadd.f32 %v25264_v19, %v26142_v5  ;;  %v27092_v29 = vpop.f32.mrb[54].mxu1 }
 0x5e5   : > { %15877 = vst.msk [vmem:[%s25102_s12 + $0xab] sm:$0x1] %vm10058_vm7, %v15505_v4  ;;  %15880 = vst.msk [vmem:[%s25102_s12 + $0xdb] sm:$0x1] %vm10058_vm7, %v15504_v1  ;;  %v27082_v53 = vadd.f32 %v25264_v19, %v26188_v40  ;;  %v14418_v15 = vrot.slane %v14404_v8, %v25067_v48  ;;  %v14419_v60 = vcombine.high %v14411_v59, %v14411_v59 }
 0x5e6   : > { %15881 = vst.msk [vmem:[%s25102_s12 + $0xeb] sm:$0x1] %vm10058_vm7, %v15506_v45  ;;  %v14427_v18 = vrot.slane %v14411_v59, %v25067_v48  ;;  %v14981_v0 = vcombine.high %v9508_v12, %v9508_v12  ;;  %15878 = vst.msk [vmem:[%s25102_s12 + $0xbb] sm:$0x1] %vm10058_vm7, %v15507_v51  ;;  %v14988_v28 = vrot.slane %v9508_v12, %v25067_v48  ;;  %v9509_v40 = vmax.f32 %v9381_v14, 0.0 }
 0x5e7   : > { %15882 = vst.msk [vmem:[%s25102_s12 + $0xfb] sm:$0x1] %vm10058_vm7, %v15508_v7  ;;  %v13925_v9 = vcombine.high %v9506_v55, %v9506_v55  ;;  %v13932_v5 = vrot.slane %v9506_v55, %v25067_v48  ;;  %v14420_v20 = vcombine.high %v14418_v15, %v14418_v15  ;;  %v14434_v26 = vrot.slane %v14418_v15, %v25067_v48 }
 0x5e8   : > { %v14441_v41 = vrot.slane %v14419_v60, %v25067_v48  ;;  %v14449_v1 = vcombine.high %v14427_v18, %v14427_v18  ;;  %14819 = vst.msk [vmem:[%s25102_s12 + $0x89] sm:$0x1] %vm10058_vm7, %v14427_v18  ;;  %v14995_v4 = vrot.slane %v14981_v0, %v25067_v48  ;;  %v14996_v45 = vcombine.high %v14988_v28, %v14988_v28  ;;  %v27112_v0 = vpop.f32.mrb[54].mxu0 }
 0x5e9   : > { %v15004_v8 = vrot.slane %v14988_v28, %v25067_v48  ;;  %v13939_v59 = vrot.slane %v13925_v9, %v25067_v48  ;;  %v14448_v12 = vrot.slane %v14420_v20, %v25067_v48  ;;  %v14450_v55 = vcombine.high %v14434_v26, %v14434_v26  ;;  %14823 = vst.msk [vmem:[%s25102_s12 + $0xc9] sm:$0x1] %vm10058_vm7, %v14434_v26  ;;  %v27114_v28 = vpop.f32.mrb[55].mxu1 }
 0x5ea   : > { %v14451_v51 = vcombine.high %v14441_v41, %v14441_v41  ;;  %14820 = vst.msk [vmem:[%s25102_s12 + $0x99] sm:$0x1] %vm10058_vm7, %v14441_v41  ;;  %14821 = vst.msk [vmem:[%s25102_s12 + $0xa9] sm:$0x1] %vm10058_vm7, %v14449_v1  ;;  %v13940_v7 = vcombine.high %v13932_v5, %v13932_v5  ;;  %v14997_v14 = vcombine.high %v14995_v4, %v14995_v4 }
 0x5eb   : > { %v15011_v15 = vrot.slane %v14995_v4, %v25067_v48  ;;  %v15018_v60 = vrot.slane %v14996_v45, %v25067_v48  ;;  %v15026_v18 = vcombine.high %v15004_v8, %v15004_v8  ;;  %15355 = vst.msk [vmem:[%s25102_s12 + $0x10a] sm:$0x1] %vm10058_vm7, %v15004_v8  ;;  %v14452_v9 = vcombine.high %v14448_v12, %v14448_v12 }
 0x5ec   : > { %14822 = vst.msk [vmem:[%s25102_s12 + $0xb9] sm:$0x1] %vm10058_vm7, %v14451_v51  ;;  %14824 = vst.msk [vmem:[%s25102_s12 + $0xd9] sm:$0x1] %vm10058_vm7, %v14448_v12  ;;  %v13941_v20 = vcombine.high %v13939_v59, %v13939_v59  ;;  %v13948_v26 = vrot.slane %v13932_v5, %v25067_v48  ;;  %v13955_v41 = vrot.slane %v13939_v59, %v25067_v48 }
 0x5ed   : > { %14825 = vst.msk [vmem:[%s25102_s12 + $0xe9] sm:$0x1] %vm10058_vm7, %v14450_v55  ;;  %v15025_v1 = vrot.slane %v14997_v14, %v25067_v48  ;;  %v15027_v4 = vcombine.high %v15011_v15, %v15011_v15  ;;  %v15028_v45 = vcombine.high %v15018_v60, %v15018_v60  ;;  %15356 = vst.msk [vmem:[%s25102_s12 + $0x11a] sm:$0x1] %vm10058_vm7, %v15018_v60 }
 0x5ee   : > { %15357 = vst.msk [vmem:[%s25102_s12 + $0x12a] sm:$0x1] %vm10058_vm7, %v15026_v18  ;;  %15359 = vst.msk [vmem:[%s25102_s12 + $0x14a] sm:$0x1] %vm10058_vm7, %v15011_v15  ;;  %v13962_v8 = vrot.slane %v13940_v7, %v25067_v48  ;;  %v13969_v5 = vrot.slane %v13941_v20, %v25067_v48  ;;  %v13970_v59 = vcombine.high %v13948_v26, %v13948_v26  ;;  %v9507_v15 = vmax.f32 %v27082_v53, 0.0 }
 0x5ef   : > { %14826 = vst.msk [vmem:[%s25102_s12 + $0xf9] sm:$0x1] %vm10058_vm7, %v14452_v9  ;;  %v13971_v12 = vcombine.high %v13955_v41, %v13955_v41  ;;  %14299 = vst.msk [vmem:[%s25102_s12 + $0x108] sm:$0x1] %vm10058_vm7, %v13948_v26  ;;  %v15509_v55 = vcombine.high %v9509_v40, %v9509_v40  ;;  %v15029_v51 = vcombine.high %v15025_v1, %v15025_v1 }
 0x5f0   : > { %14303 = vst.msk [vmem:[%s25102_s12 + $0x148] sm:$0x1] %vm10058_vm7, %v13955_v41  ;;  %15358 = vst.msk [vmem:[%s25102_s12 + $0x13a] sm:$0x1] %vm10058_vm7, %v15028_v45  ;;  %v13972_v7 = vcombine.high %v13962_v8, %v13962_v8  ;;  %v15516_v14 = vrot.slane %v9509_v40, %v25067_v48  ;;  %v13973_v60 = vcombine.high %v13969_v5, %v13969_v5 }
 0x5f1   : > { %15360 = vst.msk [vmem:[%s25102_s12 + $0x15a] sm:$0x1] %vm10058_vm7, %v15025_v1  ;;  %15361 = vst.msk [vmem:[%s25102_s12 + $0x16a] sm:$0x1] %vm10058_vm7, %v15027_v4  ;;  %v15523_v18 = vrot.slane %v15509_v55, %v25067_v48  ;;  %v9396_v9 = vadd.f32 %v25375_v52, %v26208_v10  ;;  %v9394_v20 = vadd.f32 %v25375_v52, %v26231_v34  ;;  %v27166_v1 = vpop.f32.mrb[55].mxu0 }
 0x5f2   : > { %14300 = vst.msk [vmem:[%s25102_s12 + $0x118] sm:$0x1] %vm10058_vm7, %v13962_v8  ;;  %14301 = vst.msk [vmem:[%s25102_s12 + $0x128] sm:$0x1] %vm10058_vm7, %v13970_v59  ;;  %v15524_v53 = vcombine.high %v15516_v14, %v15516_v14  ;;  %v15532_v40 = vrot.slane %v15516_v14, %v25067_v48  ;;  %v14453_v26 = vcombine.high %v9507_v15, %v9507_v15 }
 0x5f3   : > { %14304 = vst.msk [vmem:[%s25102_s12 + $0x158] sm:$0x1] %vm10058_vm7, %v13969_v5  ;;  %14305 = vst.msk [vmem:[%s25102_s12 + $0x168] sm:$0x1] %vm10058_vm7, %v13971_v12  ;;  %v14460_v41 = vrot.slane %v9507_v15, %v25067_v48  ;;  %v15525_v10 = vcombine.high %v15523_v18, %v15523_v18  ;;  %v15539_v34 = vrot.slane %v15523_v18, %v25067_v48  ;;  %v9524_v4 = vmax.f32 %v9396_v9, 0.0 }
 0x5f4   : > { %15362 = vst.msk [vmem:[%s25102_s12 + $0x17a] sm:$0x1] %vm10058_vm7, %v15029_v51  ;;  %14302 = vst.msk [vmem:[%s25102_s12 + $0x138] sm:$0x1] %vm10058_vm7, %v13972_v7  ;;  %v9522_v45 = vmax.f32 %v9394_v20, 0.0  ;;  %v15546_v8 = vrot.slane %v15524_v53, %v25067_v48  ;;  %v15554_v5 = vcombine.high %v15532_v40, %v15532_v40  ;;  %v14467_v59 = vrot.slane %v14453_v26, %v25067_v48 }
 0x5f5   : > { %14306 = vst.msk [vmem:[%s25102_s12 + $0x178] sm:$0x1] %vm10058_vm7, %v13973_v60  ;;  %15883 = vst.msk [vmem:[%s25102_s12 + $0x10b] sm:$0x1] %vm10058_vm7, %v15532_v40  ;;  %v14468_v12 = vcombine.high %v14460_v41, %v14460_v41  ;;  %v15553_v55 = vrot.slane %v15525_v10, %v25067_v48  ;;  %v15555_v51 = vcombine.high %v15539_v34, %v15539_v34 }
 0x5f6   : > { %15887 = vst.msk [vmem:[%s25102_s12 + $0x14b] sm:$0x1] %vm10058_vm7, %v15539_v34  ;;  %v14476_v7 = vrot.slane %v14460_v41, %v25067_v48  ;;  %v15030_v14 = vcombine.high %v9524_v4, %v9524_v4  ;;  %v15556_v15 = vcombine.high %v15546_v8, %v15546_v8  ;;  %15884 = vst.msk [vmem:[%s25102_s12 + $0x11b] sm:$0x1] %vm10058_vm7, %v15546_v8 }
 0x5f7   : > { %15885 = vst.msk [vmem:[%s25102_s12 + $0x12b] sm:$0x1] %vm10058_vm7, %v15554_v5  ;;  %v14469_v60 = vcombine.high %v14467_v59, %v14467_v59  ;;  %v14483_v18 = vrot.slane %v14467_v59, %v25067_v48  ;;  %v14490_v9 = vrot.slane %v14468_v12, %v25067_v48  ;;  %v15557_v20 = vcombine.high %v15553_v55, %v15553_v55  ;;  %v27200_v5 = vpop.f32.mrb[56].mxu1 }
 0x5f8   : > { %15888 = vst.msk [vmem:[%s25102_s12 + $0x15b] sm:$0x1] %vm10058_vm7, %v15553_v55  ;;  %15889 = vst.msk [vmem:[%s25102_s12 + $0x16b] sm:$0x1] %vm10058_vm7, %v15555_v51  ;;  %v14498_v53 = vcombine.high %v14476_v7, %v14476_v7  ;;  %v15037_v40 = vrot.slane %v9524_v4, %v25067_v48  ;;  %v15044_v26 = vrot.slane %v15030_v14, %v25067_v48 }
 0x5f9   : > { %14827 = vst.msk [vmem:[%s25102_s12 + $0x109] sm:$0x1] %vm10058_vm7, %v14476_v7  ;;  %15886 = vst.msk [vmem:[%s25102_s12 + $0x13b] sm:$0x1] %vm10058_vm7, %v15556_v15  ;;  %v14497_v41 = vrot.slane %v14469_v60, %v25067_v48  ;;  %v14499_v10 = vcombine.high %v14483_v18, %v14483_v18  ;;  %v14500_v34 = vcombine.high %v14490_v9, %v14490_v9  ;;  %v27218_v60 = vpop.f32.mrb[56].mxu0 }
 0x5fa   : > { %14828 = vst.msk [vmem:[%s25102_s12 + $0x119] sm:$0x1] %vm10058_vm7, %v14490_v9  ;;  %14831 = vst.msk [vmem:[%s25102_s12 + $0x149] sm:$0x1] %vm10058_vm7, %v14483_v18  ;;  %v13974_v8 = vcombine.high %v9522_v45, %v9522_v45  ;;  %v15045_v4 = vcombine.high %v15037_v40, %v15037_v40  ;;  %v15046_v59 = vcombine.high %v15044_v26, %v15044_v26 }
 0x5fb   : > { %15890 = vst.msk [vmem:[%s25102_s12 + $0x17b] sm:$0x1] %vm10058_vm7, %v15557_v20  ;;  %14829 = vst.msk [vmem:[%s25102_s12 + $0x129] sm:$0x1] %vm10058_vm7, %v14498_v53  ;;  %v15053_v12 = vrot.slane %v15037_v40, %v25067_v48  ;;  %v15060_v55 = vrot.slane %v15044_v26, %v25067_v48  ;;  %v14501_v51 = vcombine.high %v14497_v41, %v14497_v41 }
 0x5fc   : > { %14830 = vst.msk [vmem:[%s25102_s12 + $0x139] sm:$0x1] %vm10058_vm7, %v14500_v34  ;;  %14832 = vst.msk [vmem:[%s25102_s12 + $0x159] sm:$0x1] %vm10058_vm7, %v14497_v41  ;;  %v13981_v7 = vrot.slane %v9522_v45, %v25067_v48  ;;  %v13988_v14 = vrot.slane %v13974_v8, %v25067_v48  ;;  %v9397_v15 = vadd.f32 %v25375_v52, %v26252_v35  ;;  %v27230_v41 = vpop.f32.mrb[57].mxu1 }
 0x5fd   : > { %14833 = vst.msk [vmem:[%s25102_s12 + $0x169] sm:$0x1] %vm10058_vm7, %v14499_v10  ;;  %v15067_v18 = vrot.slane %v15045_v4, %v25067_v48  ;;  %v15074_v9 = vrot.slane %v15046_v59, %v25067_v48  ;;  %v15075_v20 = vcombine.high %v15053_v12, %v15053_v12  ;;  %v15076_v53 = vcombine.high %v15060_v55, %v15060_v55 }
 0x5fe   : > { %15363 = vst.msk [vmem:[%s25102_s12 + $0x18a] sm:$0x1] %vm10058_vm7, %v15053_v12  ;;  %15367 = vst.msk [vmem:[%s25102_s12 + $0x1ca] sm:$0x1] %vm10058_vm7, %v15060_v55  ;;  %v13989_v45 = vcombine.high %v13981_v7, %v13981_v7  ;;  %v13990_v35 = vcombine.high %v13988_v14, %v13988_v14  ;;  %v13997_v40 = vrot.slane %v13981_v7, %v25067_v48  ;;  %v9525_v8 = vmax.f32 %v9397_v15, 0.0 }
 0x5ff   : > { %14834 = vst.msk [vmem:[%s25102_s12 + $0x179] sm:$0x1] %vm10058_vm7, %v14501_v51  ;;  %v14004_v26 = vrot.slane %v13988_v14, %v25067_v48  ;;  %v15077_v10 = vcombine.high %v15067_v18, %v15067_v18  ;;  %v15078_v34 = vcombine.high %v15074_v9, %v15074_v9  ;;  %15364 = vst.msk [vmem:[%s25102_s12 + $0x19a] sm:$0x1] %vm10058_vm7, %v15067_v18 }
 0x600   : > { %15365 = vst.msk [vmem:[%s25102_s12 + $0x1aa] sm:$0x1] %vm10058_vm7, %v15075_v20  ;;  %15368 = vst.msk [vmem:[%s25102_s12 + $0x1da] sm:$0x1] %vm10058_vm7, %v15074_v9  ;;  %v9395_v4 = vadd.f32 %v25375_v52, %v26299_v16  ;;  %v14011_v59 = vrot.slane %v13989_v45, %v25067_v48  ;;  %v14018_v12 = vrot.slane %v13990_v35, %v25067_v48 }
 0x601   : > { %15369 = vst.msk [vmem:[%s25102_s12 + $0x1ea] sm:$0x1] %vm10058_vm7, %v15076_v53  ;;  %v14019_v55 = vcombine.high %v13997_v40, %v13997_v40  ;;  %v14020_v51 = vcombine.high %v14004_v26, %v14004_v26  ;;  %14307 = vst.msk [vmem:[%s25102_s12 + $0x188] sm:$0x1] %vm10058_vm7, %v13997_v40  ;;  %v15558_v7 = vcombine.high %v9525_v8, %v9525_v8 }
 0x602   : > { %14311 = vst.msk [vmem:[%s25102_s12 + $0x1c8] sm:$0x1] %vm10058_vm7, %v14004_v26  ;;  %15366 = vst.msk [vmem:[%s25102_s12 + $0x1ba] sm:$0x1] %vm10058_vm7, %v15077_v10  ;;  %v15565_v16 = vrot.slane %v9525_v8, %v25067_v48  ;;  %v9523_v14 = vmax.f32 %v9395_v4, 0.0  ;;  %v9412_v15 = vadd.f32 %v25492_v50, %v26332_v3  ;;  %v14021_v18 = vcombine.high %v14011_v59, %v14011_v59 }
 0x603   : > { %15370 = vst.msk [vmem:[%s25102_s12 + $0x1fa] sm:$0x1] %vm10058_vm7, %v15078_v34  ;;  %v14022_v9 = vcombine.high %v14018_v12, %v14018_v12  ;;  %14308 = vst.msk [vmem:[%s25102_s12 + $0x198] sm:$0x1] %vm10058_vm7, %v14011_v59  ;;  %v9410_v20 = vadd.f32 %v25492_v50, %v26339_v46  ;;  %v9413_v53 = vadd.f32 %v25492_v50, %v26364_v2  ;;  %v27276_v2 = vpop.f32.mrb[57].mxu0 }
 0x604   : > { %14309 = vst.msk [vmem:[%s25102_s12 + $0x1a8] sm:$0x1] %vm10058_vm7, %v14019_v55  ;;  %14312 = vst.msk [vmem:[%s25102_s12 + $0x1d8] sm:$0x1] %vm10058_vm7, %v14018_v12  ;;  %v15572_v45 = vrot.slane %v15558_v7, %v25067_v48  ;;  %v15573_v3 = vcombine.high %v15565_v16, %v15565_v16  ;;  %v15581_v35 = vrot.slane %v15565_v16, %v25067_v48  ;;  %v9540_v10 = vmax.f32 %v9412_v15, 0.0 }
 0x605   : > { %14313 = vst.msk [vmem:[%s25102_s12 + $0x1e8] sm:$0x1] %vm10058_vm7, %v14020_v51  ;;  %v14502_v40 = vcombine.high %v9523_v14, %v9523_v14  ;;  %14310 = vst.msk [vmem:[%s25102_s12 + $0x1b8] sm:$0x1] %vm10058_vm7, %v14021_v18  ;;  %v14509_v26 = vrot.slane %v9523_v14, %v25067_v48  ;;  %v9538_v34 = vmax.f32 %v9410_v20, 0.0  ;;  %v27274_v46 = vmax.f32 %v9413_v53, 0.0 }
 0x606   : > { %14314 = vst.msk [vmem:[%s25102_s12 + $0x1f8] sm:$0x1] %vm10058_vm7, %v14022_v9  ;;  %v15574_v8 = vcombine.high %v15572_v45, %v15572_v45  ;;  %v15588_v4 = vrot.slane %v15572_v45, %v25067_v48  ;;  %v15595_v59 = vrot.slane %v15573_v3, %v25067_v48  ;;  %v15603_v12 = vcombine.high %v15581_v35, %v15581_v35 }
 0x607   : > { %15891 = vst.msk [vmem:[%s25102_s12 + $0x18b] sm:$0x1] %vm10058_vm7, %v15581_v35  ;;  %v14516_v55 = vrot.slane %v14502_v40, %v25067_v48  ;;  %v14517_v51 = vcombine.high %v14509_v26, %v14509_v26  ;;  %v14525_v7 = vrot.slane %v14509_v26, %v25067_v48  ;;  %v15079_v16 = vcombine.high %v9540_v10, %v9540_v10  ;;  %v27296_v35 = vpop.f32.mrb[58].mxu1 }
 0x608   : > { %v15602_v14 = vrot.slane %v15574_v8, %v25067_v48  ;;  %v15604_v15 = vcombine.high %v15588_v4, %v15588_v4  ;;  %v15605_v18 = vcombine.high %v15595_v59, %v15595_v59  ;;  %15892 = vst.msk [vmem:[%s25102_s12 + $0x19b] sm:$0x1] %vm10058_vm7, %v15595_v59  ;;  %15893 = vst.msk [vmem:[%s25102_s12 + $0x1ab] sm:$0x1] %vm10058_vm7, %v15603_v12 }
 0x609   : > { %15895 = vst.msk [vmem:[%s25102_s12 + $0x1cb] sm:$0x1] %vm10058_vm7, %v15588_v4  ;;  %v15086_v9 = vrot.slane %v9540_v10, %v25067_v48  ;;  %v14518_v20 = vcombine.high %v14516_v55, %v14516_v55  ;;  %v14532_v53 = vrot.slane %v14516_v55, %v25067_v48  ;;  %v14539_v45 = vrot.slane %v14517_v51, %v25067_v48 }
 0x60a   : > { %v14547_v3 = vcombine.high %v14525_v7, %v14525_v7  ;;  %14835 = vst.msk [vmem:[%s25102_s12 + $0x189] sm:$0x1] %vm10058_vm7, %v14525_v7  ;;  %v15606_v40 = vcombine.high %v15602_v14, %v15602_v14  ;;  %15894 = vst.msk [vmem:[%s25102_s12 + $0x1bb] sm:$0x1] %vm10058_vm7, %v15605_v18  ;;  %v15093_v26 = vrot.slane %v15079_v16, %v25067_v48 }
 0x60b   : > { %15896 = vst.msk [vmem:[%s25102_s12 + $0x1db] sm:$0x1] %vm10058_vm7, %v15602_v14  ;;  %15897 = vst.msk [vmem:[%s25102_s12 + $0x1eb] sm:$0x1] %vm10058_vm7, %v15604_v15  ;;  %v15094_v10 = vcombine.high %v15086_v9, %v15086_v9  ;;  %v15102_v8 = vrot.slane %v15086_v9, %v25067_v48  ;;  %v14546_v4 = vrot.slane %v14518_v20, %v25067_v48  ;;  %v27319_v15 = vpop.f32.mrb[58].mxu0 }
 0x60c   : > { %v14548_v59 = vcombine.high %v14532_v53, %v14532_v53  ;;  %v14549_v12 = vcombine.high %v14539_v45, %v14539_v45  ;;  %14836 = vst.msk [vmem:[%s25102_s12 + $0x199] sm:$0x1] %vm10058_vm7, %v14539_v45  ;;  %14837 = vst.msk [vmem:[%s25102_s12 + $0x1a9] sm:$0x1] %vm10058_vm7, %v14547_v3  ;;  %v14023_v55 = vcombine.high %v9538_v34, %v9538_v34 }
 0x60d   : > { %14839 = vst.msk [vmem:[%s25102_s12 + $0x1c9] sm:$0x1] %vm10058_vm7, %v14532_v53  ;;  %15898 = vst.msk [vmem:[%s25102_s12 + $0x1fb] sm:$0x1] %vm10058_vm7, %v15606_v40  ;;  %v15095_v51 = vcombine.high %v15093_v26, %v15093_v26  ;;  %v15109_v7 = vrot.slane %v15093_v26, %v25067_v48  ;;  %v15116_v16 = vrot.slane %v15094_v10, %v25067_v48  ;;  %v27340_v26 = vpop.f32.mrb[59].mxu1 }
 0x60e   : > { %v15124_v14 = vcombine.high %v15102_v8, %v15102_v8  ;;  %15371 = vst.msk [vmem:[%s25102_s12 + $0x20a] sm:$0x1] %vm10058_vm7, %v15102_v8  ;;  %v14550_v18 = vcombine.high %v14546_v4, %v14546_v4  ;;  %14838 = vst.msk [vmem:[%s25102_s12 + $0x1b9] sm:$0x1] %vm10058_vm7, %v14549_v12  ;;  %v14030_v9 = vrot.slane %v9538_v34, %v25067_v48 }
 0x60f   : > { %14840 = vst.msk [vmem:[%s25102_s12 + $0x1d9] sm:$0x1] %vm10058_vm7, %v14546_v4  ;;  %14841 = vst.msk [vmem:[%s25102_s12 + $0x1e9] sm:$0x1] %vm10058_vm7, %v14548_v59  ;;  %v14037_v20 = vrot.slane %v14023_v55, %v25067_v48  ;;  %v15607_v53 = vcombine.high %v27274_v46, %v27274_v46  ;;  %v15123_v45 = vrot.slane %v15095_v51, %v25067_v48 }
 0x610   : > { %v15125_v3 = vcombine.high %v15109_v7, %v15109_v7  ;;  %v15126_v40 = vcombine.high %v15116_v16, %v15116_v16  ;;  %15372 = vst.msk [vmem:[%s25102_s12 + $0x21a] sm:$0x1] %vm10058_vm7, %v15116_v16  ;;  %15373 = vst.msk [vmem:[%s25102_s12 + $0x22a] sm:$0x1] %vm10058_vm7, %v15124_v14  ;;  %v15614_v34 = vrot.slane %v27274_v46, %v25067_v48 }
 0x611   : > { %15375 = vst.msk [vmem:[%s25102_s12 + $0x24a] sm:$0x1] %vm10058_vm7, %v15109_v7  ;;  %14842 = vst.msk [vmem:[%s25102_s12 + $0x1f9] sm:$0x1] %vm10058_vm7, %v14550_v18  ;;  %v14038_v10 = vcombine.high %v14030_v9, %v14030_v9  ;;  %v14039_v8 = vcombine.high %v14037_v20, %v14037_v20  ;;  %v14046_v4 = vrot.slane %v14030_v9, %v25067_v48 }
 0x612   : > { %v14053_v59 = vrot.slane %v14037_v20, %v25067_v48  ;;  %v15127_v12 = vcombine.high %v15123_v45, %v15123_v45  ;;  %15374 = vst.msk [vmem:[%s25102_s12 + $0x23a] sm:$0x1] %vm10058_vm7, %v15126_v40  ;;  %15376 = vst.msk [vmem:[%s25102_s12 + $0x25a] sm:$0x1] %vm10058_vm7, %v15123_v45  ;;  %v15621_v46 = vrot.slane %v15607_v53, %v25067_v48 }
 0x613   : > { %15377 = vst.msk [vmem:[%s25102_s12 + $0x26a] sm:$0x1] %vm10058_vm7, %v15125_v3  ;;  %v15622_v55 = vcombine.high %v15614_v34, %v15614_v34  ;;  %v15630_v51 = vrot.slane %v15614_v34, %v25067_v48  ;;  %v14060_v7 = vrot.slane %v14038_v10, %v25067_v48  ;;  %v14067_v16 = vrot.slane %v14039_v8, %v25067_v48 }
 0x614   : > { %v14068_v14 = vcombine.high %v14046_v4, %v14046_v4  ;;  %v14069_v18 = vcombine.high %v14053_v59, %v14053_v59  ;;  %14315 = vst.msk [vmem:[%s25102_s12 + $0x208] sm:$0x1] %vm10058_vm7, %v14046_v4  ;;  %14319 = vst.msk [vmem:[%s25102_s12 + $0x248] sm:$0x1] %vm10058_vm7, %v14053_v59  ;;  %v15623_v9 = vcombine.high %v15621_v46, %v15621_v46 }
 0x615   : > { %15378 = vst.msk [vmem:[%s25102_s12 + $0x27a] sm:$0x1] %vm10058_vm7, %v15127_v12  ;;  %v15637_v20 = vrot.slane %v15621_v46, %v25067_v48  ;;  %v15644_v53 = vrot.slane %v15622_v55, %v25067_v48  ;;  %v15652_v45 = vcombine.high %v15630_v51, %v15630_v51  ;;  %15899 = vst.msk [vmem:[%s25102_s12 + $0x20b] sm:$0x1] %vm10058_vm7, %v15630_v51 }
 0x616   : > { %v14070_v3 = vcombine.high %v14060_v7, %v14060_v7  ;;  %v14071_v40 = vcombine.high %v14067_v16, %v14067_v16  ;;  %14316 = vst.msk [vmem:[%s25102_s12 + $0x218] sm:$0x1] %vm10058_vm7, %v14060_v7  ;;  %14317 = vst.msk [vmem:[%s25102_s12 + $0x228] sm:$0x1] %vm10058_vm7, %v14068_v14  ;;  %v9411_v34 = vadd.f32 %v25492_v50, %v26387_v42  ;;  %v27387_v42 = vpop.f32.mrb[59].mxu0 }
 0x617   : > { %14320 = vst.msk [vmem:[%s25102_s12 + $0x258] sm:$0x1] %vm10058_vm7, %v14067_v16  ;;  %14321 = vst.msk [vmem:[%s25102_s12 + $0x268] sm:$0x1] %vm10058_vm7, %v14069_v18  ;;  %v9428_v10 = vadd.f32 %v25592_v47, %v26458_v38  ;;  %v15651_v8 = vrot.slane %v15623_v9, %v25067_v48  ;;  %v15653_v4 = vcombine.high %v15637_v20, %v15637_v20 }
 0x618   : > { %v15654_v59 = vcombine.high %v15644_v53, %v15644_v53  ;;  %15900 = vst.msk [vmem:[%s25102_s12 + $0x21b] sm:$0x1] %vm10058_vm7, %v15644_v53  ;;  %15901 = vst.msk [vmem:[%s25102_s12 + $0x22b] sm:$0x1] %vm10058_vm7, %v15652_v45  ;;  %v9426_v12 = vadd.f32 %v25592_v47, %v26466_v39  ;;  %v9539_v38 = vmax.f32 %v9411_v34, 0.0  ;;  %v9429_v55 = vadd.f32 %v25592_v47, %v26478_v22 }
 0x619   : > { %15903 = vst.msk [vmem:[%s25102_s12 + $0x24b] sm:$0x1] %vm10058_vm7, %v15637_v20  ;;  %14318 = vst.msk [vmem:[%s25102_s12 + $0x238] sm:$0x1] %vm10058_vm7, %v14070_v3  ;;  %v9556_v46 = vmax.f32 %v9428_v10, 0.0  ;;  %v9427_v51 = vadd.f32 %v25592_v47, %v26521_v43  ;;  %v15655_v7 = vcombine.high %v15651_v8, %v15651_v8  ;;  %v27405_v16 = vadd.f32 %v25718_v37, %v26548_v56  ;;  %v27420_v3 = vpop.f32.mrb[60].mxu1 }
 0x61a   : > { %14322 = vst.msk [vmem:[%s25102_s12 + $0x278] sm:$0x1] %vm10058_vm7, %v14071_v40  ;;  %15902 = vst.msk [vmem:[%s25102_s12 + $0x23b] sm:$0x1] %vm10058_vm7, %v15654_v59  ;;  %v9554_v39 = vmax.f32 %v9426_v12, 0.0  ;;  %v27409_v14 = vadd.f32 %v25718_v37, %v26568_v25  ;;  %v14551_v22 = vcombine.high %v9539_v38, %v9539_v38  ;;  %v14558_v18 = vrot.slane %v9539_v38, %v25067_v48  ;;  %v27427_v38 = vpop.f32.mrb[60].mxu0 }
 0x61b   : > { %15904 = vst.msk [vmem:[%s25102_s12 + $0x25b] sm:$0x1] %vm10058_vm7, %v15651_v8  ;;  %15905 = vst.msk [vmem:[%s25102_s12 + $0x26b] sm:$0x1] %vm10058_vm7, %v15653_v4  ;;  %v15128_v43 = vcombine.high %v9556_v46, %v9556_v46  ;;  %v15135_v9 = vrot.slane %v9556_v46, %v25067_v48  ;;  %v27416_v45 = vmax.f32 %v9429_v55, 0.0  ;;  %v27418_v56 = vmax.f32 %v9427_v51, 0.0 }
 0x61c   : > { %15906 = vst.msk [vmem:[%s25102_s12 + $0x27b] sm:$0x1] %vm10058_vm7, %v15655_v7  ;;  %v14072_v20 = vcombine.high %v9554_v39, %v9554_v39  ;;  %v14079_v53 = vrot.slane %v9554_v39, %v25067_v48  ;;  %v14565_v25 = vrot.slane %v14551_v22, %v25067_v48  ;;  %v14566_v40 = vcombine.high %v14558_v18, %v14558_v18 }
 0x61d   : > { %v14574_v34 = vrot.slane %v14558_v18, %v25067_v48  ;;  %v15142_v10 = vrot.slane %v15128_v43, %v25067_v48  ;;  %v15143_v8 = vcombine.high %v15135_v9, %v15135_v9  ;;  %v15151_v4 = vrot.slane %v15135_v9, %v25067_v48 }
 0x61e   : > { %v14086_v59 = vrot.slane %v14072_v20, %v25067_v48  ;;  %v14087_v12 = vcombine.high %v14079_v53, %v14079_v53  ;;  %v14567_v46 = vcombine.high %v14565_v25, %v14565_v25  ;;  %v14581_v55 = vrot.slane %v14565_v25, %v25067_v48 }
 0x61f   : > { %v14588_v51 = vrot.slane %v14566_v40, %v25067_v48  ;;  %v14596_v7 = vcombine.high %v14574_v34, %v14574_v34  ;;  %14843 = vst.msk [vmem:[%s25102_s12 + $0x209] sm:$0x1] %vm10058_vm7, %v14574_v34  ;;  %v15144_v39 = vcombine.high %v15142_v10, %v15142_v10  ;;  %v15158_v22 = vrot.slane %v15142_v10, %v25067_v48 }
 0x620   : > { %v15165_v18 = vrot.slane %v15143_v8, %v25067_v48  ;;  %v15173_v43 = vcombine.high %v15151_v4, %v15151_v4  ;;  %15379 = vst.msk [vmem:[%s25102_s12 + $0x28a] sm:$0x1] %vm10058_vm7, %v15151_v4  ;;  %v14595_v9 = vrot.slane %v14567_v46, %v25067_v48  ;;  %v14597_v20 = vcombine.high %v14581_v55, %v14581_v55  ;;  %v27452_v46 = vpop.f32.mrb[61].mxu1 }
 0x621   : > { %v14598_v25 = vcombine.high %v14588_v51, %v14588_v51  ;;  %14844 = vst.msk [vmem:[%s25102_s12 + $0x219] sm:$0x1] %vm10058_vm7, %v14588_v51  ;;  %14845 = vst.msk [vmem:[%s25102_s12 + $0x229] sm:$0x1] %vm10058_vm7, %v14596_v7  ;;  %v14088_v40 = vcombine.high %v14086_v59, %v14086_v59  ;;  %v15172_v34 = vrot.slane %v15144_v39, %v25067_v48 }
 0x622   : > { %14847 = vst.msk [vmem:[%s25102_s12 + $0x249] sm:$0x1] %vm10058_vm7, %v14581_v55  ;;  %v15174_v10 = vcombine.high %v15158_v22, %v15158_v22  ;;  %v15175_v8 = vcombine.high %v15165_v18, %v15165_v18  ;;  %15380 = vst.msk [vmem:[%s25102_s12 + $0x29a] sm:$0x1] %vm10058_vm7, %v15165_v18  ;;  %v14095_v4 = vrot.slane %v14079_v53, %v25067_v48  ;;  %v27475_v18 = vpop.f32.mrb[61].mxu0 }
 0x623   : > { %15381 = vst.msk [vmem:[%s25102_s12 + $0x2aa] sm:$0x1] %vm10058_vm7, %v15173_v43  ;;  %15383 = vst.msk [vmem:[%s25102_s12 + $0x2ca] sm:$0x1] %vm10058_vm7, %v15158_v22  ;;  %v14599_v55 = vcombine.high %v14595_v9, %v14595_v9  ;;  %v14102_v51 = vrot.slane %v14086_v59, %v25067_v48  ;;  %v14109_v7 = vrot.slane %v14087_v12, %v25067_v48 }
 0x624   : > { %14846 = vst.msk [vmem:[%s25102_s12 + $0x239] sm:$0x1] %vm10058_vm7, %v14598_v25  ;;  %14848 = vst.msk [vmem:[%s25102_s12 + $0x259] sm:$0x1] %vm10058_vm7, %v14595_v9  ;;  %v14116_v39 = vrot.slane %v14088_v40, %v25067_v48  ;;  %v15176_v53 = vcombine.high %v15172_v34, %v15172_v34  ;;  %v14117_v22 = vcombine.high %v14095_v4, %v14095_v4 }
 0x625   : > { %14849 = vst.msk [vmem:[%s25102_s12 + $0x269] sm:$0x1] %vm10058_vm7, %v14597_v20  ;;  %15382 = vst.msk [vmem:[%s25102_s12 + $0x2ba] sm:$0x1] %vm10058_vm7, %v15175_v8  ;;  %v15656_v59 = vcombine.high %v27416_v45, %v27416_v45  ;;  %v15663_v12 = vrot.slane %v27416_v45, %v25067_v48  ;;  %v14118_v43 = vcombine.high %v14102_v51, %v14102_v51 }
 0x626   : > { %15384 = vst.msk [vmem:[%s25102_s12 + $0x2da] sm:$0x1] %vm10058_vm7, %v15172_v34  ;;  %15385 = vst.msk [vmem:[%s25102_s12 + $0x2ea] sm:$0x1] %vm10058_vm7, %v15174_v10  ;;  %v14119_v9 = vcombine.high %v14109_v7, %v14109_v7  ;;  %v14120_v20 = vcombine.high %v14116_v39, %v14116_v39  ;;  %v14600_v25 = vcombine.high %v27418_v56, %v27418_v56 }
 0x627   : > { %14323 = vst.msk [vmem:[%s25102_s12 + $0x288] sm:$0x1] %vm10058_vm7, %v14095_v4  ;;  %14850 = vst.msk [vmem:[%s25102_s12 + $0x279] sm:$0x1] %vm10058_vm7, %v14599_v55  ;;  %v15670_v45 = vrot.slane %v15656_v59, %v25067_v48  ;;  %v15671_v40 = vcombine.high %v15663_v12, %v15663_v12  ;;  %v15679_v34 = vrot.slane %v15663_v12, %v25067_v48  ;;  %v9572_v4 = vmax.f32 %v27405_v16, 0.0 }
 0x628   : > { %14324 = vst.msk [vmem:[%s25102_s12 + $0x298] sm:$0x1] %vm10058_vm7, %v14109_v7  ;;  %14327 = vst.msk [vmem:[%s25102_s12 + $0x2c8] sm:$0x1] %vm10058_vm7, %v14102_v51  ;;  %v14607_v10 = vrot.slane %v27418_v56, %v25067_v48  ;;  %v14614_v8 = vrot.slane %v14600_v25, %v25067_v48  ;;  %v9570_v55 = vmax.f32 %v27409_v14, 0.0  ;;  %v9445_v51 = vadd.f32 %v25718_v37, %v26570_v24 }
 0x629   : > { %14328 = vst.msk [vmem:[%s25102_s12 + $0x2d8] sm:$0x1] %vm10058_vm7, %v14116_v39  ;;  %15386 = vst.msk [vmem:[%s25102_s12 + $0x2fa] sm:$0x1] %vm10058_vm7, %v15176_v53  ;;  %v15672_v7 = vcombine.high %v15670_v45, %v15670_v45  ;;  %v15686_v56 = vrot.slane %v15670_v45, %v25067_v48  ;;  %v15693_v39 = vrot.slane %v15671_v40, %v25067_v48 }
 0x62a   : > { %14325 = vst.msk [vmem:[%s25102_s12 + $0x2a8] sm:$0x1] %vm10058_vm7, %v14117_v22  ;;  %14326 = vst.msk [vmem:[%s25102_s12 + $0x2b8] sm:$0x1] %vm10058_vm7, %v14119_v9  ;;  %v15701_v53 = vcombine.high %v15679_v34, %v15679_v34  ;;  %v14615_v22 = vcombine.high %v14607_v10, %v14607_v10  ;;  %v14616_v59 = vcombine.high %v14614_v8, %v14614_v8 }
 0x62b   : > { %14329 = vst.msk [vmem:[%s25102_s12 + $0x2e8] sm:$0x1] %vm10058_vm7, %v14118_v43  ;;  %14330 = vst.msk [vmem:[%s25102_s12 + $0x2f8] sm:$0x1] %vm10058_vm7, %v14120_v20  ;;  %v14623_v16 = vrot.slane %v14607_v10, %v25067_v48  ;;  %v14630_v14 = vrot.slane %v14614_v8, %v25067_v48  ;;  %v15700_v24 = vrot.slane %v15672_v7, %v25067_v48 }
 0x62c   : > { %15907 = vst.msk [vmem:[%s25102_s12 + $0x28b] sm:$0x1] %vm10058_vm7, %v15679_v34  ;;  %v15702_v12 = vcombine.high %v15686_v56, %v15686_v56  ;;  %v15703_v43 = vcombine.high %v15693_v39, %v15693_v39  ;;  %15908 = vst.msk [vmem:[%s25102_s12 + $0x29b] sm:$0x1] %vm10058_vm7, %v15693_v39  ;;  %v15177_v9 = vcombine.high %v9572_v4, %v9572_v4 }
 0x62d   : > { %15909 = vst.msk [vmem:[%s25102_s12 + $0x2ab] sm:$0x1] %vm10058_vm7, %v15701_v53  ;;  %15911 = vst.msk [vmem:[%s25102_s12 + $0x2cb] sm:$0x1] %vm10058_vm7, %v15686_v56  ;;  %v14637_v20 = vrot.slane %v14615_v22, %v25067_v48  ;;  %v14644_v25 = vrot.slane %v14616_v59, %v25067_v48  ;;  %v14645_v45 = vcombine.high %v14623_v16, %v14623_v16  ;;  %v9573_v22 = vmax.f32 %v9445_v51, 0.0 }
 0x62e   : > { %v14646_v40 = vcombine.high %v14630_v14, %v14630_v14  ;;  %14851 = vst.msk [vmem:[%s25102_s12 + $0x289] sm:$0x1] %vm10058_vm7, %v14623_v16  ;;  %14855 = vst.msk [vmem:[%s25102_s12 + $0x2c9] sm:$0x1] %vm10058_vm7, %v14630_v14  ;;  %v15704_v34 = vcombine.high %v15700_v24, %v15700_v24  ;;  %v15184_v10 = vrot.slane %v9572_v4, %v25067_v48 }
 0x62f   : > { %15910 = vst.msk [vmem:[%s25102_s12 + $0x2bb] sm:$0x1] %vm10058_vm7, %v15703_v43  ;;  %15912 = vst.msk [vmem:[%s25102_s12 + $0x2db] sm:$0x1] %vm10058_vm7, %v15700_v24  ;;  %v15191_v8 = vrot.slane %v15177_v9, %v25067_v48  ;;  %v14121_v7 = vcombine.high %v9570_v55, %v9570_v55  ;;  %v14647_v56 = vcombine.high %v14637_v20, %v14637_v20  ;;  %v27546_v24 = vpop.f32.mrb[62].mxu1  ;;  %v27554_v9 = vpop.f32.mrb[62].mxu0 }
 0x630   : > { %15913 = vst.msk [vmem:[%s25102_s12 + $0x2eb] sm:$0x1] %vm10058_vm7, %v15702_v12  ;;  %v14648_v39 = vcombine.high %v14644_v25, %v14644_v25  ;;  %14852 = vst.msk [vmem:[%s25102_s12 + $0x299] sm:$0x1] %vm10058_vm7, %v14637_v20  ;;  %v14128_v53 = vrot.slane %v9570_v55, %v25067_v48  ;;  %v15192_v4 = vcombine.high %v15184_v10, %v15184_v10 }
 0x631   : > { %14853 = vst.msk [vmem:[%s25102_s12 + $0x2a9] sm:$0x1] %vm10058_vm7, %v14645_v45  ;;  %14856 = vst.msk [vmem:[%s25102_s12 + $0x2d9] sm:$0x1] %vm10058_vm7, %v14644_v25  ;;  %v15193_v59 = vcombine.high %v15191_v8, %v15191_v8  ;;  %v15200_v16 = vrot.slane %v15184_v10, %v25067_v48  ;;  %v15207_v14 = vrot.slane %v15191_v8, %v25067_v48 }
 0x632   : > { %14857 = vst.msk [vmem:[%s25102_s12 + $0x2e9] sm:$0x1] %vm10058_vm7, %v14646_v40  ;;  %15914 = vst.msk [vmem:[%s25102_s12 + $0x2fb] sm:$0x1] %vm10058_vm7, %v15704_v34  ;;  %v14135_v55 = vrot.slane %v14121_v7, %v25067_v48  ;;  %v14136_v51 = vcombine.high %v14128_v53, %v14128_v53  ;;  %v14144_v12 = vrot.slane %v14128_v53, %v25067_v48 }
 0x633   : > { %14854 = vst.msk [vmem:[%s25102_s12 + $0x2b9] sm:$0x1] %vm10058_vm7, %v14647_v56  ;;  %14858 = vst.msk [vmem:[%s25102_s12 + $0x2f9] sm:$0x1] %vm10058_vm7, %v14648_v39  ;;  %v15705_v43 = vcombine.high %v9573_v22, %v9573_v22  ;;  %v15214_v20 = vrot.slane %v15192_v4, %v25067_v48  ;;  %v15221_v25 = vrot.slane %v15193_v59, %v25067_v48  ;;  %v27566_v56 = vpop.f32.mrb[63].mxu1 }
 0x634   : > { %v15222_v45 = vcombine.high %v15200_v16, %v15200_v16  ;;  %v15223_v40 = vcombine.high %v15207_v14, %v15207_v14  ;;  %15387 = vst.msk [vmem:[%s25102_s12 + $0x30a] sm:$0x1] %vm10058_vm7, %v15200_v16  ;;  %15391 = vst.msk [vmem:[%s25102_s12 + $0x34a] sm:$0x1] %vm10058_vm7, %v15207_v14  ;;  %v14137_v34 = vcombine.high %v14135_v55, %v14135_v55 }
 0x635   : > { %v14151_v10 = vrot.slane %v14135_v55, %v25067_v48  ;;  %v14158_v8 = vrot.slane %v14136_v51, %v25067_v48  ;;  %v14166_v7 = vcombine.high %v14144_v12, %v14144_v12  ;;  %14331 = vst.msk [vmem:[%s25102_s12 + $0x308] sm:$0x1] %vm10058_vm7, %v14144_v12  ;;  %v15224_v39 = vcombine.high %v15214_v20, %v15214_v20 }
 0x636   : > { %v15225_v53 = vcombine.high %v15221_v25, %v15221_v25  ;;  %15388 = vst.msk [vmem:[%s25102_s12 + $0x31a] sm:$0x1] %vm10058_vm7, %v15214_v20  ;;  %15389 = vst.msk [vmem:[%s25102_s12 + $0x32a] sm:$0x1] %vm10058_vm7, %v15222_v45  ;;  %v15712_v4 = vrot.slane %v9573_v22, %v25067_v48  ;;  %v15719_v59 = vrot.slane %v15705_v43, %v25067_v48 }
 0x637   : > { %15392 = vst.msk [vmem:[%s25102_s12 + $0x35a] sm:$0x1] %vm10058_vm7, %v15221_v25  ;;  %15393 = vst.msk [vmem:[%s25102_s12 + $0x36a] sm:$0x1] %vm10058_vm7, %v15223_v40  ;;  %v14165_v16 = vrot.slane %v14137_v34, %v25067_v48  ;;  %v14167_v14 = vcombine.high %v14151_v10, %v14151_v10  ;;  %v14168_v55 = vcombine.high %v14158_v8, %v14158_v8 }
 0x638   : > { %14332 = vst.msk [vmem:[%s25102_s12 + $0x318] sm:$0x1] %vm10058_vm7, %v14158_v8  ;;  %14333 = vst.msk [vmem:[%s25102_s12 + $0x328] sm:$0x1] %vm10058_vm7, %v14166_v7  ;;  %v9443_v51 = vadd.f32 %v25718_v37, %v26622_v31  ;;  %v15720_v22 = vcombine.high %v15712_v4, %v15712_v4  ;;  %v15721_v12 = vcombine.high %v15719_v59, %v15719_v59 }
 0x639   : > { %14335 = vst.msk [vmem:[%s25102_s12 + $0x348] sm:$0x1] %vm10058_vm7, %v14151_v10  ;;  %15390 = vst.msk [vmem:[%s25102_s12 + $0x33a] sm:$0x1] %vm10058_vm7, %v15224_v39  ;;  %v15728_v43 = vrot.slane %v15712_v4, %v25067_v48  ;;  %v15735_v20 = vrot.slane %v15719_v59, %v25067_v48  ;;  %v14169_v25 = vcombine.high %v14165_v16, %v14165_v16  ;;  %v27609_v39 = vpop.f32.mrb[63].mxu0 }
 0x63a   : > { %15394 = vst.msk [vmem:[%s25102_s12 + $0x37a] sm:$0x1] %vm10058_vm7, %v15225_v53  ;;  %14334 = vst.msk [vmem:[%s25102_s12 + $0x338] sm:$0x1] %vm10058_vm7, %v14168_v55  ;;  %v9571_v31 = vmax.f32 %v9443_v51, 0.0  ;;  %v9460_v45 = vadd.f32 %v25744_v44, %v26656_v62  ;;  %v9458_v40 = vadd.f32 %v25744_v44, %v26674_v17  ;;  %v15742_v34 = vrot.slane %v15720_v22, %v25067_v48 }
 0x63b   : > { %14336 = vst.msk [vmem:[%s25102_s12 + $0x358] sm:$0x1] %vm10058_vm7, %v14165_v16  ;;  %14337 = vst.msk [vmem:[%s25102_s12 + $0x368] sm:$0x1] %vm10058_vm7, %v14167_v14  ;;  %v15749_v10 = vrot.slane %v15721_v12, %v25067_v48  ;;  %v15750_v8 = vcombine.high %v15728_v43, %v15728_v43  ;;  %v15751_v7 = vcombine.high %v15735_v20, %v15735_v20 }
 0x63c   : > { %15915 = vst.msk [vmem:[%s25102_s12 + $0x30b] sm:$0x1] %vm10058_vm7, %v15728_v43  ;;  %15919 = vst.msk [vmem:[%s25102_s12 + $0x34b] sm:$0x1] %vm10058_vm7, %v15735_v20  ;;  %v14649_v62 = vcombine.high %v9571_v31, %v9571_v31  ;;  %v14656_v17 = vrot.slane %v9571_v31, %v25067_v48  ;;  %v9588_v53 = vmax.f32 %v9460_v45, 0.0  ;;  %v9586_v4 = vmax.f32 %v9458_v40, 0.0 }
 0x63d   : > { %14338 = vst.msk [vmem:[%s25102_s12 + $0x378] sm:$0x1] %vm10058_vm7, %v14169_v25  ;;  %v15752_v59 = vcombine.high %v15742_v34, %v15742_v34  ;;  %v15753_v16 = vcombine.high %v15749_v10, %v15749_v10  ;;  %15916 = vst.msk [vmem:[%s25102_s12 + $0x31b] sm:$0x1] %vm10058_vm7, %v15742_v34  ;;  %v9461_v14 = vadd.f32 %v25744_v44, %v26686_v33 }
 0x63e   : > { %15917 = vst.msk [vmem:[%s25102_s12 + $0x32b] sm:$0x1] %vm10058_vm7, %v15750_v8  ;;  %15920 = vst.msk [vmem:[%s25102_s12 + $0x35b] sm:$0x1] %vm10058_vm7, %v15749_v10  ;;  %v9459_v55 = vadd.f32 %v25744_v44, %v26732_v27  ;;  %v14663_v51 = vrot.slane %v14649_v62, %v25067_v48  ;;  %v14664_v22 = vcombine.high %v14656_v17, %v14656_v17 }
 0x63f   : > { %15921 = vst.msk [vmem:[%s25102_s12 + $0x36b] sm:$0x1] %vm10058_vm7, %v15751_v7  ;;  %v14672_v12 = vrot.slane %v14656_v17, %v25067_v48  ;;  %v15226_v43 = vcombine.high %v9588_v53, %v9588_v53  ;;  %15918 = vst.msk [vmem:[%s25102_s12 + $0x33b] sm:$0x1] %vm10058_vm7, %v15752_v59  ;;  %v15233_v20 = vrot.slane %v9588_v53, %v25067_v48  ;;  %v9589_v31 = vmax.f32 %v9461_v14, 0.0 }
 0x640   : > { %15922 = vst.msk [vmem:[%s25102_s12 + $0x37b] sm:$0x1] %vm10058_vm7, %v15753_v16  ;;  %v14170_v25 = vcombine.high %v9586_v4, %v9586_v4  ;;  %v14177_v33 = vrot.slane %v9586_v4, %v25067_v48  ;;  %v14665_v27 = vcombine.high %v14663_v51, %v14663_v51  ;;  %v14679_v45 = vrot.slane %v14663_v51, %v25067_v48 }
 0x641   : > { %v14686_v40 = vrot.slane %v14664_v22, %v25067_v48  ;;  %v14694_v34 = vcombine.high %v14672_v12, %v14672_v12  ;;  %14859 = vst.msk [vmem:[%s25102_s12 + $0x309] sm:$0x1] %vm10058_vm7, %v14672_v12  ;;  %v15240_v10 = vrot.slane %v15226_v43, %v25067_v48  ;;  %v15241_v8 = vcombine.high %v15233_v20, %v15233_v20 }
 0x642   : > { %v15249_v7 = vrot.slane %v15233_v20, %v25067_v48  ;;  %v14184_v62 = vrot.slane %v14170_v25, %v25067_v48  ;;  %v14693_v17 = vrot.slane %v14665_v27, %v25067_v48  ;;  %v14695_v53 = vcombine.high %v14679_v45, %v14679_v45  ;;  %14863 = vst.msk [vmem:[%s25102_s12 + $0x349] sm:$0x1] %vm10058_vm7, %v14679_v45 }
 0x643   : > { %v14696_v4 = vcombine.high %v14686_v40, %v14686_v40  ;;  %14860 = vst.msk [vmem:[%s25102_s12 + $0x319] sm:$0x1] %vm10058_vm7, %v14686_v40  ;;  %14861 = vst.msk [vmem:[%s25102_s12 + $0x329] sm:$0x1] %vm10058_vm7, %v14694_v34  ;;  %v14185_v59 = vcombine.high %v14177_v33, %v14177_v33  ;;  %v15242_v16 = vcombine.high %v15240_v10, %v15240_v10 }
 0x644   : > { %v15256_v14 = vrot.slane %v15240_v10, %v25067_v48  ;;  %v15263_v51 = vrot.slane %v15241_v8, %v25067_v48  ;;  %v15271_v22 = vcombine.high %v15249_v7, %v15249_v7  ;;  %15395 = vst.msk [vmem:[%s25102_s12 + $0x38a] sm:$0x1] %vm10058_vm7, %v15249_v7  ;;  %v14697_v12 = vcombine.high %v14693_v17, %v14693_v17 }
 0x645   : > { %14862 = vst.msk [vmem:[%s25102_s12 + $0x339] sm:$0x1] %vm10058_vm7, %v14696_v4  ;;  %14864 = vst.msk [vmem:[%s25102_s12 + $0x359] sm:$0x1] %vm10058_vm7, %v14693_v17  ;;  %v14186_v43 = vcombine.high %v14184_v62, %v14184_v62  ;;  %v14193_v20 = vrot.slane %v14177_v33, %v25067_v48  ;;  %v14200_v25 = vrot.slane %v14184_v62, %v25067_v48  ;;  %v9587_v4 = vmax.f32 %v9459_v55, 0.0 }
 0x646   : > { %14865 = vst.msk [vmem:[%s25102_s12 + $0x369] sm:$0x1] %vm10058_vm7, %v14695_v53  ;;  %v15270_v27 = vrot.slane %v15242_v16, %v25067_v48  ;;  %v15272_v45 = vcombine.high %v15256_v14, %v15256_v14  ;;  %v15273_v40 = vcombine.high %v15263_v51, %v15263_v51  ;;  %15396 = vst.msk [vmem:[%s25102_s12 + $0x39a] sm:$0x1] %vm10058_vm7, %v15263_v51 }
 0x647   : > { %15397 = vst.msk [vmem:[%s25102_s12 + $0x3aa] sm:$0x1] %vm10058_vm7, %v15271_v22  ;;  %15399 = vst.msk [vmem:[%s25102_s12 + $0x3ca] sm:$0x1] %vm10058_vm7, %v15256_v14  ;;  %v14207_v34 = vrot.slane %v14185_v59, %v25067_v48  ;;  %v14214_v33 = vrot.slane %v14186_v43, %v25067_v48  ;;  %v14215_v10 = vcombine.high %v14193_v20, %v14193_v20 }
 0x648   : > { %14866 = vst.msk [vmem:[%s25102_s12 + $0x379] sm:$0x1] %vm10058_vm7, %v14697_v12  ;;  %v14216_v8 = vcombine.high %v14200_v25, %v14200_v25  ;;  %14339 = vst.msk [vmem:[%s25102_s12 + $0x388] sm:$0x1] %vm10058_vm7, %v14193_v20  ;;  %v15754_v7 = vcombine.high %v9589_v31, %v9589_v31  ;;  %v15274_v62 = vcombine.high %v15270_v27, %v15270_v27 }
 0x649   : > { %14343 = vst.msk [vmem:[%s25102_s12 + $0x3c8] sm:$0x1] %vm10058_vm7, %v14200_v25  ;;  %15398 = vst.msk [vmem:[%s25102_s12 + $0x3ba] sm:$0x1] %vm10058_vm7, %v15273_v40  ;;  %v14217_v17 = vcombine.high %v14207_v34, %v14207_v34  ;;  %v15761_v53 = vrot.slane %v9589_v31, %v25067_v48  ;;  %v14218_v59 = vcombine.high %v14214_v33, %v14214_v33 }
 0x64a   : > { %15400 = vst.msk [vmem:[%s25102_s12 + $0x3da] sm:$0x1] %vm10058_vm7, %v15270_v27  ;;  %15401 = vst.msk [vmem:[%s25102_s12 + $0x3ea] sm:$0x1] %vm10058_vm7, %v15272_v45  ;;  %v15768_v16 = vrot.slane %v15754_v7, %v25067_v48  ;;  %v9352_v14 = vadd.f32 %v25063_v63, %v26752_v32  ;;  %v9350_v51 = vadd.f32 %v25063_v63, %v26775_v30 }
 0x64b   : > { %14340 = vst.msk [vmem:[%s25102_s12 + $0x398] sm:$0x1] %vm10058_vm7, %v14207_v34  ;;  %14341 = vst.msk [vmem:[%s25102_s12 + $0x3a8] sm:$0x1] %vm10058_vm7, %v14215_v10  ;;  %v15769_v55 = vcombine.high %v15761_v53, %v15761_v53  ;;  %v15777_v31 = vrot.slane %v15761_v53, %v25067_v48  ;;  %v14698_v22 = vcombine.high %v9587_v4, %v9587_v4 }
 0x64c   : > { %14344 = vst.msk [vmem:[%s25102_s12 + $0x3d8] sm:$0x1] %vm10058_vm7, %v14214_v33  ;;  %14345 = vst.msk [vmem:[%s25102_s12 + $0x3e8] sm:$0x1] %vm10058_vm7, %v14216_v8  ;;  %v14705_v12 = vrot.slane %v9587_v4, %v25067_v48  ;;  %v15770_v43 = vcombine.high %v15768_v16, %v15768_v16  ;;  %v15784_v32 = vrot.slane %v15768_v16, %v25067_v48  ;;  %v9480_v20 = vmax.f32 %v9352_v14, 0.0 }
 0x64d   : > { %15402 = vst.msk [vmem:[%s25102_s12 + $0x3fa] sm:$0x1] %vm10058_vm7, %v15274_v62  ;;  %14342 = vst.msk [vmem:[%s25102_s12 + $0x3b8] sm:$0x1] %vm10058_vm7, %v14217_v17  ;;  %v9478_v30 = vmax.f32 %v9350_v51, 0.0  ;;  %v15791_v25 = vrot.slane %v15769_v55, %v25067_v48  ;;  %v15799_v27 = vcombine.high %v15777_v31, %v15777_v31  ;;  %v14712_v45 = vrot.slane %v14698_v22, %v25067_v48 }
 0x64e   : > { %14346 = vst.msk [vmem:[%s25102_s12 + $0x3f8] sm:$0x1] %vm10058_vm7, %v14218_v59  ;;  %15923 = vst.msk [vmem:[%s25102_s12 + $0x38b] sm:$0x1] %vm10058_vm7, %v15777_v31  ;;  %v14713_v40 = vcombine.high %v14705_v12, %v14705_v12  ;;  %v15798_v34 = vrot.slane %v15770_v43, %v25067_v48  ;;  %v15800_v33 = vcombine.high %v15784_v32, %v15784_v32 }
 0x64f   : > { %15927 = vst.msk [vmem:[%s25102_s12 + $0x3cb] sm:$0x1] %vm10058_vm7, %v15784_v32  ;;  %v14721_v10 = vrot.slane %v14705_v12, %v25067_v48  ;;  %v16995_v8 = vcombine.high %v9480_v20, %v9480_v20  ;;  %v15801_v7 = vcombine.high %v15791_v25, %v15791_v25  ;;  %15924 = vst.msk [vmem:[%s25102_s12 + $0x39b] sm:$0x1] %vm10058_vm7, %v15791_v25 }
 0x650   : > { %15925 = vst.msk [vmem:[%s25102_s12 + $0x3ab] sm:$0x1] %vm10058_vm7, %v15799_v27  ;;  %v14714_v62 = vcombine.high %v14712_v45, %v14712_v45  ;;  %v14728_v17 = vrot.slane %v14712_v45, %v25067_v48  ;;  %v14735_v53 = vrot.slane %v14713_v40, %v25067_v48  ;;  %v15802_v4 = vcombine.high %v15798_v34, %v15798_v34 }
 0x651   : > { %15928 = vst.msk [vmem:[%s25102_s12 + $0x3db] sm:$0x1] %vm10058_vm7, %v15798_v34  ;;  %15929 = vst.msk [vmem:[%s25102_s12 + $0x3eb] sm:$0x1] %vm10058_vm7, %v15800_v33  ;;  %v14743_v59 = vcombine.high %v14721_v10, %v14721_v10  ;;  %v17002_v16 = vrot.slane %v9480_v20, %v25067_v48  ;;  %v17009_v14 = vrot.slane %v16995_v8, %v25067_v48 }
 0x652   : > { %14867 = vst.msk [vmem:[%s25102_s12 + $0x389] sm:$0x1] %vm10058_vm7, %v14721_v10  ;;  %15926 = vst.msk [vmem:[%s25102_s12 + $0x3bb] sm:$0x1] %vm10058_vm7, %v15801_v7  ;;  %v14742_v51 = vrot.slane %v14714_v62, %v25067_v48  ;;  %v14744_v55 = vcombine.high %v14728_v17, %v14728_v17  ;;  %v14745_v31 = vcombine.high %v14735_v53, %v14735_v53 }
 0x653   : > { %14868 = vst.msk [vmem:[%s25102_s12 + $0x399] sm:$0x1] %vm10058_vm7, %v14735_v53  ;;  %14871 = vst.msk [vmem:[%s25102_s12 + $0x3c9] sm:$0x1] %vm10058_vm7, %v14728_v17  ;;  %v15939_v22 = vcombine.high %v9478_v30, %v9478_v30  ;;  %v17010_v12 = vcombine.high %v17002_v16, %v17002_v16  ;;  %v17011_v43 = vcombine.high %v17009_v14, %v17009_v14 }
 0x654   : > { %15930 = vst.msk [vmem:[%s25102_s12 + $0x3fb] sm:$0x1] %vm10058_vm7, %v15802_v4  ;;  %14869 = vst.msk [vmem:[%s25102_s12 + $0x3a9] sm:$0x1] %vm10058_vm7, %v14743_v59  ;;  %v17018_v32 = vrot.slane %v17002_v16, %v25067_v48  ;;  %v17025_v20 = vrot.slane %v17009_v14, %v25067_v48  ;;  %v14746_v25 = vcombine.high %v14742_v51, %v14742_v51 }
 0x655   : > { %14870 = vst.msk [vmem:[%s25102_s12 + $0x3b9] sm:$0x1] %vm10058_vm7, %v14745_v31  ;;  %14872 = vst.msk [vmem:[%s25102_s12 + $0x3d9] sm:$0x1] %vm10058_vm7, %v14742_v51  ;;  %v15946_v27 = vrot.slane %v9478_v30, %v25067_v48  ;;  %v15953_v45 = vrot.slane %v15939_v22, %v25067_v48  ;;  %v9353_v40 = vadd.f32 %v25063_v63, %v26796_v57 }
 0x656   : > { %14873 = vst.msk [vmem:[%s25102_s12 + $0x3e9] sm:$0x1] %vm10058_vm7, %v14744_v55  ;;  %v17032_v34 = vrot.slane %v17010_v12, %v25067_v48  ;;  %v17039_v33 = vrot.slane %v17011_v43, %v25067_v48  ;;  %v17040_v10 = vcombine.high %v17018_v32, %v17018_v32  ;;  %v17041_v8 = vcombine.high %v17025_v20, %v17025_v20 }
 0x657   : > { %17451 = vst.msk [vmem:[%s25102_s12 + $0xe] sm:$0x1] %vm10058_vm7, %v17018_v32  ;;  %17455 = vst.msk [vmem:[%s25102_s12 + $0x4e] sm:$0x1] %vm10058_vm7, %v17025_v20  ;;  %v15954_v30 = vcombine.high %v15946_v27, %v15946_v27  ;;  %v15955_v7 = vcombine.high %v15953_v45, %v15953_v45  ;;  %v15962_v57 = vrot.slane %v15946_v27, %v25067_v48  ;;  %v9481_v4 = vmax.f32 %v9353_v40, 0.0 }
 0x658   : > { %14874 = vst.msk [vmem:[%s25102_s12 + $0x3f9] sm:$0x1] %vm10058_vm7, %v14746_v25  ;;  %v15969_v62 = vrot.slane %v15953_v45, %v25067_v48  ;;  %v17042_v17 = vcombine.high %v17032_v34, %v17032_v34  ;;  %v17043_v53 = vcombine.high %v17039_v33, %v17039_v33  ;;  %17452 = vst.msk [vmem:[%s25102_s12 + $0x1e] sm:$0x1] %vm10058_vm7, %v17032_v34 }
 0x659   : > { %17453 = vst.msk [vmem:[%s25102_s12 + $0x2e] sm:$0x1] %vm10058_vm7, %v17040_v10  ;;  %17456 = vst.msk [vmem:[%s25102_s12 + $0x5e] sm:$0x1] %vm10058_vm7, %v17039_v33  ;;  %v9351_v59 = vadd.f32 %v25063_v63, %v26843_v54  ;;  %v15976_v16 = vrot.slane %v15954_v30, %v25067_v48  ;;  %v15983_v14 = vrot.slane %v15955_v7, %v25067_v48 }
 0x65a   : > { %17457 = vst.msk [vmem:[%s25102_s12 + $0x6e] sm:$0x1] %vm10058_vm7, %v17041_v8  ;;  %v15984_v51 = vcombine.high %v15962_v57, %v15962_v57  ;;  %v15985_v55 = vcombine.high %v15969_v62, %v15969_v62  ;;  %16395 = vst.msk [vmem:[%s25102_s12 + $0xc] sm:$0x1] %vm10058_vm7, %v15962_v57  ;;  %v17523_v31 = vcombine.high %v9481_v4, %v9481_v4 }
 0x65b   : > { %16399 = vst.msk [vmem:[%s25102_s12 + $0x4c] sm:$0x1] %vm10058_vm7, %v15969_v62  ;;  %17454 = vst.msk [vmem:[%s25102_s12 + $0x3e] sm:$0x1] %vm10058_vm7, %v17042_v17  ;;  %v17530_v63 = vrot.slane %v9481_v4, %v25067_v48  ;;  %v9479_v54 = vmax.f32 %v9351_v59, 0.0  ;;  %v9368_v22 = vadd.f32 %v25071_v49, %v26876_v23  ;;  %v15986_v12 = vcombine.high %v15976_v16, %v15976_v16 }
 0x65c   : > { %17458 = vst.msk [vmem:[%s25102_s12 + $0x7e] sm:$0x1] %vm10058_vm7, %v17043_v53  ;;  %v15987_v43 = vcombine.high %v15983_v14, %v15983_v14  ;;  %16396 = vst.msk [vmem:[%s25102_s12 + $0x1c] sm:$0x1] %vm10058_vm7, %v15976_v16  ;;  %v9366_v32 = vadd.f32 %v25071_v49, %v26883_v6  ;;  %v9369_v20 = vadd.f32 %v25071_v49, %v26908_v13 }
 0x65d   : > { %16397 = vst.msk [vmem:[%s25102_s12 + $0x2c] sm:$0x1] %vm10058_vm7, %v15984_v51  ;;  %16400 = vst.msk [vmem:[%s25102_s12 + $0x5c] sm:$0x1] %vm10058_vm7, %v15983_v14  ;;  %v17537_v25 = vrot.slane %v17523_v31, %v25067_v48  ;;  %v17538_v23 = vcombine.high %v17530_v63, %v17530_v63  ;;  %v17546_v27 = vrot.slane %v17530_v63, %v25067_v48  ;;  %v9496_v34 = vmax.f32 %v9368_v22, 0.0 }
 0x65e   : > { %16401 = vst.msk [vmem:[%s25102_s12 + $0x6c] sm:$0x1] %vm10058_vm7, %v15985_v55  ;;  %v16467_v45 = vcombine.high %v9479_v54, %v9479_v54  ;;  %16398 = vst.msk [vmem:[%s25102_s12 + $0x3c] sm:$0x1] %vm10058_vm7, %v15986_v12  ;;  %v16474_v40 = vrot.slane %v9479_v54, %v25067_v48  ;;  %v9494_v6 = vmax.f32 %v9366_v32, 0.0  ;;  %v27801_v33 = vmax.f32 %v9369_v20, 0.0 }
 0x65f   : > { %16402 = vst.msk [vmem:[%s25102_s12 + $0x7c] sm:$0x1] %vm10058_vm7, %v15987_v43  ;;  %v17539_v13 = vcombine.high %v17537_v25, %v17537_v25  ;;  %v17553_v10 = vrot.slane %v17537_v25, %v25067_v48  ;;  %v17560_v8 = vrot.slane %v17538_v23, %v25067_v48  ;;  %v17568_v30 = vcombine.high %v17546_v27, %v17546_v27 }
 0x660   : > { %17979 = vst.msk [vmem:[%s25102_s12 + $0xf] sm:$0x1] %vm10058_vm7, %v17546_v27  ;;  %v16481_v7 = vrot.slane %v16467_v45, %v25067_v48  ;;  %v16482_v57 = vcombine.high %v16474_v40, %v16474_v40  ;;  %v16490_v62 = vrot.slane %v16474_v40, %v25067_v48  ;;  %v17044_v17 = vcombine.high %v9496_v34, %v9496_v34 }
 0x661   : > { %v17567_v53 = vrot.slane %v17539_v13, %v25067_v48  ;;  %v17569_v4 = vcombine.high %v17553_v10, %v17553_v10  ;;  %v17570_v59 = vcombine.high %v17560_v8, %v17560_v8  ;;  %17980 = vst.msk [vmem:[%s25102_s12 + $0x1f] sm:$0x1] %vm10058_vm7, %v17560_v8  ;;  %17981 = vst.msk [vmem:[%s25102_s12 + $0x2f] sm:$0x1] %vm10058_vm7, %v17568_v30 }
 0x662   : > { %17983 = vst.msk [vmem:[%s25102_s12 + $0x4f] sm:$0x1] %vm10058_vm7, %v17553_v10  ;;  %v17051_v16 = vrot.slane %v9496_v34, %v25067_v48  ;;  %v16483_v14 = vcombine.high %v16481_v7, %v16481_v7  ;;  %v16497_v51 = vrot.slane %v16481_v7, %v25067_v48  ;;  %v16504_v55 = vrot.slane %v16482_v57, %v25067_v48 }
 0x663   : > { %v16512_v31 = vcombine.high %v16490_v62, %v16490_v62  ;;  %16923 = vst.msk [vmem:[%s25102_s12 + $0xd] sm:$0x1] %vm10058_vm7, %v16490_v62  ;;  %v17571_v63 = vcombine.high %v17567_v53, %v17567_v53  ;;  %17982 = vst.msk [vmem:[%s25102_s12 + $0x3f] sm:$0x1] %vm10058_vm7, %v17570_v59  ;;  %v17058_v54 = vrot.slane %v17044_v17, %v25067_v48 }
 0x664   : > { %17984 = vst.msk [vmem:[%s25102_s12 + $0x5f] sm:$0x1] %vm10058_vm7, %v17567_v53  ;;  %17985 = vst.msk [vmem:[%s25102_s12 + $0x6f] sm:$0x1] %vm10058_vm7, %v17569_v4  ;;  %v17059_v22 = vcombine.high %v17051_v16, %v17051_v16  ;;  %v17067_v12 = vrot.slane %v17051_v16, %v25067_v48  ;;  %v16511_v43 = vrot.slane %v16483_v14, %v25067_v48 }
 0x665   : > { %v16513_v32 = vcombine.high %v16497_v51, %v16497_v51  ;;  %v16514_v20 = vcombine.high %v16504_v55, %v16504_v55  ;;  %16924 = vst.msk [vmem:[%s25102_s12 + $0x1d] sm:$0x1] %vm10058_vm7, %v16504_v55  ;;  %16925 = vst.msk [vmem:[%s25102_s12 + $0x2d] sm:$0x1] %vm10058_vm7, %v16512_v31  ;;  %v15988_v25 = vcombine.high %v9494_v6, %v9494_v6 }
 0x666   : > { %16927 = vst.msk [vmem:[%s25102_s12 + $0x4d] sm:$0x1] %vm10058_vm7, %v16497_v51  ;;  %17986 = vst.msk [vmem:[%s25102_s12 + $0x7f] sm:$0x1] %vm10058_vm7, %v17571_v63  ;;  %v17060_v23 = vcombine.high %v17058_v54, %v17058_v54  ;;  %v17074_v27 = vrot.slane %v17058_v54, %v25067_v48  ;;  %v17081_v45 = vrot.slane %v17059_v22, %v25067_v48 }
 0x667   : > { %v17089_v40 = vcombine.high %v17067_v12, %v17067_v12  ;;  %17459 = vst.msk [vmem:[%s25102_s12 + $0x8e] sm:$0x1] %vm10058_vm7, %v17067_v12  ;;  %v16515_v34 = vcombine.high %v16511_v43, %v16511_v43  ;;  %16926 = vst.msk [vmem:[%s25102_s12 + $0x3d] sm:$0x1] %vm10058_vm7, %v16514_v20  ;;  %v15995_v13 = vrot.slane %v9494_v6, %v25067_v48 }
 0x668   : > { %16928 = vst.msk [vmem:[%s25102_s12 + $0x5d] sm:$0x1] %vm10058_vm7, %v16511_v43  ;;  %16929 = vst.msk [vmem:[%s25102_s12 + $0x6d] sm:$0x1] %vm10058_vm7, %v16513_v32  ;;  %v16002_v10 = vrot.slane %v15988_v25, %v25067_v48  ;;  %v17572_v8 = vcombine.high %v27801_v33, %v27801_v33  ;;  %v17088_v30 = vrot.slane %v17060_v23, %v25067_v48 }
 0x669   : > { %v17090_v7 = vcombine.high %v17074_v27, %v17074_v27  ;;  %v17091_v57 = vcombine.high %v17081_v45, %v17081_v45  ;;  %17460 = vst.msk [vmem:[%s25102_s12 + $0x9e] sm:$0x1] %vm10058_vm7, %v17081_v45  ;;  %17461 = vst.msk [vmem:[%s25102_s12 + $0xae] sm:$0x1] %vm10058_vm7, %v17089_v40  ;;  %v17579_v6 = vrot.slane %v27801_v33, %v25067_v48 }
 0x66a   : > { %17463 = vst.msk [vmem:[%s25102_s12 + $0xce] sm:$0x1] %vm10058_vm7, %v17074_v27  ;;  %16930 = vst.msk [vmem:[%s25102_s12 + $0x7d] sm:$0x1] %vm10058_vm7, %v16515_v34  ;;  %v16003_v62 = vcombine.high %v15995_v13, %v15995_v13  ;;  %v16004_v17 = vcombine.high %v16002_v10, %v16002_v10  ;;  %v16011_v53 = vrot.slane %v15995_v13, %v25067_v48 }
 0x66b   : > { %v16018_v4 = vrot.slane %v16002_v10, %v25067_v48  ;;  %v17092_v59 = vcombine.high %v17088_v30, %v17088_v30  ;;  %17462 = vst.msk [vmem:[%s25102_s12 + $0xbe] sm:$0x1] %vm10058_vm7, %v17091_v57  ;;  %17464 = vst.msk [vmem:[%s25102_s12 + $0xde] sm:$0x1] %vm10058_vm7, %v17088_v30  ;;  %v17586_v33 = vrot.slane %v17572_v8, %v25067_v48 }
 0x66c   : > { %17465 = vst.msk [vmem:[%s25102_s12 + $0xee] sm:$0x1] %vm10058_vm7, %v17090_v7  ;;  %v17587_v16 = vcombine.high %v17579_v6, %v17579_v6  ;;  %v17595_v14 = vrot.slane %v17579_v6, %v25067_v48  ;;  %v16025_v51 = vrot.slane %v16003_v62, %v25067_v48  ;;  %v16032_v55 = vrot.slane %v16004_v17, %v25067_v48 }
 0x66d   : > { %v16033_v31 = vcombine.high %v16011_v53, %v16011_v53  ;;  %v16034_v63 = vcombine.high %v16018_v4, %v16018_v4  ;;  %16403 = vst.msk [vmem:[%s25102_s12 + $0x8c] sm:$0x1] %vm10058_vm7, %v16011_v53  ;;  %16407 = vst.msk [vmem:[%s25102_s12 + $0xcc] sm:$0x1] %vm10058_vm7, %v16018_v4  ;;  %v17588_v54 = vcombine.high %v17586_v33, %v17586_v33 }
 0x66e   : > { %17466 = vst.msk [vmem:[%s25102_s12 + $0xfe] sm:$0x1] %vm10058_vm7, %v17092_v59  ;;  %v17602_v22 = vrot.slane %v17586_v33, %v25067_v48  ;;  %v17609_v12 = vrot.slane %v17587_v16, %v25067_v48  ;;  %v17617_v43 = vcombine.high %v17595_v14, %v17595_v14  ;;  %17987 = vst.msk [vmem:[%s25102_s12 + $0x8f] sm:$0x1] %vm10058_vm7, %v17595_v14 }
 0x66f   : > { %v16035_v32 = vcombine.high %v16025_v51, %v16025_v51  ;;  %v16036_v20 = vcombine.high %v16032_v55, %v16032_v55  ;;  %16404 = vst.msk [vmem:[%s25102_s12 + $0x9c] sm:$0x1] %vm10058_vm7, %v16025_v51  ;;  %16405 = vst.msk [vmem:[%s25102_s12 + $0xac] sm:$0x1] %vm10058_vm7, %v16033_v31  ;;  %v9367_v25 = vadd.f32 %v25071_v49, %v26931_v58 }
 0x670   : > { %16408 = vst.msk [vmem:[%s25102_s12 + $0xdc] sm:$0x1] %vm10058_vm7, %v16032_v55  ;;  %16409 = vst.msk [vmem:[%s25102_s12 + $0xec] sm:$0x1] %vm10058_vm7, %v16034_v63  ;;  %v9384_v23 = vadd.f32 %v25264_v19, %v27002_v11  ;;  %v17616_v27 = vrot.slane %v17588_v54, %v25067_v48  ;;  %v17618_v45 = vcombine.high %v17602_v22, %v17602_v22 }
 0x671   : > { %v17619_v40 = vcombine.high %v17609_v12, %v17609_v12  ;;  %17988 = vst.msk [vmem:[%s25102_s12 + $0x9f] sm:$0x1] %vm10058_vm7, %v17609_v12  ;;  %17989 = vst.msk [vmem:[%s25102_s12 + $0xaf] sm:$0x1] %vm10058_vm7, %v17617_v43  ;;  %v9382_v34 = vadd.f32 %v25264_v19, %v27010_v61  ;;  %v9495_v49 = vmax.f32 %v9367_v25, 0.0  ;;  %v9385_v11 = vadd.f32 %v25264_v19, %v27022_v36 }
 0x672   : > { %17991 = vst.msk [vmem:[%s25102_s12 + $0xcf] sm:$0x1] %vm10058_vm7, %v17602_v22  ;;  %16406 = vst.msk [vmem:[%s25102_s12 + $0xbc] sm:$0x1] %vm10058_vm7, %v16035_v32  ;;  %v9512_v58 = vmax.f32 %v9384_v23, 0.0  ;;  %v9383_v13 = vadd.f32 %v25264_v19, %v27065_v21  ;;  %v17620_v10 = vcombine.high %v17616_v27, %v17616_v27  ;;  %v27922_v8 = vadd.f32 %v25375_v52, %v27092_v29 }
 0x673   : > { %16410 = vst.msk [vmem:[%s25102_s12 + $0xfc] sm:$0x1] %vm10058_vm7, %v16036_v20  ;;  %17990 = vst.msk [vmem:[%s25102_s12 + $0xbf] sm:$0x1] %vm10058_vm7, %v17619_v40  ;;  %v9510_v61 = vmax.f32 %v9382_v34, 0.0  ;;  %v27926_v30 = vadd.f32 %v25375_v52, %v27112_v0  ;;  %v16516_v36 = vcombine.high %v9495_v49, %v9495_v49  ;;  %v16523_v7 = vrot.slane %v9495_v49, %v25067_v48 }
 0x674   : > { %17992 = vst.msk [vmem:[%s25102_s12 + $0xdf] sm:$0x1] %vm10058_vm7, %v17616_v27  ;;  %17993 = vst.msk [vmem:[%s25102_s12 + $0xef] sm:$0x1] %vm10058_vm7, %v17618_v45  ;;  %v17093_v19 = vcombine.high %v9512_v58, %v9512_v58  ;;  %v17100_v21 = vrot.slane %v9512_v58, %v25067_v48  ;;  %v9513_v62 = vmax.f32 %v9385_v11, 0.0  ;;  %v27933_v17 = vmax.f32 %v9383_v13, 0.0 }
 0x675   : > { %17994 = vst.msk [vmem:[%s25102_s12 + $0xff] sm:$0x1] %vm10058_vm7, %v17620_v10  ;;  %v16037_v57 = vcombine.high %v9510_v61, %v9510_v61  ;;  %v16044_v6 = vrot.slane %v9510_v61, %v25067_v48  ;;  %v16530_v29 = vrot.slane %v16516_v36, %v25067_v48  ;;  %v16531_v53 = vcombine.high %v16523_v7, %v16523_v7 }
 0x676   : > { %v16539_v0 = vrot.slane %v16523_v7, %v25067_v48  ;;  %v17107_v4 = vrot.slane %v17093_v19, %v25067_v48  ;;  %v17108_v59 = vcombine.high %v17100_v21, %v17100_v21  ;;  %v17116_v33 = vrot.slane %v17100_v21, %v25067_v48 }
 0x677   : > { %v16051_v16 = vrot.slane %v16037_v57, %v25067_v48  ;;  %v16052_v14 = vcombine.high %v16044_v6, %v16044_v6  ;;  %v16532_v51 = vcombine.high %v16530_v29, %v16530_v29  ;;  %v16546_v55 = vrot.slane %v16530_v29, %v25067_v48 }
 0x678   : > { %v16553_v31 = vrot.slane %v16531_v53, %v25067_v48  ;;  %v16561_v63 = vcombine.high %v16539_v0, %v16539_v0  ;;  %16931 = vst.msk [vmem:[%s25102_s12 + $0x8d] sm:$0x1] %vm10058_vm7, %v16539_v0  ;;  %v17109_v54 = vcombine.high %v17107_v4, %v17107_v4  ;;  %v17123_v22 = vrot.slane %v17107_v4, %v25067_v48 }
 0x679   : > { %v17130_v12 = vrot.slane %v17108_v59, %v25067_v48  ;;  %v17138_v43 = vcombine.high %v17116_v33, %v17116_v33  ;;  %17467 = vst.msk [vmem:[%s25102_s12 + $0x10e] sm:$0x1] %vm10058_vm7, %v17116_v33  ;;  %v16560_v32 = vrot.slane %v16532_v51, %v25067_v48  ;;  %v16562_v20 = vcombine.high %v16546_v55, %v16546_v55 }
 0x67a   : > { %v16563_v25 = vcombine.high %v16553_v31, %v16553_v31  ;;  %16932 = vst.msk [vmem:[%s25102_s12 + $0x9d] sm:$0x1] %vm10058_vm7, %v16553_v31  ;;  %16933 = vst.msk [vmem:[%s25102_s12 + $0xad] sm:$0x1] %vm10058_vm7, %v16561_v63  ;;  %v16053_v23 = vcombine.high %v16051_v16, %v16051_v16  ;;  %v17137_v27 = vrot.slane %v17109_v54, %v25067_v48  ;;  %v9528_v59 = vmax.f32 %v27922_v8, 0.0 }
 0x67b   : > { %16935 = vst.msk [vmem:[%s25102_s12 + $0xcd] sm:$0x1] %vm10058_vm7, %v16546_v55  ;;  %v17139_v45 = vcombine.high %v17123_v22, %v17123_v22  ;;  %v17140_v40 = vcombine.high %v17130_v12, %v17130_v12  ;;  %17468 = vst.msk [vmem:[%s25102_s12 + $0x11e] sm:$0x1] %vm10058_vm7, %v17130_v12  ;;  %v16060_v34 = vrot.slane %v16044_v6, %v25067_v48  ;;  %v9526_v33 = vmax.f32 %v27926_v30, 0.0 }
 0x67c   : > { %17469 = vst.msk [vmem:[%s25102_s12 + $0x12e] sm:$0x1] %vm10058_vm7, %v17138_v43  ;;  %17471 = vst.msk [vmem:[%s25102_s12 + $0x14e] sm:$0x1] %vm10058_vm7, %v17123_v22  ;;  %v16564_v49 = vcombine.high %v16560_v32, %v16560_v32  ;;  %v16067_v58 = vrot.slane %v16051_v16, %v25067_v48  ;;  %v16074_v11 = vrot.slane %v16052_v14, %v25067_v48 }
 0x67d   : > { %16934 = vst.msk [vmem:[%s25102_s12 + $0xbd] sm:$0x1] %vm10058_vm7, %v16563_v25  ;;  %16936 = vst.msk [vmem:[%s25102_s12 + $0xdd] sm:$0x1] %vm10058_vm7, %v16560_v32  ;;  %v16081_v13 = vrot.slane %v16053_v23, %v25067_v48  ;;  %v17141_v10 = vcombine.high %v17137_v27, %v17137_v27  ;;  %v16082_v61 = vcombine.high %v16060_v34, %v16060_v34 }
 0x67e   : > { %16937 = vst.msk [vmem:[%s25102_s12 + $0xed] sm:$0x1] %vm10058_vm7, %v16562_v20  ;;  %17470 = vst.msk [vmem:[%s25102_s12 + $0x13e] sm:$0x1] %vm10058_vm7, %v17140_v40  ;;  %v17621_v36 = vcombine.high %v9513_v62, %v9513_v62  ;;  %v17628_v7 = vrot.slane %v9513_v62, %v25067_v48  ;;  %v16083_v19 = vcombine.high %v16067_v58, %v16067_v58 }
 0x67f   : > { %17472 = vst.msk [vmem:[%s25102_s12 + $0x15e] sm:$0x1] %vm10058_vm7, %v17137_v27  ;;  %17473 = vst.msk [vmem:[%s25102_s12 + $0x16e] sm:$0x1] %vm10058_vm7, %v17139_v45  ;;  %v16084_v21 = vcombine.high %v16074_v11, %v16074_v11  ;;  %v16085_v57 = vcombine.high %v16081_v13, %v16081_v13  ;;  %v16565_v6 = vcombine.high %v27933_v17, %v27933_v17 }
 0x680   : > { %16411 = vst.msk [vmem:[%s25102_s12 + $0x10c] sm:$0x1] %vm10058_vm7, %v16060_v34  ;;  %16938 = vst.msk [vmem:[%s25102_s12 + $0xfd] sm:$0x1] %vm10058_vm7, %v16564_v49  ;;  %v17635_v62 = vrot.slane %v17621_v36, %v25067_v48  ;;  %v17636_v29 = vcombine.high %v17628_v7, %v17628_v7  ;;  %v17644_v53 = vrot.slane %v17628_v7, %v25067_v48 }
 0x681   : > { %16412 = vst.msk [vmem:[%s25102_s12 + $0x11c] sm:$0x1] %vm10058_vm7, %v16074_v11  ;;  %16415 = vst.msk [vmem:[%s25102_s12 + $0x14c] sm:$0x1] %vm10058_vm7, %v16067_v58  ;;  %v16572_v0 = vrot.slane %v27933_v17, %v25067_v48  ;;  %v16579_v4 = vrot.slane %v16565_v6, %v25067_v48  ;;  %v9401_v16 = vadd.f32 %v25375_v52, %v27114_v28 }
 0x682   : > { %16416 = vst.msk [vmem:[%s25102_s12 + $0x15c] sm:$0x1] %vm10058_vm7, %v16081_v13  ;;  %17474 = vst.msk [vmem:[%s25102_s12 + $0x17e] sm:$0x1] %vm10058_vm7, %v17141_v10  ;;  %v17637_v14 = vcombine.high %v17635_v62, %v17635_v62  ;;  %v17651_v17 = vrot.slane %v17635_v62, %v25067_v48  ;;  %v17658_v51 = vrot.slane %v17636_v29, %v25067_v48 }
 0x683   : > { %16413 = vst.msk [vmem:[%s25102_s12 + $0x12c] sm:$0x1] %vm10058_vm7, %v16082_v61  ;;  %16414 = vst.msk [vmem:[%s25102_s12 + $0x13c] sm:$0x1] %vm10058_vm7, %v16084_v21  ;;  %v17666_v55 = vcombine.high %v17644_v53, %v17644_v53  ;;  %v16580_v31 = vcombine.high %v16572_v0, %v16572_v0  ;;  %v16581_v63 = vcombine.high %v16579_v4, %v16579_v4  ;;  %v9529_v11 = vmax.f32 %v9401_v16, 0.0 }
 0x684   : > { %16417 = vst.msk [vmem:[%s25102_s12 + $0x16c] sm:$0x1] %vm10058_vm7, %v16083_v19  ;;  %16418 = vst.msk [vmem:[%s25102_s12 + $0x17c] sm:$0x1] %vm10058_vm7, %v16085_v57  ;;  %v16588_v8 = vrot.slane %v16572_v0, %v25067_v48  ;;  %v16595_v30 = vrot.slane %v16579_v4, %v25067_v48  ;;  %v17665_v28 = vrot.slane %v17637_v14, %v25067_v48 }
 0x685   : > { %17995 = vst.msk [vmem:[%s25102_s12 + $0x10f] sm:$0x1] %vm10058_vm7, %v17644_v53  ;;  %v17667_v54 = vcombine.high %v17651_v17, %v17651_v17  ;;  %v17668_v22 = vcombine.high %v17658_v51, %v17658_v51  ;;  %17996 = vst.msk [vmem:[%s25102_s12 + $0x11f] sm:$0x1] %vm10058_vm7, %v17658_v51  ;;  %v17142_v12 = vcombine.high %v9528_v59, %v9528_v59 }
 0x686   : > { %17997 = vst.msk [vmem:[%s25102_s12 + $0x12f] sm:$0x1] %vm10058_vm7, %v17666_v55  ;;  %17999 = vst.msk [vmem:[%s25102_s12 + $0x14f] sm:$0x1] %vm10058_vm7, %v17651_v17  ;;  %v16602_v43 = vrot.slane %v16580_v31, %v25067_v48  ;;  %v16609_v32 = vrot.slane %v16581_v63, %v25067_v48  ;;  %v16610_v20 = vcombine.high %v16588_v8, %v16588_v8 }
 0x687   : > { %v16611_v25 = vcombine.high %v16595_v30, %v16595_v30  ;;  %16939 = vst.msk [vmem:[%s25102_s12 + $0x10d] sm:$0x1] %vm10058_vm7, %v16588_v8  ;;  %16943 = vst.msk [vmem:[%s25102_s12 + $0x14d] sm:$0x1] %vm10058_vm7, %v16595_v30  ;;  %v17669_v23 = vcombine.high %v17665_v28, %v17665_v28  ;;  %v17149_v27 = vrot.slane %v9528_v59, %v25067_v48 }
 0x688   : > { %17998 = vst.msk [vmem:[%s25102_s12 + $0x13f] sm:$0x1] %vm10058_vm7, %v17668_v22  ;;  %18000 = vst.msk [vmem:[%s25102_s12 + $0x15f] sm:$0x1] %vm10058_vm7, %v17665_v28  ;;  %v17156_v45 = vrot.slane %v17142_v12, %v25067_v48  ;;  %v16086_v40 = vcombine.high %v9526_v33, %v9526_v33  ;;  %v16612_v34 = vcombine.high %v16602_v43, %v16602_v43 }
 0x689   : > { %18001 = vst.msk [vmem:[%s25102_s12 + $0x16f] sm:$0x1] %vm10058_vm7, %v17667_v54  ;;  %v16613_v49 = vcombine.high %v16609_v32, %v16609_v32  ;;  %16940 = vst.msk [vmem:[%s25102_s12 + $0x11d] sm:$0x1] %vm10058_vm7, %v16602_v43  ;;  %v16093_v58 = vrot.slane %v9526_v33, %v25067_v48  ;;  %v17157_v13 = vcombine.high %v17149_v27, %v17149_v27 }
 0x68a   : > { %16941 = vst.msk [vmem:[%s25102_s12 + $0x12d] sm:$0x1] %vm10058_vm7, %v16610_v20  ;;  %16944 = vst.msk [vmem:[%s25102_s12 + $0x15d] sm:$0x1] %vm10058_vm7, %v16609_v32  ;;  %v17158_v10 = vcombine.high %v17156_v45, %v17156_v45  ;;  %v17165_v61 = vrot.slane %v17149_v27, %v25067_v48  ;;  %v17172_v36 = vrot.slane %v17156_v45, %v25067_v48 }
 0x68b   : > { %16945 = vst.msk [vmem:[%s25102_s12 + $0x16d] sm:$0x1] %vm10058_vm7, %v16611_v25  ;;  %18002 = vst.msk [vmem:[%s25102_s12 + $0x17f] sm:$0x1] %vm10058_vm7, %v17669_v23  ;;  %v16100_v7 = vrot.slane %v16086_v40, %v25067_v48  ;;  %v16101_v19 = vcombine.high %v16093_v58, %v16093_v58  ;;  %v16109_v21 = vrot.slane %v16093_v58, %v25067_v48 }
 0x68c   : > { %16942 = vst.msk [vmem:[%s25102_s12 + $0x13d] sm:$0x1] %vm10058_vm7, %v16612_v34  ;;  %16946 = vst.msk [vmem:[%s25102_s12 + $0x17d] sm:$0x1] %vm10058_vm7, %v16613_v49  ;;  %v17670_v57 = vcombine.high %v9529_v11, %v9529_v11  ;;  %v17179_v6 = vrot.slane %v17157_v13, %v25067_v48  ;;  %v17186_v62 = vrot.slane %v17158_v10, %v25067_v48 }
 0x68d   : > { %v17187_v29 = vcombine.high %v17165_v61, %v17165_v61  ;;  %v17188_v53 = vcombine.high %v17172_v36, %v17172_v36  ;;  %17475 = vst.msk [vmem:[%s25102_s12 + $0x18e] sm:$0x1] %vm10058_vm7, %v17165_v61  ;;  %17479 = vst.msk [vmem:[%s25102_s12 + $0x1ce] sm:$0x1] %vm10058_vm7, %v17172_v36  ;;  %v16102_v0 = vcombine.high %v16100_v7, %v16100_v7 }
 0x68e   : > { %v16116_v4 = vrot.slane %v16100_v7, %v25067_v48  ;;  %v16123_v59 = vrot.slane %v16101_v19, %v25067_v48  ;;  %v16131_v33 = vcombine.high %v16109_v21, %v16109_v21  ;;  %16419 = vst.msk [vmem:[%s25102_s12 + $0x18c] sm:$0x1] %vm10058_vm7, %v16109_v21  ;;  %v17189_v16 = vcombine.high %v17179_v6, %v17179_v6 }
 0x68f   : > { %v17190_v14 = vcombine.high %v17186_v62, %v17186_v62  ;;  %17476 = vst.msk [vmem:[%s25102_s12 + $0x19e] sm:$0x1] %vm10058_vm7, %v17179_v6  ;;  %17477 = vst.msk [vmem:[%s25102_s12 + $0x1ae] sm:$0x1] %vm10058_vm7, %v17187_v29  ;;  %v17677_v17 = vrot.slane %v9529_v11, %v25067_v48  ;;  %v17684_v51 = vrot.slane %v17670_v57, %v25067_v48 }
 0x690   : > { %17480 = vst.msk [vmem:[%s25102_s12 + $0x1de] sm:$0x1] %vm10058_vm7, %v17186_v62  ;;  %17481 = vst.msk [vmem:[%s25102_s12 + $0x1ee] sm:$0x1] %vm10058_vm7, %v17188_v53  ;;  %v16130_v55 = vrot.slane %v16102_v0, %v25067_v48  ;;  %v16132_v31 = vcombine.high %v16116_v4, %v16116_v4  ;;  %v16133_v63 = vcombine.high %v16123_v59, %v16123_v59 }
 0x691   : > { %16420 = vst.msk [vmem:[%s25102_s12 + $0x19c] sm:$0x1] %vm10058_vm7, %v16123_v59  ;;  %16421 = vst.msk [vmem:[%s25102_s12 + $0x1ac] sm:$0x1] %vm10058_vm7, %v16131_v33  ;;  %v9399_v8 = vadd.f32 %v25375_v52, %v27166_v1  ;;  %v17685_v30 = vcombine.high %v17677_v17, %v17677_v17  ;;  %v17686_v28 = vcombine.high %v17684_v51, %v17684_v51 }
 0x692   : > { %16423 = vst.msk [vmem:[%s25102_s12 + $0x1cc] sm:$0x1] %vm10058_vm7, %v16116_v4  ;;  %17478 = vst.msk [vmem:[%s25102_s12 + $0x1be] sm:$0x1] %vm10058_vm7, %v17189_v16  ;;  %v17693_v54 = vrot.slane %v17677_v17, %v25067_v48  ;;  %v17700_v22 = vrot.slane %v17684_v51, %v25067_v48  ;;  %v16134_v12 = vcombine.high %v16130_v55, %v16130_v55 }
 0x693   : > { %17482 = vst.msk [vmem:[%s25102_s12 + $0x1fe] sm:$0x1] %vm10058_vm7, %v17190_v14  ;;  %16422 = vst.msk [vmem:[%s25102_s12 + $0x1bc] sm:$0x1] %vm10058_vm7, %v16133_v63  ;;  %v9527_v52 = vmax.f32 %v9399_v8, 0.0  ;;  %v9416_v1 = vadd.f32 %v25492_v50, %v27200_v5  ;;  %v9414_v43 = vadd.f32 %v25492_v50, %v27218_v60  ;;  %v17707_v32 = vrot.slane %v17685_v30, %v25067_v48 }
 0x694   : > { %16424 = vst.msk [vmem:[%s25102_s12 + $0x1dc] sm:$0x1] %vm10058_vm7, %v16130_v55  ;;  %16425 = vst.msk [vmem:[%s25102_s12 + $0x1ec] sm:$0x1] %vm10058_vm7, %v16132_v31  ;;  %v17714_v20 = vrot.slane %v17686_v28, %v25067_v48  ;;  %v17715_v25 = vcombine.high %v17693_v54, %v17693_v54  ;;  %v17716_v23 = vcombine.high %v17700_v22, %v17700_v22 }
 0x695   : > { %18003 = vst.msk [vmem:[%s25102_s12 + $0x18f] sm:$0x1] %vm10058_vm7, %v17693_v54  ;;  %18007 = vst.msk [vmem:[%s25102_s12 + $0x1cf] sm:$0x1] %vm10058_vm7, %v17700_v22  ;;  %v16614_v27 = vcombine.high %v9527_v52, %v9527_v52  ;;  %v16621_v5 = vrot.slane %v9527_v52, %v25067_v48  ;;  %v9544_v60 = vmax.f32 %v9416_v1, 0.0  ;;  %v9542_v45 = vmax.f32 %v9414_v43, 0.0 }
 0x696   : > { %16426 = vst.msk [vmem:[%s25102_s12 + $0x1fc] sm:$0x1] %vm10058_vm7, %v16134_v12  ;;  %v17717_v40 = vcombine.high %v17707_v32, %v17707_v32  ;;  %v17718_v34 = vcombine.high %v17714_v20, %v17714_v20  ;;  %18004 = vst.msk [vmem:[%s25102_s12 + $0x19f] sm:$0x1] %vm10058_vm7, %v17707_v32  ;;  %v9417_v49 = vadd.f32 %v25492_v50, %v27230_v41 }
 0x697   : > { %18005 = vst.msk [vmem:[%s25102_s12 + $0x1af] sm:$0x1] %vm10058_vm7, %v17715_v25  ;;  %18008 = vst.msk [vmem:[%s25102_s12 + $0x1df] sm:$0x1] %vm10058_vm7, %v17714_v20  ;;  %v9415_v58 = vadd.f32 %v25492_v50, %v27276_v2  ;;  %v16628_v11 = vrot.slane %v16614_v27, %v25067_v48  ;;  %v16629_v13 = vcombine.high %v16621_v5, %v16621_v5 }
 0x698   : > { %18009 = vst.msk [vmem:[%s25102_s12 + $0x1ef] sm:$0x1] %vm10058_vm7, %v17716_v23  ;;  %v16637_v10 = vrot.slane %v16621_v5, %v25067_v48  ;;  %v17191_v61 = vcombine.high %v9544_v60, %v9544_v60  ;;  %18006 = vst.msk [vmem:[%s25102_s12 + $0x1bf] sm:$0x1] %vm10058_vm7, %v17717_v40  ;;  %v17198_v36 = vrot.slane %v9544_v60, %v25067_v48  ;;  %v9545_v19 = vmax.f32 %v9417_v49, 0.0 }
 0x699   : > { %18010 = vst.msk [vmem:[%s25102_s12 + $0x1ff] sm:$0x1] %vm10058_vm7, %v17718_v34  ;;  %v16135_v7 = vcombine.high %v9542_v45, %v9542_v45  ;;  %v16142_v41 = vrot.slane %v9542_v45, %v25067_v48  ;;  %v16630_v50 = vcombine.high %v16628_v11, %v16628_v11  ;;  %v16644_v2 = vrot.slane %v16628_v11, %v25067_v48 }
 0x69a   : > { %v16651_v21 = vrot.slane %v16629_v13, %v25067_v48  ;;  %v16659_v57 = vcombine.high %v16637_v10, %v16637_v10  ;;  %16947 = vst.msk [vmem:[%s25102_s12 + $0x18d] sm:$0x1] %vm10058_vm7, %v16637_v10  ;;  %v17205_v6 = vrot.slane %v17191_v61, %v25067_v48  ;;  %v17206_v62 = vcombine.high %v17198_v36, %v17198_v36 }
 0x69b   : > { %v17214_v29 = vrot.slane %v17198_v36, %v25067_v48  ;;  %v16149_v53 = vrot.slane %v16135_v7, %v25067_v48  ;;  %v16658_v0 = vrot.slane %v16630_v50, %v25067_v48  ;;  %v16660_v4 = vcombine.high %v16644_v2, %v16644_v2  ;;  %16951 = vst.msk [vmem:[%s25102_s12 + $0x1cd] sm:$0x1] %vm10058_vm7, %v16644_v2 }
 0x69c   : > { %v16661_v59 = vcombine.high %v16651_v21, %v16651_v21  ;;  %16948 = vst.msk [vmem:[%s25102_s12 + $0x19d] sm:$0x1] %vm10058_vm7, %v16651_v21  ;;  %16949 = vst.msk [vmem:[%s25102_s12 + $0x1ad] sm:$0x1] %vm10058_vm7, %v16659_v57  ;;  %v16150_v33 = vcombine.high %v16142_v41, %v16142_v41  ;;  %v17207_v16 = vcombine.high %v17205_v6, %v17205_v6  ;;  %v9543_v23 = vmax.f32 %v9415_v58, 0.0 }
 0x69d   : > { %v17221_v14 = vrot.slane %v17205_v6, %v25067_v48  ;;  %v17228_v17 = vrot.slane %v17206_v62, %v25067_v48  ;;  %v17236_v51 = vcombine.high %v17214_v29, %v17214_v29  ;;  %17483 = vst.msk [vmem:[%s25102_s12 + $0x20e] sm:$0x1] %vm10058_vm7, %v17214_v29  ;;  %v16662_v55 = vcombine.high %v16658_v0, %v16658_v0 }
 0x69e   : > { %16950 = vst.msk [vmem:[%s25102_s12 + $0x1bd] sm:$0x1] %vm10058_vm7, %v16661_v59  ;;  %16952 = vst.msk [vmem:[%s25102_s12 + $0x1dd] sm:$0x1] %vm10058_vm7, %v16658_v0  ;;  %v16151_v31 = vcombine.high %v16149_v53, %v16149_v53  ;;  %v16158_v63 = vrot.slane %v16142_v41, %v25067_v48  ;;  %v16165_v8 = vrot.slane %v16149_v53, %v25067_v48 }
 0x69f   : > { %16953 = vst.msk [vmem:[%s25102_s12 + $0x1ed] sm:$0x1] %vm10058_vm7, %v16660_v4  ;;  %v17235_v30 = vrot.slane %v17207_v16, %v25067_v48  ;;  %v17237_v28 = vcombine.high %v17221_v14, %v17221_v14  ;;  %v17238_v54 = vcombine.high %v17228_v17, %v17228_v17  ;;  %17484 = vst.msk [vmem:[%s25102_s12 + $0x21e] sm:$0x1] %vm10058_vm7, %v17228_v17 }
 0x6a0   : > { %17485 = vst.msk [vmem:[%s25102_s12 + $0x22e] sm:$0x1] %vm10058_vm7, %v17236_v51  ;;  %17487 = vst.msk [vmem:[%s25102_s12 + $0x24e] sm:$0x1] %vm10058_vm7, %v17221_v14  ;;  %v16172_v22 = vrot.slane %v16150_v33, %v25067_v48  ;;  %v16179_v12 = vrot.slane %v16151_v31, %v25067_v48  ;;  %v16180_v52 = vcombine.high %v16158_v63, %v16158_v63 }
 0x6a1   : > { %16954 = vst.msk [vmem:[%s25102_s12 + $0x1fd] sm:$0x1] %vm10058_vm7, %v16662_v55  ;;  %v16181_v1 = vcombine.high %v16165_v8, %v16165_v8  ;;  %16427 = vst.msk [vmem:[%s25102_s12 + $0x20c] sm:$0x1] %vm10058_vm7, %v16158_v63  ;;  %v17719_v43 = vcombine.high %v9545_v19, %v9545_v19  ;;  %v17239_v32 = vcombine.high %v17235_v30, %v17235_v30 }
 0x6a2   : > { %16431 = vst.msk [vmem:[%s25102_s12 + $0x24c] sm:$0x1] %vm10058_vm7, %v16165_v8  ;;  %17486 = vst.msk [vmem:[%s25102_s12 + $0x23e] sm:$0x1] %vm10058_vm7, %v17238_v54  ;;  %v16182_v20 = vcombine.high %v16172_v22, %v16172_v22  ;;  %v17726_v25 = vrot.slane %v9545_v19, %v25067_v48  ;;  %v16183_v27 = vcombine.high %v16179_v12, %v16179_v12 }
 0x6a3   : > { %17488 = vst.msk [vmem:[%s25102_s12 + $0x25e] sm:$0x1] %vm10058_vm7, %v17235_v30  ;;  %17489 = vst.msk [vmem:[%s25102_s12 + $0x26e] sm:$0x1] %vm10058_vm7, %v17237_v28  ;;  %v17733_v5 = vrot.slane %v17719_v43, %v25067_v48  ;;  %v9432_v60 = vadd.f32 %v25592_v47, %v27296_v35  ;;  %v9430_v45 = vadd.f32 %v25592_v47, %v27319_v15 }
 0x6a4   : > { %16428 = vst.msk [vmem:[%s25102_s12 + $0x21c] sm:$0x1] %vm10058_vm7, %v16172_v22  ;;  %16429 = vst.msk [vmem:[%s25102_s12 + $0x22c] sm:$0x1] %vm10058_vm7, %v16180_v52  ;;  %v17734_v40 = vcombine.high %v17726_v25, %v17726_v25  ;;  %v17742_v34 = vrot.slane %v17726_v25, %v25067_v48  ;;  %v16663_v49 = vcombine.high %v9543_v23, %v9543_v23 }
 0x6a5   : > { %16432 = vst.msk [vmem:[%s25102_s12 + $0x25c] sm:$0x1] %vm10058_vm7, %v16179_v12  ;;  %16433 = vst.msk [vmem:[%s25102_s12 + $0x26c] sm:$0x1] %vm10058_vm7, %v16181_v1  ;;  %v16670_v58 = vrot.slane %v9543_v23, %v25067_v48  ;;  %v17735_v11 = vcombine.high %v17733_v5, %v17733_v5  ;;  %v17749_v35 = vrot.slane %v17733_v5, %v25067_v48  ;;  %v9560_v13 = vmax.f32 %v9432_v60, 0.0 }
 0x6a6   : > { %17490 = vst.msk [vmem:[%s25102_s12 + $0x27e] sm:$0x1] %vm10058_vm7, %v17239_v32  ;;  %16430 = vst.msk [vmem:[%s25102_s12 + $0x23c] sm:$0x1] %vm10058_vm7, %v16182_v20  ;;  %v9558_v15 = vmax.f32 %v9430_v45, 0.0  ;;  %v17756_v10 = vrot.slane %v17734_v40, %v25067_v48  ;;  %v17764_v61 = vcombine.high %v17742_v34, %v17742_v34  ;;  %v16677_v36 = vrot.slane %v16663_v49, %v25067_v48 }
 0x6a7   : > { %16434 = vst.msk [vmem:[%s25102_s12 + $0x27c] sm:$0x1] %vm10058_vm7, %v16183_v27  ;;  %18011 = vst.msk [vmem:[%s25102_s12 + $0x20f] sm:$0x1] %vm10058_vm7, %v17742_v34  ;;  %v16678_v7 = vcombine.high %v16670_v58, %v16670_v58  ;;  %v17763_v41 = vrot.slane %v17735_v11, %v25067_v48  ;;  %v17765_v19 = vcombine.high %v17749_v35, %v17749_v35 }
 0x6a8   : > { %18015 = vst.msk [vmem:[%s25102_s12 + $0x24f] sm:$0x1] %vm10058_vm7, %v17749_v35  ;;  %v16686_v50 = vrot.slane %v16670_v58, %v25067_v48  ;;  %v17240_v2 = vcombine.high %v9560_v13, %v9560_v13  ;;  %v17766_v21 = vcombine.high %v17756_v10, %v17756_v10  ;;  %18012 = vst.msk [vmem:[%s25102_s12 + $0x21f] sm:$0x1] %vm10058_vm7, %v17756_v10 }
 0x6a9   : > { %18013 = vst.msk [vmem:[%s25102_s12 + $0x22f] sm:$0x1] %vm10058_vm7, %v17764_v61  ;;  %v16679_v57 = vcombine.high %v16677_v36, %v16677_v36  ;;  %v16693_v6 = vrot.slane %v16677_v36, %v25067_v48  ;;  %v16700_v62 = vrot.slane %v16678_v7, %v25067_v48  ;;  %v17767_v29 = vcombine.high %v17763_v41, %v17763_v41 }
 0x6aa   : > { %18016 = vst.msk [vmem:[%s25102_s12 + $0x25f] sm:$0x1] %vm10058_vm7, %v17763_v41  ;;  %18017 = vst.msk [vmem:[%s25102_s12 + $0x26f] sm:$0x1] %vm10058_vm7, %v17765_v19  ;;  %v16708_v53 = vcombine.high %v16686_v50, %v16686_v50  ;;  %v17247_v0 = vrot.slane %v9560_v13, %v25067_v48  ;;  %v17254_v4 = vrot.slane %v17240_v2, %v25067_v48 }
 0x6ab   : > { %16955 = vst.msk [vmem:[%s25102_s12 + $0x20d] sm:$0x1] %vm10058_vm7, %v16686_v50  ;;  %18014 = vst.msk [vmem:[%s25102_s12 + $0x23f] sm:$0x1] %vm10058_vm7, %v17766_v21  ;;  %v16707_v59 = vrot.slane %v16679_v57, %v25067_v48  ;;  %v16709_v33 = vcombine.high %v16693_v6, %v16693_v6  ;;  %v16710_v16 = vcombine.high %v16700_v62, %v16700_v62 }
 0x6ac   : > { %16956 = vst.msk [vmem:[%s25102_s12 + $0x21d] sm:$0x1] %vm10058_vm7, %v16700_v62  ;;  %16959 = vst.msk [vmem:[%s25102_s12 + $0x24d] sm:$0x1] %vm10058_vm7, %v16693_v6  ;;  %v16184_v14 = vcombine.high %v9558_v15, %v9558_v15  ;;  %v17255_v17 = vcombine.high %v17247_v0, %v17247_v0  ;;  %v17256_v51 = vcombine.high %v17254_v4, %v17254_v4 }
 0x6ad   : > { %18018 = vst.msk [vmem:[%s25102_s12 + $0x27f] sm:$0x1] %vm10058_vm7, %v17767_v29  ;;  %16957 = vst.msk [vmem:[%s25102_s12 + $0x22d] sm:$0x1] %vm10058_vm7, %v16708_v53  ;;  %v17263_v55 = vrot.slane %v17247_v0, %v25067_v48  ;;  %v17270_v31 = vrot.slane %v17254_v4, %v25067_v48  ;;  %v16711_v63 = vcombine.high %v16707_v59, %v16707_v59 }
 0x6ae   : > { %16958 = vst.msk [vmem:[%s25102_s12 + $0x23d] sm:$0x1] %vm10058_vm7, %v16710_v16  ;;  %16960 = vst.msk [vmem:[%s25102_s12 + $0x25d] sm:$0x1] %vm10058_vm7, %v16707_v59  ;;  %v16191_v8 = vrot.slane %v9558_v15, %v25067_v48  ;;  %v16198_v30 = vrot.slane %v16184_v14, %v25067_v48  ;;  %v9433_v28 = vadd.f32 %v25592_v47, %v27340_v26 }
 0x6af   : > { %16961 = vst.msk [vmem:[%s25102_s12 + $0x26d] sm:$0x1] %vm10058_vm7, %v16709_v33  ;;  %v17277_v54 = vrot.slane %v17255_v17, %v25067_v48  ;;  %v17284_v22 = vrot.slane %v17256_v51, %v25067_v48  ;;  %v17285_v12 = vcombine.high %v17263_v55, %v17263_v55  ;;  %v17286_v52 = vcombine.high %v17270_v31, %v17270_v31 }
 0x6b0   : > { %17491 = vst.msk [vmem:[%s25102_s12 + $0x28e] sm:$0x1] %vm10058_vm7, %v17263_v55  ;;  %17495 = vst.msk [vmem:[%s25102_s12 + $0x2ce] sm:$0x1] %vm10058_vm7, %v17270_v31  ;;  %v16199_v1 = vcombine.high %v16191_v8, %v16191_v8  ;;  %v16200_v43 = vcombine.high %v16198_v30, %v16198_v30  ;;  %v16207_v26 = vrot.slane %v16191_v8, %v25067_v48  ;;  %v9561_v23 = vmax.f32 %v9433_v28, 0.0 }
 0x6b1   : > { %16962 = vst.msk [vmem:[%s25102_s12 + $0x27d] sm:$0x1] %vm10058_vm7, %v16711_v63  ;;  %v16214_v32 = vrot.slane %v16198_v30, %v25067_v48  ;;  %v17287_v20 = vcombine.high %v17277_v54, %v17277_v54  ;;  %v17288_v25 = vcombine.high %v17284_v22, %v17284_v22  ;;  %17492 = vst.msk [vmem:[%s25102_s12 + $0x29e] sm:$0x1] %vm10058_vm7, %v17277_v54 }
 0x6b2   : > { %17493 = vst.msk [vmem:[%s25102_s12 + $0x2ae] sm:$0x1] %vm10058_vm7, %v17285_v12  ;;  %17496 = vst.msk [vmem:[%s25102_s12 + $0x2de] sm:$0x1] %vm10058_vm7, %v17284_v22  ;;  %v9431_v27 = vadd.f32 %v25592_v47, %v27387_v42  ;;  %v16221_v5 = vrot.slane %v16199_v1, %v25067_v48  ;;  %v16228_v60 = vrot.slane %v16200_v43, %v25067_v48 }
 0x6b3   : > { %17497 = vst.msk [vmem:[%s25102_s12 + $0x2ee] sm:$0x1] %vm10058_vm7, %v17286_v52  ;;  %v16229_v45 = vcombine.high %v16207_v26, %v16207_v26  ;;  %v16230_v40 = vcombine.high %v16214_v32, %v16214_v32  ;;  %16435 = vst.msk [vmem:[%s25102_s12 + $0x28c] sm:$0x1] %vm10058_vm7, %v16207_v26  ;;  %v17768_v34 = vcombine.high %v9561_v23, %v9561_v23 }
 0x6b4   : > { %16439 = vst.msk [vmem:[%s25102_s12 + $0x2cc] sm:$0x1] %vm10058_vm7, %v16214_v32  ;;  %17494 = vst.msk [vmem:[%s25102_s12 + $0x2be] sm:$0x1] %vm10058_vm7, %v17287_v20  ;;  %v17775_v47 = vrot.slane %v9561_v23, %v25067_v48  ;;  %v9559_v42 = vmax.f32 %v9431_v27, 0.0  ;;  %v9448_v49 = vadd.f32 %v25718_v37, %v27420_v3  ;;  %v16231_v58 = vcombine.high %v16221_v5, %v16221_v5 }
 0x6b5   : > { %17498 = vst.msk [vmem:[%s25102_s12 + $0x2fe] sm:$0x1] %vm10058_vm7, %v17288_v25  ;;  %v16232_v11 = vcombine.high %v16228_v60, %v16228_v60  ;;  %16436 = vst.msk [vmem:[%s25102_s12 + $0x29c] sm:$0x1] %vm10058_vm7, %v16221_v5  ;;  %v9446_v35 = vadd.f32 %v25718_v37, %v27427_v38  ;;  %v9449_v13 = vadd.f32 %v25718_v37, %v27452_v46 }
 0x6b6   : > { %16437 = vst.msk [vmem:[%s25102_s12 + $0x2ac] sm:$0x1] %vm10058_vm7, %v16229_v45  ;;  %16440 = vst.msk [vmem:[%s25102_s12 + $0x2dc] sm:$0x1] %vm10058_vm7, %v16228_v60  ;;  %v17782_v15 = vrot.slane %v17768_v34, %v25067_v48  ;;  %v17783_v3 = vcombine.high %v17775_v47, %v17775_v47  ;;  %v17791_v10 = vrot.slane %v17775_v47, %v25067_v48  ;;  %v9576_v7 = vmax.f32 %v9448_v49, 0.0 }
 0x6b7   : > { %16441 = vst.msk [vmem:[%s25102_s12 + $0x2ec] sm:$0x1] %vm10058_vm7, %v16230_v40  ;;  %v16712_v61 = vcombine.high %v9559_v42, %v9559_v42  ;;  %16438 = vst.msk [vmem:[%s25102_s12 + $0x2bc] sm:$0x1] %vm10058_vm7, %v16231_v58  ;;  %v16719_v36 = vrot.slane %v9559_v42, %v25067_v48  ;;  %v9574_v38 = vmax.f32 %v9446_v35, 0.0  ;;  %v28297_v41 = vmax.f32 %v9449_v13, 0.0 }
 0x6b8   : > { %16442 = vst.msk [vmem:[%s25102_s12 + $0x2fc] sm:$0x1] %vm10058_vm7, %v16232_v11  ;;  %v17784_v46 = vcombine.high %v17782_v15, %v17782_v15  ;;  %v17798_v19 = vrot.slane %v17782_v15, %v25067_v48  ;;  %v17805_v50 = vrot.slane %v17783_v3, %v25067_v48  ;;  %v17813_v2 = vcombine.high %v17791_v10, %v17791_v10 }
 0x6b9   : > { %18019 = vst.msk [vmem:[%s25102_s12 + $0x28f] sm:$0x1] %vm10058_vm7, %v17791_v10  ;;  %v16726_v21 = vrot.slane %v16712_v61, %v25067_v48  ;;  %v16727_v57 = vcombine.high %v16719_v36, %v16719_v36  ;;  %v16735_v6 = vrot.slane %v16719_v36, %v25067_v48  ;;  %v17289_v62 = vcombine.high %v9576_v7, %v9576_v7 }
 0x6ba   : > { %v17812_v29 = vrot.slane %v17784_v46, %v25067_v48  ;;  %v17814_v53 = vcombine.high %v17798_v19, %v17798_v19  ;;  %v17815_v0 = vcombine.high %v17805_v50, %v17805_v50  ;;  %18020 = vst.msk [vmem:[%s25102_s12 + $0x29f] sm:$0x1] %vm10058_vm7, %v17805_v50  ;;  %18021 = vst.msk [vmem:[%s25102_s12 + $0x2af] sm:$0x1] %vm10058_vm7, %v17813_v2 }
 0x6bb   : > { %18023 = vst.msk [vmem:[%s25102_s12 + $0x2cf] sm:$0x1] %vm10058_vm7, %v17798_v19  ;;  %v17296_v4 = vrot.slane %v9576_v7, %v25067_v48  ;;  %v16728_v59 = vcombine.high %v16726_v21, %v16726_v21  ;;  %v16742_v33 = vrot.slane %v16726_v21, %v25067_v48  ;;  %v16749_v16 = vrot.slane %v16727_v57, %v25067_v48 }
 0x6bc   : > { %v16757_v14 = vcombine.high %v16735_v6, %v16735_v6  ;;  %16963 = vst.msk [vmem:[%s25102_s12 + $0x28d] sm:$0x1] %vm10058_vm7, %v16735_v6  ;;  %v17816_v17 = vcombine.high %v17812_v29, %v17812_v29  ;;  %18022 = vst.msk [vmem:[%s25102_s12 + $0x2bf] sm:$0x1] %vm10058_vm7, %v17815_v0  ;;  %v17303_v51 = vrot.slane %v17289_v62, %v25067_v48 }
 0x6bd   : > { %18024 = vst.msk [vmem:[%s25102_s12 + $0x2df] sm:$0x1] %vm10058_vm7, %v17812_v29  ;;  %18025 = vst.msk [vmem:[%s25102_s12 + $0x2ef] sm:$0x1] %vm10058_vm7, %v17814_v53  ;;  %v17304_v55 = vcombine.high %v17296_v4, %v17296_v4  ;;  %v17312_v31 = vrot.slane %v17296_v4, %v25067_v48  ;;  %v16756_v63 = vrot.slane %v16728_v59, %v25067_v48 }
 0x6be   : > { %v16758_v8 = vcombine.high %v16742_v33, %v16742_v33  ;;  %v16759_v30 = vcombine.high %v16749_v16, %v16749_v16  ;;  %16964 = vst.msk [vmem:[%s25102_s12 + $0x29d] sm:$0x1] %vm10058_vm7, %v16749_v16  ;;  %16965 = vst.msk [vmem:[%s25102_s12 + $0x2ad] sm:$0x1] %vm10058_vm7, %v16757_v14  ;;  %v16233_v28 = vcombine.high %v9574_v38, %v9574_v38 }
 0x6bf   : > { %16967 = vst.msk [vmem:[%s25102_s12 + $0x2cd] sm:$0x1] %vm10058_vm7, %v16742_v33  ;;  %18026 = vst.msk [vmem:[%s25102_s12 + $0x2ff] sm:$0x1] %vm10058_vm7, %v17816_v17  ;;  %v17305_v54 = vcombine.high %v17303_v51, %v17303_v51  ;;  %v17319_v22 = vrot.slane %v17303_v51, %v25067_v48  ;;  %v17326_v12 = vrot.slane %v17304_v55, %v25067_v48 }
 0x6c0   : > { %v17334_v52 = vcombine.high %v17312_v31, %v17312_v31  ;;  %17499 = vst.msk [vmem:[%s25102_s12 + $0x30e] sm:$0x1] %vm10058_vm7, %v17312_v31  ;;  %v16760_v1 = vcombine.high %v16756_v63, %v16756_v63  ;;  %16966 = vst.msk [vmem:[%s25102_s12 + $0x2bd] sm:$0x1] %vm10058_vm7, %v16759_v30  ;;  %v16240_v43 = vrot.slane %v9574_v38, %v25067_v48 }
 0x6c1   : > { %16968 = vst.msk [vmem:[%s25102_s12 + $0x2dd] sm:$0x1] %vm10058_vm7, %v16756_v63  ;;  %16969 = vst.msk [vmem:[%s25102_s12 + $0x2ed] sm:$0x1] %vm10058_vm7, %v16758_v8  ;;  %v16247_v26 = vrot.slane %v16233_v28, %v25067_v48  ;;  %v17817_v32 = vcombine.high %v28297_v41, %v28297_v41  ;;  %v17333_v20 = vrot.slane %v17305_v54, %v25067_v48 }
 0x6c2   : > { %v17335_v25 = vcombine.high %v17319_v22, %v17319_v22  ;;  %v17336_v23 = vcombine.high %v17326_v12, %v17326_v12  ;;  %17500 = vst.msk [vmem:[%s25102_s12 + $0x31e] sm:$0x1] %vm10058_vm7, %v17326_v12  ;;  %17501 = vst.msk [vmem:[%s25102_s12 + $0x32e] sm:$0x1] %vm10058_vm7, %v17334_v52  ;;  %v17824_v27 = vrot.slane %v28297_v41, %v25067_v48 }
 0x6c3   : > { %17503 = vst.msk [vmem:[%s25102_s12 + $0x34e] sm:$0x1] %vm10058_vm7, %v17319_v22  ;;  %16970 = vst.msk [vmem:[%s25102_s12 + $0x2fd] sm:$0x1] %vm10058_vm7, %v16760_v1  ;;  %v16248_v5 = vcombine.high %v16240_v43, %v16240_v43  ;;  %v16249_v60 = vcombine.high %v16247_v26, %v16247_v26  ;;  %v16256_v45 = vrot.slane %v16240_v43, %v25067_v48 }
 0x6c4   : > { %v16263_v40 = vrot.slane %v16247_v26, %v25067_v48  ;;  %v17337_v34 = vcombine.high %v17333_v20, %v17333_v20  ;;  %17502 = vst.msk [vmem:[%s25102_s12 + $0x33e] sm:$0x1] %vm10058_vm7, %v17336_v23  ;;  %17504 = vst.msk [vmem:[%s25102_s12 + $0x35e] sm:$0x1] %vm10058_vm7, %v17333_v20  ;;  %v17831_v47 = vrot.slane %v17817_v32, %v25067_v48 }
 0x6c5   : > { %17505 = vst.msk [vmem:[%s25102_s12 + $0x36e] sm:$0x1] %vm10058_vm7, %v17335_v25  ;;  %v17832_v42 = vcombine.high %v17824_v27, %v17824_v27  ;;  %v17840_v49 = vrot.slane %v17824_v27, %v25067_v48  ;;  %v16270_v58 = vrot.slane %v16248_v5, %v25067_v48  ;;  %v16277_v11 = vrot.slane %v16249_v60, %v25067_v48 }
 0x6c6   : > { %v16278_v35 = vcombine.high %v16256_v45, %v16256_v45  ;;  %v16279_v13 = vcombine.high %v16263_v40, %v16263_v40  ;;  %16443 = vst.msk [vmem:[%s25102_s12 + $0x30c] sm:$0x1] %vm10058_vm7, %v16256_v45  ;;  %16447 = vst.msk [vmem:[%s25102_s12 + $0x34c] sm:$0x1] %vm10058_vm7, %v16263_v40  ;;  %v17833_v15 = vcombine.high %v17831_v47, %v17831_v47 }
 0x6c7   : > { %17506 = vst.msk [vmem:[%s25102_s12 + $0x37e] sm:$0x1] %vm10058_vm7, %v17337_v34  ;;  %v17847_v3 = vrot.slane %v17831_v47, %v25067_v48  ;;  %v17854_v10 = vrot.slane %v17832_v42, %v25067_v48  ;;  %v17862_v61 = vcombine.high %v17840_v49, %v17840_v49  ;;  %18027 = vst.msk [vmem:[%s25102_s12 + $0x30f] sm:$0x1] %vm10058_vm7, %v17840_v49 }
 0x6c8   : > { %v16280_v36 = vcombine.high %v16270_v58, %v16270_v58  ;;  %v16281_v7 = vcombine.high %v16277_v11, %v16277_v11  ;;  %16444 = vst.msk [vmem:[%s25102_s12 + $0x31c] sm:$0x1] %vm10058_vm7, %v16270_v58  ;;  %16445 = vst.msk [vmem:[%s25102_s12 + $0x32c] sm:$0x1] %vm10058_vm7, %v16278_v35  ;;  %v9447_v38 = vadd.f32 %v25718_v37, %v27475_v18 }
 0x6c9   : > { %16448 = vst.msk [vmem:[%s25102_s12 + $0x35c] sm:$0x1] %vm10058_vm7, %v16277_v11  ;;  %16449 = vst.msk [vmem:[%s25102_s12 + $0x36c] sm:$0x1] %vm10058_vm7, %v16279_v13  ;;  %v9464_v41 = vadd.f32 %v25744_v44, %v27546_v24  ;;  %v17861_v46 = vrot.slane %v17833_v15, %v25067_v48  ;;  %v17863_v19 = vcombine.high %v17847_v3, %v17847_v3 }
 0x6ca   : > { %v17864_v50 = vcombine.high %v17854_v10, %v17854_v10  ;;  %18028 = vst.msk [vmem:[%s25102_s12 + $0x31f] sm:$0x1] %vm10058_vm7, %v17854_v10  ;;  %18029 = vst.msk [vmem:[%s25102_s12 + $0x32f] sm:$0x1] %vm10058_vm7, %v17862_v61  ;;  %v9462_v2 = vadd.f32 %v25744_v44, %v27554_v9  ;;  %v9575_v37 = vmax.f32 %v9447_v38, 0.0  ;;  %v9465_v24 = vadd.f32 %v25744_v44, %v27566_v56 }
 0x6cb   : > { %18031 = vst.msk [vmem:[%s25102_s12 + $0x34f] sm:$0x1] %vm10058_vm7, %v17847_v3  ;;  %16446 = vst.msk [vmem:[%s25102_s12 + $0x33c] sm:$0x1] %vm10058_vm7, %v16280_v36  ;;  %v9592_v18 = vmax.f32 %v9464_v41, 0.0  ;;  %v9463_v21 = vadd.f32 %v25744_v44, %v27609_v39  ;;  %v17865_v57 = vcombine.high %v17861_v46, %v17861_v46 }
 0x6cc   : > { %16450 = vst.msk [vmem:[%s25102_s12 + $0x37c] sm:$0x1] %vm10058_vm7, %v16281_v7  ;;  %18030 = vst.msk [vmem:[%s25102_s12 + $0x33f] sm:$0x1] %vm10058_vm7, %v17864_v50  ;;  %v9590_v9 = vmax.f32 %v9462_v2, 0.0  ;;  %v16761_v6 = vcombine.high %v9575_v37, %v9575_v37  ;;  %v16768_v62 = vrot.slane %v9575_v37, %v25067_v48  ;;  %v9593_v39 = vmax.f32 %v9465_v24, 0.0 }
 0x6cd   : > { %18032 = vst.msk [vmem:[%s25102_s12 + $0x35f] sm:$0x1] %vm10058_vm7, %v17861_v46  ;;  %18033 = vst.msk [vmem:[%s25102_s12 + $0x36f] sm:$0x1] %vm10058_vm7, %v17863_v19  ;;  %v17338_v29 = vcombine.high %v9592_v18, %v9592_v18  ;;  %v17345_v53 = vrot.slane %v9592_v18, %v25067_v48  ;;  %v28421_v0 = vmax.f32 %v9463_v21, 0.0 }
 0x6ce   : > { %18034 = vst.msk [vmem:[%s25102_s12 + $0x37f] sm:$0x1] %vm10058_vm7, %v17865_v57  ;;  %v16282_v56 = vcombine.high %v9590_v9, %v9590_v9  ;;  %v16289_v44 = vrot.slane %v9590_v9, %v25067_v48  ;;  %v16775_v4 = vrot.slane %v16761_v6, %v25067_v48  ;;  %v16776_v59 = vcombine.high %v16768_v62, %v16768_v62 }
 0x6cf   : > { %v16784_v33 = vrot.slane %v16768_v62, %v25067_v48  ;;  %v17352_v16 = vrot.slane %v17338_v29, %v25067_v48  ;;  %v17353_v14 = vcombine.high %v17345_v53, %v17345_v53  ;;  %v17361_v17 = vrot.slane %v17345_v53, %v25067_v48 }
 0x6d0   : > { %v16296_v51 = vrot.slane %v16282_v56, %v25067_v48  ;;  %v16297_v55 = vcombine.high %v16289_v44, %v16289_v44  ;;  %v16777_v31 = vcombine.high %v16775_v4, %v16775_v4  ;;  %v16791_v63 = vrot.slane %v16775_v4, %v25067_v48  ;;  %v18338_v56 = vld [vmem:[%s25102_s12 + $0x8] sm:$0xff] (%p21076_p5) }
 0x6d1   : > { %v16798_v8 = vrot.slane %v16776_v59, %v25067_v48  ;;  %v16806_v30 = vcombine.high %v16784_v33, %v16784_v33  ;;  %16971 = vst.msk [vmem:[%s25102_s12 + $0x30d] sm:$0x1] %vm10058_vm7, %v16784_v33  ;;  %v17354_v28 = vcombine.high %v17352_v16, %v17352_v16  ;;  %v17368_v54 = vrot.slane %v17352_v16, %v25067_v48  ;;  %v18346_v4 = vld [vmem:[%s25102_s12 + $0x28] sm:$0xff] (%p21076_p5)  ;;  %v18348_v59 = vld [vmem:[%s25102_s12 + $0x30] sm:$0xff] (%p21076_p5)  ;;  %v18350_v33 = vld [vmem:[%s25102_s12 + $0x38] sm:$0xff] (%p21076_p5) }
 0x6d2   : > { %v17375_v22 = vrot.slane %v17353_v14, %v25067_v48  ;;  %v17383_v12 = vcombine.high %v17361_v17, %v17361_v17  ;;  %17507 = vst.msk [vmem:[%s25102_s12 + $0x38e] sm:$0x1] %vm10058_vm7, %v17361_v17  ;;  %v16805_v52 = vrot.slane %v16777_v31, %v25067_v48  ;;  %v16807_v1 = vcombine.high %v16791_v63, %v16791_v63  ;;  %v18352_v16 = vld [vmem:[%s25102_s12 + $0x40] sm:$0xff] (%p21076_p5)  ;;  %v18354_v14 = vld [vmem:[%s25102_s12 + $0x48] sm:$0xff] (%p21076_p5)  ;;  %v18356_v17 = vld [vmem:[%s25102_s12 + $0x50] sm:$0xff] (%p21076_p5) }
 0x6d3   : > { %v16808_v43 = vcombine.high %v16798_v8, %v16798_v8  ;;  %16972 = vst.msk [vmem:[%s25102_s12 + $0x31d] sm:$0x1] %vm10058_vm7, %v16798_v8  ;;  %16973 = vst.msk [vmem:[%s25102_s12 + $0x32d] sm:$0x1] %vm10058_vm7, %v16806_v30  ;;  %v16298_v26 = vcombine.high %v16296_v51, %v16296_v51  ;;  %v17382_v32 = vrot.slane %v17354_v28, %v25067_v48  ;;  %v18362_v31 = vld [vmem:[%s25102_s12 + $0x68] sm:$0xff] (%p21076_p5)  ;;  %v18366_v8 = vld [vmem:[%s25102_s12 + $0x78] sm:$0xff] (%p21076_p5) }
 0x6d4   : > { %16975 = vst.msk [vmem:[%s25102_s12 + $0x34d] sm:$0x1] %vm10058_vm7, %v16791_v63  ;;  %v17384_v20 = vcombine.high %v17368_v54, %v17368_v54  ;;  %v17385_v25 = vcombine.high %v17375_v22, %v17375_v22  ;;  %17508 = vst.msk [vmem:[%s25102_s12 + $0x39e] sm:$0x1] %vm10058_vm7, %v17375_v22  ;;  %v16305_v23 = vrot.slane %v16289_v44, %v25067_v48  ;;  %v18340_v44 = vld [vmem:[%s25102_s12 + $0x10] sm:$0xff] (%p21076_p5)  ;;  %v18368_v30 = vld [vmem:[%s25102_s12 + $0x80] sm:$0xff] (%p21076_p5) }
 0x6d5   : > { %17509 = vst.msk [vmem:[%s25102_s12 + $0x3ae] sm:$0x1] %vm10058_vm7, %v17383_v12  ;;  %17511 = vst.msk [vmem:[%s25102_s12 + $0x3ce] sm:$0x1] %vm10058_vm7, %v17368_v54  ;;  %v16809_v27 = vcombine.high %v16805_v52, %v16805_v52  ;;  %v16312_v5 = vrot.slane %v16296_v51, %v25067_v48  ;;  %v16319_v60 = vrot.slane %v16297_v55, %v25067_v48  ;;  %v18358_v51 = vld [vmem:[%s25102_s12 + $0x58] sm:$0xff] (%p21076_p5)  ;;  %v18360_v55 = vld [vmem:[%s25102_s12 + $0x60] sm:$0xff] (%p21076_p5) }
 0x6d6   : > { %16974 = vst.msk [vmem:[%s25102_s12 + $0x33d] sm:$0x1] %vm10058_vm7, %v16808_v43  ;;  %16976 = vst.msk [vmem:[%s25102_s12 + $0x35d] sm:$0x1] %vm10058_vm7, %v16805_v52  ;;  %v16326_v45 = vrot.slane %v16298_v26, %v25067_v48  ;;  %v17386_v40 = vcombine.high %v17382_v32, %v17382_v32  ;;  %v16327_v34 = vcombine.high %v16305_v23, %v16305_v23  ;;  %v18364_v63 = vld [vmem:[%s25102_s12 + $0x70] sm:$0xff] (%p21076_p5)  ;;  %v18370_v28 = vld [vmem:[%s25102_s12 + $0x88] sm:$0xff] (%p21076_p5) }
 0x6d7   : > { %16977 = vst.msk [vmem:[%s25102_s12 + $0x36d] sm:$0x1] %vm10058_vm7, %v16807_v1  ;;  %17510 = vst.msk [vmem:[%s25102_s12 + $0x3be] sm:$0x1] %vm10058_vm7, %v17385_v25  ;;  %v17866_v47 = vcombine.high %v9593_v39, %v9593_v39  ;;  %v17873_v42 = vrot.slane %v9593_v39, %v25067_v48  ;;  %v16328_v49 = vcombine.high %v16312_v5, %v16312_v5  ;;  %v18342_v39 = vld [vmem:[%s25102_s12 + $0x18] sm:$0xff] (%p21076_p5)  ;;  %v18372_v54 = vld [vmem:[%s25102_s12 + $0x90] sm:$0xff] (%p21076_p5) }
 0x6d8   : > { %17512 = vst.msk [vmem:[%s25102_s12 + $0x3de] sm:$0x1] %vm10058_vm7, %v17382_v32  ;;  %17513 = vst.msk [vmem:[%s25102_s12 + $0x3ee] sm:$0x1] %vm10058_vm7, %v17384_v20  ;;  %v16329_v58 = vcombine.high %v16319_v60, %v16319_v60  ;;  %v16330_v11 = vcombine.high %v16326_v45, %v16326_v45  ;;  %v16810_v35 = vcombine.high %v28421_v0, %v28421_v0  ;;  %v18374_v22 = vld [vmem:[%s25102_s12 + $0x98] sm:$0xff] (%p21076_p5)  ;;  %v18376_v12 = vld [vmem:[%s25102_s12 + $0xa0] sm:$0xff] (%p21076_p5) }
 0x6d9   : > { %16451 = vst.msk [vmem:[%s25102_s12 + $0x38c] sm:$0x1] %vm10058_vm7, %v16305_v23  ;;  %16978 = vst.msk [vmem:[%s25102_s12 + $0x37d] sm:$0x1] %vm10058_vm7, %v16809_v27  ;;  %v17880_v13 = vrot.slane %v17866_v47, %v25067_v48  ;;  %v17881_v15 = vcombine.high %v17873_v42, %v17873_v42  ;;  %v17889_v3 = vrot.slane %v17873_v42, %v25067_v48  ;;  %v18378_v52 = vld [vmem:[%s25102_s12 + $0xa8] sm:$0xff] (%p21076_p5)  ;;  %v18380_v1 = vld [vmem:[%s25102_s12 + $0xb0] sm:$0xff] (%p21076_p5) }
 0x6da   : > { %16452 = vst.msk [vmem:[%s25102_s12 + $0x39c] sm:$0x1] %vm10058_vm7, %v16319_v60  ;;  %16455 = vst.msk [vmem:[%s25102_s12 + $0x3cc] sm:$0x1] %vm10058_vm7, %v16312_v5  ;;  %v16817_v10 = vrot.slane %v28421_v0, %v25067_v48  ;;  %v16824_v61 = vrot.slane %v16810_v35, %v25067_v48  ;;  %v18344_v0 = vld [vmem:[%s25102_s12 + $0x20] sm:$0xff] (%p21076_p5)  ;;  %v18382_v43 = vld [vmem:[%s25102_s12 + $0xb8] sm:$0xff] (%p21076_p5) }
 0x6db   : > { %16456 = vst.msk [vmem:[%s25102_s12 + $0x3dc] sm:$0x1] %vm10058_vm7, %v16326_v45  ;;  %17514 = vst.msk [vmem:[%s25102_s12 + $0x3fe] sm:$0x1] %vm10058_vm7, %v17386_v40  ;;  %v17882_v36 = vcombine.high %v17880_v13, %v17880_v13  ;;  %v17896_v7 = vrot.slane %v17880_v13, %v25067_v48  ;;  %v17903_v38 = vrot.slane %v17881_v15, %v25067_v48  ;;  %v18384_v26 = vld [vmem:[%s25102_s12 + $0xc0] sm:$0xff] (%p21076_p5)  ;;  %v18386_v32 = vld [vmem:[%s25102_s12 + $0xc8] sm:$0xff] (%p21076_p5) }
 0x6dc   : > { %16453 = vst.msk [vmem:[%s25102_s12 + $0x3ac] sm:$0x1] %vm10058_vm7, %v16327_v34  ;;  %16454 = vst.msk [vmem:[%s25102_s12 + $0x3bc] sm:$0x1] %vm10058_vm7, %v16329_v58  ;;  %v17911_v41 = vcombine.high %v17889_v3, %v17889_v3  ;;  %v16825_v46 = vcombine.high %v16817_v10, %v16817_v10  ;;  %v16826_v19 = vcombine.high %v16824_v61, %v16824_v61  ;;  %v18388_v20 = vld [vmem:[%s25102_s12 + $0xd0] sm:$0xff] (%p21076_p5)  ;;  %v18390_v25 = vld [vmem:[%s25102_s12 + $0xd8] sm:$0xff] (%p21076_p5) }
 0x6dd   : > { %16457 = vst.msk [vmem:[%s25102_s12 + $0x3ec] sm:$0x1] %vm10058_vm7, %v16328_v49  ;;  %16458 = vst.msk [vmem:[%s25102_s12 + $0x3fc] sm:$0x1] %vm10058_vm7, %v16330_v11  ;;  %v16833_v50 = vrot.slane %v16817_v10, %v25067_v48  ;;  %v16840_v2 = vrot.slane %v16824_v61, %v25067_v48  ;;  %v17910_v37 = vrot.slane %v17882_v36, %v25067_v48  ;;  %v18392_v23 = vld [vmem:[%s25102_s12 + $0xe0] sm:$0xff] (%p21076_p5)  ;;  %v18394_v27 = vld [vmem:[%s25102_s12 + $0xe8] sm:$0xff] (%p21076_p5) }
 0x6de   : > { %18035 = vst.msk [vmem:[%s25102_s12 + $0x38f] sm:$0x1] %vm10058_vm7, %v17889_v3  ;;  %v17912_v18 = vcombine.high %v17896_v7, %v17896_v7  ;;  %v17913_v24 = vcombine.high %v17903_v38, %v17903_v38  ;;  %18036 = vst.msk [vmem:[%s25102_s12 + $0x39f] sm:$0x1] %vm10058_vm7, %v17903_v38  ;;  %v16847_v21 = vrot.slane %v16825_v46, %v25067_v48  ;;  %v18396_v5 = vld [vmem:[%s25102_s12 + $0xf0] sm:$0xff] (%p21076_p5)  ;;  %v18398_v60 = vld [vmem:[%s25102_s12 + $0xf8] sm:$0xff] (%p21076_p5) }
 0x6df   : > { %18037 = vst.msk [vmem:[%s25102_s12 + $0x3af] sm:$0x1] %vm10058_vm7, %v17911_v41  ;;  %18039 = vst.msk [vmem:[%s25102_s12 + $0x3cf] sm:$0x1] %vm10058_vm7, %v17896_v7  ;;  %v16854_v57 = vrot.slane %v16826_v19, %v25067_v48  ;;  %v16855_v9 = vcombine.high %v16833_v50, %v16833_v50  ;;  %v16856_v6 = vcombine.high %v16840_v2, %v16840_v2  ;;  %18049 = sbr.rel (!%p21076_p5) target bundleno = 1830 (0x726), region = 36  ;;  %v18336_v48 = vld [vmem:[%s25102_s12] sm:$0xff] (%p21076_p5) }
 0x6e0   : > { %16979 = vst.msk [vmem:[%s25102_s12 + $0x38d] sm:$0x1] %vm10058_vm7, %v16833_v50  ;;  %16983 = vst.msk [vmem:[%s25102_s12 + $0x3cd] sm:$0x1] %vm10058_vm7, %v16840_v2  ;;  %v17914_v62 = vcombine.high %v17910_v37, %v17910_v37  ;;  %v16857_v29 = vcombine.high %v16847_v21, %v16847_v21  ;;  %v18400_v45 = vld [vmem:[%s25102_s12 + $0x100] sm:$0xff] (%p21076_p5)  ;;  %v18402_v40 = vld [vmem:[%s25102_s12 + $0x108] sm:$0xff] (%p21076_p5) }
 0x6e1   : > { %18038 = vst.msk [vmem:[%s25102_s12 + $0x3bf] sm:$0x1] %vm10058_vm7, %v17913_v24  ;;  %18040 = vst.msk [vmem:[%s25102_s12 + $0x3df] sm:$0x1] %vm10058_vm7, %v17910_v37  ;;  %v16858_v53 = vcombine.high %v16854_v57, %v16854_v57  ;;  %v18404_v34 = vld [vmem:[%s25102_s12 + $0x110] sm:$0xff] (%p21076_p5)  ;;  %v18406_v47 = vld [vmem:[%s25102_s12 + $0x118] sm:$0xff] (%p21076_p5) }
 0x6e2   : > { %18041 = vst.msk [vmem:[%s25102_s12 + $0x3ef] sm:$0x1] %vm10058_vm7, %v17912_v18  ;;  %16980 = vst.msk [vmem:[%s25102_s12 + $0x39d] sm:$0x1] %vm10058_vm7, %v16847_v21  ;;  %v18408_v42 = vld [vmem:[%s25102_s12 + $0x120] sm:$0xff] (%p21076_p5)  ;;  %v18410_v49 = vld [vmem:[%s25102_s12 + $0x128] sm:$0xff] (%p21076_p5) }
 0x6e3   : > { %16981 = vst.msk [vmem:[%s25102_s12 + $0x3ad] sm:$0x1] %vm10058_vm7, %v16855_v9  ;;  %16984 = vst.msk [vmem:[%s25102_s12 + $0x3dd] sm:$0x1] %vm10058_vm7, %v16854_v57  ;;  %v18412_v58 = vld [vmem:[%s25102_s12 + $0x130] sm:$0xff] (%p21076_p5)  ;;  %v18414_v11 = vld [vmem:[%s25102_s12 + $0x138] sm:$0xff] (%p21076_p5) }
 0x6e4   : > { %16985 = vst.msk [vmem:[%s25102_s12 + $0x3ed] sm:$0x1] %vm10058_vm7, %v16856_v6  ;;  %18042 = vst.msk [vmem:[%s25102_s12 + $0x3ff] sm:$0x1] %vm10058_vm7, %v17914_v62  ;;  %v18416_v35 = vld [vmem:[%s25102_s12 + $0x140] sm:$0xff] (%p21076_p5)  ;;  %v18418_v13 = vld [vmem:[%s25102_s12 + $0x148] sm:$0xff] (%p21076_p5) }
 0x6e5   : > { %16982 = vst.msk [vmem:[%s25102_s12 + $0x3bd] sm:$0x1] %vm10058_vm7, %v16857_v29  ;;  %16986 = vst.msk [vmem:[%s25102_s12 + $0x3fd] sm:$0x1] %vm10058_vm7, %v16858_v53  ;;  %v18420_v15 = vld [vmem:[%s25102_s12 + $0x150] sm:$0xff] (%p21076_p5)  ;;  %v18422_v3 = vld [vmem:[%s25102_s12 + $0x158] sm:$0xff] (%p21076_p5) }
 0x6e6   : > { %18337 = vst [vmem:[%s28549_s5] sm:$0xff] %v18336_v48  ;;  %18339 = vst [vmem:[%s28549_s5 + $0x8] sm:$0xff] %v18338_v56  ;;  %v18424_v10 = vld [vmem:[%s25102_s12 + $0x160] sm:$0xff]  ;;  %v18426_v61 = vld [vmem:[%s25102_s12 + $0x168] sm:$0xff] }
 0x6e7   : > { %18341 = vst [vmem:[%s28549_s5 + $0x20] sm:$0xff] %v18340_v44  ;;  %18343 = vst [vmem:[%s28549_s5 + $0x28] sm:$0xff] %v18342_v39  ;;  %v18428_v36 = vld [vmem:[%s25102_s12 + $0x170] sm:$0xff]  ;;  %v18430_v7 = vld [vmem:[%s25102_s12 + $0x178] sm:$0xff] }
 0x6e8   : > { %18345 = vst [vmem:[%s28549_s5 + $0x40] sm:$0xff] %v18344_v0  ;;  %18347 = vst [vmem:[%s28549_s5 + $0x48] sm:$0xff] %v18346_v4  ;;  %v18432_v38 = vld [vmem:[%s25102_s12 + $0x180] sm:$0xff]  ;;  %v18434_v41 = vld [vmem:[%s25102_s12 + $0x188] sm:$0xff] }
 0x6e9   : > { %18349 = vst [vmem:[%s28549_s5 + $0x60] sm:$0xff] %v18348_v59  ;;  %18351 = vst [vmem:[%s28549_s5 + $0x68] sm:$0xff] %v18350_v33  ;;  %v18436_v46 = vld [vmem:[%s25102_s12 + $0x190] sm:$0xff]  ;;  %v18438_v19 = vld [vmem:[%s25102_s12 + $0x198] sm:$0xff] }
 0x6ea   : > { %18353 = vst [vmem:[%s28549_s5 + $0x80] sm:$0xff] %v18352_v16  ;;  %18355 = vst [vmem:[%s28549_s5 + $0x88] sm:$0xff] %v18354_v14  ;;  %v18440_v50 = vld [vmem:[%s25102_s12 + $0x1a0] sm:$0xff]  ;;  %v18442_v2 = vld [vmem:[%s25102_s12 + $0x1a8] sm:$0xff] }
 0x6eb   : > { %18357 = vst [vmem:[%s28549_s5 + $0xa0] sm:$0xff] %v18356_v17  ;;  %18359 = vst [vmem:[%s28549_s5 + $0xa8] sm:$0xff] %v18358_v51  ;;  %v18444_v37 = vld [vmem:[%s25102_s12 + $0x1b0] sm:$0xff]  ;;  %v18446_v18 = vld [vmem:[%s25102_s12 + $0x1b8] sm:$0xff] }
 0x6ec   : > { %18361 = vst [vmem:[%s28549_s5 + $0xc0] sm:$0xff] %v18360_v55  ;;  %18363 = vst [vmem:[%s28549_s5 + $0xc8] sm:$0xff] %v18362_v31  ;;  %v18448_v24 = vld [vmem:[%s25102_s12 + $0x1c0] sm:$0xff]  ;;  %v18450_v21 = vld [vmem:[%s25102_s12 + $0x1c8] sm:$0xff] }
 0x6ed   : > { %18365 = vst [vmem:[%s28549_s5 + $0xe0] sm:$0xff] %v18364_v63  ;;  %18367 = vst [vmem:[%s28549_s5 + $0xe8] sm:$0xff] %v18366_v8  ;;  %v18452_v57 = vld [vmem:[%s25102_s12 + $0x1d0] sm:$0xff]  ;;  %v18454_v9 = vld [vmem:[%s25102_s12 + $0x1d8] sm:$0xff] }
 0x6ee   : > { %18369 = vst [vmem:[%s28549_s5 + $0x100] sm:$0xff] %v18368_v30  ;;  %18371 = vst [vmem:[%s28549_s5 + $0x108] sm:$0xff] %v18370_v28  ;;  %v18456_v6 = vld [vmem:[%s25102_s12 + $0x1e0] sm:$0xff]  ;;  %v18458_v62 = vld [vmem:[%s25102_s12 + $0x1e8] sm:$0xff] }
 0x6ef   : > { %18373 = vst [vmem:[%s28549_s5 + $0x120] sm:$0xff] %v18372_v54  ;;  %18375 = vst [vmem:[%s28549_s5 + $0x128] sm:$0xff] %v18374_v22  ;;  %v18460_v29 = vld [vmem:[%s25102_s12 + $0x1f0] sm:$0xff]  ;;  %v18462_v53 = vld [vmem:[%s25102_s12 + $0x1f8] sm:$0xff] }
 0x6f0   : > { %18377 = vst [vmem:[%s28549_s5 + $0x140] sm:$0xff] %v18376_v12  ;;  %18379 = vst [vmem:[%s28549_s5 + $0x148] sm:$0xff] %v18378_v52  ;;  %v18464_v48 = vld [vmem:[%s25102_s12 + $0x200] sm:$0xff]  ;;  %v18466_v56 = vld [vmem:[%s25102_s12 + $0x208] sm:$0xff] }
 0x6f1   : > { %18381 = vst [vmem:[%s28549_s5 + $0x160] sm:$0xff] %v18380_v1  ;;  %18383 = vst [vmem:[%s28549_s5 + $0x168] sm:$0xff] %v18382_v43  ;;  %v18468_v44 = vld [vmem:[%s25102_s12 + $0x210] sm:$0xff]  ;;  %v18470_v39 = vld [vmem:[%s25102_s12 + $0x218] sm:$0xff] }
 0x6f2   : > { %18385 = vst [vmem:[%s28549_s5 + $0x180] sm:$0xff] %v18384_v26  ;;  %18387 = vst [vmem:[%s28549_s5 + $0x188] sm:$0xff] %v18386_v32  ;;  %v18472_v0 = vld [vmem:[%s25102_s12 + $0x220] sm:$0xff]  ;;  %v18474_v4 = vld [vmem:[%s25102_s12 + $0x228] sm:$0xff] }
 0x6f3   : > { %18389 = vst [vmem:[%s28549_s5 + $0x1a0] sm:$0xff] %v18388_v20  ;;  %18391 = vst [vmem:[%s28549_s5 + $0x1a8] sm:$0xff] %v18390_v25  ;;  %v18476_v59 = vld [vmem:[%s25102_s12 + $0x230] sm:$0xff]  ;;  %v18478_v33 = vld [vmem:[%s25102_s12 + $0x238] sm:$0xff] }
 0x6f4   : > { %18393 = vst [vmem:[%s28549_s5 + $0x1c0] sm:$0xff] %v18392_v23  ;;  %18395 = vst [vmem:[%s28549_s5 + $0x1c8] sm:$0xff] %v18394_v27  ;;  %v18480_v16 = vld [vmem:[%s25102_s12 + $0x240] sm:$0xff]  ;;  %v18482_v14 = vld [vmem:[%s25102_s12 + $0x248] sm:$0xff] }
 0x6f5   : > { %18397 = vst [vmem:[%s28549_s5 + $0x1e0] sm:$0xff] %v18396_v5  ;;  %18399 = vst [vmem:[%s28549_s5 + $0x1e8] sm:$0xff] %v18398_v60  ;;  %v18484_v17 = vld [vmem:[%s25102_s12 + $0x250] sm:$0xff]  ;;  %v18486_v51 = vld [vmem:[%s25102_s12 + $0x258] sm:$0xff] }
 0x6f6   : > { %18401 = vst [vmem:[%s28549_s5 + $0x200] sm:$0xff] %v18400_v45  ;;  %18403 = vst [vmem:[%s28549_s5 + $0x208] sm:$0xff] %v18402_v40  ;;  %v18488_v55 = vld [vmem:[%s25102_s12 + $0x260] sm:$0xff]  ;;  %v18490_v31 = vld [vmem:[%s25102_s12 + $0x268] sm:$0xff] }
 0x6f7   : > { %18405 = vst [vmem:[%s28549_s5 + $0x220] sm:$0xff] %v18404_v34  ;;  %18407 = vst [vmem:[%s28549_s5 + $0x228] sm:$0xff] %v18406_v47  ;;  %v18492_v63 = vld [vmem:[%s25102_s12 + $0x270] sm:$0xff]  ;;  %v18494_v8 = vld [vmem:[%s25102_s12 + $0x278] sm:$0xff] }
 0x6f8   : > { %18409 = vst [vmem:[%s28549_s5 + $0x240] sm:$0xff] %v18408_v42  ;;  %18411 = vst [vmem:[%s28549_s5 + $0x248] sm:$0xff] %v18410_v49  ;;  %v18496_v30 = vld [vmem:[%s25102_s12 + $0x280] sm:$0xff]  ;;  %v18498_v28 = vld [vmem:[%s25102_s12 + $0x288] sm:$0xff] }
 0x6f9   : > { %18413 = vst [vmem:[%s28549_s5 + $0x260] sm:$0xff] %v18412_v58  ;;  %18415 = vst [vmem:[%s28549_s5 + $0x268] sm:$0xff] %v18414_v11  ;;  %v18500_v54 = vld [vmem:[%s25102_s12 + $0x290] sm:$0xff]  ;;  %v18502_v22 = vld [vmem:[%s25102_s12 + $0x298] sm:$0xff] }
 0x6fa   : > { %18417 = vst [vmem:[%s28549_s5 + $0x280] sm:$0xff] %v18416_v35  ;;  %18419 = vst [vmem:[%s28549_s5 + $0x288] sm:$0xff] %v18418_v13  ;;  %v18504_v12 = vld [vmem:[%s25102_s12 + $0x2a0] sm:$0xff]  ;;  %v18506_v52 = vld [vmem:[%s25102_s12 + $0x2a8] sm:$0xff] }
 0x6fb   : > { %18421 = vst [vmem:[%s28549_s5 + $0x2a0] sm:$0xff] %v18420_v15  ;;  %18423 = vst [vmem:[%s28549_s5 + $0x2a8] sm:$0xff] %v18422_v3  ;;  %v18508_v1 = vld [vmem:[%s25102_s12 + $0x2b0] sm:$0xff]  ;;  %v18510_v43 = vld [vmem:[%s25102_s12 + $0x2b8] sm:$0xff] }
 0x6fc   : > { %18425 = vst [vmem:[%s28549_s5 + $0x2c0] sm:$0xff] %v18424_v10  ;;  %18427 = vst [vmem:[%s28549_s5 + $0x2c8] sm:$0xff] %v18426_v61  ;;  %v18512_v26 = vld [vmem:[%s25102_s12 + $0x2c0] sm:$0xff]  ;;  %v18514_v32 = vld [vmem:[%s25102_s12 + $0x2c8] sm:$0xff] }
 0x6fd   : > { %18429 = vst [vmem:[%s28549_s5 + $0x2e0] sm:$0xff] %v18428_v36  ;;  %18431 = vst [vmem:[%s28549_s5 + $0x2e8] sm:$0xff] %v18430_v7  ;;  %v18516_v20 = vld [vmem:[%s25102_s12 + $0x2d0] sm:$0xff]  ;;  %v18518_v25 = vld [vmem:[%s25102_s12 + $0x2d8] sm:$0xff] }
 0x6fe   : > { %18433 = vst [vmem:[%s28549_s5 + $0x300] sm:$0xff] %v18432_v38  ;;  %18435 = vst [vmem:[%s28549_s5 + $0x308] sm:$0xff] %v18434_v41  ;;  %v18520_v23 = vld [vmem:[%s25102_s12 + $0x2e0] sm:$0xff]  ;;  %v18522_v27 = vld [vmem:[%s25102_s12 + $0x2e8] sm:$0xff] }
 0x6ff   : > { %18437 = vst [vmem:[%s28549_s5 + $0x320] sm:$0xff] %v18436_v46  ;;  %18439 = vst [vmem:[%s28549_s5 + $0x328] sm:$0xff] %v18438_v19  ;;  %v18524_v5 = vld [vmem:[%s25102_s12 + $0x2f0] sm:$0xff]  ;;  %v18526_v60 = vld [vmem:[%s25102_s12 + $0x2f8] sm:$0xff] }
 0x700   : > { %18441 = vst [vmem:[%s28549_s5 + $0x340] sm:$0xff] %v18440_v50  ;;  %18443 = vst [vmem:[%s28549_s5 + $0x348] sm:$0xff] %v18442_v2  ;;  %v18528_v45 = vld [vmem:[%s25102_s12 + $0x300] sm:$0xff]  ;;  %v18530_v40 = vld [vmem:[%s25102_s12 + $0x308] sm:$0xff] }
 0x701   : > { %18445 = vst [vmem:[%s28549_s5 + $0x360] sm:$0xff] %v18444_v37  ;;  %18447 = vst [vmem:[%s28549_s5 + $0x368] sm:$0xff] %v18446_v18  ;;  %v18532_v34 = vld [vmem:[%s25102_s12 + $0x310] sm:$0xff]  ;;  %v18534_v47 = vld [vmem:[%s25102_s12 + $0x318] sm:$0xff] }
 0x702   : > { %18449 = vst [vmem:[%s28549_s5 + $0x380] sm:$0xff] %v18448_v24  ;;  %18451 = vst [vmem:[%s28549_s5 + $0x388] sm:$0xff] %v18450_v21  ;;  %v18536_v42 = vld [vmem:[%s25102_s12 + $0x320] sm:$0xff]  ;;  %v18538_v49 = vld [vmem:[%s25102_s12 + $0x328] sm:$0xff] }
 0x703   : > { %18453 = vst [vmem:[%s28549_s5 + $0x3a0] sm:$0xff] %v18452_v57  ;;  %18455 = vst [vmem:[%s28549_s5 + $0x3a8] sm:$0xff] %v18454_v9  ;;  %v18540_v58 = vld [vmem:[%s25102_s12 + $0x330] sm:$0xff]  ;;  %v18542_v11 = vld [vmem:[%s25102_s12 + $0x338] sm:$0xff] }
 0x704   : > { %18457 = vst [vmem:[%s28549_s5 + $0x3c0] sm:$0xff] %v18456_v6  ;;  %18459 = vst [vmem:[%s28549_s5 + $0x3c8] sm:$0xff] %v18458_v62  ;;  %v18544_v35 = vld [vmem:[%s25102_s12 + $0x340] sm:$0xff]  ;;  %v18546_v13 = vld [vmem:[%s25102_s12 + $0x348] sm:$0xff] }
 0x705   : > { %18461 = vst [vmem:[%s28549_s5 + $0x3e0] sm:$0xff] %v18460_v29  ;;  %18463 = vst [vmem:[%s28549_s5 + $0x3e8] sm:$0xff] %v18462_v53  ;;  %v18548_v15 = vld [vmem:[%s25102_s12 + $0x350] sm:$0xff]  ;;  %v18550_v3 = vld [vmem:[%s25102_s12 + $0x358] sm:$0xff] }
 0x706   : > { %18465 = vst [vmem:[%s28549_s5 + $0x400] sm:$0xff] %v18464_v48  ;;  %18467 = vst [vmem:[%s28549_s5 + $0x408] sm:$0xff] %v18466_v56  ;;  %v18552_v10 = vld [vmem:[%s25102_s12 + $0x360] sm:$0xff]  ;;  %v18554_v61 = vld [vmem:[%s25102_s12 + $0x368] sm:$0xff] }
 0x707   : > { %18469 = vst [vmem:[%s28549_s5 + $0x420] sm:$0xff] %v18468_v44  ;;  %18471 = vst [vmem:[%s28549_s5 + $0x428] sm:$0xff] %v18470_v39  ;;  %v18556_v36 = vld [vmem:[%s25102_s12 + $0x370] sm:$0xff]  ;;  %v18558_v7 = vld [vmem:[%s25102_s12 + $0x378] sm:$0xff] }
 0x708   : > { %18473 = vst [vmem:[%s28549_s5 + $0x440] sm:$0xff] %v18472_v0  ;;  %18475 = vst [vmem:[%s28549_s5 + $0x448] sm:$0xff] %v18474_v4  ;;  %v18560_v38 = vld [vmem:[%s25102_s12 + $0x380] sm:$0xff]  ;;  %v18562_v41 = vld [vmem:[%s25102_s12 + $0x388] sm:$0xff] }
 0x709   : > { %18477 = vst [vmem:[%s28549_s5 + $0x460] sm:$0xff] %v18476_v59  ;;  %18479 = vst [vmem:[%s28549_s5 + $0x468] sm:$0xff] %v18478_v33  ;;  %v18564_v46 = vld [vmem:[%s25102_s12 + $0x390] sm:$0xff]  ;;  %v18566_v19 = vld [vmem:[%s25102_s12 + $0x398] sm:$0xff] }
 0x70a   : > { %18481 = vst [vmem:[%s28549_s5 + $0x480] sm:$0xff] %v18480_v16  ;;  %18483 = vst [vmem:[%s28549_s5 + $0x488] sm:$0xff] %v18482_v14  ;;  %v18568_v50 = vld [vmem:[%s25102_s12 + $0x3a0] sm:$0xff]  ;;  %v18570_v2 = vld [vmem:[%s25102_s12 + $0x3a8] sm:$0xff] }
 0x70b   : > { %18485 = vst [vmem:[%s28549_s5 + $0x4a0] sm:$0xff] %v18484_v17  ;;  %18487 = vst [vmem:[%s28549_s5 + $0x4a8] sm:$0xff] %v18486_v51  ;;  %v18572_v37 = vld [vmem:[%s25102_s12 + $0x3b0] sm:$0xff]  ;;  %v18574_v18 = vld [vmem:[%s25102_s12 + $0x3b8] sm:$0xff] }
 0x70c   : > { %18489 = vst [vmem:[%s28549_s5 + $0x4c0] sm:$0xff] %v18488_v55  ;;  %18491 = vst [vmem:[%s28549_s5 + $0x4c8] sm:$0xff] %v18490_v31  ;;  %v18576_v24 = vld [vmem:[%s25102_s12 + $0x3c0] sm:$0xff]  ;;  %v18578_v21 = vld [vmem:[%s25102_s12 + $0x3c8] sm:$0xff] }
 0x70d   : > { %18493 = vst [vmem:[%s28549_s5 + $0x4e0] sm:$0xff] %v18492_v63  ;;  %18495 = vst [vmem:[%s28549_s5 + $0x4e8] sm:$0xff] %v18494_v8  ;;  %v18580_v57 = vld [vmem:[%s25102_s12 + $0x3d0] sm:$0xff]  ;;  %v18582_v9 = vld [vmem:[%s25102_s12 + $0x3d8] sm:$0xff] }
 0x70e   : > { %18497 = vst [vmem:[%s28549_s5 + $0x500] sm:$0xff] %v18496_v30  ;;  %18499 = vst [vmem:[%s28549_s5 + $0x508] sm:$0xff] %v18498_v28  ;;  %v18584_v6 = vld [vmem:[%s25102_s12 + $0x3e0] sm:$0xff]  ;;  %v18586_v62 = vld [vmem:[%s25102_s12 + $0x3e8] sm:$0xff] }
 0x70f   : > { %18501 = vst [vmem:[%s28549_s5 + $0x520] sm:$0xff] %v18500_v54  ;;  %18503 = vst [vmem:[%s28549_s5 + $0x528] sm:$0xff] %v18502_v22  ;;  %v18588_v29 = vld [vmem:[%s25102_s12 + $0x3f0] sm:$0xff]  ;;  %v18590_v53 = vld [vmem:[%s25102_s12 + $0x3f8] sm:$0xff] }
 0x710   : > { %18505 = vst [vmem:[%s28549_s5 + $0x540] sm:$0xff] %v18504_v12  ;;  %18507 = vst [vmem:[%s28549_s5 + $0x548] sm:$0xff] %v18506_v52 }
 0x711   : > { %18509 = vst [vmem:[%s28549_s5 + $0x560] sm:$0xff] %v18508_v1  ;;  %18511 = vst [vmem:[%s28549_s5 + $0x568] sm:$0xff] %v18510_v43 }
 0x712   : > { %18513 = vst [vmem:[%s28549_s5 + $0x580] sm:$0xff] %v18512_v26  ;;  %18515 = vst [vmem:[%s28549_s5 + $0x588] sm:$0xff] %v18514_v32 }
 0x713   : > { %18517 = vst [vmem:[%s28549_s5 + $0x5a0] sm:$0xff] %v18516_v20  ;;  %18519 = vst [vmem:[%s28549_s5 + $0x5a8] sm:$0xff] %v18518_v25 }
 0x714   : > { %18521 = vst [vmem:[%s28549_s5 + $0x5c0] sm:$0xff] %v18520_v23  ;;  %18523 = vst [vmem:[%s28549_s5 + $0x5c8] sm:$0xff] %v18522_v27 }
 0x715   : > { %18525 = vst [vmem:[%s28549_s5 + $0x5e0] sm:$0xff] %v18524_v5  ;;  %18527 = vst [vmem:[%s28549_s5 + $0x5e8] sm:$0xff] %v18526_v60 }
 0x716   : > { %18529 = vst [vmem:[%s28549_s5 + $0x600] sm:$0xff] %v18528_v45  ;;  %18531 = vst [vmem:[%s28549_s5 + $0x608] sm:$0xff] %v18530_v40 }
 0x717   : > { %18533 = vst [vmem:[%s28549_s5 + $0x620] sm:$0xff] %v18532_v34  ;;  %18535 = vst [vmem:[%s28549_s5 + $0x628] sm:$0xff] %v18534_v47 }
 0x718   : > { %18537 = vst [vmem:[%s28549_s5 + $0x640] sm:$0xff] %v18536_v42  ;;  %18539 = vst [vmem:[%s28549_s5 + $0x648] sm:$0xff] %v18538_v49 }
 0x719   : > { %18541 = vst [vmem:[%s28549_s5 + $0x660] sm:$0xff] %v18540_v58  ;;  %18543 = vst [vmem:[%s28549_s5 + $0x668] sm:$0xff] %v18542_v11 }
 0x71a   : > { %18545 = vst [vmem:[%s28549_s5 + $0x680] sm:$0xff] %v18544_v35  ;;  %18547 = vst [vmem:[%s28549_s5 + $0x688] sm:$0xff] %v18546_v13 }
 0x71b   : > { %18549 = vst [vmem:[%s28549_s5 + $0x6a0] sm:$0xff] %v18548_v15  ;;  %18551 = vst [vmem:[%s28549_s5 + $0x6a8] sm:$0xff] %v18550_v3 }
 0x71c   : > { %18553 = vst [vmem:[%s28549_s5 + $0x6c0] sm:$0xff] %v18552_v10  ;;  %18555 = vst [vmem:[%s28549_s5 + $0x6c8] sm:$0xff] %v18554_v61 }
 0x71d   : > { %18557 = vst [vmem:[%s28549_s5 + $0x6e0] sm:$0xff] %v18556_v36  ;;  %18559 = vst [vmem:[%s28549_s5 + $0x6e8] sm:$0xff] %v18558_v7 }
 0x71e   : > { %18561 = vst [vmem:[%s28549_s5 + $0x700] sm:$0xff] %v18560_v38  ;;  %18563 = vst [vmem:[%s28549_s5 + $0x708] sm:$0xff] %v18562_v41 }
 0x71f   : > { %18565 = vst [vmem:[%s28549_s5 + $0x720] sm:$0xff] %v18564_v46  ;;  %18567 = vst [vmem:[%s28549_s5 + $0x728] sm:$0xff] %v18566_v19 }
 0x720   : > { %18569 = vst [vmem:[%s28549_s5 + $0x740] sm:$0xff] %v18568_v50  ;;  %18571 = vst [vmem:[%s28549_s5 + $0x748] sm:$0xff] %v18570_v2 }
 0x721   : > { %18573 = vst [vmem:[%s28549_s5 + $0x760] sm:$0xff] %v18572_v37  ;;  %18575 = vst [vmem:[%s28549_s5 + $0x768] sm:$0xff] %v18574_v18 }
 0x722   : > { %18577 = vst [vmem:[%s28549_s5 + $0x780] sm:$0xff] %v18576_v24  ;;  %18579 = vst [vmem:[%s28549_s5 + $0x788] sm:$0xff] %v18578_v21 }
 0x723   : > { %18581 = vst [vmem:[%s28549_s5 + $0x7a0] sm:$0xff] %v18580_v57  ;;  %18583 = vst [vmem:[%s28549_s5 + $0x7a8] sm:$0xff] %v18582_v9 }
 0x724   : > { %18585 = vst [vmem:[%s28549_s5 + $0x7c0] sm:$0xff] %v18584_v6  ;;  %18587 = vst [vmem:[%s28549_s5 + $0x7c8] sm:$0xff] %v18586_v62 }
 0x725   : > { %18589 = vst [vmem:[%s28549_s5 + $0x7e0] sm:$0xff] %v18588_v29  ;;  %18591 = vst [vmem:[%s28549_s5 + $0x7e8] sm:$0xff] %v18590_v53 }
 0x726 PF: > { %s13_s18 = sadd.s32 1, %s20999_s18   ;;  %s28834_s12 = smov %s20979_s13 }
 0x727   : > { %p10_p10 = scmp.ge.s32.totalorder %s13_s18, 6   ;;  %s28835_s13 = smov %s21087_s27 }
 0x728   : > { %s28836_s14 = smov %s20991_s16  ;;  %s28837_s15 = smov %s20995_s17 }
 0x729   : > { %s28838_s16 = smov %s28841_s19  ;;  %s28839_s17 = smov %s28845_s20 }
 0x72a   :  { %12 = sbr.rel (!%p10_p10) target bundleno = 4 (0x4), region = 113 }

</bundles_post_ra>
